<compile_context>
chip_gen: v7x
topology: tpu7x:2x2x1
jax: 0.10.0
libtpu: 0.0.40
codegen_flags: <defaults>
</compile_context>

<pallas_src>
import functools

import jax
import jax.numpy as jnp
from jax.experimental import pallas as pl
from jax.experimental.pallas import tpu as pltpu


# ---------------------------------------------------------------------------
# Pallas kernel
# ---------------------------------------------------------------------------
def _gru_kernel(T, B, H, HP,
                x_ref,                                    # (T*B, D_in) time-major rows
                wx0_ref, b0_ref, uzr0_ref, uh0_ref, g0_ref, be0_ref,
                wzu1_ref, b1_ref, uh1_ref, g1_ref, be1_ref,
                out_ref):                                 # (B, H)
    f32 = jnp.float32
    inv_H = 1.0 / H
    inv_T = 1.0 / T

    # --- Hoist everything loop-invariant out of the recurrence -------------
    # LayerNorm gammas/betas: row-extract + broadcast ONCE.
    def ln_params(g_ref, be_ref):
        gs = [jnp.broadcast_to(g_ref[i], (B, HP)) for i in range(3)]
        bs = [jnp.broadcast_to(be_ref[i], (B, HP)) for i in range(3)]
        return gs, bs

    (gz0, gr0, gh0), (bz0, br0, bh0) = ln_params(g0_ref, be0_ref)
    (gz1, gr1, gh1), (bz1, br1, bh1) = ln_params(g1_ref, be1_ref)
    b1 = jnp.broadcast_to(b1_ref[...], (B, 3 * HP))

    # Time-invariant layer-0 input projection for ALL timesteps in one fused MXU
    # pass: rows are [xz | xr | xh] with biases folded in, gates lane-padded.
    xp_all = (jnp.dot(x_ref[...], wx0_ref[...], preferred_element_type=f32)
              + b0_ref[...])                              # (T*B, 3*HP)

    def layernorm(v, gamma, beta):
        # Two INDEPENDENT lane reductions (E[v], E[v^2]); var = E[v^2] - m^2.
        # Normalize by the true H: padded lanes are exactly zero by construction,
        # and gamma/beta padding keeps the padded output lanes exactly zero.
        m = jnp.sum(v, axis=-1, keepdims=True) * inv_H
        s2 = jnp.sum(v * v, axis=-1, keepdims=True) * inv_H
        var = s2 - m * m
        return (v - m) * jax.lax.rsqrt(var + 1e-5) * gamma + beta

    def cell0(xp3, h):
        # Layer 0: x-projection precomputed -> 2 MXU pushes on the serial path.
        uzr = jnp.dot(h, uzr0_ref[...], preferred_element_type=f32)   # (B, 2*HP)
        z = jax.nn.sigmoid(layernorm(xp3[:, :HP] + uzr[:, :HP], gz0, bz0))
        r = jax.nn.sigmoid(layernorm(xp3[:, HP:2 * HP] + uzr[:, HP:], gr0, br0))
        uh = jnp.dot(r * h, uh0_ref[...], preferred_element_type=f32)
        h_tilde = jnp.tanh(layernorm(xp3[:, 2 * HP:] + uh, gh0, bh0))
        return (1.0 - z) * h + z * h_tilde

    def cell1(h0, h1):
        # Layer 1: x-projection fused into the recurrent z/r matmul -> one push
        # yields [Wz h0 + Uz h1 | Wr h0 + Ur h1 | Wh h0]; 2 MXU pushes total.
        lhs = jnp.concatenate([h0, h1], axis=-1)                      # (B, 2*HP)
        p = jnp.dot(lhs, wzu1_ref[...], preferred_element_type=f32) + b1
        z = jax.nn.sigmoid(layernorm(p[:, :HP], gz1, bz1))
        r = jax.nn.sigmoid(layernorm(p[:, HP:2 * HP], gr1, br1))
        uh = jnp.dot(r * h1, uh1_ref[...], preferred_element_type=f32)
        h_tilde = jnp.tanh(layernorm(p[:, 2 * HP:] + uh, gh1, bh1))
        return (1.0 - z) * h1 + z * h_tilde

    # Per-timestep x-projection slabs: depend only on xp_all, not on recurrent
    # state, so they stay off the serial critical path of the loop.
    xp_steps = [xp_all[t * B:(t + 1) * B, :] for t in range(T)]

    zeros = jnp.zeros((B, HP), f32)
    h0, h1, acc = zeros, zeros, zeros
    # T=8: full unroll is fine today. TODO(synk): cap unroll at 4-8 once T grows.
    for t in range(T):
        h0 = cell0(xp_steps[t], h0)
        # inter-layer nn.Dropout(0.1) is identity in eval mode
        h1 = cell1(h0, h1)
        acc = acc + h1

    out_ref[...] = (acc * inv_T)[:, :H]                   # mean over time, drop lane padding


# ---------------------------------------------------------------------------
# Host packing: PyTorch layout -> fused, pre-transposed, 128-lane-padded gates
# ---------------------------------------------------------------------------
def _pack_params(layers, H, HP, dtype=jnp.float32):
    p0, p1 = layers

    def padc(w):   # (rows, H) -> (rows, HP): zero-pad gate columns
        return jnp.pad(w.astype(dtype), ((0, 0), (0, HP - H)))

    def padsq(w):  # (H, H) -> (HP, HP)
        return jnp.pad(w.astype(dtype), ((0, HP - H), (0, HP - H)))

    def padv(v):   # (H,) -> (HP,)
        return jnp.pad(v.astype(dtype), (0, HP - H))

    # Layer 0 (input size D_in).
    wx0 = jnp.concatenate([padc(p0["Wz"].T), padc(p0["Wr"].T), padc(p0["Wh"].T)], axis=1)
    b0 = jnp.concatenate([padv(p0["bz"]), padv(p0["br"]), padv(p0["bh"])])[None, :]
    uzr0 = jnp.concatenate([padsq(p0["Uz"].T), padsq(p0["Ur"].T)], axis=1)
    uh0 = padsq(p0["Uh"].T)
    g0 = jnp.stack([padv(p0["g_z"]), padv(p0["g_r"]), padv(p0["g_h"])])
    be0 = jnp.stack([padv(p0["b_z"]), padv(p0["b_r"]), padv(p0["b_h"])])

    # Layer 1 (input size H): stack [W | U(z,r) / 0(h)] so one MXU push does
    # the x-projection and the z/r recurrent matmuls together.
    top = jnp.concatenate([padsq(p1["Wz"].T), padsq(p1["Wr"].T), padsq(p1["Wh"].T)], axis=1)
    bot = jnp.concatenate([padsq(p1["Uz"].T), padsq(p1["Ur"].T),
                           jnp.zeros((HP, HP), dtype)], axis=1)
    wzu1 = jnp.concatenate([top, bot], axis=0)            # (2*HP, 3*HP)
    b1 = jnp.concatenate([padv(p1["bz"]), padv(p1["br"]), padv(p1["bh"])])[None, :]
    uh1 = padsq(p1["Uh"].T)
    g1 = jnp.stack([padv(p1["g_z"]), padv(p1["g_r"]), padv(p1["g_h"])])
    be1 = jnp.stack([padv(p1["b_z"]), padv(p1["b_r"]), padv(p1["b_h"])])

    return (wx0, b0, uzr0, uh0, g0, be0, wzu1, b1, uh1, g1, be1)


def gru_forward(inputs, layers, hidden):
    """inputs: (B, T, D_in) float32 -> (B, H) float32."""
    B, T, D_in = inputs.shape
    H = hidden
    HP = ((H + 127) // 128) * 128                         # pad each gate to a 128-lane stripe

    # time-major, flattened rows: row t*B + b  <->  inputs[b, t, :]
    x_flat = jnp.transpose(inputs, (1, 0, 2)).reshape(T * B, D_in)
    operands = (x_flat,) + _pack_params(layers, H, HP)

    # No grid, no pipelining: every operand lives whole in VMEM exactly once
    # (no useless double-buffering for a single-program kernel).
    in_specs = [pl.BlockSpec(memory_space=pltpu.MemorySpace.VMEM) for _ in operands]
    out_spec = pl.BlockSpec(memory_space=pltpu.MemorySpace.VMEM)

    return pl.pallas_call(
        functools.partial(_gru_kernel, T, B, H, HP),
        out_shape=jax.ShapeDtypeStruct((B, H), jnp.float32),
        in_specs=in_specs,
        out_specs=out_spec,
    )(*operands)


# ---------------------------------------------------------------------------
# Independent pure-JAX reference: mirrors the PyTorch module structure exactly
# (separate per-gate Linears, y = x @ W.T + b, unfused math, unpadded).
# ---------------------------------------------------------------------------
def _ref_layernorm(x, gamma, beta, eps=1e-5):
    mean = jnp.mean(x, axis=-1, keepdims=True)
    var = jnp.mean((x - mean) ** 2, axis=-1, keepdims=True)
    return (x - mean) / jnp.sqrt(var + eps) * gamma + beta


def _ref_cell(x, h, p):
    z = jax.nn.sigmoid(_ref_layernorm(x @ p["Wz"].T + p["bz"] + h @ p["Uz"].T,
                                      p["g_z"], p["b_z"]))
    r = jax.nn.sigmoid(_ref_layernorm(x @ p["Wr"].T + p["br"] + h @ p["Ur"].T,
                                      p["g_r"], p["b_r"]))
    preact = x @ p["Wh"].T + p["bh"] + (r * h) @ p["Uh"].T
    h_tilde = jnp.tanh(_ref_layernorm(preact, p["g_h"], p["b_h"]))
    return (1.0 - z) * h + z * h_tilde


def gru_reference(inputs, layers, hidden):
    B, T, _ = inputs.shape
    hs = [jnp.zeros((B, hidden), jnp.float32) for _ in layers]
    outs = []
    for t in range(T):
        x_t = inputs[:, t, :]
        for li, p in enumerate(layers):
            hs[li] = _ref_cell(x_t, hs[li], p)
            x_t = hs[li]  # dropout(0.1) is identity in eval mode
        outs.append(hs[-1])
    return jnp.mean(jnp.stack(outs, axis=1), axis=1)


# ---------------------------------------------------------------------------
def make_params(key, input_size, hidden):
    """Per-layer params in the original PyTorch layout (Linear stores (out, in))."""
    layers = []
    sizes = [(input_size, hidden), (hidden, hidden)]
    for li, (din, H) in enumerate(sizes):
        k = jax.random.fold_in(key, li)
        ks = jax.random.split(k, 15)
        W = lambda kk, o, i: 0.1 * jax.random.normal(kk, (o, i), jnp.float32)
        b = lambda kk, o: 0.05 * jax.random.normal(kk, (o,), jnp.float32)
        layers.append(dict(
            Wz=W(ks[0], H, din), bz=b(ks[1], H), Uz=W(ks[2], H, H),
            Wr=W(ks[3], H, din), br=b(ks[4], H), Ur=W(ks[5], H, H),
            Wh=W(ks[6], H, din), bh=b(ks[7], H), Uh=W(ks[8], H, H),
            g_z=1.0 + 0.1 * jax.random.normal(ks[9], (H,), jnp.float32),
            b_z=b(ks[10], H),
            g_r=1.0 + 0.1 * jax.random.normal(ks[11], (H,), jnp.float32),
            b_r=b(ks[12], H),
            g_h=1.0 + 0.1 * jax.random.normal(ks[13], (H,), jnp.float32),
            b_h=b(ks[14], H),
        ))
    return layers


if __name__ == "__main__":
    B, T, D_IN, HIDDEN = 2, 8, 16, 32

    key = jax.random.PRNGKey(0)
    k_x, k_p = jax.random.split(key)
    inputs = jax.random.normal(k_x, (B, T, D_IN), jnp.float32)
    layers = make_params(k_p, D_IN, HIDDEN)

    out = gru_forward(inputs, layers, HIDDEN)
    out = jax.block_until_ready(out)

    ref = gru_reference(inputs, layers, HIDDEN)
    assert out.shape == (B, HIDDEN)
    assert jnp.allclose(out, ref, rtol=2e-3, atol=2e-3), \
        f"mismatch: max abs diff {jnp.max(jnp.abs(out - ref))}"

    print("KERNEL_OK")
</pallas_src>

<mosaic_0001>
module attributes {stable_mosaic.version = 11 : i64} {
  func.func @_gru_kernel(%arg0: memref<16x16xf32, #tpu.memory_space<vmem>>, %arg1: memref<16x384xf32, #tpu.memory_space<vmem>>, %arg2: memref<1x384xf32, #tpu.memory_space<vmem>>, %arg3: memref<128x256xf32, #tpu.memory_space<vmem>>, %arg4: memref<128x128xf32, #tpu.memory_space<vmem>>, %arg5: memref<3x128xf32, #tpu.memory_space<vmem>>, %arg6: memref<3x128xf32, #tpu.memory_space<vmem>>, %arg7: memref<256x384xf32, #tpu.memory_space<vmem>>, %arg8: memref<1x384xf32, #tpu.memory_space<vmem>>, %arg9: memref<128x128xf32, #tpu.memory_space<vmem>>, %arg10: memref<3x128xf32, #tpu.memory_space<vmem>>, %arg11: memref<3x128xf32, #tpu.memory_space<vmem>>, %arg12: memref<2x32xf32, #tpu.memory_space<vmem>>) attributes {dimension_semantics = [], scalar_prefetch = 0 : i64, scratch_operands = 0 : i64, tpu.core_type = #tpu.core_type<tc>} {
    %c0 = arith.constant 0 : index
    %c0_0 = arith.constant 0 : index
    %0 = vector.load %arg5[%c0, %c0_0] : memref<3x128xf32, #tpu.memory_space<vmem>>, vector<1x128xf32>
    %1 = vector.shape_cast %0 : vector<1x128xf32> to vector<128xf32>
    %2 = vector.shape_cast %1 : vector<128xf32> to vector<1x128xf32>
    %3 = vector.broadcast %2 : vector<1x128xf32> to vector<2x128xf32>
    %c1 = arith.constant 1 : index
    %c0_1 = arith.constant 0 : index
    %4 = vector.load %arg5[%c1, %c0_1] : memref<3x128xf32, #tpu.memory_space<vmem>>, vector<1x128xf32>
    %5 = vector.shape_cast %4 : vector<1x128xf32> to vector<128xf32>
    %6 = vector.shape_cast %5 : vector<128xf32> to vector<1x128xf32>
    %7 = vector.broadcast %6 : vector<1x128xf32> to vector<2x128xf32>
    %c2 = arith.constant 2 : index
    %c0_2 = arith.constant 0 : index
    %8 = vector.load %arg5[%c2, %c0_2] : memref<3x128xf32, #tpu.memory_space<vmem>>, vector<1x128xf32>
    %9 = vector.shape_cast %8 : vector<1x128xf32> to vector<128xf32>
    %10 = vector.shape_cast %9 : vector<128xf32> to vector<1x128xf32>
    %11 = vector.broadcast %10 : vector<1x128xf32> to vector<2x128xf32>
    %c0_3 = arith.constant 0 : index
    %c0_4 = arith.constant 0 : index
    %12 = vector.load %arg6[%c0_3, %c0_4] : memref<3x128xf32, #tpu.memory_space<vmem>>, vector<1x128xf32>
    %13 = vector.shape_cast %12 : vector<1x128xf32> to vector<128xf32>
    %14 = vector.shape_cast %13 : vector<128xf32> to vector<1x128xf32>
    %15 = vector.broadcast %14 : vector<1x128xf32> to vector<2x128xf32>
    %c1_5 = arith.constant 1 : index
    %c0_6 = arith.constant 0 : index
    %16 = vector.load %arg6[%c1_5, %c0_6] : memref<3x128xf32, #tpu.memory_space<vmem>>, vector<1x128xf32>
    %17 = vector.shape_cast %16 : vector<1x128xf32> to vector<128xf32>
    %18 = vector.shape_cast %17 : vector<128xf32> to vector<1x128xf32>
    %19 = vector.broadcast %18 : vector<1x128xf32> to vector<2x128xf32>
    %c2_7 = arith.constant 2 : index
    %c0_8 = arith.constant 0 : index
    %20 = vector.load %arg6[%c2_7, %c0_8] : memref<3x128xf32, #tpu.memory_space<vmem>>, vector<1x128xf32>
    %21 = vector.shape_cast %20 : vector<1x128xf32> to vector<128xf32>
    %22 = vector.shape_cast %21 : vector<128xf32> to vector<1x128xf32>
    %23 = vector.broadcast %22 : vector<1x128xf32> to vector<2x128xf32>
    %c0_9 = arith.constant 0 : index
    %c0_10 = arith.constant 0 : index
    %24 = vector.load %arg10[%c0_9, %c0_10] : memref<3x128xf32, #tpu.memory_space<vmem>>, vector<1x128xf32>
    %25 = vector.shape_cast %24 : vector<1x128xf32> to vector<128xf32>
    %26 = vector.shape_cast %25 : vector<128xf32> to vector<1x128xf32>
    %27 = vector.broadcast %26 : vector<1x128xf32> to vector<2x128xf32>
    %c1_11 = arith.constant 1 : index
    %c0_12 = arith.constant 0 : index
    %28 = vector.load %arg10[%c1_11, %c0_12] : memref<3x128xf32, #tpu.memory_space<vmem>>, vector<1x128xf32>
    %29 = vector.shape_cast %28 : vector<1x128xf32> to vector<128xf32>
    %30 = vector.shape_cast %29 : vector<128xf32> to vector<1x128xf32>
    %31 = vector.broadcast %30 : vector<1x128xf32> to vector<2x128xf32>
    %c2_13 = arith.constant 2 : index
    %c0_14 = arith.constant 0 : index
    %32 = vector.load %arg10[%c2_13, %c0_14] : memref<3x128xf32, #tpu.memory_space<vmem>>, vector<1x128xf32>
    %33 = vector.shape_cast %32 : vector<1x128xf32> to vector<128xf32>
    %34 = vector.shape_cast %33 : vector<128xf32> to vector<1x128xf32>
    %35 = vector.broadcast %34 : vector<1x128xf32> to vector<2x128xf32>
    %c0_15 = arith.constant 0 : index
    %c0_16 = arith.constant 0 : index
    %36 = vector.load %arg11[%c0_15, %c0_16] : memref<3x128xf32, #tpu.memory_space<vmem>>, vector<1x128xf32>
    %37 = vector.shape_cast %36 : vector<1x128xf32> to vector<128xf32>
    %38 = vector.shape_cast %37 : vector<128xf32> to vector<1x128xf32>
    %39 = vector.broadcast %38 : vector<1x128xf32> to vector<2x128xf32>
    %c1_17 = arith.constant 1 : index
    %c0_18 = arith.constant 0 : index
    %40 = vector.load %arg11[%c1_17, %c0_18] : memref<3x128xf32, #tpu.memory_space<vmem>>, vector<1x128xf32>
    %41 = vector.shape_cast %40 : vector<1x128xf32> to vector<128xf32>
    %42 = vector.shape_cast %41 : vector<128xf32> to vector<1x128xf32>
    %43 = vector.broadcast %42 : vector<1x128xf32> to vector<2x128xf32>
    %c2_19 = arith.constant 2 : index
    %c0_20 = arith.constant 0 : index
    %44 = vector.load %arg11[%c2_19, %c0_20] : memref<3x128xf32, #tpu.memory_space<vmem>>, vector<1x128xf32>
    %45 = vector.shape_cast %44 : vector<1x128xf32> to vector<128xf32>
    %46 = vector.shape_cast %45 : vector<128xf32> to vector<1x128xf32>
    %47 = vector.broadcast %46 : vector<1x128xf32> to vector<2x128xf32>
    %c0_21 = arith.constant 0 : index
    %c0_22 = arith.constant 0 : index
    %48 = vector.load %arg8[%c0_21, %c0_22] : memref<1x384xf32, #tpu.memory_space<vmem>>, vector<1x384xf32>
    %49 = vector.shape_cast %48 : vector<1x384xf32> to vector<1x384xf32>
    %50 = vector.broadcast %49 : vector<1x384xf32> to vector<2x384xf32>
    %c0_23 = arith.constant 0 : index
    %c0_24 = arith.constant 0 : index
    %51 = vector.load %arg0[%c0_23, %c0_24] : memref<16x16xf32, #tpu.memory_space<vmem>>, vector<16x16xf32>
    %c0_25 = arith.constant 0 : index
    %c0_26 = arith.constant 0 : index
    %52 = vector.load %arg1[%c0_25, %c0_26] : memref<16x384xf32, #tpu.memory_space<vmem>>, vector<16x384xf32>
    %cst = arith.constant dense<0.000000e+00> : vector<16x384xf32>
    %53 = tpu.matmul %51, %52, %cst {dimension_numbers = #tpu.dot_dimension_numbers<[1], [0], [0], [1], [0, 0, 1, 1], [], []>} : vector<16x16xf32>, vector<16x384xf32>, vector<16x384xf32> -> vector<16x384xf32>
    %c0_27 = arith.constant 0 : index
    %c0_28 = arith.constant 0 : index
    %54 = vector.load %arg2[%c0_27, %c0_28] : memref<1x384xf32, #tpu.memory_space<vmem>>, vector<1x384xf32>
    %55 = vector.broadcast %54 : vector<1x384xf32> to vector<16x384xf32>
    %56 = arith.addf %53, %55 : vector<16x384xf32>
    %57 = vector.extract_strided_slice %56 {offsets = [0, 0], sizes = [2, 384], strides = [1, 1]} : vector<16x384xf32> to vector<2x384xf32>
    %58 = vector.extract_strided_slice %56 {offsets = [2, 0], sizes = [2, 384], strides = [1, 1]} : vector<16x384xf32> to vector<2x384xf32>
    %59 = vector.extract_strided_slice %56 {offsets = [4, 0], sizes = [2, 384], strides = [1, 1]} : vector<16x384xf32> to vector<2x384xf32>
    %60 = vector.extract_strided_slice %56 {offsets = [6, 0], sizes = [2, 384], strides = [1, 1]} : vector<16x384xf32> to vector<2x384xf32>
    %61 = vector.extract_strided_slice %56 {offsets = [8, 0], sizes = [2, 384], strides = [1, 1]} : vector<16x384xf32> to vector<2x384xf32>
    %62 = vector.extract_strided_slice %56 {offsets = [10, 0], sizes = [2, 384], strides = [1, 1]} : vector<16x384xf32> to vector<2x384xf32>
    %63 = vector.extract_strided_slice %56 {offsets = [12, 0], sizes = [2, 384], strides = [1, 1]} : vector<16x384xf32> to vector<2x384xf32>
    %64 = vector.extract_strided_slice %56 {offsets = [14, 0], sizes = [2, 384], strides = [1, 1]} : vector<16x384xf32> to vector<2x384xf32>
    %cst_29 = arith.constant 0.000000e+00 : f32
    %65 = vector.broadcast %cst_29 : f32 to vector<2x128xf32>
    %c0_30 = arith.constant 0 : index
    %c0_31 = arith.constant 0 : index
    %66 = vector.load %arg3[%c0_30, %c0_31] : memref<128x256xf32, #tpu.memory_space<vmem>>, vector<128x256xf32>
    %cst_32 = arith.constant dense<0.000000e+00> : vector<2x256xf32>
    %67 = tpu.matmul %65, %66, %cst_32 {dimension_numbers = #tpu.dot_dimension_numbers<[1], [0], [0], [1], [0, 0, 1, 1], [], []>} : vector<2x128xf32>, vector<128x256xf32>, vector<2x256xf32> -> vector<2x256xf32>
    %68 = vector.extract_strided_slice %57 {offsets = [0, 0], sizes = [2, 128], strides = [1, 1]} : vector<2x384xf32> to vector<2x128xf32>
    %69 = vector.extract_strided_slice %67 {offsets = [0, 0], sizes = [2, 128], strides = [1, 1]} : vector<2x256xf32> to vector<2x128xf32>
    %70 = arith.addf %68, %69 : vector<2x128xf32>
    %cst_33 = arith.constant dense<0.000000e+00> : vector<2xf32>
    %71 = vector.multi_reduction <add>, %70, %cst_33 [1] : vector<2x128xf32> to vector<2xf32>
    %72 = vector.shape_cast %71 : vector<2xf32> to vector<2x1xf32>
    %cst_34 = arith.constant 3.125000e-02 : f32
    %73 = vector.broadcast %cst_34 : f32 to vector<2x1xf32>
    %74 = arith.mulf %72, %73 : vector<2x1xf32>
    %75 = arith.mulf %70, %70 : vector<2x128xf32>
    %cst_35 = arith.constant dense<0.000000e+00> : vector<2xf32>
    %76 = vector.multi_reduction <add>, %75, %cst_35 [1] : vector<2x128xf32> to vector<2xf32>
    %77 = vector.shape_cast %76 : vector<2xf32> to vector<2x1xf32>
    %cst_36 = arith.constant 3.125000e-02 : f32
    %78 = vector.broadcast %cst_36 : f32 to vector<2x1xf32>
    %79 = arith.mulf %77, %78 : vector<2x1xf32>
    %80 = arith.mulf %74, %74 : vector<2x1xf32>
    %81 = arith.subf %79, %80 : vector<2x1xf32>
    %82 = vector.broadcast %74 : vector<2x1xf32> to vector<2x128xf32>
    %83 = arith.subf %70, %82 : vector<2x128xf32>
    %cst_37 = arith.constant 9.99999974E-6 : f32
    %84 = vector.broadcast %cst_37 : f32 to vector<2x1xf32>
    %85 = arith.addf %81, %84 : vector<2x1xf32>
    %86 = math.rsqrt %85 : vector<2x1xf32>
    %87 = vector.broadcast %86 : vector<2x1xf32> to vector<2x128xf32>
    %88 = arith.mulf %83, %87 : vector<2x128xf32>
    %89 = arith.mulf %88, %3 : vector<2x128xf32>
    %90 = arith.addf %89, %15 : vector<2x128xf32>
    %91 = arith.negf %90 : vector<2x128xf32>
    %92 = math.exp %91 : vector<2x128xf32>
    %cst_38 = arith.constant 1.000000e+00 : f32
    %93 = vector.broadcast %cst_38 : f32 to vector<2x128xf32>
    %94 = arith.addf %93, %92 : vector<2x128xf32>
    %95 = arith.divf %93, %94 : vector<2x128xf32>
    %96 = vector.extract_strided_slice %57 {offsets = [0, 128], sizes = [2, 128], strides = [1, 1]} : vector<2x384xf32> to vector<2x128xf32>
    %97 = vector.extract_strided_slice %67 {offsets = [0, 128], sizes = [2, 128], strides = [1, 1]} : vector<2x256xf32> to vector<2x128xf32>
    %98 = arith.addf %96, %97 : vector<2x128xf32>
    %cst_39 = arith.constant dense<0.000000e+00> : vector<2xf32>
    %99 = vector.multi_reduction <add>, %98, %cst_39 [1] : vector<2x128xf32> to vector<2xf32>
    %100 = vector.shape_cast %99 : vector<2xf32> to vector<2x1xf32>
    %cst_40 = arith.constant 3.125000e-02 : f32
    %101 = vector.broadcast %cst_40 : f32 to vector<2x1xf32>
    %102 = arith.mulf %100, %101 : vector<2x1xf32>
    %103 = arith.mulf %98, %98 : vector<2x128xf32>
    %cst_41 = arith.constant dense<0.000000e+00> : vector<2xf32>
    %104 = vector.multi_reduction <add>, %103, %cst_41 [1] : vector<2x128xf32> to vector<2xf32>
    %105 = vector.shape_cast %104 : vector<2xf32> to vector<2x1xf32>
    %cst_42 = arith.constant 3.125000e-02 : f32
    %106 = vector.broadcast %cst_42 : f32 to vector<2x1xf32>
    %107 = arith.mulf %105, %106 : vector<2x1xf32>
    %108 = arith.mulf %102, %102 : vector<2x1xf32>
    %109 = arith.subf %107, %108 : vector<2x1xf32>
    %110 = vector.broadcast %102 : vector<2x1xf32> to vector<2x128xf32>
    %111 = arith.subf %98, %110 : vector<2x128xf32>
    %cst_43 = arith.constant 9.99999974E-6 : f32
    %112 = vector.broadcast %cst_43 : f32 to vector<2x1xf32>
    %113 = arith.addf %109, %112 : vector<2x1xf32>
    %114 = math.rsqrt %113 : vector<2x1xf32>
    %115 = vector.broadcast %114 : vector<2x1xf32> to vector<2x128xf32>
    %116 = arith.mulf %111, %115 : vector<2x128xf32>
    %117 = arith.mulf %116, %7 : vector<2x128xf32>
    %118 = arith.addf %117, %19 : vector<2x128xf32>
    %119 = arith.negf %118 : vector<2x128xf32>
    %120 = math.exp %119 : vector<2x128xf32>
    %cst_44 = arith.constant 1.000000e+00 : f32
    %121 = vector.broadcast %cst_44 : f32 to vector<2x128xf32>
    %122 = arith.addf %121, %120 : vector<2x128xf32>
    %123 = arith.divf %121, %122 : vector<2x128xf32>
    %124 = arith.mulf %123, %65 : vector<2x128xf32>
    %c0_45 = arith.constant 0 : index
    %c0_46 = arith.constant 0 : index
    %125 = vector.load %arg4[%c0_45, %c0_46] : memref<128x128xf32, #tpu.memory_space<vmem>>, vector<128x128xf32>
    %cst_47 = arith.constant dense<0.000000e+00> : vector<2x128xf32>
    %126 = tpu.matmul %124, %125, %cst_47 {dimension_numbers = #tpu.dot_dimension_numbers<[1], [0], [0], [1], [0, 0, 1, 1], [], []>} : vector<2x128xf32>, vector<128x128xf32>, vector<2x128xf32> -> vector<2x128xf32>
    %127 = vector.extract_strided_slice %57 {offsets = [0, 256], sizes = [2, 128], strides = [1, 1]} : vector<2x384xf32> to vector<2x128xf32>
    %128 = arith.addf %127, %126 : vector<2x128xf32>
    %cst_48 = arith.constant dense<0.000000e+00> : vector<2xf32>
    %129 = vector.multi_reduction <add>, %128, %cst_48 [1] : vector<2x128xf32> to vector<2xf32>
    %130 = vector.shape_cast %129 : vector<2xf32> to vector<2x1xf32>
    %cst_49 = arith.constant 3.125000e-02 : f32
    %131 = vector.broadcast %cst_49 : f32 to vector<2x1xf32>
    %132 = arith.mulf %130, %131 : vector<2x1xf32>
    %133 = arith.mulf %128, %128 : vector<2x128xf32>
    %cst_50 = arith.constant dense<0.000000e+00> : vector<2xf32>
    %134 = vector.multi_reduction <add>, %133, %cst_50 [1] : vector<2x128xf32> to vector<2xf32>
    %135 = vector.shape_cast %134 : vector<2xf32> to vector<2x1xf32>
    %cst_51 = arith.constant 3.125000e-02 : f32
    %136 = vector.broadcast %cst_51 : f32 to vector<2x1xf32>
    %137 = arith.mulf %135, %136 : vector<2x1xf32>
    %138 = arith.mulf %132, %132 : vector<2x1xf32>
    %139 = arith.subf %137, %138 : vector<2x1xf32>
    %140 = vector.broadcast %132 : vector<2x1xf32> to vector<2x128xf32>
    %141 = arith.subf %128, %140 : vector<2x128xf32>
    %cst_52 = arith.constant 9.99999974E-6 : f32
    %142 = vector.broadcast %cst_52 : f32 to vector<2x1xf32>
    %143 = arith.addf %139, %142 : vector<2x1xf32>
    %144 = math.rsqrt %143 : vector<2x1xf32>
    %145 = vector.broadcast %144 : vector<2x1xf32> to vector<2x128xf32>
    %146 = arith.mulf %141, %145 : vector<2x128xf32>
    %147 = arith.mulf %146, %11 : vector<2x128xf32>
    %148 = arith.addf %147, %23 : vector<2x128xf32>
    %149 = math.tanh %148 : vector<2x128xf32>
    %cst_53 = arith.constant 1.000000e+00 : f32
    %150 = vector.broadcast %cst_53 : f32 to vector<2x128xf32>
    %151 = arith.subf %150, %95 : vector<2x128xf32>
    %152 = arith.mulf %151, %65 : vector<2x128xf32>
    %153 = arith.mulf %95, %149 : vector<2x128xf32>
    %154 = arith.addf %152, %153 : vector<2x128xf32>
    %155 = tpu.concatenate %154, %65 in 1 : vector<2x128xf32>, vector<2x128xf32> -> vector<2x256xf32>
    %c0_54 = arith.constant 0 : index
    %c0_55 = arith.constant 0 : index
    %156 = vector.load %arg7[%c0_54, %c0_55] : memref<256x384xf32, #tpu.memory_space<vmem>>, vector<256x384xf32>
    %cst_56 = arith.constant dense<0.000000e+00> : vector<2x384xf32>
    %157 = tpu.matmul %155, %156, %cst_56 {dimension_numbers = #tpu.dot_dimension_numbers<[1], [0], [0], [1], [0, 0, 1, 1], [], []>} : vector<2x256xf32>, vector<256x384xf32>, vector<2x384xf32> -> vector<2x384xf32>
    %158 = arith.addf %157, %50 : vector<2x384xf32>
    %159 = vector.extract_strided_slice %158 {offsets = [0, 0], sizes = [2, 128], strides = [1, 1]} : vector<2x384xf32> to vector<2x128xf32>
    %cst_57 = arith.constant dense<0.000000e+00> : vector<2xf32>
    %160 = vector.multi_reduction <add>, %159, %cst_57 [1] : vector<2x128xf32> to vector<2xf32>
    %161 = vector.shape_cast %160 : vector<2xf32> to vector<2x1xf32>
    %cst_58 = arith.constant 3.125000e-02 : f32
    %162 = vector.broadcast %cst_58 : f32 to vector<2x1xf32>
    %163 = arith.mulf %161, %162 : vector<2x1xf32>
    %164 = arith.mulf %159, %159 : vector<2x128xf32>
    %cst_59 = arith.constant dense<0.000000e+00> : vector<2xf32>
    %165 = vector.multi_reduction <add>, %164, %cst_59 [1] : vector<2x128xf32> to vector<2xf32>
    %166 = vector.shape_cast %165 : vector<2xf32> to vector<2x1xf32>
    %cst_60 = arith.constant 3.125000e-02 : f32
    %167 = vector.broadcast %cst_60 : f32 to vector<2x1xf32>
    %168 = arith.mulf %166, %167 : vector<2x1xf32>
    %169 = arith.mulf %163, %163 : vector<2x1xf32>
    %170 = arith.subf %168, %169 : vector<2x1xf32>
    %171 = vector.broadcast %163 : vector<2x1xf32> to vector<2x128xf32>
    %172 = arith.subf %159, %171 : vector<2x128xf32>
    %cst_61 = arith.constant 9.99999974E-6 : f32
    %173 = vector.broadcast %cst_61 : f32 to vector<2x1xf32>
    %174 = arith.addf %170, %173 : vector<2x1xf32>
    %175 = math.rsqrt %174 : vector<2x1xf32>
    %176 = vector.broadcast %175 : vector<2x1xf32> to vector<2x128xf32>
    %177 = arith.mulf %172, %176 : vector<2x128xf32>
    %178 = arith.mulf %177, %27 : vector<2x128xf32>
    %179 = arith.addf %178, %39 : vector<2x128xf32>
    %180 = arith.negf %179 : vector<2x128xf32>
    %181 = math.exp %180 : vector<2x128xf32>
    %cst_62 = arith.constant 1.000000e+00 : f32
    %182 = vector.broadcast %cst_62 : f32 to vector<2x128xf32>
    %183 = arith.addf %182, %181 : vector<2x128xf32>
    %184 = arith.divf %182, %183 : vector<2x128xf32>
    %185 = vector.extract_strided_slice %158 {offsets = [0, 128], sizes = [2, 128], strides = [1, 1]} : vector<2x384xf32> to vector<2x128xf32>
    %cst_63 = arith.constant dense<0.000000e+00> : vector<2xf32>
    %186 = vector.multi_reduction <add>, %185, %cst_63 [1] : vector<2x128xf32> to vector<2xf32>
    %187 = vector.shape_cast %186 : vector<2xf32> to vector<2x1xf32>
    %cst_64 = arith.constant 3.125000e-02 : f32
    %188 = vector.broadcast %cst_64 : f32 to vector<2x1xf32>
    %189 = arith.mulf %187, %188 : vector<2x1xf32>
    %190 = arith.mulf %185, %185 : vector<2x128xf32>
    %cst_65 = arith.constant dense<0.000000e+00> : vector<2xf32>
    %191 = vector.multi_reduction <add>, %190, %cst_65 [1] : vector<2x128xf32> to vector<2xf32>
    %192 = vector.shape_cast %191 : vector<2xf32> to vector<2x1xf32>
    %cst_66 = arith.constant 3.125000e-02 : f32
    %193 = vector.broadcast %cst_66 : f32 to vector<2x1xf32>
    %194 = arith.mulf %192, %193 : vector<2x1xf32>
    %195 = arith.mulf %189, %189 : vector<2x1xf32>
    %196 = arith.subf %194, %195 : vector<2x1xf32>
    %197 = vector.broadcast %189 : vector<2x1xf32> to vector<2x128xf32>
    %198 = arith.subf %185, %197 : vector<2x128xf32>
    %cst_67 = arith.constant 9.99999974E-6 : f32
    %199 = vector.broadcast %cst_67 : f32 to vector<2x1xf32>
    %200 = arith.addf %196, %199 : vector<2x1xf32>
    %201 = math.rsqrt %200 : vector<2x1xf32>
    %202 = vector.broadcast %201 : vector<2x1xf32> to vector<2x128xf32>
    %203 = arith.mulf %198, %202 : vector<2x128xf32>
    %204 = arith.mulf %203, %31 : vector<2x128xf32>
    %205 = arith.addf %204, %43 : vector<2x128xf32>
    %206 = arith.negf %205 : vector<2x128xf32>
    %207 = math.exp %206 : vector<2x128xf32>
    %cst_68 = arith.constant 1.000000e+00 : f32
    %208 = vector.broadcast %cst_68 : f32 to vector<2x128xf32>
    %209 = arith.addf %208, %207 : vector<2x128xf32>
    %210 = arith.divf %208, %209 : vector<2x128xf32>
    %211 = arith.mulf %210, %65 : vector<2x128xf32>
    %c0_69 = arith.constant 0 : index
    %c0_70 = arith.constant 0 : index
    %212 = vector.load %arg9[%c0_69, %c0_70] : memref<128x128xf32, #tpu.memory_space<vmem>>, vector<128x128xf32>
    %cst_71 = arith.constant dense<0.000000e+00> : vector<2x128xf32>
    %213 = tpu.matmul %211, %212, %cst_71 {dimension_numbers = #tpu.dot_dimension_numbers<[1], [0], [0], [1], [0, 0, 1, 1], [], []>} : vector<2x128xf32>, vector<128x128xf32>, vector<2x128xf32> -> vector<2x128xf32>
    %214 = vector.extract_strided_slice %158 {offsets = [0, 256], sizes = [2, 128], strides = [1, 1]} : vector<2x384xf32> to vector<2x128xf32>
    %215 = arith.addf %214, %213 : vector<2x128xf32>
    %cst_72 = arith.constant dense<0.000000e+00> : vector<2xf32>
    %216 = vector.multi_reduction <add>, %215, %cst_72 [1] : vector<2x128xf32> to vector<2xf32>
    %217 = vector.shape_cast %216 : vector<2xf32> to vector<2x1xf32>
    %cst_73 = arith.constant 3.125000e-02 : f32
    %218 = vector.broadcast %cst_73 : f32 to vector<2x1xf32>
    %219 = arith.mulf %217, %218 : vector<2x1xf32>
    %220 = arith.mulf %215, %215 : vector<2x128xf32>
    %cst_74 = arith.constant dense<0.000000e+00> : vector<2xf32>
    %221 = vector.multi_reduction <add>, %220, %cst_74 [1] : vector<2x128xf32> to vector<2xf32>
    %222 = vector.shape_cast %221 : vector<2xf32> to vector<2x1xf32>
    %cst_75 = arith.constant 3.125000e-02 : f32
    %223 = vector.broadcast %cst_75 : f32 to vector<2x1xf32>
    %224 = arith.mulf %222, %223 : vector<2x1xf32>
    %225 = arith.mulf %219, %219 : vector<2x1xf32>
    %226 = arith.subf %224, %225 : vector<2x1xf32>
    %227 = vector.broadcast %219 : vector<2x1xf32> to vector<2x128xf32>
    %228 = arith.subf %215, %227 : vector<2x128xf32>
    %cst_76 = arith.constant 9.99999974E-6 : f32
    %229 = vector.broadcast %cst_76 : f32 to vector<2x1xf32>
    %230 = arith.addf %226, %229 : vector<2x1xf32>
    %231 = math.rsqrt %230 : vector<2x1xf32>
    %232 = vector.broadcast %231 : vector<2x1xf32> to vector<2x128xf32>
    %233 = arith.mulf %228, %232 : vector<2x128xf32>
    %234 = arith.mulf %233, %35 : vector<2x128xf32>
    %235 = arith.addf %234, %47 : vector<2x128xf32>
    %236 = math.tanh %235 : vector<2x128xf32>
    %cst_77 = arith.constant 1.000000e+00 : f32
    %237 = vector.broadcast %cst_77 : f32 to vector<2x128xf32>
    %238 = arith.subf %237, %184 : vector<2x128xf32>
    %239 = arith.mulf %238, %65 : vector<2x128xf32>
    %240 = arith.mulf %184, %236 : vector<2x128xf32>
    %241 = arith.addf %239, %240 : vector<2x128xf32>
    %242 = arith.addf %65, %241 : vector<2x128xf32>
    %c0_78 = arith.constant 0 : index
    %c0_79 = arith.constant 0 : index
    %243 = vector.load %arg3[%c0_78, %c0_79] : memref<128x256xf32, #tpu.memory_space<vmem>>, vector<128x256xf32>
    %cst_80 = arith.constant dense<0.000000e+00> : vector<2x256xf32>
    %244 = tpu.matmul %154, %243, %cst_80 {dimension_numbers = #tpu.dot_dimension_numbers<[1], [0], [0], [1], [0, 0, 1, 1], [], []>} : vector<2x128xf32>, vector<128x256xf32>, vector<2x256xf32> -> vector<2x256xf32>
    %245 = vector.extract_strided_slice %58 {offsets = [0, 0], sizes = [2, 128], strides = [1, 1]} : vector<2x384xf32> to vector<2x128xf32>
    %246 = vector.extract_strided_slice %244 {offsets = [0, 0], sizes = [2, 128], strides = [1, 1]} : vector<2x256xf32> to vector<2x128xf32>
    %247 = arith.addf %245, %246 : vector<2x128xf32>
    %cst_81 = arith.constant dense<0.000000e+00> : vector<2xf32>
    %248 = vector.multi_reduction <add>, %247, %cst_81 [1] : vector<2x128xf32> to vector<2xf32>
    %249 = vector.shape_cast %248 : vector<2xf32> to vector<2x1xf32>
    %cst_82 = arith.constant 3.125000e-02 : f32
    %250 = vector.broadcast %cst_82 : f32 to vector<2x1xf32>
    %251 = arith.mulf %249, %250 : vector<2x1xf32>
    %252 = arith.mulf %247, %247 : vector<2x128xf32>
    %cst_83 = arith.constant dense<0.000000e+00> : vector<2xf32>
    %253 = vector.multi_reduction <add>, %252, %cst_83 [1] : vector<2x128xf32> to vector<2xf32>
    %254 = vector.shape_cast %253 : vector<2xf32> to vector<2x1xf32>
    %cst_84 = arith.constant 3.125000e-02 : f32
    %255 = vector.broadcast %cst_84 : f32 to vector<2x1xf32>
    %256 = arith.mulf %254, %255 : vector<2x1xf32>
    %257 = arith.mulf %251, %251 : vector<2x1xf32>
    %258 = arith.subf %256, %257 : vector<2x1xf32>
    %259 = vector.broadcast %251 : vector<2x1xf32> to vector<2x128xf32>
    %260 = arith.subf %247, %259 : vector<2x128xf32>
    %cst_85 = arith.constant 9.99999974E-6 : f32
    %261 = vector.broadcast %cst_85 : f32 to vector<2x1xf32>
    %262 = arith.addf %258, %261 : vector<2x1xf32>
    %263 = math.rsqrt %262 : vector<2x1xf32>
    %264 = vector.broadcast %263 : vector<2x1xf32> to vector<2x128xf32>
    %265 = arith.mulf %260, %264 : vector<2x128xf32>
    %266 = arith.mulf %265, %3 : vector<2x128xf32>
    %267 = arith.addf %266, %15 : vector<2x128xf32>
    %268 = arith.negf %267 : vector<2x128xf32>
    %269 = math.exp %268 : vector<2x128xf32>
    %cst_86 = arith.constant 1.000000e+00 : f32
    %270 = vector.broadcast %cst_86 : f32 to vector<2x128xf32>
    %271 = arith.addf %270, %269 : vector<2x128xf32>
    %272 = arith.divf %270, %271 : vector<2x128xf32>
    %273 = vector.extract_strided_slice %58 {offsets = [0, 128], sizes = [2, 128], strides = [1, 1]} : vector<2x384xf32> to vector<2x128xf32>
    %274 = vector.extract_strided_slice %244 {offsets = [0, 128], sizes = [2, 128], strides = [1, 1]} : vector<2x256xf32> to vector<2x128xf32>
    %275 = arith.addf %273, %274 : vector<2x128xf32>
    %cst_87 = arith.constant dense<0.000000e+00> : vector<2xf32>
    %276 = vector.multi_reduction <add>, %275, %cst_87 [1] : vector<2x128xf32> to vector<2xf32>
    %277 = vector.shape_cast %276 : vector<2xf32> to vector<2x1xf32>
    %cst_88 = arith.constant 3.125000e-02 : f32
    %278 = vector.broadcast %cst_88 : f32 to vector<2x1xf32>
    %279 = arith.mulf %277, %278 : vector<2x1xf32>
    %280 = arith.mulf %275, %275 : vector<2x128xf32>
    %cst_89 = arith.constant dense<0.000000e+00> : vector<2xf32>
    %281 = vector.multi_reduction <add>, %280, %cst_89 [1] : vector<2x128xf32> to vector<2xf32>
    %282 = vector.shape_cast %281 : vector<2xf32> to vector<2x1xf32>
    %cst_90 = arith.constant 3.125000e-02 : f32
    %283 = vector.broadcast %cst_90 : f32 to vector<2x1xf32>
    %284 = arith.mulf %282, %283 : vector<2x1xf32>
    %285 = arith.mulf %279, %279 : vector<2x1xf32>
    %286 = arith.subf %284, %285 : vector<2x1xf32>
    %287 = vector.broadcast %279 : vector<2x1xf32> to vector<2x128xf32>
    %288 = arith.subf %275, %287 : vector<2x128xf32>
    %cst_91 = arith.constant 9.99999974E-6 : f32
    %289 = vector.broadcast %cst_91 : f32 to vector<2x1xf32>
    %290 = arith.addf %286, %289 : vector<2x1xf32>
    %291 = math.rsqrt %290 : vector<2x1xf32>
    %292 = vector.broadcast %291 : vector<2x1xf32> to vector<2x128xf32>
    %293 = arith.mulf %288, %292 : vector<2x128xf32>
    %294 = arith.mulf %293, %7 : vector<2x128xf32>
    %295 = arith.addf %294, %19 : vector<2x128xf32>
    %296 = arith.negf %295 : vector<2x128xf32>
    %297 = math.exp %296 : vector<2x128xf32>
    %cst_92 = arith.constant 1.000000e+00 : f32
    %298 = vector.broadcast %cst_92 : f32 to vector<2x128xf32>
    %299 = arith.addf %298, %297 : vector<2x128xf32>
    %300 = arith.divf %298, %299 : vector<2x128xf32>
    %301 = arith.mulf %300, %154 : vector<2x128xf32>
    %c0_93 = arith.constant 0 : index
    %c0_94 = arith.constant 0 : index
    %302 = vector.load %arg4[%c0_93, %c0_94] : memref<128x128xf32, #tpu.memory_space<vmem>>, vector<128x128xf32>
    %cst_95 = arith.constant dense<0.000000e+00> : vector<2x128xf32>
    %303 = tpu.matmul %301, %302, %cst_95 {dimension_numbers = #tpu.dot_dimension_numbers<[1], [0], [0], [1], [0, 0, 1, 1], [], []>} : vector<2x128xf32>, vector<128x128xf32>, vector<2x128xf32> -> vector<2x128xf32>
    %304 = vector.extract_strided_slice %58 {offsets = [0, 256], sizes = [2, 128], strides = [1, 1]} : vector<2x384xf32> to vector<2x128xf32>
    %305 = arith.addf %304, %303 : vector<2x128xf32>
    %cst_96 = arith.constant dense<0.000000e+00> : vector<2xf32>
    %306 = vector.multi_reduction <add>, %305, %cst_96 [1] : vector<2x128xf32> to vector<2xf32>
    %307 = vector.shape_cast %306 : vector<2xf32> to vector<2x1xf32>
    %cst_97 = arith.constant 3.125000e-02 : f32
    %308 = vector.broadcast %cst_97 : f32 to vector<2x1xf32>
    %309 = arith.mulf %307, %308 : vector<2x1xf32>
    %310 = arith.mulf %305, %305 : vector<2x128xf32>
    %cst_98 = arith.constant dense<0.000000e+00> : vector<2xf32>
    %311 = vector.multi_reduction <add>, %310, %cst_98 [1] : vector<2x128xf32> to vector<2xf32>
    %312 = vector.shape_cast %311 : vector<2xf32> to vector<2x1xf32>
    %cst_99 = arith.constant 3.125000e-02 : f32
    %313 = vector.broadcast %cst_99 : f32 to vector<2x1xf32>
    %314 = arith.mulf %312, %313 : vector<2x1xf32>
    %315 = arith.mulf %309, %309 : vector<2x1xf32>
    %316 = arith.subf %314, %315 : vector<2x1xf32>
    %317 = vector.broadcast %309 : vector<2x1xf32> to vector<2x128xf32>
    %318 = arith.subf %305, %317 : vector<2x128xf32>
    %cst_100 = arith.constant 9.99999974E-6 : f32
    %319 = vector.broadcast %cst_100 : f32 to vector<2x1xf32>
    %320 = arith.addf %316, %319 : vector<2x1xf32>
    %321 = math.rsqrt %320 : vector<2x1xf32>
    %322 = vector.broadcast %321 : vector<2x1xf32> to vector<2x128xf32>
    %323 = arith.mulf %318, %322 : vector<2x128xf32>
    %324 = arith.mulf %323, %11 : vector<2x128xf32>
    %325 = arith.addf %324, %23 : vector<2x128xf32>
    %326 = math.tanh %325 : vector<2x128xf32>
    %cst_101 = arith.constant 1.000000e+00 : f32
    %327 = vector.broadcast %cst_101 : f32 to vector<2x128xf32>
    %328 = arith.subf %327, %272 : vector<2x128xf32>
    %329 = arith.mulf %328, %154 : vector<2x128xf32>
    %330 = arith.mulf %272, %326 : vector<2x128xf32>
    %331 = arith.addf %329, %330 : vector<2x128xf32>
    %332 = tpu.concatenate %331, %241 in 1 : vector<2x128xf32>, vector<2x128xf32> -> vector<2x256xf32>
    %c0_102 = arith.constant 0 : index
    %c0_103 = arith.constant 0 : index
    %333 = vector.load %arg7[%c0_102, %c0_103] : memref<256x384xf32, #tpu.memory_space<vmem>>, vector<256x384xf32>
    %cst_104 = arith.constant dense<0.000000e+00> : vector<2x384xf32>
    %334 = tpu.matmul %332, %333, %cst_104 {dimension_numbers = #tpu.dot_dimension_numbers<[1], [0], [0], [1], [0, 0, 1, 1], [], []>} : vector<2x256xf32>, vector<256x384xf32>, vector<2x384xf32> -> vector<2x384xf32>
    %335 = arith.addf %334, %50 : vector<2x384xf32>
    %336 = vector.extract_strided_slice %335 {offsets = [0, 0], sizes = [2, 128], strides = [1, 1]} : vector<2x384xf32> to vector<2x128xf32>
    %cst_105 = arith.constant dense<0.000000e+00> : vector<2xf32>
    %337 = vector.multi_reduction <add>, %336, %cst_105 [1] : vector<2x128xf32> to vector<2xf32>
    %338 = vector.shape_cast %337 : vector<2xf32> to vector<2x1xf32>
    %cst_106 = arith.constant 3.125000e-02 : f32
    %339 = vector.broadcast %cst_106 : f32 to vector<2x1xf32>
    %340 = arith.mulf %338, %339 : vector<2x1xf32>
    %341 = arith.mulf %336, %336 : vector<2x128xf32>
    %cst_107 = arith.constant dense<0.000000e+00> : vector<2xf32>
    %342 = vector.multi_reduction <add>, %341, %cst_107 [1] : vector<2x128xf32> to vector<2xf32>
    %343 = vector.shape_cast %342 : vector<2xf32> to vector<2x1xf32>
    %cst_108 = arith.constant 3.125000e-02 : f32
    %344 = vector.broadcast %cst_108 : f32 to vector<2x1xf32>
    %345 = arith.mulf %343, %344 : vector<2x1xf32>
    %346 = arith.mulf %340, %340 : vector<2x1xf32>
    %347 = arith.subf %345, %346 : vector<2x1xf32>
    %348 = vector.broadcast %340 : vector<2x1xf32> to vector<2x128xf32>
    %349 = arith.subf %336, %348 : vector<2x128xf32>
    %cst_109 = arith.constant 9.99999974E-6 : f32
    %350 = vector.broadcast %cst_109 : f32 to vector<2x1xf32>
    %351 = arith.addf %347, %350 : vector<2x1xf32>
    %352 = math.rsqrt %351 : vector<2x1xf32>
    %353 = vector.broadcast %352 : vector<2x1xf32> to vector<2x128xf32>
    %354 = arith.mulf %349, %353 : vector<2x128xf32>
    %355 = arith.mulf %354, %27 : vector<2x128xf32>
    %356 = arith.addf %355, %39 : vector<2x128xf32>
    %357 = arith.negf %356 : vector<2x128xf32>
    %358 = math.exp %357 : vector<2x128xf32>
    %cst_110 = arith.constant 1.000000e+00 : f32
    %359 = vector.broadcast %cst_110 : f32 to vector<2x128xf32>
    %360 = arith.addf %359, %358 : vector<2x128xf32>
    %361 = arith.divf %359, %360 : vector<2x128xf32>
    %362 = vector.extract_strided_slice %335 {offsets = [0, 128], sizes = [2, 128], strides = [1, 1]} : vector<2x384xf32> to vector<2x128xf32>
    %cst_111 = arith.constant dense<0.000000e+00> : vector<2xf32>
    %363 = vector.multi_reduction <add>, %362, %cst_111 [1] : vector<2x128xf32> to vector<2xf32>
    %364 = vector.shape_cast %363 : vector<2xf32> to vector<2x1xf32>
    %cst_112 = arith.constant 3.125000e-02 : f32
    %365 = vector.broadcast %cst_112 : f32 to vector<2x1xf32>
    %366 = arith.mulf %364, %365 : vector<2x1xf32>
    %367 = arith.mulf %362, %362 : vector<2x128xf32>
    %cst_113 = arith.constant dense<0.000000e+00> : vector<2xf32>
    %368 = vector.multi_reduction <add>, %367, %cst_113 [1] : vector<2x128xf32> to vector<2xf32>
    %369 = vector.shape_cast %368 : vector<2xf32> to vector<2x1xf32>
    %cst_114 = arith.constant 3.125000e-02 : f32
    %370 = vector.broadcast %cst_114 : f32 to vector<2x1xf32>
    %371 = arith.mulf %369, %370 : vector<2x1xf32>
    %372 = arith.mulf %366, %366 : vector<2x1xf32>
    %373 = arith.subf %371, %372 : vector<2x1xf32>
    %374 = vector.broadcast %366 : vector<2x1xf32> to vector<2x128xf32>
    %375 = arith.subf %362, %374 : vector<2x128xf32>
    %cst_115 = arith.constant 9.99999974E-6 : f32
    %376 = vector.broadcast %cst_115 : f32 to vector<2x1xf32>
    %377 = arith.addf %373, %376 : vector<2x1xf32>
    %378 = math.rsqrt %377 : vector<2x1xf32>
    %379 = vector.broadcast %378 : vector<2x1xf32> to vector<2x128xf32>
    %380 = arith.mulf %375, %379 : vector<2x128xf32>
    %381 = arith.mulf %380, %31 : vector<2x128xf32>
    %382 = arith.addf %381, %43 : vector<2x128xf32>
    %383 = arith.negf %382 : vector<2x128xf32>
    %384 = math.exp %383 : vector<2x128xf32>
    %cst_116 = arith.constant 1.000000e+00 : f32
    %385 = vector.broadcast %cst_116 : f32 to vector<2x128xf32>
    %386 = arith.addf %385, %384 : vector<2x128xf32>
    %387 = arith.divf %385, %386 : vector<2x128xf32>
    %388 = arith.mulf %387, %241 : vector<2x128xf32>
    %c0_117 = arith.constant 0 : index
    %c0_118 = arith.constant 0 : index
    %389 = vector.load %arg9[%c0_117, %c0_118] : memref<128x128xf32, #tpu.memory_space<vmem>>, vector<128x128xf32>
    %cst_119 = arith.constant dense<0.000000e+00> : vector<2x128xf32>
    %390 = tpu.matmul %388, %389, %cst_119 {dimension_numbers = #tpu.dot_dimension_numbers<[1], [0], [0], [1], [0, 0, 1, 1], [], []>} : vector<2x128xf32>, vector<128x128xf32>, vector<2x128xf32> -> vector<2x128xf32>
    %391 = vector.extract_strided_slice %335 {offsets = [0, 256], sizes = [2, 128], strides = [1, 1]} : vector<2x384xf32> to vector<2x128xf32>
    %392 = arith.addf %391, %390 : vector<2x128xf32>
    %cst_120 = arith.constant dense<0.000000e+00> : vector<2xf32>
    %393 = vector.multi_reduction <add>, %392, %cst_120 [1] : vector<2x128xf32> to vector<2xf32>
    %394 = vector.shape_cast %393 : vector<2xf32> to vector<2x1xf32>
    %cst_121 = arith.constant 3.125000e-02 : f32
    %395 = vector.broadcast %cst_121 : f32 to vector<2x1xf32>
    %396 = arith.mulf %394, %395 : vector<2x1xf32>
    %397 = arith.mulf %392, %392 : vector<2x128xf32>
    %cst_122 = arith.constant dense<0.000000e+00> : vector<2xf32>
    %398 = vector.multi_reduction <add>, %397, %cst_122 [1] : vector<2x128xf32> to vector<2xf32>
    %399 = vector.shape_cast %398 : vector<2xf32> to vector<2x1xf32>
    %cst_123 = arith.constant 3.125000e-02 : f32
    %400 = vector.broadcast %cst_123 : f32 to vector<2x1xf32>
    %401 = arith.mulf %399, %400 : vector<2x1xf32>
    %402 = arith.mulf %396, %396 : vector<2x1xf32>
    %403 = arith.subf %401, %402 : vector<2x1xf32>
    %404 = vector.broadcast %396 : vector<2x1xf32> to vector<2x128xf32>
    %405 = arith.subf %392, %404 : vector<2x128xf32>
    %cst_124 = arith.constant 9.99999974E-6 : f32
    %406 = vector.broadcast %cst_124 : f32 to vector<2x1xf32>
    %407 = arith.addf %403, %406 : vector<2x1xf32>
    %408 = math.rsqrt %407 : vector<2x1xf32>
    %409 = vector.broadcast %408 : vector<2x1xf32> to vector<2x128xf32>
    %410 = arith.mulf %405, %409 : vector<2x128xf32>
    %411 = arith.mulf %410, %35 : vector<2x128xf32>
    %412 = arith.addf %411, %47 : vector<2x128xf32>
    %413 = math.tanh %412 : vector<2x128xf32>
    %cst_125 = arith.constant 1.000000e+00 : f32
    %414 = vector.broadcast %cst_125 : f32 to vector<2x128xf32>
    %415 = arith.subf %414, %361 : vector<2x128xf32>
    %416 = arith.mulf %415, %241 : vector<2x128xf32>
    %417 = arith.mulf %361, %413 : vector<2x128xf32>
    %418 = arith.addf %416, %417 : vector<2x128xf32>
    %419 = arith.addf %242, %418 : vector<2x128xf32>
    %c0_126 = arith.constant 0 : index
    %c0_127 = arith.constant 0 : index
    %420 = vector.load %arg3[%c0_126, %c0_127] : memref<128x256xf32, #tpu.memory_space<vmem>>, vector<128x256xf32>
    %cst_128 = arith.constant dense<0.000000e+00> : vector<2x256xf32>
    %421 = tpu.matmul %331, %420, %cst_128 {dimension_numbers = #tpu.dot_dimension_numbers<[1], [0], [0], [1], [0, 0, 1, 1], [], []>} : vector<2x128xf32>, vector<128x256xf32>, vector<2x256xf32> -> vector<2x256xf32>
    %422 = vector.extract_strided_slice %59 {offsets = [0, 0], sizes = [2, 128], strides = [1, 1]} : vector<2x384xf32> to vector<2x128xf32>
    %423 = vector.extract_strided_slice %421 {offsets = [0, 0], sizes = [2, 128], strides = [1, 1]} : vector<2x256xf32> to vector<2x128xf32>
    %424 = arith.addf %422, %423 : vector<2x128xf32>
    %cst_129 = arith.constant dense<0.000000e+00> : vector<2xf32>
    %425 = vector.multi_reduction <add>, %424, %cst_129 [1] : vector<2x128xf32> to vector<2xf32>
    %426 = vector.shape_cast %425 : vector<2xf32> to vector<2x1xf32>
    %cst_130 = arith.constant 3.125000e-02 : f32
    %427 = vector.broadcast %cst_130 : f32 to vector<2x1xf32>
    %428 = arith.mulf %426, %427 : vector<2x1xf32>
    %429 = arith.mulf %424, %424 : vector<2x128xf32>
    %cst_131 = arith.constant dense<0.000000e+00> : vector<2xf32>
    %430 = vector.multi_reduction <add>, %429, %cst_131 [1] : vector<2x128xf32> to vector<2xf32>
    %431 = vector.shape_cast %430 : vector<2xf32> to vector<2x1xf32>
    %cst_132 = arith.constant 3.125000e-02 : f32
    %432 = vector.broadcast %cst_132 : f32 to vector<2x1xf32>
    %433 = arith.mulf %431, %432 : vector<2x1xf32>
    %434 = arith.mulf %428, %428 : vector<2x1xf32>
    %435 = arith.subf %433, %434 : vector<2x1xf32>
    %436 = vector.broadcast %428 : vector<2x1xf32> to vector<2x128xf32>
    %437 = arith.subf %424, %436 : vector<2x128xf32>
    %cst_133 = arith.constant 9.99999974E-6 : f32
    %438 = vector.broadcast %cst_133 : f32 to vector<2x1xf32>
    %439 = arith.addf %435, %438 : vector<2x1xf32>
    %440 = math.rsqrt %439 : vector<2x1xf32>
    %441 = vector.broadcast %440 : vector<2x1xf32> to vector<2x128xf32>
    %442 = arith.mulf %437, %441 : vector<2x128xf32>
    %443 = arith.mulf %442, %3 : vector<2x128xf32>
    %444 = arith.addf %443, %15 : vector<2x128xf32>
    %445 = arith.negf %444 : vector<2x128xf32>
    %446 = math.exp %445 : vector<2x128xf32>
    %cst_134 = arith.constant 1.000000e+00 : f32
    %447 = vector.broadcast %cst_134 : f32 to vector<2x128xf32>
    %448 = arith.addf %447, %446 : vector<2x128xf32>
    %449 = arith.divf %447, %448 : vector<2x128xf32>
    %450 = vector.extract_strided_slice %59 {offsets = [0, 128], sizes = [2, 128], strides = [1, 1]} : vector<2x384xf32> to vector<2x128xf32>
    %451 = vector.extract_strided_slice %421 {offsets = [0, 128], sizes = [2, 128], strides = [1, 1]} : vector<2x256xf32> to vector<2x128xf32>
    %452 = arith.addf %450, %451 : vector<2x128xf32>
    %cst_135 = arith.constant dense<0.000000e+00> : vector<2xf32>
    %453 = vector.multi_reduction <add>, %452, %cst_135 [1] : vector<2x128xf32> to vector<2xf32>
    %454 = vector.shape_cast %453 : vector<2xf32> to vector<2x1xf32>
    %cst_136 = arith.constant 3.125000e-02 : f32
    %455 = vector.broadcast %cst_136 : f32 to vector<2x1xf32>
    %456 = arith.mulf %454, %455 : vector<2x1xf32>
    %457 = arith.mulf %452, %452 : vector<2x128xf32>
    %cst_137 = arith.constant dense<0.000000e+00> : vector<2xf32>
    %458 = vector.multi_reduction <add>, %457, %cst_137 [1] : vector<2x128xf32> to vector<2xf32>
    %459 = vector.shape_cast %458 : vector<2xf32> to vector<2x1xf32>
    %cst_138 = arith.constant 3.125000e-02 : f32
    %460 = vector.broadcast %cst_138 : f32 to vector<2x1xf32>
    %461 = arith.mulf %459, %460 : vector<2x1xf32>
    %462 = arith.mulf %456, %456 : vector<2x1xf32>
    %463 = arith.subf %461, %462 : vector<2x1xf32>
    %464 = vector.broadcast %456 : vector<2x1xf32> to vector<2x128xf32>
    %465 = arith.subf %452, %464 : vector<2x128xf32>
    %cst_139 = arith.constant 9.99999974E-6 : f32
    %466 = vector.broadcast %cst_139 : f32 to vector<2x1xf32>
    %467 = arith.addf %463, %466 : vector<2x1xf32>
    %468 = math.rsqrt %467 : vector<2x1xf32>
    %469 = vector.broadcast %468 : vector<2x1xf32> to vector<2x128xf32>
    %470 = arith.mulf %465, %469 : vector<2x128xf32>
    %471 = arith.mulf %470, %7 : vector<2x128xf32>
    %472 = arith.addf %471, %19 : vector<2x128xf32>
    %473 = arith.negf %472 : vector<2x128xf32>
    %474 = math.exp %473 : vector<2x128xf32>
    %cst_140 = arith.constant 1.000000e+00 : f32
    %475 = vector.broadcast %cst_140 : f32 to vector<2x128xf32>
    %476 = arith.addf %475, %474 : vector<2x128xf32>
    %477 = arith.divf %475, %476 : vector<2x128xf32>
    %478 = arith.mulf %477, %331 : vector<2x128xf32>
    %c0_141 = arith.constant 0 : index
    %c0_142 = arith.constant 0 : index
    %479 = vector.load %arg4[%c0_141, %c0_142] : memref<128x128xf32, #tpu.memory_space<vmem>>, vector<128x128xf32>
    %cst_143 = arith.constant dense<0.000000e+00> : vector<2x128xf32>
    %480 = tpu.matmul %478, %479, %cst_143 {dimension_numbers = #tpu.dot_dimension_numbers<[1], [0], [0], [1], [0, 0, 1, 1], [], []>} : vector<2x128xf32>, vector<128x128xf32>, vector<2x128xf32> -> vector<2x128xf32>
    %481 = vector.extract_strided_slice %59 {offsets = [0, 256], sizes = [2, 128], strides = [1, 1]} : vector<2x384xf32> to vector<2x128xf32>
    %482 = arith.addf %481, %480 : vector<2x128xf32>
    %cst_144 = arith.constant dense<0.000000e+00> : vector<2xf32>
    %483 = vector.multi_reduction <add>, %482, %cst_144 [1] : vector<2x128xf32> to vector<2xf32>
    %484 = vector.shape_cast %483 : vector<2xf32> to vector<2x1xf32>
    %cst_145 = arith.constant 3.125000e-02 : f32
    %485 = vector.broadcast %cst_145 : f32 to vector<2x1xf32>
    %486 = arith.mulf %484, %485 : vector<2x1xf32>
    %487 = arith.mulf %482, %482 : vector<2x128xf32>
    %cst_146 = arith.constant dense<0.000000e+00> : vector<2xf32>
    %488 = vector.multi_reduction <add>, %487, %cst_146 [1] : vector<2x128xf32> to vector<2xf32>
    %489 = vector.shape_cast %488 : vector<2xf32> to vector<2x1xf32>
    %cst_147 = arith.constant 3.125000e-02 : f32
    %490 = vector.broadcast %cst_147 : f32 to vector<2x1xf32>
    %491 = arith.mulf %489, %490 : vector<2x1xf32>
    %492 = arith.mulf %486, %486 : vector<2x1xf32>
    %493 = arith.subf %491, %492 : vector<2x1xf32>
    %494 = vector.broadcast %486 : vector<2x1xf32> to vector<2x128xf32>
    %495 = arith.subf %482, %494 : vector<2x128xf32>
    %cst_148 = arith.constant 9.99999974E-6 : f32
    %496 = vector.broadcast %cst_148 : f32 to vector<2x1xf32>
    %497 = arith.addf %493, %496 : vector<2x1xf32>
    %498 = math.rsqrt %497 : vector<2x1xf32>
    %499 = vector.broadcast %498 : vector<2x1xf32> to vector<2x128xf32>
    %500 = arith.mulf %495, %499 : vector<2x128xf32>
    %501 = arith.mulf %500, %11 : vector<2x128xf32>
    %502 = arith.addf %501, %23 : vector<2x128xf32>
    %503 = math.tanh %502 : vector<2x128xf32>
    %cst_149 = arith.constant 1.000000e+00 : f32
    %504 = vector.broadcast %cst_149 : f32 to vector<2x128xf32>
    %505 = arith.subf %504, %449 : vector<2x128xf32>
    %506 = arith.mulf %505, %331 : vector<2x128xf32>
    %507 = arith.mulf %449, %503 : vector<2x128xf32>
    %508 = arith.addf %506, %507 : vector<2x128xf32>
    %509 = tpu.concatenate %508, %418 in 1 : vector<2x128xf32>, vector<2x128xf32> -> vector<2x256xf32>
    %c0_150 = arith.constant 0 : index
    %c0_151 = arith.constant 0 : index
    %510 = vector.load %arg7[%c0_150, %c0_151] : memref<256x384xf32, #tpu.memory_space<vmem>>, vector<256x384xf32>
    %cst_152 = arith.constant dense<0.000000e+00> : vector<2x384xf32>
    %511 = tpu.matmul %509, %510, %cst_152 {dimension_numbers = #tpu.dot_dimension_numbers<[1], [0], [0], [1], [0, 0, 1, 1], [], []>} : vector<2x256xf32>, vector<256x384xf32>, vector<2x384xf32> -> vector<2x384xf32>
    %512 = arith.addf %511, %50 : vector<2x384xf32>
    %513 = vector.extract_strided_slice %512 {offsets = [0, 0], sizes = [2, 128], strides = [1, 1]} : vector<2x384xf32> to vector<2x128xf32>
    %cst_153 = arith.constant dense<0.000000e+00> : vector<2xf32>
    %514 = vector.multi_reduction <add>, %513, %cst_153 [1] : vector<2x128xf32> to vector<2xf32>
    %515 = vector.shape_cast %514 : vector<2xf32> to vector<2x1xf32>
    %cst_154 = arith.constant 3.125000e-02 : f32
    %516 = vector.broadcast %cst_154 : f32 to vector<2x1xf32>
    %517 = arith.mulf %515, %516 : vector<2x1xf32>
    %518 = arith.mulf %513, %513 : vector<2x128xf32>
    %cst_155 = arith.constant dense<0.000000e+00> : vector<2xf32>
    %519 = vector.multi_reduction <add>, %518, %cst_155 [1] : vector<2x128xf32> to vector<2xf32>
    %520 = vector.shape_cast %519 : vector<2xf32> to vector<2x1xf32>
    %cst_156 = arith.constant 3.125000e-02 : f32
    %521 = vector.broadcast %cst_156 : f32 to vector<2x1xf32>
    %522 = arith.mulf %520, %521 : vector<2x1xf32>
    %523 = arith.mulf %517, %517 : vector<2x1xf32>
    %524 = arith.subf %522, %523 : vector<2x1xf32>
    %525 = vector.broadcast %517 : vector<2x1xf32> to vector<2x128xf32>
    %526 = arith.subf %513, %525 : vector<2x128xf32>
    %cst_157 = arith.constant 9.99999974E-6 : f32
    %527 = vector.broadcast %cst_157 : f32 to vector<2x1xf32>
    %528 = arith.addf %524, %527 : vector<2x1xf32>
    %529 = math.rsqrt %528 : vector<2x1xf32>
    %530 = vector.broadcast %529 : vector<2x1xf32> to vector<2x128xf32>
    %531 = arith.mulf %526, %530 : vector<2x128xf32>
    %532 = arith.mulf %531, %27 : vector<2x128xf32>
    %533 = arith.addf %532, %39 : vector<2x128xf32>
    %534 = arith.negf %533 : vector<2x128xf32>
    %535 = math.exp %534 : vector<2x128xf32>
    %cst_158 = arith.constant 1.000000e+00 : f32
    %536 = vector.broadcast %cst_158 : f32 to vector<2x128xf32>
    %537 = arith.addf %536, %535 : vector<2x128xf32>
    %538 = arith.divf %536, %537 : vector<2x128xf32>
    %539 = vector.extract_strided_slice %512 {offsets = [0, 128], sizes = [2, 128], strides = [1, 1]} : vector<2x384xf32> to vector<2x128xf32>
    %cst_159 = arith.constant dense<0.000000e+00> : vector<2xf32>
    %540 = vector.multi_reduction <add>, %539, %cst_159 [1] : vector<2x128xf32> to vector<2xf32>
    %541 = vector.shape_cast %540 : vector<2xf32> to vector<2x1xf32>
    %cst_160 = arith.constant 3.125000e-02 : f32
    %542 = vector.broadcast %cst_160 : f32 to vector<2x1xf32>
    %543 = arith.mulf %541, %542 : vector<2x1xf32>
    %544 = arith.mulf %539, %539 : vector<2x128xf32>
    %cst_161 = arith.constant dense<0.000000e+00> : vector<2xf32>
    %545 = vector.multi_reduction <add>, %544, %cst_161 [1] : vector<2x128xf32> to vector<2xf32>
    %546 = vector.shape_cast %545 : vector<2xf32> to vector<2x1xf32>
    %cst_162 = arith.constant 3.125000e-02 : f32
    %547 = vector.broadcast %cst_162 : f32 to vector<2x1xf32>
    %548 = arith.mulf %546, %547 : vector<2x1xf32>
    %549 = arith.mulf %543, %543 : vector<2x1xf32>
    %550 = arith.subf %548, %549 : vector<2x1xf32>
    %551 = vector.broadcast %543 : vector<2x1xf32> to vector<2x128xf32>
    %552 = arith.subf %539, %551 : vector<2x128xf32>
    %cst_163 = arith.constant 9.99999974E-6 : f32
    %553 = vector.broadcast %cst_163 : f32 to vector<2x1xf32>
    %554 = arith.addf %550, %553 : vector<2x1xf32>
    %555 = math.rsqrt %554 : vector<2x1xf32>
    %556 = vector.broadcast %555 : vector<2x1xf32> to vector<2x128xf32>
    %557 = arith.mulf %552, %556 : vector<2x128xf32>
    %558 = arith.mulf %557, %31 : vector<2x128xf32>
    %559 = arith.addf %558, %43 : vector<2x128xf32>
    %560 = arith.negf %559 : vector<2x128xf32>
    %561 = math.exp %560 : vector<2x128xf32>
    %cst_164 = arith.constant 1.000000e+00 : f32
    %562 = vector.broadcast %cst_164 : f32 to vector<2x128xf32>
    %563 = arith.addf %562, %561 : vector<2x128xf32>
    %564 = arith.divf %562, %563 : vector<2x128xf32>
    %565 = arith.mulf %564, %418 : vector<2x128xf32>
    %c0_165 = arith.constant 0 : index
    %c0_166 = arith.constant 0 : index
    %566 = vector.load %arg9[%c0_165, %c0_166] : memref<128x128xf32, #tpu.memory_space<vmem>>, vector<128x128xf32>
    %cst_167 = arith.constant dense<0.000000e+00> : vector<2x128xf32>
    %567 = tpu.matmul %565, %566, %cst_167 {dimension_numbers = #tpu.dot_dimension_numbers<[1], [0], [0], [1], [0, 0, 1, 1], [], []>} : vector<2x128xf32>, vector<128x128xf32>, vector<2x128xf32> -> vector<2x128xf32>
    %568 = vector.extract_strided_slice %512 {offsets = [0, 256], sizes = [2, 128], strides = [1, 1]} : vector<2x384xf32> to vector<2x128xf32>
    %569 = arith.addf %568, %567 : vector<2x128xf32>
    %cst_168 = arith.constant dense<0.000000e+00> : vector<2xf32>
    %570 = vector.multi_reduction <add>, %569, %cst_168 [1] : vector<2x128xf32> to vector<2xf32>
    %571 = vector.shape_cast %570 : vector<2xf32> to vector<2x1xf32>
    %cst_169 = arith.constant 3.125000e-02 : f32
    %572 = vector.broadcast %cst_169 : f32 to vector<2x1xf32>
    %573 = arith.mulf %571, %572 : vector<2x1xf32>
    %574 = arith.mulf %569, %569 : vector<2x128xf32>
    %cst_170 = arith.constant dense<0.000000e+00> : vector<2xf32>
    %575 = vector.multi_reduction <add>, %574, %cst_170 [1] : vector<2x128xf32> to vector<2xf32>
    %576 = vector.shape_cast %575 : vector<2xf32> to vector<2x1xf32>
    %cst_171 = arith.constant 3.125000e-02 : f32
    %577 = vector.broadcast %cst_171 : f32 to vector<2x1xf32>
    %578 = arith.mulf %576, %577 : vector<2x1xf32>
    %579 = arith.mulf %573, %573 : vector<2x1xf32>
    %580 = arith.subf %578, %579 : vector<2x1xf32>
    %581 = vector.broadcast %573 : vector<2x1xf32> to vector<2x128xf32>
    %582 = arith.subf %569, %581 : vector<2x128xf32>
    %cst_172 = arith.constant 9.99999974E-6 : f32
    %583 = vector.broadcast %cst_172 : f32 to vector<2x1xf32>
    %584 = arith.addf %580, %583 : vector<2x1xf32>
    %585 = math.rsqrt %584 : vector<2x1xf32>
    %586 = vector.broadcast %585 : vector<2x1xf32> to vector<2x128xf32>
    %587 = arith.mulf %582, %586 : vector<2x128xf32>
    %588 = arith.mulf %587, %35 : vector<2x128xf32>
    %589 = arith.addf %588, %47 : vector<2x128xf32>
    %590 = math.tanh %589 : vector<2x128xf32>
    %cst_173 = arith.constant 1.000000e+00 : f32
    %591 = vector.broadcast %cst_173 : f32 to vector<2x128xf32>
    %592 = arith.subf %591, %538 : vector<2x128xf32>
    %593 = arith.mulf %592, %418 : vector<2x128xf32>
    %594 = arith.mulf %538, %590 : vector<2x128xf32>
    %595 = arith.addf %593, %594 : vector<2x128xf32>
    %596 = arith.addf %419, %595 : vector<2x128xf32>
    %c0_174 = arith.constant 0 : index
    %c0_175 = arith.constant 0 : index
    %597 = vector.load %arg3[%c0_174, %c0_175] : memref<128x256xf32, #tpu.memory_space<vmem>>, vector<128x256xf32>
    %cst_176 = arith.constant dense<0.000000e+00> : vector<2x256xf32>
    %598 = tpu.matmul %508, %597, %cst_176 {dimension_numbers = #tpu.dot_dimension_numbers<[1], [0], [0], [1], [0, 0, 1, 1], [], []>} : vector<2x128xf32>, vector<128x256xf32>, vector<2x256xf32> -> vector<2x256xf32>
    %599 = vector.extract_strided_slice %60 {offsets = [0, 0], sizes = [2, 128], strides = [1, 1]} : vector<2x384xf32> to vector<2x128xf32>
    %600 = vector.extract_strided_slice %598 {offsets = [0, 0], sizes = [2, 128], strides = [1, 1]} : vector<2x256xf32> to vector<2x128xf32>
    %601 = arith.addf %599, %600 : vector<2x128xf32>
    %cst_177 = arith.constant dense<0.000000e+00> : vector<2xf32>
    %602 = vector.multi_reduction <add>, %601, %cst_177 [1] : vector<2x128xf32> to vector<2xf32>
    %603 = vector.shape_cast %602 : vector<2xf32> to vector<2x1xf32>
    %cst_178 = arith.constant 3.125000e-02 : f32
    %604 = vector.broadcast %cst_178 : f32 to vector<2x1xf32>
    %605 = arith.mulf %603, %604 : vector<2x1xf32>
    %606 = arith.mulf %601, %601 : vector<2x128xf32>
    %cst_179 = arith.constant dense<0.000000e+00> : vector<2xf32>
    %607 = vector.multi_reduction <add>, %606, %cst_179 [1] : vector<2x128xf32> to vector<2xf32>
    %608 = vector.shape_cast %607 : vector<2xf32> to vector<2x1xf32>
    %cst_180 = arith.constant 3.125000e-02 : f32
    %609 = vector.broadcast %cst_180 : f32 to vector<2x1xf32>
    %610 = arith.mulf %608, %609 : vector<2x1xf32>
    %611 = arith.mulf %605, %605 : vector<2x1xf32>
    %612 = arith.subf %610, %611 : vector<2x1xf32>
    %613 = vector.broadcast %605 : vector<2x1xf32> to vector<2x128xf32>
    %614 = arith.subf %601, %613 : vector<2x128xf32>
    %cst_181 = arith.constant 9.99999974E-6 : f32
    %615 = vector.broadcast %cst_181 : f32 to vector<2x1xf32>
    %616 = arith.addf %612, %615 : vector<2x1xf32>
    %617 = math.rsqrt %616 : vector<2x1xf32>
    %618 = vector.broadcast %617 : vector<2x1xf32> to vector<2x128xf32>
    %619 = arith.mulf %614, %618 : vector<2x128xf32>
    %620 = arith.mulf %619, %3 : vector<2x128xf32>
    %621 = arith.addf %620, %15 : vector<2x128xf32>
    %622 = arith.negf %621 : vector<2x128xf32>
    %623 = math.exp %622 : vector<2x128xf32>
    %cst_182 = arith.constant 1.000000e+00 : f32
    %624 = vector.broadcast %cst_182 : f32 to vector<2x128xf32>
    %625 = arith.addf %624, %623 : vector<2x128xf32>
    %626 = arith.divf %624, %625 : vector<2x128xf32>
    %627 = vector.extract_strided_slice %60 {offsets = [0, 128], sizes = [2, 128], strides = [1, 1]} : vector<2x384xf32> to vector<2x128xf32>
    %628 = vector.extract_strided_slice %598 {offsets = [0, 128], sizes = [2, 128], strides = [1, 1]} : vector<2x256xf32> to vector<2x128xf32>
    %629 = arith.addf %627, %628 : vector<2x128xf32>
    %cst_183 = arith.constant dense<0.000000e+00> : vector<2xf32>
    %630 = vector.multi_reduction <add>, %629, %cst_183 [1] : vector<2x128xf32> to vector<2xf32>
    %631 = vector.shape_cast %630 : vector<2xf32> to vector<2x1xf32>
    %cst_184 = arith.constant 3.125000e-02 : f32
    %632 = vector.broadcast %cst_184 : f32 to vector<2x1xf32>
    %633 = arith.mulf %631, %632 : vector<2x1xf32>
    %634 = arith.mulf %629, %629 : vector<2x128xf32>
    %cst_185 = arith.constant dense<0.000000e+00> : vector<2xf32>
    %635 = vector.multi_reduction <add>, %634, %cst_185 [1] : vector<2x128xf32> to vector<2xf32>
    %636 = vector.shape_cast %635 : vector<2xf32> to vector<2x1xf32>
    %cst_186 = arith.constant 3.125000e-02 : f32
    %637 = vector.broadcast %cst_186 : f32 to vector<2x1xf32>
    %638 = arith.mulf %636, %637 : vector<2x1xf32>
    %639 = arith.mulf %633, %633 : vector<2x1xf32>
    %640 = arith.subf %638, %639 : vector<2x1xf32>
    %641 = vector.broadcast %633 : vector<2x1xf32> to vector<2x128xf32>
    %642 = arith.subf %629, %641 : vector<2x128xf32>
    %cst_187 = arith.constant 9.99999974E-6 : f32
    %643 = vector.broadcast %cst_187 : f32 to vector<2x1xf32>
    %644 = arith.addf %640, %643 : vector<2x1xf32>
    %645 = math.rsqrt %644 : vector<2x1xf32>
    %646 = vector.broadcast %645 : vector<2x1xf32> to vector<2x128xf32>
    %647 = arith.mulf %642, %646 : vector<2x128xf32>
    %648 = arith.mulf %647, %7 : vector<2x128xf32>
    %649 = arith.addf %648, %19 : vector<2x128xf32>
    %650 = arith.negf %649 : vector<2x128xf32>
    %651 = math.exp %650 : vector<2x128xf32>
    %cst_188 = arith.constant 1.000000e+00 : f32
    %652 = vector.broadcast %cst_188 : f32 to vector<2x128xf32>
    %653 = arith.addf %652, %651 : vector<2x128xf32>
    %654 = arith.divf %652, %653 : vector<2x128xf32>
    %655 = arith.mulf %654, %508 : vector<2x128xf32>
    %c0_189 = arith.constant 0 : index
    %c0_190 = arith.constant 0 : index
    %656 = vector.load %arg4[%c0_189, %c0_190] : memref<128x128xf32, #tpu.memory_space<vmem>>, vector<128x128xf32>
    %cst_191 = arith.constant dense<0.000000e+00> : vector<2x128xf32>
    %657 = tpu.matmul %655, %656, %cst_191 {dimension_numbers = #tpu.dot_dimension_numbers<[1], [0], [0], [1], [0, 0, 1, 1], [], []>} : vector<2x128xf32>, vector<128x128xf32>, vector<2x128xf32> -> vector<2x128xf32>
    %658 = vector.extract_strided_slice %60 {offsets = [0, 256], sizes = [2, 128], strides = [1, 1]} : vector<2x384xf32> to vector<2x128xf32>
    %659 = arith.addf %658, %657 : vector<2x128xf32>
    %cst_192 = arith.constant dense<0.000000e+00> : vector<2xf32>
    %660 = vector.multi_reduction <add>, %659, %cst_192 [1] : vector<2x128xf32> to vector<2xf32>
    %661 = vector.shape_cast %660 : vector<2xf32> to vector<2x1xf32>
    %cst_193 = arith.constant 3.125000e-02 : f32
    %662 = vector.broadcast %cst_193 : f32 to vector<2x1xf32>
    %663 = arith.mulf %661, %662 : vector<2x1xf32>
    %664 = arith.mulf %659, %659 : vector<2x128xf32>
    %cst_194 = arith.constant dense<0.000000e+00> : vector<2xf32>
    %665 = vector.multi_reduction <add>, %664, %cst_194 [1] : vector<2x128xf32> to vector<2xf32>
    %666 = vector.shape_cast %665 : vector<2xf32> to vector<2x1xf32>
    %cst_195 = arith.constant 3.125000e-02 : f32
    %667 = vector.broadcast %cst_195 : f32 to vector<2x1xf32>
    %668 = arith.mulf %666, %667 : vector<2x1xf32>
    %669 = arith.mulf %663, %663 : vector<2x1xf32>
    %670 = arith.subf %668, %669 : vector<2x1xf32>
    %671 = vector.broadcast %663 : vector<2x1xf32> to vector<2x128xf32>
    %672 = arith.subf %659, %671 : vector<2x128xf32>
    %cst_196 = arith.constant 9.99999974E-6 : f32
    %673 = vector.broadcast %cst_196 : f32 to vector<2x1xf32>
    %674 = arith.addf %670, %673 : vector<2x1xf32>
    %675 = math.rsqrt %674 : vector<2x1xf32>
    %676 = vector.broadcast %675 : vector<2x1xf32> to vector<2x128xf32>
    %677 = arith.mulf %672, %676 : vector<2x128xf32>
    %678 = arith.mulf %677, %11 : vector<2x128xf32>
    %679 = arith.addf %678, %23 : vector<2x128xf32>
    %680 = math.tanh %679 : vector<2x128xf32>
    %cst_197 = arith.constant 1.000000e+00 : f32
    %681 = vector.broadcast %cst_197 : f32 to vector<2x128xf32>
    %682 = arith.subf %681, %626 : vector<2x128xf32>
    %683 = arith.mulf %682, %508 : vector<2x128xf32>
    %684 = arith.mulf %626, %680 : vector<2x128xf32>
    %685 = arith.addf %683, %684 : vector<2x128xf32>
    %686 = tpu.concatenate %685, %595 in 1 : vector<2x128xf32>, vector<2x128xf32> -> vector<2x256xf32>
    %c0_198 = arith.constant 0 : index
    %c0_199 = arith.constant 0 : index
    %687 = vector.load %arg7[%c0_198, %c0_199] : memref<256x384xf32, #tpu.memory_space<vmem>>, vector<256x384xf32>
    %cst_200 = arith.constant dense<0.000000e+00> : vector<2x384xf32>
    %688 = tpu.matmul %686, %687, %cst_200 {dimension_numbers = #tpu.dot_dimension_numbers<[1], [0], [0], [1], [0, 0, 1, 1], [], []>} : vector<2x256xf32>, vector<256x384xf32>, vector<2x384xf32> -> vector<2x384xf32>
    %689 = arith.addf %688, %50 : vector<2x384xf32>
    %690 = vector.extract_strided_slice %689 {offsets = [0, 0], sizes = [2, 128], strides = [1, 1]} : vector<2x384xf32> to vector<2x128xf32>
    %cst_201 = arith.constant dense<0.000000e+00> : vector<2xf32>
    %691 = vector.multi_reduction <add>, %690, %cst_201 [1] : vector<2x128xf32> to vector<2xf32>
    %692 = vector.shape_cast %691 : vector<2xf32> to vector<2x1xf32>
    %cst_202 = arith.constant 3.125000e-02 : f32
    %693 = vector.broadcast %cst_202 : f32 to vector<2x1xf32>
    %694 = arith.mulf %692, %693 : vector<2x1xf32>
    %695 = arith.mulf %690, %690 : vector<2x128xf32>
    %cst_203 = arith.constant dense<0.000000e+00> : vector<2xf32>
    %696 = vector.multi_reduction <add>, %695, %cst_203 [1] : vector<2x128xf32> to vector<2xf32>
    %697 = vector.shape_cast %696 : vector<2xf32> to vector<2x1xf32>
    %cst_204 = arith.constant 3.125000e-02 : f32
    %698 = vector.broadcast %cst_204 : f32 to vector<2x1xf32>
    %699 = arith.mulf %697, %698 : vector<2x1xf32>
    %700 = arith.mulf %694, %694 : vector<2x1xf32>
    %701 = arith.subf %699, %700 : vector<2x1xf32>
    %702 = vector.broadcast %694 : vector<2x1xf32> to vector<2x128xf32>
    %703 = arith.subf %690, %702 : vector<2x128xf32>
    %cst_205 = arith.constant 9.99999974E-6 : f32
    %704 = vector.broadcast %cst_205 : f32 to vector<2x1xf32>
    %705 = arith.addf %701, %704 : vector<2x1xf32>
    %706 = math.rsqrt %705 : vector<2x1xf32>
    %707 = vector.broadcast %706 : vector<2x1xf32> to vector<2x128xf32>
    %708 = arith.mulf %703, %707 : vector<2x128xf32>
    %709 = arith.mulf %708, %27 : vector<2x128xf32>
    %710 = arith.addf %709, %39 : vector<2x128xf32>
    %711 = arith.negf %710 : vector<2x128xf32>
    %712 = math.exp %711 : vector<2x128xf32>
    %cst_206 = arith.constant 1.000000e+00 : f32
    %713 = vector.broadcast %cst_206 : f32 to vector<2x128xf32>
    %714 = arith.addf %713, %712 : vector<2x128xf32>
    %715 = arith.divf %713, %714 : vector<2x128xf32>
    %716 = vector.extract_strided_slice %689 {offsets = [0, 128], sizes = [2, 128], strides = [1, 1]} : vector<2x384xf32> to vector<2x128xf32>
    %cst_207 = arith.constant dense<0.000000e+00> : vector<2xf32>
    %717 = vector.multi_reduction <add>, %716, %cst_207 [1] : vector<2x128xf32> to vector<2xf32>
    %718 = vector.shape_cast %717 : vector<2xf32> to vector<2x1xf32>
    %cst_208 = arith.constant 3.125000e-02 : f32
    %719 = vector.broadcast %cst_208 : f32 to vector<2x1xf32>
    %720 = arith.mulf %718, %719 : vector<2x1xf32>
    %721 = arith.mulf %716, %716 : vector<2x128xf32>
    %cst_209 = arith.constant dense<0.000000e+00> : vector<2xf32>
    %722 = vector.multi_reduction <add>, %721, %cst_209 [1] : vector<2x128xf32> to vector<2xf32>
    %723 = vector.shape_cast %722 : vector<2xf32> to vector<2x1xf32>
    %cst_210 = arith.constant 3.125000e-02 : f32
    %724 = vector.broadcast %cst_210 : f32 to vector<2x1xf32>
    %725 = arith.mulf %723, %724 : vector<2x1xf32>
    %726 = arith.mulf %720, %720 : vector<2x1xf32>
    %727 = arith.subf %725, %726 : vector<2x1xf32>
    %728 = vector.broadcast %720 : vector<2x1xf32> to vector<2x128xf32>
    %729 = arith.subf %716, %728 : vector<2x128xf32>
    %cst_211 = arith.constant 9.99999974E-6 : f32
    %730 = vector.broadcast %cst_211 : f32 to vector<2x1xf32>
    %731 = arith.addf %727, %730 : vector<2x1xf32>
    %732 = math.rsqrt %731 : vector<2x1xf32>
    %733 = vector.broadcast %732 : vector<2x1xf32> to vector<2x128xf32>
    %734 = arith.mulf %729, %733 : vector<2x128xf32>
    %735 = arith.mulf %734, %31 : vector<2x128xf32>
    %736 = arith.addf %735, %43 : vector<2x128xf32>
    %737 = arith.negf %736 : vector<2x128xf32>
    %738 = math.exp %737 : vector<2x128xf32>
    %cst_212 = arith.constant 1.000000e+00 : f32
    %739 = vector.broadcast %cst_212 : f32 to vector<2x128xf32>
    %740 = arith.addf %739, %738 : vector<2x128xf32>
    %741 = arith.divf %739, %740 : vector<2x128xf32>
    %742 = arith.mulf %741, %595 : vector<2x128xf32>
    %c0_213 = arith.constant 0 : index
    %c0_214 = arith.constant 0 : index
    %743 = vector.load %arg9[%c0_213, %c0_214] : memref<128x128xf32, #tpu.memory_space<vmem>>, vector<128x128xf32>
    %cst_215 = arith.constant dense<0.000000e+00> : vector<2x128xf32>
    %744 = tpu.matmul %742, %743, %cst_215 {dimension_numbers = #tpu.dot_dimension_numbers<[1], [0], [0], [1], [0, 0, 1, 1], [], []>} : vector<2x128xf32>, vector<128x128xf32>, vector<2x128xf32> -> vector<2x128xf32>
    %745 = vector.extract_strided_slice %689 {offsets = [0, 256], sizes = [2, 128], strides = [1, 1]} : vector<2x384xf32> to vector<2x128xf32>
    %746 = arith.addf %745, %744 : vector<2x128xf32>
    %cst_216 = arith.constant dense<0.000000e+00> : vector<2xf32>
    %747 = vector.multi_reduction <add>, %746, %cst_216 [1] : vector<2x128xf32> to vector<2xf32>
    %748 = vector.shape_cast %747 : vector<2xf32> to vector<2x1xf32>
    %cst_217 = arith.constant 3.125000e-02 : f32
    %749 = vector.broadcast %cst_217 : f32 to vector<2x1xf32>
    %750 = arith.mulf %748, %749 : vector<2x1xf32>
    %751 = arith.mulf %746, %746 : vector<2x128xf32>
    %cst_218 = arith.constant dense<0.000000e+00> : vector<2xf32>
    %752 = vector.multi_reduction <add>, %751, %cst_218 [1] : vector<2x128xf32> to vector<2xf32>
    %753 = vector.shape_cast %752 : vector<2xf32> to vector<2x1xf32>
    %cst_219 = arith.constant 3.125000e-02 : f32
    %754 = vector.broadcast %cst_219 : f32 to vector<2x1xf32>
    %755 = arith.mulf %753, %754 : vector<2x1xf32>
    %756 = arith.mulf %750, %750 : vector<2x1xf32>
    %757 = arith.subf %755, %756 : vector<2x1xf32>
    %758 = vector.broadcast %750 : vector<2x1xf32> to vector<2x128xf32>
    %759 = arith.subf %746, %758 : vector<2x128xf32>
    %cst_220 = arith.constant 9.99999974E-6 : f32
    %760 = vector.broadcast %cst_220 : f32 to vector<2x1xf32>
    %761 = arith.addf %757, %760 : vector<2x1xf32>
    %762 = math.rsqrt %761 : vector<2x1xf32>
    %763 = vector.broadcast %762 : vector<2x1xf32> to vector<2x128xf32>
    %764 = arith.mulf %759, %763 : vector<2x128xf32>
    %765 = arith.mulf %764, %35 : vector<2x128xf32>
    %766 = arith.addf %765, %47 : vector<2x128xf32>
    %767 = math.tanh %766 : vector<2x128xf32>
    %cst_221 = arith.constant 1.000000e+00 : f32
    %768 = vector.broadcast %cst_221 : f32 to vector<2x128xf32>
    %769 = arith.subf %768, %715 : vector<2x128xf32>
    %770 = arith.mulf %769, %595 : vector<2x128xf32>
    %771 = arith.mulf %715, %767 : vector<2x128xf32>
    %772 = arith.addf %770, %771 : vector<2x128xf32>
    %773 = arith.addf %596, %772 : vector<2x128xf32>
    %c0_222 = arith.constant 0 : index
    %c0_223 = arith.constant 0 : index
    %774 = vector.load %arg3[%c0_222, %c0_223] : memref<128x256xf32, #tpu.memory_space<vmem>>, vector<128x256xf32>
    %cst_224 = arith.constant dense<0.000000e+00> : vector<2x256xf32>
    %775 = tpu.matmul %685, %774, %cst_224 {dimension_numbers = #tpu.dot_dimension_numbers<[1], [0], [0], [1], [0, 0, 1, 1], [], []>} : vector<2x128xf32>, vector<128x256xf32>, vector<2x256xf32> -> vector<2x256xf32>
    %776 = vector.extract_strided_slice %61 {offsets = [0, 0], sizes = [2, 128], strides = [1, 1]} : vector<2x384xf32> to vector<2x128xf32>
    %777 = vector.extract_strided_slice %775 {offsets = [0, 0], sizes = [2, 128], strides = [1, 1]} : vector<2x256xf32> to vector<2x128xf32>
    %778 = arith.addf %776, %777 : vector<2x128xf32>
    %cst_225 = arith.constant dense<0.000000e+00> : vector<2xf32>
    %779 = vector.multi_reduction <add>, %778, %cst_225 [1] : vector<2x128xf32> to vector<2xf32>
    %780 = vector.shape_cast %779 : vector<2xf32> to vector<2x1xf32>
    %cst_226 = arith.constant 3.125000e-02 : f32
    %781 = vector.broadcast %cst_226 : f32 to vector<2x1xf32>
    %782 = arith.mulf %780, %781 : vector<2x1xf32>
    %783 = arith.mulf %778, %778 : vector<2x128xf32>
    %cst_227 = arith.constant dense<0.000000e+00> : vector<2xf32>
    %784 = vector.multi_reduction <add>, %783, %cst_227 [1] : vector<2x128xf32> to vector<2xf32>
    %785 = vector.shape_cast %784 : vector<2xf32> to vector<2x1xf32>
    %cst_228 = arith.constant 3.125000e-02 : f32
    %786 = vector.broadcast %cst_228 : f32 to vector<2x1xf32>
    %787 = arith.mulf %785, %786 : vector<2x1xf32>
    %788 = arith.mulf %782, %782 : vector<2x1xf32>
    %789 = arith.subf %787, %788 : vector<2x1xf32>
    %790 = vector.broadcast %782 : vector<2x1xf32> to vector<2x128xf32>
    %791 = arith.subf %778, %790 : vector<2x128xf32>
    %cst_229 = arith.constant 9.99999974E-6 : f32
    %792 = vector.broadcast %cst_229 : f32 to vector<2x1xf32>
    %793 = arith.addf %789, %792 : vector<2x1xf32>
    %794 = math.rsqrt %793 : vector<2x1xf32>
    %795 = vector.broadcast %794 : vector<2x1xf32> to vector<2x128xf32>
    %796 = arith.mulf %791, %795 : vector<2x128xf32>
    %797 = arith.mulf %796, %3 : vector<2x128xf32>
    %798 = arith.addf %797, %15 : vector<2x128xf32>
    %799 = arith.negf %798 : vector<2x128xf32>
    %800 = math.exp %799 : vector<2x128xf32>
    %cst_230 = arith.constant 1.000000e+00 : f32
    %801 = vector.broadcast %cst_230 : f32 to vector<2x128xf32>
    %802 = arith.addf %801, %800 : vector<2x128xf32>
    %803 = arith.divf %801, %802 : vector<2x128xf32>
    %804 = vector.extract_strided_slice %61 {offsets = [0, 128], sizes = [2, 128], strides = [1, 1]} : vector<2x384xf32> to vector<2x128xf32>
    %805 = vector.extract_strided_slice %775 {offsets = [0, 128], sizes = [2, 128], strides = [1, 1]} : vector<2x256xf32> to vector<2x128xf32>
    %806 = arith.addf %804, %805 : vector<2x128xf32>
    %cst_231 = arith.constant dense<0.000000e+00> : vector<2xf32>
    %807 = vector.multi_reduction <add>, %806, %cst_231 [1] : vector<2x128xf32> to vector<2xf32>
    %808 = vector.shape_cast %807 : vector<2xf32> to vector<2x1xf32>
    %cst_232 = arith.constant 3.125000e-02 : f32
    %809 = vector.broadcast %cst_232 : f32 to vector<2x1xf32>
    %810 = arith.mulf %808, %809 : vector<2x1xf32>
    %811 = arith.mulf %806, %806 : vector<2x128xf32>
    %cst_233 = arith.constant dense<0.000000e+00> : vector<2xf32>
    %812 = vector.multi_reduction <add>, %811, %cst_233 [1] : vector<2x128xf32> to vector<2xf32>
    %813 = vector.shape_cast %812 : vector<2xf32> to vector<2x1xf32>
    %cst_234 = arith.constant 3.125000e-02 : f32
    %814 = vector.broadcast %cst_234 : f32 to vector<2x1xf32>
    %815 = arith.mulf %813, %814 : vector<2x1xf32>
    %816 = arith.mulf %810, %810 : vector<2x1xf32>
    %817 = arith.subf %815, %816 : vector<2x1xf32>
    %818 = vector.broadcast %810 : vector<2x1xf32> to vector<2x128xf32>
    %819 = arith.subf %806, %818 : vector<2x128xf32>
    %cst_235 = arith.constant 9.99999974E-6 : f32
    %820 = vector.broadcast %cst_235 : f32 to vector<2x1xf32>
    %821 = arith.addf %817, %820 : vector<2x1xf32>
    %822 = math.rsqrt %821 : vector<2x1xf32>
    %823 = vector.broadcast %822 : vector<2x1xf32> to vector<2x128xf32>
    %824 = arith.mulf %819, %823 : vector<2x128xf32>
    %825 = arith.mulf %824, %7 : vector<2x128xf32>
    %826 = arith.addf %825, %19 : vector<2x128xf32>
    %827 = arith.negf %826 : vector<2x128xf32>
    %828 = math.exp %827 : vector<2x128xf32>
    %cst_236 = arith.constant 1.000000e+00 : f32
    %829 = vector.broadcast %cst_236 : f32 to vector<2x128xf32>
    %830 = arith.addf %829, %828 : vector<2x128xf32>
    %831 = arith.divf %829, %830 : vector<2x128xf32>
    %832 = arith.mulf %831, %685 : vector<2x128xf32>
    %c0_237 = arith.constant 0 : index
    %c0_238 = arith.constant 0 : index
    %833 = vector.load %arg4[%c0_237, %c0_238] : memref<128x128xf32, #tpu.memory_space<vmem>>, vector<128x128xf32>
    %cst_239 = arith.constant dense<0.000000e+00> : vector<2x128xf32>
    %834 = tpu.matmul %832, %833, %cst_239 {dimension_numbers = #tpu.dot_dimension_numbers<[1], [0], [0], [1], [0, 0, 1, 1], [], []>} : vector<2x128xf32>, vector<128x128xf32>, vector<2x128xf32> -> vector<2x128xf32>
    %835 = vector.extract_strided_slice %61 {offsets = [0, 256], sizes = [2, 128], strides = [1, 1]} : vector<2x384xf32> to vector<2x128xf32>
    %836 = arith.addf %835, %834 : vector<2x128xf32>
    %cst_240 = arith.constant dense<0.000000e+00> : vector<2xf32>
    %837 = vector.multi_reduction <add>, %836, %cst_240 [1] : vector<2x128xf32> to vector<2xf32>
    %838 = vector.shape_cast %837 : vector<2xf32> to vector<2x1xf32>
    %cst_241 = arith.constant 3.125000e-02 : f32
    %839 = vector.broadcast %cst_241 : f32 to vector<2x1xf32>
    %840 = arith.mulf %838, %839 : vector<2x1xf32>
    %841 = arith.mulf %836, %836 : vector<2x128xf32>
    %cst_242 = arith.constant dense<0.000000e+00> : vector<2xf32>
    %842 = vector.multi_reduction <add>, %841, %cst_242 [1] : vector<2x128xf32> to vector<2xf32>
    %843 = vector.shape_cast %842 : vector<2xf32> to vector<2x1xf32>
    %cst_243 = arith.constant 3.125000e-02 : f32
    %844 = vector.broadcast %cst_243 : f32 to vector<2x1xf32>
    %845 = arith.mulf %843, %844 : vector<2x1xf32>
    %846 = arith.mulf %840, %840 : vector<2x1xf32>
    %847 = arith.subf %845, %846 : vector<2x1xf32>
    %848 = vector.broadcast %840 : vector<2x1xf32> to vector<2x128xf32>
    %849 = arith.subf %836, %848 : vector<2x128xf32>
    %cst_244 = arith.constant 9.99999974E-6 : f32
    %850 = vector.broadcast %cst_244 : f32 to vector<2x1xf32>
    %851 = arith.addf %847, %850 : vector<2x1xf32>
    %852 = math.rsqrt %851 : vector<2x1xf32>
    %853 = vector.broadcast %852 : vector<2x1xf32> to vector<2x128xf32>
    %854 = arith.mulf %849, %853 : vector<2x128xf32>
    %855 = arith.mulf %854, %11 : vector<2x128xf32>
    %856 = arith.addf %855, %23 : vector<2x128xf32>
    %857 = math.tanh %856 : vector<2x128xf32>
    %cst_245 = arith.constant 1.000000e+00 : f32
    %858 = vector.broadcast %cst_245 : f32 to vector<2x128xf32>
    %859 = arith.subf %858, %803 : vector<2x128xf32>
    %860 = arith.mulf %859, %685 : vector<2x128xf32>
    %861 = arith.mulf %803, %857 : vector<2x128xf32>
    %862 = arith.addf %860, %861 : vector<2x128xf32>
    %863 = tpu.concatenate %862, %772 in 1 : vector<2x128xf32>, vector<2x128xf32> -> vector<2x256xf32>
    %c0_246 = arith.constant 0 : index
    %c0_247 = arith.constant 0 : index
    %864 = vector.load %arg7[%c0_246, %c0_247] : memref<256x384xf32, #tpu.memory_space<vmem>>, vector<256x384xf32>
    %cst_248 = arith.constant dense<0.000000e+00> : vector<2x384xf32>
    %865 = tpu.matmul %863, %864, %cst_248 {dimension_numbers = #tpu.dot_dimension_numbers<[1], [0], [0], [1], [0, 0, 1, 1], [], []>} : vector<2x256xf32>, vector<256x384xf32>, vector<2x384xf32> -> vector<2x384xf32>
    %866 = arith.addf %865, %50 : vector<2x384xf32>
    %867 = vector.extract_strided_slice %866 {offsets = [0, 0], sizes = [2, 128], strides = [1, 1]} : vector<2x384xf32> to vector<2x128xf32>
    %cst_249 = arith.constant dense<0.000000e+00> : vector<2xf32>
    %868 = vector.multi_reduction <add>, %867, %cst_249 [1] : vector<2x128xf32> to vector<2xf32>
    %869 = vector.shape_cast %868 : vector<2xf32> to vector<2x1xf32>
    %cst_250 = arith.constant 3.125000e-02 : f32
    %870 = vector.broadcast %cst_250 : f32 to vector<2x1xf32>
    %871 = arith.mulf %869, %870 : vector<2x1xf32>
    %872 = arith.mulf %867, %867 : vector<2x128xf32>
    %cst_251 = arith.constant dense<0.000000e+00> : vector<2xf32>
    %873 = vector.multi_reduction <add>, %872, %cst_251 [1] : vector<2x128xf32> to vector<2xf32>
    %874 = vector.shape_cast %873 : vector<2xf32> to vector<2x1xf32>
    %cst_252 = arith.constant 3.125000e-02 : f32
    %875 = vector.broadcast %cst_252 : f32 to vector<2x1xf32>
    %876 = arith.mulf %874, %875 : vector<2x1xf32>
    %877 = arith.mulf %871, %871 : vector<2x1xf32>
    %878 = arith.subf %876, %877 : vector<2x1xf32>
    %879 = vector.broadcast %871 : vector<2x1xf32> to vector<2x128xf32>
    %880 = arith.subf %867, %879 : vector<2x128xf32>
    %cst_253 = arith.constant 9.99999974E-6 : f32
    %881 = vector.broadcast %cst_253 : f32 to vector<2x1xf32>
    %882 = arith.addf %878, %881 : vector<2x1xf32>
    %883 = math.rsqrt %882 : vector<2x1xf32>
    %884 = vector.broadcast %883 : vector<2x1xf32> to vector<2x128xf32>
    %885 = arith.mulf %880, %884 : vector<2x128xf32>
    %886 = arith.mulf %885, %27 : vector<2x128xf32>
    %887 = arith.addf %886, %39 : vector<2x128xf32>
    %888 = arith.negf %887 : vector<2x128xf32>
    %889 = math.exp %888 : vector<2x128xf32>
    %cst_254 = arith.constant 1.000000e+00 : f32
    %890 = vector.broadcast %cst_254 : f32 to vector<2x128xf32>
    %891 = arith.addf %890, %889 : vector<2x128xf32>
    %892 = arith.divf %890, %891 : vector<2x128xf32>
    %893 = vector.extract_strided_slice %866 {offsets = [0, 128], sizes = [2, 128], strides = [1, 1]} : vector<2x384xf32> to vector<2x128xf32>
    %cst_255 = arith.constant dense<0.000000e+00> : vector<2xf32>
    %894 = vector.multi_reduction <add>, %893, %cst_255 [1] : vector<2x128xf32> to vector<2xf32>
    %895 = vector.shape_cast %894 : vector<2xf32> to vector<2x1xf32>
    %cst_256 = arith.constant 3.125000e-02 : f32
    %896 = vector.broadcast %cst_256 : f32 to vector<2x1xf32>
    %897 = arith.mulf %895, %896 : vector<2x1xf32>
    %898 = arith.mulf %893, %893 : vector<2x128xf32>
    %cst_257 = arith.constant dense<0.000000e+00> : vector<2xf32>
    %899 = vector.multi_reduction <add>, %898, %cst_257 [1] : vector<2x128xf32> to vector<2xf32>
    %900 = vector.shape_cast %899 : vector<2xf32> to vector<2x1xf32>
    %cst_258 = arith.constant 3.125000e-02 : f32
    %901 = vector.broadcast %cst_258 : f32 to vector<2x1xf32>
    %902 = arith.mulf %900, %901 : vector<2x1xf32>
    %903 = arith.mulf %897, %897 : vector<2x1xf32>
    %904 = arith.subf %902, %903 : vector<2x1xf32>
    %905 = vector.broadcast %897 : vector<2x1xf32> to vector<2x128xf32>
    %906 = arith.subf %893, %905 : vector<2x128xf32>
    %cst_259 = arith.constant 9.99999974E-6 : f32
    %907 = vector.broadcast %cst_259 : f32 to vector<2x1xf32>
    %908 = arith.addf %904, %907 : vector<2x1xf32>
    %909 = math.rsqrt %908 : vector<2x1xf32>
    %910 = vector.broadcast %909 : vector<2x1xf32> to vector<2x128xf32>
    %911 = arith.mulf %906, %910 : vector<2x128xf32>
    %912 = arith.mulf %911, %31 : vector<2x128xf32>
    %913 = arith.addf %912, %43 : vector<2x128xf32>
    %914 = arith.negf %913 : vector<2x128xf32>
    %915 = math.exp %914 : vector<2x128xf32>
    %cst_260 = arith.constant 1.000000e+00 : f32
    %916 = vector.broadcast %cst_260 : f32 to vector<2x128xf32>
    %917 = arith.addf %916, %915 : vector<2x128xf32>
    %918 = arith.divf %916, %917 : vector<2x128xf32>
    %919 = arith.mulf %918, %772 : vector<2x128xf32>
    %c0_261 = arith.constant 0 : index
    %c0_262 = arith.constant 0 : index
    %920 = vector.load %arg9[%c0_261, %c0_262] : memref<128x128xf32, #tpu.memory_space<vmem>>, vector<128x128xf32>
    %cst_263 = arith.constant dense<0.000000e+00> : vector<2x128xf32>
    %921 = tpu.matmul %919, %920, %cst_263 {dimension_numbers = #tpu.dot_dimension_numbers<[1], [0], [0], [1], [0, 0, 1, 1], [], []>} : vector<2x128xf32>, vector<128x128xf32>, vector<2x128xf32> -> vector<2x128xf32>
    %922 = vector.extract_strided_slice %866 {offsets = [0, 256], sizes = [2, 128], strides = [1, 1]} : vector<2x384xf32> to vector<2x128xf32>
    %923 = arith.addf %922, %921 : vector<2x128xf32>
    %cst_264 = arith.constant dense<0.000000e+00> : vector<2xf32>
    %924 = vector.multi_reduction <add>, %923, %cst_264 [1] : vector<2x128xf32> to vector<2xf32>
    %925 = vector.shape_cast %924 : vector<2xf32> to vector<2x1xf32>
    %cst_265 = arith.constant 3.125000e-02 : f32
    %926 = vector.broadcast %cst_265 : f32 to vector<2x1xf32>
    %927 = arith.mulf %925, %926 : vector<2x1xf32>
    %928 = arith.mulf %923, %923 : vector<2x128xf32>
    %cst_266 = arith.constant dense<0.000000e+00> : vector<2xf32>
    %929 = vector.multi_reduction <add>, %928, %cst_266 [1] : vector<2x128xf32> to vector<2xf32>
    %930 = vector.shape_cast %929 : vector<2xf32> to vector<2x1xf32>
    %cst_267 = arith.constant 3.125000e-02 : f32
    %931 = vector.broadcast %cst_267 : f32 to vector<2x1xf32>
    %932 = arith.mulf %930, %931 : vector<2x1xf32>
    %933 = arith.mulf %927, %927 : vector<2x1xf32>
    %934 = arith.subf %932, %933 : vector<2x1xf32>
    %935 = vector.broadcast %927 : vector<2x1xf32> to vector<2x128xf32>
    %936 = arith.subf %923, %935 : vector<2x128xf32>
    %cst_268 = arith.constant 9.99999974E-6 : f32
    %937 = vector.broadcast %cst_268 : f32 to vector<2x1xf32>
    %938 = arith.addf %934, %937 : vector<2x1xf32>
    %939 = math.rsqrt %938 : vector<2x1xf32>
    %940 = vector.broadcast %939 : vector<2x1xf32> to vector<2x128xf32>
    %941 = arith.mulf %936, %940 : vector<2x128xf32>
    %942 = arith.mulf %941, %35 : vector<2x128xf32>
    %943 = arith.addf %942, %47 : vector<2x128xf32>
    %944 = math.tanh %943 : vector<2x128xf32>
    %cst_269 = arith.constant 1.000000e+00 : f32
    %945 = vector.broadcast %cst_269 : f32 to vector<2x128xf32>
    %946 = arith.subf %945, %892 : vector<2x128xf32>
    %947 = arith.mulf %946, %772 : vector<2x128xf32>
    %948 = arith.mulf %892, %944 : vector<2x128xf32>
    %949 = arith.addf %947, %948 : vector<2x128xf32>
    %950 = arith.addf %773, %949 : vector<2x128xf32>
    %c0_270 = arith.constant 0 : index
    %c0_271 = arith.constant 0 : index
    %951 = vector.load %arg3[%c0_270, %c0_271] : memref<128x256xf32, #tpu.memory_space<vmem>>, vector<128x256xf32>
    %cst_272 = arith.constant dense<0.000000e+00> : vector<2x256xf32>
    %952 = tpu.matmul %862, %951, %cst_272 {dimension_numbers = #tpu.dot_dimension_numbers<[1], [0], [0], [1], [0, 0, 1, 1], [], []>} : vector<2x128xf32>, vector<128x256xf32>, vector<2x256xf32> -> vector<2x256xf32>
    %953 = vector.extract_strided_slice %62 {offsets = [0, 0], sizes = [2, 128], strides = [1, 1]} : vector<2x384xf32> to vector<2x128xf32>
    %954 = vector.extract_strided_slice %952 {offsets = [0, 0], sizes = [2, 128], strides = [1, 1]} : vector<2x256xf32> to vector<2x128xf32>
    %955 = arith.addf %953, %954 : vector<2x128xf32>
    %cst_273 = arith.constant dense<0.000000e+00> : vector<2xf32>
    %956 = vector.multi_reduction <add>, %955, %cst_273 [1] : vector<2x128xf32> to vector<2xf32>
    %957 = vector.shape_cast %956 : vector<2xf32> to vector<2x1xf32>
    %cst_274 = arith.constant 3.125000e-02 : f32
    %958 = vector.broadcast %cst_274 : f32 to vector<2x1xf32>
    %959 = arith.mulf %957, %958 : vector<2x1xf32>
    %960 = arith.mulf %955, %955 : vector<2x128xf32>
    %cst_275 = arith.constant dense<0.000000e+00> : vector<2xf32>
    %961 = vector.multi_reduction <add>, %960, %cst_275 [1] : vector<2x128xf32> to vector<2xf32>
    %962 = vector.shape_cast %961 : vector<2xf32> to vector<2x1xf32>
    %cst_276 = arith.constant 3.125000e-02 : f32
    %963 = vector.broadcast %cst_276 : f32 to vector<2x1xf32>
    %964 = arith.mulf %962, %963 : vector<2x1xf32>
    %965 = arith.mulf %959, %959 : vector<2x1xf32>
    %966 = arith.subf %964, %965 : vector<2x1xf32>
    %967 = vector.broadcast %959 : vector<2x1xf32> to vector<2x128xf32>
    %968 = arith.subf %955, %967 : vector<2x128xf32>
    %cst_277 = arith.constant 9.99999974E-6 : f32
    %969 = vector.broadcast %cst_277 : f32 to vector<2x1xf32>
    %970 = arith.addf %966, %969 : vector<2x1xf32>
    %971 = math.rsqrt %970 : vector<2x1xf32>
    %972 = vector.broadcast %971 : vector<2x1xf32> to vector<2x128xf32>
    %973 = arith.mulf %968, %972 : vector<2x128xf32>
    %974 = arith.mulf %973, %3 : vector<2x128xf32>
    %975 = arith.addf %974, %15 : vector<2x128xf32>
    %976 = arith.negf %975 : vector<2x128xf32>
    %977 = math.exp %976 : vector<2x128xf32>
    %cst_278 = arith.constant 1.000000e+00 : f32
    %978 = vector.broadcast %cst_278 : f32 to vector<2x128xf32>
    %979 = arith.addf %978, %977 : vector<2x128xf32>
    %980 = arith.divf %978, %979 : vector<2x128xf32>
    %981 = vector.extract_strided_slice %62 {offsets = [0, 128], sizes = [2, 128], strides = [1, 1]} : vector<2x384xf32> to vector<2x128xf32>
    %982 = vector.extract_strided_slice %952 {offsets = [0, 128], sizes = [2, 128], strides = [1, 1]} : vector<2x256xf32> to vector<2x128xf32>
    %983 = arith.addf %981, %982 : vector<2x128xf32>
    %cst_279 = arith.constant dense<0.000000e+00> : vector<2xf32>
    %984 = vector.multi_reduction <add>, %983, %cst_279 [1] : vector<2x128xf32> to vector<2xf32>
    %985 = vector.shape_cast %984 : vector<2xf32> to vector<2x1xf32>
    %cst_280 = arith.constant 3.125000e-02 : f32
    %986 = vector.broadcast %cst_280 : f32 to vector<2x1xf32>
    %987 = arith.mulf %985, %986 : vector<2x1xf32>
    %988 = arith.mulf %983, %983 : vector<2x128xf32>
    %cst_281 = arith.constant dense<0.000000e+00> : vector<2xf32>
    %989 = vector.multi_reduction <add>, %988, %cst_281 [1] : vector<2x128xf32> to vector<2xf32>
    %990 = vector.shape_cast %989 : vector<2xf32> to vector<2x1xf32>
    %cst_282 = arith.constant 3.125000e-02 : f32
    %991 = vector.broadcast %cst_282 : f32 to vector<2x1xf32>
    %992 = arith.mulf %990, %991 : vector<2x1xf32>
    %993 = arith.mulf %987, %987 : vector<2x1xf32>
    %994 = arith.subf %992, %993 : vector<2x1xf32>
    %995 = vector.broadcast %987 : vector<2x1xf32> to vector<2x128xf32>
    %996 = arith.subf %983, %995 : vector<2x128xf32>
    %cst_283 = arith.constant 9.99999974E-6 : f32
    %997 = vector.broadcast %cst_283 : f32 to vector<2x1xf32>
    %998 = arith.addf %994, %997 : vector<2x1xf32>
    %999 = math.rsqrt %998 : vector<2x1xf32>
    %1000 = vector.broadcast %999 : vector<2x1xf32> to vector<2x128xf32>
    %1001 = arith.mulf %996, %1000 : vector<2x128xf32>
    %1002 = arith.mulf %1001, %7 : vector<2x128xf32>
    %1003 = arith.addf %1002, %19 : vector<2x128xf32>
    %1004 = arith.negf %1003 : vector<2x128xf32>
    %1005 = math.exp %1004 : vector<2x128xf32>
    %cst_284 = arith.constant 1.000000e+00 : f32
    %1006 = vector.broadcast %cst_284 : f32 to vector<2x128xf32>
    %1007 = arith.addf %1006, %1005 : vector<2x128xf32>
    %1008 = arith.divf %1006, %1007 : vector<2x128xf32>
    %1009 = arith.mulf %1008, %862 : vector<2x128xf32>
    %c0_285 = arith.constant 0 : index
    %c0_286 = arith.constant 0 : index
    %1010 = vector.load %arg4[%c0_285, %c0_286] : memref<128x128xf32, #tpu.memory_space<vmem>>, vector<128x128xf32>
    %cst_287 = arith.constant dense<0.000000e+00> : vector<2x128xf32>
    %1011 = tpu.matmul %1009, %1010, %cst_287 {dimension_numbers = #tpu.dot_dimension_numbers<[1], [0], [0], [1], [0, 0, 1, 1], [], []>} : vector<2x128xf32>, vector<128x128xf32>, vector<2x128xf32> -> vector<2x128xf32>
    %1012 = vector.extract_strided_slice %62 {offsets = [0, 256], sizes = [2, 128], strides = [1, 1]} : vector<2x384xf32> to vector<2x128xf32>
    %1013 = arith.addf %1012, %1011 : vector<2x128xf32>
    %cst_288 = arith.constant dense<0.000000e+00> : vector<2xf32>
    %1014 = vector.multi_reduction <add>, %1013, %cst_288 [1] : vector<2x128xf32> to vector<2xf32>
    %1015 = vector.shape_cast %1014 : vector<2xf32> to vector<2x1xf32>
    %cst_289 = arith.constant 3.125000e-02 : f32
    %1016 = vector.broadcast %cst_289 : f32 to vector<2x1xf32>
    %1017 = arith.mulf %1015, %1016 : vector<2x1xf32>
    %1018 = arith.mulf %1013, %1013 : vector<2x128xf32>
    %cst_290 = arith.constant dense<0.000000e+00> : vector<2xf32>
    %1019 = vector.multi_reduction <add>, %1018, %cst_290 [1] : vector<2x128xf32> to vector<2xf32>
    %1020 = vector.shape_cast %1019 : vector<2xf32> to vector<2x1xf32>
    %cst_291 = arith.constant 3.125000e-02 : f32
    %1021 = vector.broadcast %cst_291 : f32 to vector<2x1xf32>
    %1022 = arith.mulf %1020, %1021 : vector<2x1xf32>
    %1023 = arith.mulf %1017, %1017 : vector<2x1xf32>
    %1024 = arith.subf %1022, %1023 : vector<2x1xf32>
    %1025 = vector.broadcast %1017 : vector<2x1xf32> to vector<2x128xf32>
    %1026 = arith.subf %1013, %1025 : vector<2x128xf32>
    %cst_292 = arith.constant 9.99999974E-6 : f32
    %1027 = vector.broadcast %cst_292 : f32 to vector<2x1xf32>
    %1028 = arith.addf %1024, %1027 : vector<2x1xf32>
    %1029 = math.rsqrt %1028 : vector<2x1xf32>
    %1030 = vector.broadcast %1029 : vector<2x1xf32> to vector<2x128xf32>
    %1031 = arith.mulf %1026, %1030 : vector<2x128xf32>
    %1032 = arith.mulf %1031, %11 : vector<2x128xf32>
    %1033 = arith.addf %1032, %23 : vector<2x128xf32>
    %1034 = math.tanh %1033 : vector<2x128xf32>
    %cst_293 = arith.constant 1.000000e+00 : f32
    %1035 = vector.broadcast %cst_293 : f32 to vector<2x128xf32>
    %1036 = arith.subf %1035, %980 : vector<2x128xf32>
    %1037 = arith.mulf %1036, %862 : vector<2x128xf32>
    %1038 = arith.mulf %980, %1034 : vector<2x128xf32>
    %1039 = arith.addf %1037, %1038 : vector<2x128xf32>
    %1040 = tpu.concatenate %1039, %949 in 1 : vector<2x128xf32>, vector<2x128xf32> -> vector<2x256xf32>
    %c0_294 = arith.constant 0 : index
    %c0_295 = arith.constant 0 : index
    %1041 = vector.load %arg7[%c0_294, %c0_295] : memref<256x384xf32, #tpu.memory_space<vmem>>, vector<256x384xf32>
    %cst_296 = arith.constant dense<0.000000e+00> : vector<2x384xf32>
    %1042 = tpu.matmul %1040, %1041, %cst_296 {dimension_numbers = #tpu.dot_dimension_numbers<[1], [0], [0], [1], [0, 0, 1, 1], [], []>} : vector<2x256xf32>, vector<256x384xf32>, vector<2x384xf32> -> vector<2x384xf32>
    %1043 = arith.addf %1042, %50 : vector<2x384xf32>
    %1044 = vector.extract_strided_slice %1043 {offsets = [0, 0], sizes = [2, 128], strides = [1, 1]} : vector<2x384xf32> to vector<2x128xf32>
    %cst_297 = arith.constant dense<0.000000e+00> : vector<2xf32>
    %1045 = vector.multi_reduction <add>, %1044, %cst_297 [1] : vector<2x128xf32> to vector<2xf32>
    %1046 = vector.shape_cast %1045 : vector<2xf32> to vector<2x1xf32>
    %cst_298 = arith.constant 3.125000e-02 : f32
    %1047 = vector.broadcast %cst_298 : f32 to vector<2x1xf32>
    %1048 = arith.mulf %1046, %1047 : vector<2x1xf32>
    %1049 = arith.mulf %1044, %1044 : vector<2x128xf32>
    %cst_299 = arith.constant dense<0.000000e+00> : vector<2xf32>
    %1050 = vector.multi_reduction <add>, %1049, %cst_299 [1] : vector<2x128xf32> to vector<2xf32>
    %1051 = vector.shape_cast %1050 : vector<2xf32> to vector<2x1xf32>
    %cst_300 = arith.constant 3.125000e-02 : f32
    %1052 = vector.broadcast %cst_300 : f32 to vector<2x1xf32>
    %1053 = arith.mulf %1051, %1052 : vector<2x1xf32>
    %1054 = arith.mulf %1048, %1048 : vector<2x1xf32>
    %1055 = arith.subf %1053, %1054 : vector<2x1xf32>
    %1056 = vector.broadcast %1048 : vector<2x1xf32> to vector<2x128xf32>
    %1057 = arith.subf %1044, %1056 : vector<2x128xf32>
    %cst_301 = arith.constant 9.99999974E-6 : f32
    %1058 = vector.broadcast %cst_301 : f32 to vector<2x1xf32>
    %1059 = arith.addf %1055, %1058 : vector<2x1xf32>
    %1060 = math.rsqrt %1059 : vector<2x1xf32>
    %1061 = vector.broadcast %1060 : vector<2x1xf32> to vector<2x128xf32>
    %1062 = arith.mulf %1057, %1061 : vector<2x128xf32>
    %1063 = arith.mulf %1062, %27 : vector<2x128xf32>
    %1064 = arith.addf %1063, %39 : vector<2x128xf32>
    %1065 = arith.negf %1064 : vector<2x128xf32>
    %1066 = math.exp %1065 : vector<2x128xf32>
    %cst_302 = arith.constant 1.000000e+00 : f32
    %1067 = vector.broadcast %cst_302 : f32 to vector<2x128xf32>
    %1068 = arith.addf %1067, %1066 : vector<2x128xf32>
    %1069 = arith.divf %1067, %1068 : vector<2x128xf32>
    %1070 = vector.extract_strided_slice %1043 {offsets = [0, 128], sizes = [2, 128], strides = [1, 1]} : vector<2x384xf32> to vector<2x128xf32>
    %cst_303 = arith.constant dense<0.000000e+00> : vector<2xf32>
    %1071 = vector.multi_reduction <add>, %1070, %cst_303 [1] : vector<2x128xf32> to vector<2xf32>
    %1072 = vector.shape_cast %1071 : vector<2xf32> to vector<2x1xf32>
    %cst_304 = arith.constant 3.125000e-02 : f32
    %1073 = vector.broadcast %cst_304 : f32 to vector<2x1xf32>
    %1074 = arith.mulf %1072, %1073 : vector<2x1xf32>
    %1075 = arith.mulf %1070, %1070 : vector<2x128xf32>
    %cst_305 = arith.constant dense<0.000000e+00> : vector<2xf32>
    %1076 = vector.multi_reduction <add>, %1075, %cst_305 [1] : vector<2x128xf32> to vector<2xf32>
    %1077 = vector.shape_cast %1076 : vector<2xf32> to vector<2x1xf32>
    %cst_306 = arith.constant 3.125000e-02 : f32
    %1078 = vector.broadcast %cst_306 : f32 to vector<2x1xf32>
    %1079 = arith.mulf %1077, %1078 : vector<2x1xf32>
    %1080 = arith.mulf %1074, %1074 : vector<2x1xf32>
    %1081 = arith.subf %1079, %1080 : vector<2x1xf32>
    %1082 = vector.broadcast %1074 : vector<2x1xf32> to vector<2x128xf32>
    %1083 = arith.subf %1070, %1082 : vector<2x128xf32>
    %cst_307 = arith.constant 9.99999974E-6 : f32
    %1084 = vector.broadcast %cst_307 : f32 to vector<2x1xf32>
    %1085 = arith.addf %1081, %1084 : vector<2x1xf32>
    %1086 = math.rsqrt %1085 : vector<2x1xf32>
    %1087 = vector.broadcast %1086 : vector<2x1xf32> to vector<2x128xf32>
    %1088 = arith.mulf %1083, %1087 : vector<2x128xf32>
    %1089 = arith.mulf %1088, %31 : vector<2x128xf32>
    %1090 = arith.addf %1089, %43 : vector<2x128xf32>
    %1091 = arith.negf %1090 : vector<2x128xf32>
    %1092 = math.exp %1091 : vector<2x128xf32>
    %cst_308 = arith.constant 1.000000e+00 : f32
    %1093 = vector.broadcast %cst_308 : f32 to vector<2x128xf32>
    %1094 = arith.addf %1093, %1092 : vector<2x128xf32>
    %1095 = arith.divf %1093, %1094 : vector<2x128xf32>
    %1096 = arith.mulf %1095, %949 : vector<2x128xf32>
    %c0_309 = arith.constant 0 : index
    %c0_310 = arith.constant 0 : index
    %1097 = vector.load %arg9[%c0_309, %c0_310] : memref<128x128xf32, #tpu.memory_space<vmem>>, vector<128x128xf32>
    %cst_311 = arith.constant dense<0.000000e+00> : vector<2x128xf32>
    %1098 = tpu.matmul %1096, %1097, %cst_311 {dimension_numbers = #tpu.dot_dimension_numbers<[1], [0], [0], [1], [0, 0, 1, 1], [], []>} : vector<2x128xf32>, vector<128x128xf32>, vector<2x128xf32> -> vector<2x128xf32>
    %1099 = vector.extract_strided_slice %1043 {offsets = [0, 256], sizes = [2, 128], strides = [1, 1]} : vector<2x384xf32> to vector<2x128xf32>
    %1100 = arith.addf %1099, %1098 : vector<2x128xf32>
    %cst_312 = arith.constant dense<0.000000e+00> : vector<2xf32>
    %1101 = vector.multi_reduction <add>, %1100, %cst_312 [1] : vector<2x128xf32> to vector<2xf32>
    %1102 = vector.shape_cast %1101 : vector<2xf32> to vector<2x1xf32>
    %cst_313 = arith.constant 3.125000e-02 : f32
    %1103 = vector.broadcast %cst_313 : f32 to vector<2x1xf32>
    %1104 = arith.mulf %1102, %1103 : vector<2x1xf32>
    %1105 = arith.mulf %1100, %1100 : vector<2x128xf32>
    %cst_314 = arith.constant dense<0.000000e+00> : vector<2xf32>
    %1106 = vector.multi_reduction <add>, %1105, %cst_314 [1] : vector<2x128xf32> to vector<2xf32>
    %1107 = vector.shape_cast %1106 : vector<2xf32> to vector<2x1xf32>
    %cst_315 = arith.constant 3.125000e-02 : f32
    %1108 = vector.broadcast %cst_315 : f32 to vector<2x1xf32>
    %1109 = arith.mulf %1107, %1108 : vector<2x1xf32>
    %1110 = arith.mulf %1104, %1104 : vector<2x1xf32>
    %1111 = arith.subf %1109, %1110 : vector<2x1xf32>
    %1112 = vector.broadcast %1104 : vector<2x1xf32> to vector<2x128xf32>
    %1113 = arith.subf %1100, %1112 : vector<2x128xf32>
    %cst_316 = arith.constant 9.99999974E-6 : f32
    %1114 = vector.broadcast %cst_316 : f32 to vector<2x1xf32>
    %1115 = arith.addf %1111, %1114 : vector<2x1xf32>
    %1116 = math.rsqrt %1115 : vector<2x1xf32>
    %1117 = vector.broadcast %1116 : vector<2x1xf32> to vector<2x128xf32>
    %1118 = arith.mulf %1113, %1117 : vector<2x128xf32>
    %1119 = arith.mulf %1118, %35 : vector<2x128xf32>
    %1120 = arith.addf %1119, %47 : vector<2x128xf32>
    %1121 = math.tanh %1120 : vector<2x128xf32>
    %cst_317 = arith.constant 1.000000e+00 : f32
    %1122 = vector.broadcast %cst_317 : f32 to vector<2x128xf32>
    %1123 = arith.subf %1122, %1069 : vector<2x128xf32>
    %1124 = arith.mulf %1123, %949 : vector<2x128xf32>
    %1125 = arith.mulf %1069, %1121 : vector<2x128xf32>
    %1126 = arith.addf %1124, %1125 : vector<2x128xf32>
    %1127 = arith.addf %950, %1126 : vector<2x128xf32>
    %c0_318 = arith.constant 0 : index
    %c0_319 = arith.constant 0 : index
    %1128 = vector.load %arg3[%c0_318, %c0_319] : memref<128x256xf32, #tpu.memory_space<vmem>>, vector<128x256xf32>
    %cst_320 = arith.constant dense<0.000000e+00> : vector<2x256xf32>
    %1129 = tpu.matmul %1039, %1128, %cst_320 {dimension_numbers = #tpu.dot_dimension_numbers<[1], [0], [0], [1], [0, 0, 1, 1], [], []>} : vector<2x128xf32>, vector<128x256xf32>, vector<2x256xf32> -> vector<2x256xf32>
    %1130 = vector.extract_strided_slice %63 {offsets = [0, 0], sizes = [2, 128], strides = [1, 1]} : vector<2x384xf32> to vector<2x128xf32>
    %1131 = vector.extract_strided_slice %1129 {offsets = [0, 0], sizes = [2, 128], strides = [1, 1]} : vector<2x256xf32> to vector<2x128xf32>
    %1132 = arith.addf %1130, %1131 : vector<2x128xf32>
    %cst_321 = arith.constant dense<0.000000e+00> : vector<2xf32>
    %1133 = vector.multi_reduction <add>, %1132, %cst_321 [1] : vector<2x128xf32> to vector<2xf32>
    %1134 = vector.shape_cast %1133 : vector<2xf32> to vector<2x1xf32>
    %cst_322 = arith.constant 3.125000e-02 : f32
    %1135 = vector.broadcast %cst_322 : f32 to vector<2x1xf32>
    %1136 = arith.mulf %1134, %1135 : vector<2x1xf32>
    %1137 = arith.mulf %1132, %1132 : vector<2x128xf32>
    %cst_323 = arith.constant dense<0.000000e+00> : vector<2xf32>
    %1138 = vector.multi_reduction <add>, %1137, %cst_323 [1] : vector<2x128xf32> to vector<2xf32>
    %1139 = vector.shape_cast %1138 : vector<2xf32> to vector<2x1xf32>
    %cst_324 = arith.constant 3.125000e-02 : f32
    %1140 = vector.broadcast %cst_324 : f32 to vector<2x1xf32>
    %1141 = arith.mulf %1139, %1140 : vector<2x1xf32>
    %1142 = arith.mulf %1136, %1136 : vector<2x1xf32>
    %1143 = arith.subf %1141, %1142 : vector<2x1xf32>
    %1144 = vector.broadcast %1136 : vector<2x1xf32> to vector<2x128xf32>
    %1145 = arith.subf %1132, %1144 : vector<2x128xf32>
    %cst_325 = arith.constant 9.99999974E-6 : f32
    %1146 = vector.broadcast %cst_325 : f32 to vector<2x1xf32>
    %1147 = arith.addf %1143, %1146 : vector<2x1xf32>
    %1148 = math.rsqrt %1147 : vector<2x1xf32>
    %1149 = vector.broadcast %1148 : vector<2x1xf32> to vector<2x128xf32>
    %1150 = arith.mulf %1145, %1149 : vector<2x128xf32>
    %1151 = arith.mulf %1150, %3 : vector<2x128xf32>
    %1152 = arith.addf %1151, %15 : vector<2x128xf32>
    %1153 = arith.negf %1152 : vector<2x128xf32>
    %1154 = math.exp %1153 : vector<2x128xf32>
    %cst_326 = arith.constant 1.000000e+00 : f32
    %1155 = vector.broadcast %cst_326 : f32 to vector<2x128xf32>
    %1156 = arith.addf %1155, %1154 : vector<2x128xf32>
    %1157 = arith.divf %1155, %1156 : vector<2x128xf32>
    %1158 = vector.extract_strided_slice %63 {offsets = [0, 128], sizes = [2, 128], strides = [1, 1]} : vector<2x384xf32> to vector<2x128xf32>
    %1159 = vector.extract_strided_slice %1129 {offsets = [0, 128], sizes = [2, 128], strides = [1, 1]} : vector<2x256xf32> to vector<2x128xf32>
    %1160 = arith.addf %1158, %1159 : vector<2x128xf32>
    %cst_327 = arith.constant dense<0.000000e+00> : vector<2xf32>
    %1161 = vector.multi_reduction <add>, %1160, %cst_327 [1] : vector<2x128xf32> to vector<2xf32>
    %1162 = vector.shape_cast %1161 : vector<2xf32> to vector<2x1xf32>
    %cst_328 = arith.constant 3.125000e-02 : f32
    %1163 = vector.broadcast %cst_328 : f32 to vector<2x1xf32>
    %1164 = arith.mulf %1162, %1163 : vector<2x1xf32>
    %1165 = arith.mulf %1160, %1160 : vector<2x128xf32>
    %cst_329 = arith.constant dense<0.000000e+00> : vector<2xf32>
    %1166 = vector.multi_reduction <add>, %1165, %cst_329 [1] : vector<2x128xf32> to vector<2xf32>
    %1167 = vector.shape_cast %1166 : vector<2xf32> to vector<2x1xf32>
    %cst_330 = arith.constant 3.125000e-02 : f32
    %1168 = vector.broadcast %cst_330 : f32 to vector<2x1xf32>
    %1169 = arith.mulf %1167, %1168 : vector<2x1xf32>
    %1170 = arith.mulf %1164, %1164 : vector<2x1xf32>
    %1171 = arith.subf %1169, %1170 : vector<2x1xf32>
    %1172 = vector.broadcast %1164 : vector<2x1xf32> to vector<2x128xf32>
    %1173 = arith.subf %1160, %1172 : vector<2x128xf32>
    %cst_331 = arith.constant 9.99999974E-6 : f32
    %1174 = vector.broadcast %cst_331 : f32 to vector<2x1xf32>
    %1175 = arith.addf %1171, %1174 : vector<2x1xf32>
    %1176 = math.rsqrt %1175 : vector<2x1xf32>
    %1177 = vector.broadcast %1176 : vector<2x1xf32> to vector<2x128xf32>
    %1178 = arith.mulf %1173, %1177 : vector<2x128xf32>
    %1179 = arith.mulf %1178, %7 : vector<2x128xf32>
    %1180 = arith.addf %1179, %19 : vector<2x128xf32>
    %1181 = arith.negf %1180 : vector<2x128xf32>
    %1182 = math.exp %1181 : vector<2x128xf32>
    %cst_332 = arith.constant 1.000000e+00 : f32
    %1183 = vector.broadcast %cst_332 : f32 to vector<2x128xf32>
    %1184 = arith.addf %1183, %1182 : vector<2x128xf32>
    %1185 = arith.divf %1183, %1184 : vector<2x128xf32>
    %1186 = arith.mulf %1185, %1039 : vector<2x128xf32>
    %c0_333 = arith.constant 0 : index
    %c0_334 = arith.constant 0 : index
    %1187 = vector.load %arg4[%c0_333, %c0_334] : memref<128x128xf32, #tpu.memory_space<vmem>>, vector<128x128xf32>
    %cst_335 = arith.constant dense<0.000000e+00> : vector<2x128xf32>
    %1188 = tpu.matmul %1186, %1187, %cst_335 {dimension_numbers = #tpu.dot_dimension_numbers<[1], [0], [0], [1], [0, 0, 1, 1], [], []>} : vector<2x128xf32>, vector<128x128xf32>, vector<2x128xf32> -> vector<2x128xf32>
    %1189 = vector.extract_strided_slice %63 {offsets = [0, 256], sizes = [2, 128], strides = [1, 1]} : vector<2x384xf32> to vector<2x128xf32>
    %1190 = arith.addf %1189, %1188 : vector<2x128xf32>
    %cst_336 = arith.constant dense<0.000000e+00> : vector<2xf32>
    %1191 = vector.multi_reduction <add>, %1190, %cst_336 [1] : vector<2x128xf32> to vector<2xf32>
    %1192 = vector.shape_cast %1191 : vector<2xf32> to vector<2x1xf32>
    %cst_337 = arith.constant 3.125000e-02 : f32
    %1193 = vector.broadcast %cst_337 : f32 to vector<2x1xf32>
    %1194 = arith.mulf %1192, %1193 : vector<2x1xf32>
    %1195 = arith.mulf %1190, %1190 : vector<2x128xf32>
    %cst_338 = arith.constant dense<0.000000e+00> : vector<2xf32>
    %1196 = vector.multi_reduction <add>, %1195, %cst_338 [1] : vector<2x128xf32> to vector<2xf32>
    %1197 = vector.shape_cast %1196 : vector<2xf32> to vector<2x1xf32>
    %cst_339 = arith.constant 3.125000e-02 : f32
    %1198 = vector.broadcast %cst_339 : f32 to vector<2x1xf32>
    %1199 = arith.mulf %1197, %1198 : vector<2x1xf32>
    %1200 = arith.mulf %1194, %1194 : vector<2x1xf32>
    %1201 = arith.subf %1199, %1200 : vector<2x1xf32>
    %1202 = vector.broadcast %1194 : vector<2x1xf32> to vector<2x128xf32>
    %1203 = arith.subf %1190, %1202 : vector<2x128xf32>
    %cst_340 = arith.constant 9.99999974E-6 : f32
    %1204 = vector.broadcast %cst_340 : f32 to vector<2x1xf32>
    %1205 = arith.addf %1201, %1204 : vector<2x1xf32>
    %1206 = math.rsqrt %1205 : vector<2x1xf32>
    %1207 = vector.broadcast %1206 : vector<2x1xf32> to vector<2x128xf32>
    %1208 = arith.mulf %1203, %1207 : vector<2x128xf32>
    %1209 = arith.mulf %1208, %11 : vector<2x128xf32>
    %1210 = arith.addf %1209, %23 : vector<2x128xf32>
    %1211 = math.tanh %1210 : vector<2x128xf32>
    %cst_341 = arith.constant 1.000000e+00 : f32
    %1212 = vector.broadcast %cst_341 : f32 to vector<2x128xf32>
    %1213 = arith.subf %1212, %1157 : vector<2x128xf32>
    %1214 = arith.mulf %1213, %1039 : vector<2x128xf32>
    %1215 = arith.mulf %1157, %1211 : vector<2x128xf32>
    %1216 = arith.addf %1214, %1215 : vector<2x128xf32>
    %1217 = tpu.concatenate %1216, %1126 in 1 : vector<2x128xf32>, vector<2x128xf32> -> vector<2x256xf32>
    %c0_342 = arith.constant 0 : index
    %c0_343 = arith.constant 0 : index
    %1218 = vector.load %arg7[%c0_342, %c0_343] : memref<256x384xf32, #tpu.memory_space<vmem>>, vector<256x384xf32>
    %cst_344 = arith.constant dense<0.000000e+00> : vector<2x384xf32>
    %1219 = tpu.matmul %1217, %1218, %cst_344 {dimension_numbers = #tpu.dot_dimension_numbers<[1], [0], [0], [1], [0, 0, 1, 1], [], []>} : vector<2x256xf32>, vector<256x384xf32>, vector<2x384xf32> -> vector<2x384xf32>
    %1220 = arith.addf %1219, %50 : vector<2x384xf32>
    %1221 = vector.extract_strided_slice %1220 {offsets = [0, 0], sizes = [2, 128], strides = [1, 1]} : vector<2x384xf32> to vector<2x128xf32>
    %cst_345 = arith.constant dense<0.000000e+00> : vector<2xf32>
    %1222 = vector.multi_reduction <add>, %1221, %cst_345 [1] : vector<2x128xf32> to vector<2xf32>
    %1223 = vector.shape_cast %1222 : vector<2xf32> to vector<2x1xf32>
    %cst_346 = arith.constant 3.125000e-02 : f32
    %1224 = vector.broadcast %cst_346 : f32 to vector<2x1xf32>
    %1225 = arith.mulf %1223, %1224 : vector<2x1xf32>
    %1226 = arith.mulf %1221, %1221 : vector<2x128xf32>
    %cst_347 = arith.constant dense<0.000000e+00> : vector<2xf32>
    %1227 = vector.multi_reduction <add>, %1226, %cst_347 [1] : vector<2x128xf32> to vector<2xf32>
    %1228 = vector.shape_cast %1227 : vector<2xf32> to vector<2x1xf32>
    %cst_348 = arith.constant 3.125000e-02 : f32
    %1229 = vector.broadcast %cst_348 : f32 to vector<2x1xf32>
    %1230 = arith.mulf %1228, %1229 : vector<2x1xf32>
    %1231 = arith.mulf %1225, %1225 : vector<2x1xf32>
    %1232 = arith.subf %1230, %1231 : vector<2x1xf32>
    %1233 = vector.broadcast %1225 : vector<2x1xf32> to vector<2x128xf32>
    %1234 = arith.subf %1221, %1233 : vector<2x128xf32>
    %cst_349 = arith.constant 9.99999974E-6 : f32
    %1235 = vector.broadcast %cst_349 : f32 to vector<2x1xf32>
    %1236 = arith.addf %1232, %1235 : vector<2x1xf32>
    %1237 = math.rsqrt %1236 : vector<2x1xf32>
    %1238 = vector.broadcast %1237 : vector<2x1xf32> to vector<2x128xf32>
    %1239 = arith.mulf %1234, %1238 : vector<2x128xf32>
    %1240 = arith.mulf %1239, %27 : vector<2x128xf32>
    %1241 = arith.addf %1240, %39 : vector<2x128xf32>
    %1242 = arith.negf %1241 : vector<2x128xf32>
    %1243 = math.exp %1242 : vector<2x128xf32>
    %cst_350 = arith.constant 1.000000e+00 : f32
    %1244 = vector.broadcast %cst_350 : f32 to vector<2x128xf32>
    %1245 = arith.addf %1244, %1243 : vector<2x128xf32>
    %1246 = arith.divf %1244, %1245 : vector<2x128xf32>
    %1247 = vector.extract_strided_slice %1220 {offsets = [0, 128], sizes = [2, 128], strides = [1, 1]} : vector<2x384xf32> to vector<2x128xf32>
    %cst_351 = arith.constant dense<0.000000e+00> : vector<2xf32>
    %1248 = vector.multi_reduction <add>, %1247, %cst_351 [1] : vector<2x128xf32> to vector<2xf32>
    %1249 = vector.shape_cast %1248 : vector<2xf32> to vector<2x1xf32>
    %cst_352 = arith.constant 3.125000e-02 : f32
    %1250 = vector.broadcast %cst_352 : f32 to vector<2x1xf32>
    %1251 = arith.mulf %1249, %1250 : vector<2x1xf32>
    %1252 = arith.mulf %1247, %1247 : vector<2x128xf32>
    %cst_353 = arith.constant dense<0.000000e+00> : vector<2xf32>
    %1253 = vector.multi_reduction <add>, %1252, %cst_353 [1] : vector<2x128xf32> to vector<2xf32>
    %1254 = vector.shape_cast %1253 : vector<2xf32> to vector<2x1xf32>
    %cst_354 = arith.constant 3.125000e-02 : f32
    %1255 = vector.broadcast %cst_354 : f32 to vector<2x1xf32>
    %1256 = arith.mulf %1254, %1255 : vector<2x1xf32>
    %1257 = arith.mulf %1251, %1251 : vector<2x1xf32>
    %1258 = arith.subf %1256, %1257 : vector<2x1xf32>
    %1259 = vector.broadcast %1251 : vector<2x1xf32> to vector<2x128xf32>
    %1260 = arith.subf %1247, %1259 : vector<2x128xf32>
    %cst_355 = arith.constant 9.99999974E-6 : f32
    %1261 = vector.broadcast %cst_355 : f32 to vector<2x1xf32>
    %1262 = arith.addf %1258, %1261 : vector<2x1xf32>
    %1263 = math.rsqrt %1262 : vector<2x1xf32>
    %1264 = vector.broadcast %1263 : vector<2x1xf32> to vector<2x128xf32>
    %1265 = arith.mulf %1260, %1264 : vector<2x128xf32>
    %1266 = arith.mulf %1265, %31 : vector<2x128xf32>
    %1267 = arith.addf %1266, %43 : vector<2x128xf32>
    %1268 = arith.negf %1267 : vector<2x128xf32>
    %1269 = math.exp %1268 : vector<2x128xf32>
    %cst_356 = arith.constant 1.000000e+00 : f32
    %1270 = vector.broadcast %cst_356 : f32 to vector<2x128xf32>
    %1271 = arith.addf %1270, %1269 : vector<2x128xf32>
    %1272 = arith.divf %1270, %1271 : vector<2x128xf32>
    %1273 = arith.mulf %1272, %1126 : vector<2x128xf32>
    %c0_357 = arith.constant 0 : index
    %c0_358 = arith.constant 0 : index
    %1274 = vector.load %arg9[%c0_357, %c0_358] : memref<128x128xf32, #tpu.memory_space<vmem>>, vector<128x128xf32>
    %cst_359 = arith.constant dense<0.000000e+00> : vector<2x128xf32>
    %1275 = tpu.matmul %1273, %1274, %cst_359 {dimension_numbers = #tpu.dot_dimension_numbers<[1], [0], [0], [1], [0, 0, 1, 1], [], []>} : vector<2x128xf32>, vector<128x128xf32>, vector<2x128xf32> -> vector<2x128xf32>
    %1276 = vector.extract_strided_slice %1220 {offsets = [0, 256], sizes = [2, 128], strides = [1, 1]} : vector<2x384xf32> to vector<2x128xf32>
    %1277 = arith.addf %1276, %1275 : vector<2x128xf32>
    %cst_360 = arith.constant dense<0.000000e+00> : vector<2xf32>
    %1278 = vector.multi_reduction <add>, %1277, %cst_360 [1] : vector<2x128xf32> to vector<2xf32>
    %1279 = vector.shape_cast %1278 : vector<2xf32> to vector<2x1xf32>
    %cst_361 = arith.constant 3.125000e-02 : f32
    %1280 = vector.broadcast %cst_361 : f32 to vector<2x1xf32>
    %1281 = arith.mulf %1279, %1280 : vector<2x1xf32>
    %1282 = arith.mulf %1277, %1277 : vector<2x128xf32>
    %cst_362 = arith.constant dense<0.000000e+00> : vector<2xf32>
    %1283 = vector.multi_reduction <add>, %1282, %cst_362 [1] : vector<2x128xf32> to vector<2xf32>
    %1284 = vector.shape_cast %1283 : vector<2xf32> to vector<2x1xf32>
    %cst_363 = arith.constant 3.125000e-02 : f32
    %1285 = vector.broadcast %cst_363 : f32 to vector<2x1xf32>
    %1286 = arith.mulf %1284, %1285 : vector<2x1xf32>
    %1287 = arith.mulf %1281, %1281 : vector<2x1xf32>
    %1288 = arith.subf %1286, %1287 : vector<2x1xf32>
    %1289 = vector.broadcast %1281 : vector<2x1xf32> to vector<2x128xf32>
    %1290 = arith.subf %1277, %1289 : vector<2x128xf32>
    %cst_364 = arith.constant 9.99999974E-6 : f32
    %1291 = vector.broadcast %cst_364 : f32 to vector<2x1xf32>
    %1292 = arith.addf %1288, %1291 : vector<2x1xf32>
    %1293 = math.rsqrt %1292 : vector<2x1xf32>
    %1294 = vector.broadcast %1293 : vector<2x1xf32> to vector<2x128xf32>
    %1295 = arith.mulf %1290, %1294 : vector<2x128xf32>
    %1296 = arith.mulf %1295, %35 : vector<2x128xf32>
    %1297 = arith.addf %1296, %47 : vector<2x128xf32>
    %1298 = math.tanh %1297 : vector<2x128xf32>
    %cst_365 = arith.constant 1.000000e+00 : f32
    %1299 = vector.broadcast %cst_365 : f32 to vector<2x128xf32>
    %1300 = arith.subf %1299, %1246 : vector<2x128xf32>
    %1301 = arith.mulf %1300, %1126 : vector<2x128xf32>
    %1302 = arith.mulf %1246, %1298 : vector<2x128xf32>
    %1303 = arith.addf %1301, %1302 : vector<2x128xf32>
    %1304 = arith.addf %1127, %1303 : vector<2x128xf32>
    %c0_366 = arith.constant 0 : index
    %c0_367 = arith.constant 0 : index
    %1305 = vector.load %arg3[%c0_366, %c0_367] : memref<128x256xf32, #tpu.memory_space<vmem>>, vector<128x256xf32>
    %cst_368 = arith.constant dense<0.000000e+00> : vector<2x256xf32>
    %1306 = tpu.matmul %1216, %1305, %cst_368 {dimension_numbers = #tpu.dot_dimension_numbers<[1], [0], [0], [1], [0, 0, 1, 1], [], []>} : vector<2x128xf32>, vector<128x256xf32>, vector<2x256xf32> -> vector<2x256xf32>
    %1307 = vector.extract_strided_slice %64 {offsets = [0, 0], sizes = [2, 128], strides = [1, 1]} : vector<2x384xf32> to vector<2x128xf32>
    %1308 = vector.extract_strided_slice %1306 {offsets = [0, 0], sizes = [2, 128], strides = [1, 1]} : vector<2x256xf32> to vector<2x128xf32>
    %1309 = arith.addf %1307, %1308 : vector<2x128xf32>
    %cst_369 = arith.constant dense<0.000000e+00> : vector<2xf32>
    %1310 = vector.multi_reduction <add>, %1309, %cst_369 [1] : vector<2x128xf32> to vector<2xf32>
    %1311 = vector.shape_cast %1310 : vector<2xf32> to vector<2x1xf32>
    %cst_370 = arith.constant 3.125000e-02 : f32
    %1312 = vector.broadcast %cst_370 : f32 to vector<2x1xf32>
    %1313 = arith.mulf %1311, %1312 : vector<2x1xf32>
    %1314 = arith.mulf %1309, %1309 : vector<2x128xf32>
    %cst_371 = arith.constant dense<0.000000e+00> : vector<2xf32>
    %1315 = vector.multi_reduction <add>, %1314, %cst_371 [1] : vector<2x128xf32> to vector<2xf32>
    %1316 = vector.shape_cast %1315 : vector<2xf32> to vector<2x1xf32>
    %cst_372 = arith.constant 3.125000e-02 : f32
    %1317 = vector.broadcast %cst_372 : f32 to vector<2x1xf32>
    %1318 = arith.mulf %1316, %1317 : vector<2x1xf32>
    %1319 = arith.mulf %1313, %1313 : vector<2x1xf32>
    %1320 = arith.subf %1318, %1319 : vector<2x1xf32>
    %1321 = vector.broadcast %1313 : vector<2x1xf32> to vector<2x128xf32>
    %1322 = arith.subf %1309, %1321 : vector<2x128xf32>
    %cst_373 = arith.constant 9.99999974E-6 : f32
    %1323 = vector.broadcast %cst_373 : f32 to vector<2x1xf32>
    %1324 = arith.addf %1320, %1323 : vector<2x1xf32>
    %1325 = math.rsqrt %1324 : vector<2x1xf32>
    %1326 = vector.broadcast %1325 : vector<2x1xf32> to vector<2x128xf32>
    %1327 = arith.mulf %1322, %1326 : vector<2x128xf32>
    %1328 = arith.mulf %1327, %3 : vector<2x128xf32>
    %1329 = arith.addf %1328, %15 : vector<2x128xf32>
    %1330 = arith.negf %1329 : vector<2x128xf32>
    %1331 = math.exp %1330 : vector<2x128xf32>
    %cst_374 = arith.constant 1.000000e+00 : f32
    %1332 = vector.broadcast %cst_374 : f32 to vector<2x128xf32>
    %1333 = arith.addf %1332, %1331 : vector<2x128xf32>
    %1334 = arith.divf %1332, %1333 : vector<2x128xf32>
    %1335 = vector.extract_strided_slice %64 {offsets = [0, 128], sizes = [2, 128], strides = [1, 1]} : vector<2x384xf32> to vector<2x128xf32>
    %1336 = vector.extract_strided_slice %1306 {offsets = [0, 128], sizes = [2, 128], strides = [1, 1]} : vector<2x256xf32> to vector<2x128xf32>
    %1337 = arith.addf %1335, %1336 : vector<2x128xf32>
    %cst_375 = arith.constant dense<0.000000e+00> : vector<2xf32>
    %1338 = vector.multi_reduction <add>, %1337, %cst_375 [1] : vector<2x128xf32> to vector<2xf32>
    %1339 = vector.shape_cast %1338 : vector<2xf32> to vector<2x1xf32>
    %cst_376 = arith.constant 3.125000e-02 : f32
    %1340 = vector.broadcast %cst_376 : f32 to vector<2x1xf32>
    %1341 = arith.mulf %1339, %1340 : vector<2x1xf32>
    %1342 = arith.mulf %1337, %1337 : vector<2x128xf32>
    %cst_377 = arith.constant dense<0.000000e+00> : vector<2xf32>
    %1343 = vector.multi_reduction <add>, %1342, %cst_377 [1] : vector<2x128xf32> to vector<2xf32>
    %1344 = vector.shape_cast %1343 : vector<2xf32> to vector<2x1xf32>
    %cst_378 = arith.constant 3.125000e-02 : f32
    %1345 = vector.broadcast %cst_378 : f32 to vector<2x1xf32>
    %1346 = arith.mulf %1344, %1345 : vector<2x1xf32>
    %1347 = arith.mulf %1341, %1341 : vector<2x1xf32>
    %1348 = arith.subf %1346, %1347 : vector<2x1xf32>
    %1349 = vector.broadcast %1341 : vector<2x1xf32> to vector<2x128xf32>
    %1350 = arith.subf %1337, %1349 : vector<2x128xf32>
    %cst_379 = arith.constant 9.99999974E-6 : f32
    %1351 = vector.broadcast %cst_379 : f32 to vector<2x1xf32>
    %1352 = arith.addf %1348, %1351 : vector<2x1xf32>
    %1353 = math.rsqrt %1352 : vector<2x1xf32>
    %1354 = vector.broadcast %1353 : vector<2x1xf32> to vector<2x128xf32>
    %1355 = arith.mulf %1350, %1354 : vector<2x128xf32>
    %1356 = arith.mulf %1355, %7 : vector<2x128xf32>
    %1357 = arith.addf %1356, %19 : vector<2x128xf32>
    %1358 = arith.negf %1357 : vector<2x128xf32>
    %1359 = math.exp %1358 : vector<2x128xf32>
    %cst_380 = arith.constant 1.000000e+00 : f32
    %1360 = vector.broadcast %cst_380 : f32 to vector<2x128xf32>
    %1361 = arith.addf %1360, %1359 : vector<2x128xf32>
    %1362 = arith.divf %1360, %1361 : vector<2x128xf32>
    %1363 = arith.mulf %1362, %1216 : vector<2x128xf32>
    %c0_381 = arith.constant 0 : index
    %c0_382 = arith.constant 0 : index
    %1364 = vector.load %arg4[%c0_381, %c0_382] : memref<128x128xf32, #tpu.memory_space<vmem>>, vector<128x128xf32>
    %cst_383 = arith.constant dense<0.000000e+00> : vector<2x128xf32>
    %1365 = tpu.matmul %1363, %1364, %cst_383 {dimension_numbers = #tpu.dot_dimension_numbers<[1], [0], [0], [1], [0, 0, 1, 1], [], []>} : vector<2x128xf32>, vector<128x128xf32>, vector<2x128xf32> -> vector<2x128xf32>
    %1366 = vector.extract_strided_slice %64 {offsets = [0, 256], sizes = [2, 128], strides = [1, 1]} : vector<2x384xf32> to vector<2x128xf32>
    %1367 = arith.addf %1366, %1365 : vector<2x128xf32>
    %cst_384 = arith.constant dense<0.000000e+00> : vector<2xf32>
    %1368 = vector.multi_reduction <add>, %1367, %cst_384 [1] : vector<2x128xf32> to vector<2xf32>
    %1369 = vector.shape_cast %1368 : vector<2xf32> to vector<2x1xf32>
    %cst_385 = arith.constant 3.125000e-02 : f32
    %1370 = vector.broadcast %cst_385 : f32 to vector<2x1xf32>
    %1371 = arith.mulf %1369, %1370 : vector<2x1xf32>
    %1372 = arith.mulf %1367, %1367 : vector<2x128xf32>
    %cst_386 = arith.constant dense<0.000000e+00> : vector<2xf32>
    %1373 = vector.multi_reduction <add>, %1372, %cst_386 [1] : vector<2x128xf32> to vector<2xf32>
    %1374 = vector.shape_cast %1373 : vector<2xf32> to vector<2x1xf32>
    %cst_387 = arith.constant 3.125000e-02 : f32
    %1375 = vector.broadcast %cst_387 : f32 to vector<2x1xf32>
    %1376 = arith.mulf %1374, %1375 : vector<2x1xf32>
    %1377 = arith.mulf %1371, %1371 : vector<2x1xf32>
    %1378 = arith.subf %1376, %1377 : vector<2x1xf32>
    %1379 = vector.broadcast %1371 : vector<2x1xf32> to vector<2x128xf32>
    %1380 = arith.subf %1367, %1379 : vector<2x128xf32>
    %cst_388 = arith.constant 9.99999974E-6 : f32
    %1381 = vector.broadcast %cst_388 : f32 to vector<2x1xf32>
    %1382 = arith.addf %1378, %1381 : vector<2x1xf32>
    %1383 = math.rsqrt %1382 : vector<2x1xf32>
    %1384 = vector.broadcast %1383 : vector<2x1xf32> to vector<2x128xf32>
    %1385 = arith.mulf %1380, %1384 : vector<2x128xf32>
    %1386 = arith.mulf %1385, %11 : vector<2x128xf32>
    %1387 = arith.addf %1386, %23 : vector<2x128xf32>
    %1388 = math.tanh %1387 : vector<2x128xf32>
    %cst_389 = arith.constant 1.000000e+00 : f32
    %1389 = vector.broadcast %cst_389 : f32 to vector<2x128xf32>
    %1390 = arith.subf %1389, %1334 : vector<2x128xf32>
    %1391 = arith.mulf %1390, %1216 : vector<2x128xf32>
    %1392 = arith.mulf %1334, %1388 : vector<2x128xf32>
    %1393 = arith.addf %1391, %1392 : vector<2x128xf32>
    %1394 = tpu.concatenate %1393, %1303 in 1 : vector<2x128xf32>, vector<2x128xf32> -> vector<2x256xf32>
    %c0_390 = arith.constant 0 : index
    %c0_391 = arith.constant 0 : index
    %1395 = vector.load %arg7[%c0_390, %c0_391] : memref<256x384xf32, #tpu.memory_space<vmem>>, vector<256x384xf32>
    %cst_392 = arith.constant dense<0.000000e+00> : vector<2x384xf32>
    %1396 = tpu.matmul %1394, %1395, %cst_392 {dimension_numbers = #tpu.dot_dimension_numbers<[1], [0], [0], [1], [0, 0, 1, 1], [], []>} : vector<2x256xf32>, vector<256x384xf32>, vector<2x384xf32> -> vector<2x384xf32>
    %1397 = arith.addf %1396, %50 : vector<2x384xf32>
    %1398 = vector.extract_strided_slice %1397 {offsets = [0, 0], sizes = [2, 128], strides = [1, 1]} : vector<2x384xf32> to vector<2x128xf32>
    %cst_393 = arith.constant dense<0.000000e+00> : vector<2xf32>
    %1399 = vector.multi_reduction <add>, %1398, %cst_393 [1] : vector<2x128xf32> to vector<2xf32>
    %1400 = vector.shape_cast %1399 : vector<2xf32> to vector<2x1xf32>
    %cst_394 = arith.constant 3.125000e-02 : f32
    %1401 = vector.broadcast %cst_394 : f32 to vector<2x1xf32>
    %1402 = arith.mulf %1400, %1401 : vector<2x1xf32>
    %1403 = arith.mulf %1398, %1398 : vector<2x128xf32>
    %cst_395 = arith.constant dense<0.000000e+00> : vector<2xf32>
    %1404 = vector.multi_reduction <add>, %1403, %cst_395 [1] : vector<2x128xf32> to vector<2xf32>
    %1405 = vector.shape_cast %1404 : vector<2xf32> to vector<2x1xf32>
    %cst_396 = arith.constant 3.125000e-02 : f32
    %1406 = vector.broadcast %cst_396 : f32 to vector<2x1xf32>
    %1407 = arith.mulf %1405, %1406 : vector<2x1xf32>
    %1408 = arith.mulf %1402, %1402 : vector<2x1xf32>
    %1409 = arith.subf %1407, %1408 : vector<2x1xf32>
    %1410 = vector.broadcast %1402 : vector<2x1xf32> to vector<2x128xf32>
    %1411 = arith.subf %1398, %1410 : vector<2x128xf32>
    %cst_397 = arith.constant 9.99999974E-6 : f32
    %1412 = vector.broadcast %cst_397 : f32 to vector<2x1xf32>
    %1413 = arith.addf %1409, %1412 : vector<2x1xf32>
    %1414 = math.rsqrt %1413 : vector<2x1xf32>
    %1415 = vector.broadcast %1414 : vector<2x1xf32> to vector<2x128xf32>
    %1416 = arith.mulf %1411, %1415 : vector<2x128xf32>
    %1417 = arith.mulf %1416, %27 : vector<2x128xf32>
    %1418 = arith.addf %1417, %39 : vector<2x128xf32>
    %1419 = arith.negf %1418 : vector<2x128xf32>
    %1420 = math.exp %1419 : vector<2x128xf32>
    %cst_398 = arith.constant 1.000000e+00 : f32
    %1421 = vector.broadcast %cst_398 : f32 to vector<2x128xf32>
    %1422 = arith.addf %1421, %1420 : vector<2x128xf32>
    %1423 = arith.divf %1421, %1422 : vector<2x128xf32>
    %1424 = vector.extract_strided_slice %1397 {offsets = [0, 128], sizes = [2, 128], strides = [1, 1]} : vector<2x384xf32> to vector<2x128xf32>
    %cst_399 = arith.constant dense<0.000000e+00> : vector<2xf32>
    %1425 = vector.multi_reduction <add>, %1424, %cst_399 [1] : vector<2x128xf32> to vector<2xf32>
    %1426 = vector.shape_cast %1425 : vector<2xf32> to vector<2x1xf32>
    %cst_400 = arith.constant 3.125000e-02 : f32
    %1427 = vector.broadcast %cst_400 : f32 to vector<2x1xf32>
    %1428 = arith.mulf %1426, %1427 : vector<2x1xf32>
    %1429 = arith.mulf %1424, %1424 : vector<2x128xf32>
    %cst_401 = arith.constant dense<0.000000e+00> : vector<2xf32>
    %1430 = vector.multi_reduction <add>, %1429, %cst_401 [1] : vector<2x128xf32> to vector<2xf32>
    %1431 = vector.shape_cast %1430 : vector<2xf32> to vector<2x1xf32>
    %cst_402 = arith.constant 3.125000e-02 : f32
    %1432 = vector.broadcast %cst_402 : f32 to vector<2x1xf32>
    %1433 = arith.mulf %1431, %1432 : vector<2x1xf32>
    %1434 = arith.mulf %1428, %1428 : vector<2x1xf32>
    %1435 = arith.subf %1433, %1434 : vector<2x1xf32>
    %1436 = vector.broadcast %1428 : vector<2x1xf32> to vector<2x128xf32>
    %1437 = arith.subf %1424, %1436 : vector<2x128xf32>
    %cst_403 = arith.constant 9.99999974E-6 : f32
    %1438 = vector.broadcast %cst_403 : f32 to vector<2x1xf32>
    %1439 = arith.addf %1435, %1438 : vector<2x1xf32>
    %1440 = math.rsqrt %1439 : vector<2x1xf32>
    %1441 = vector.broadcast %1440 : vector<2x1xf32> to vector<2x128xf32>
    %1442 = arith.mulf %1437, %1441 : vector<2x128xf32>
    %1443 = arith.mulf %1442, %31 : vector<2x128xf32>
    %1444 = arith.addf %1443, %43 : vector<2x128xf32>
    %1445 = arith.negf %1444 : vector<2x128xf32>
    %1446 = math.exp %1445 : vector<2x128xf32>
    %cst_404 = arith.constant 1.000000e+00 : f32
    %1447 = vector.broadcast %cst_404 : f32 to vector<2x128xf32>
    %1448 = arith.addf %1447, %1446 : vector<2x128xf32>
    %1449 = arith.divf %1447, %1448 : vector<2x128xf32>
    %1450 = arith.mulf %1449, %1303 : vector<2x128xf32>
    %c0_405 = arith.constant 0 : index
    %c0_406 = arith.constant 0 : index
    %1451 = vector.load %arg9[%c0_405, %c0_406] : memref<128x128xf32, #tpu.memory_space<vmem>>, vector<128x128xf32>
    %cst_407 = arith.constant dense<0.000000e+00> : vector<2x128xf32>
    %1452 = tpu.matmul %1450, %1451, %cst_407 {dimension_numbers = #tpu.dot_dimension_numbers<[1], [0], [0], [1], [0, 0, 1, 1], [], []>} : vector<2x128xf32>, vector<128x128xf32>, vector<2x128xf32> -> vector<2x128xf32>
    %1453 = vector.extract_strided_slice %1397 {offsets = [0, 256], sizes = [2, 128], strides = [1, 1]} : vector<2x384xf32> to vector<2x128xf32>
    %1454 = arith.addf %1453, %1452 : vector<2x128xf32>
    %cst_408 = arith.constant dense<0.000000e+00> : vector<2xf32>
    %1455 = vector.multi_reduction <add>, %1454, %cst_408 [1] : vector<2x128xf32> to vector<2xf32>
    %1456 = vector.shape_cast %1455 : vector<2xf32> to vector<2x1xf32>
    %cst_409 = arith.constant 3.125000e-02 : f32
    %1457 = vector.broadcast %cst_409 : f32 to vector<2x1xf32>
    %1458 = arith.mulf %1456, %1457 : vector<2x1xf32>
    %1459 = arith.mulf %1454, %1454 : vector<2x128xf32>
    %cst_410 = arith.constant dense<0.000000e+00> : vector<2xf32>
    %1460 = vector.multi_reduction <add>, %1459, %cst_410 [1] : vector<2x128xf32> to vector<2xf32>
    %1461 = vector.shape_cast %1460 : vector<2xf32> to vector<2x1xf32>
    %cst_411 = arith.constant 3.125000e-02 : f32
    %1462 = vector.broadcast %cst_411 : f32 to vector<2x1xf32>
    %1463 = arith.mulf %1461, %1462 : vector<2x1xf32>
    %1464 = arith.mulf %1458, %1458 : vector<2x1xf32>
    %1465 = arith.subf %1463, %1464 : vector<2x1xf32>
    %1466 = vector.broadcast %1458 : vector<2x1xf32> to vector<2x128xf32>
    %1467 = arith.subf %1454, %1466 : vector<2x128xf32>
    %cst_412 = arith.constant 9.99999974E-6 : f32
    %1468 = vector.broadcast %cst_412 : f32 to vector<2x1xf32>
    %1469 = arith.addf %1465, %1468 : vector<2x1xf32>
    %1470 = math.rsqrt %1469 : vector<2x1xf32>
    %1471 = vector.broadcast %1470 : vector<2x1xf32> to vector<2x128xf32>
    %1472 = arith.mulf %1467, %1471 : vector<2x128xf32>
    %1473 = arith.mulf %1472, %35 : vector<2x128xf32>
    %1474 = arith.addf %1473, %47 : vector<2x128xf32>
    %1475 = math.tanh %1474 : vector<2x128xf32>
    %cst_413 = arith.constant 1.000000e+00 : f32
    %1476 = vector.broadcast %cst_413 : f32 to vector<2x128xf32>
    %1477 = arith.subf %1476, %1423 : vector<2x128xf32>
    %1478 = arith.mulf %1477, %1303 : vector<2x128xf32>
    %1479 = arith.mulf %1423, %1475 : vector<2x128xf32>
    %1480 = arith.addf %1478, %1479 : vector<2x128xf32>
    %1481 = arith.addf %1304, %1480 : vector<2x128xf32>
    %cst_414 = arith.constant 1.250000e-01 : f32
    %1482 = vector.broadcast %cst_414 : f32 to vector<2x128xf32>
    %1483 = arith.mulf %1481, %1482 : vector<2x128xf32>
    %1484 = vector.extract_strided_slice %1483 {offsets = [0, 0], sizes = [2, 32], strides = [1, 1]} : vector<2x128xf32> to vector<2x32xf32>
    %c0_415 = arith.constant 0 : index
    %c0_416 = arith.constant 0 : index
    %1485 = vector.load %arg12[%c0_415, %c0_416] : memref<2x32xf32, #tpu.memory_space<vmem>>, vector<2x32xf32>
    tpu.vector_store %arg12[%c0_415, %c0_416], %1484 {strides = array<i32>} : memref<2x32xf32, #tpu.memory_space<vmem>>, vector<2x32xf32>,
    return
  }
}

</mosaic_0001>

<bundles_post_ra>
// kernel: tpu_custom_call.1
= control target key start
LH: loop header
LB: loop body
LE: loop exit
PB: predicated region body
PF: predicated region fallthrough
CT: control target
= control target key end

     0   :  { %17 = vsyncpa [#allocation3], 0  ;;  %s9746_s0 = inlined_call_operand.hbm [shape: f32[16,16], index: 0, kind: input, shape index: {}]   ;;  %s9747_s1 = inlined_call_operand.hbm [shape: f32[16,384], index: 1, kind: input, shape index: {}]   ;;  %s9748_s2 = inlined_call_operand.hbm [shape: f32[1,384], index: 2, kind: input, shape index: {}]   ;;  %s9749_s3 = inlined_call_operand.hbm [shape: f32[128,256], index: 3, kind: input, shape index: {}]   ;;  %s9750_s4 = inlined_call_operand.hbm [shape: f32[128,128], index: 4, kind: input, shape index: {}]   ;;  %s9751_s5 = inlined_call_operand.vmem [shape: f32[3,128], index: 5, kind: input, shape index: {}]   ;;  %s9752_s6 = inlined_call_operand.vmem [shape: f32[3,128], index: 6, kind: input, shape index: {}]   ;;  %s9753_s7 = inlined_call_operand.hbm [shape: f32[256,384], index: 7, kind: input, shape index: {}]   ;;  %s9754_s8 = inlined_call_operand.vmem [shape: f32[1,384], index: 8, kind: input, shape index: {}]   ;;  %s9755_s9 = inlined_call_operand.hbm [shape: f32[128,128], index: 9, kind: input, shape index: {}]   ;;  %s9756_s10 = inlined_call_operand.vmem [shape: f32[3,128], index: 10, kind: input, shape index: {}]   ;;  %s9757_s11 = inlined_call_operand.vmem [shape: f32[3,128], index: 11, kind: input, shape index: {}]   ;;  %s9758_s12 = inlined_call_operand.hbm [shape: f32[2,32], index: 12, kind: output, shape index: {}]  }
   0x1   :  { %18 = vsyncpa [#allocation6], 0 }
   0x2   :  { %19 = vsyncpa [#allocation9], 0 }
   0x3   :  { %20 = vsyncpa [#allocation12], 0 }
   0x4   :  { %21 = vsyncpa [#allocation4], 0  ;;  %s7751_s21 = smov [#allocation5]   ;;  %s7565_s25 = scalar_lea.hbm %s9747_s1, 768 }
   0x5   :  { %s39_s22 = sshll.u32 %s7751_s21, 4  ;;  %p7566_p0 = scmp.ne.s32.totalorder %s9747_s1, %s7565_s25  ;;  %s40_s22 = int_to_ptr.vmem [resolvable:$true] %s39_s22 }
   0x6   :  { %p7569_p1 = scmp.lt.u32.totalorder %s7565_s25, %s9747_s1 }
   0x8   :  { %p7571_p2 = pnand %p7569_p1, %p7566_p0 }
   0xa   :  { %7574 = shalt.err (!%p7571_p2)
}
   0xb   :  { %s7575_s30 = scalar_lea.vmem %s40_s22, 768  ;;  %p7580_p4 = scmp.lt.s32.totalorder %s40_s22, %s40_s22 }
   0xc   :  { %p7576_p3 = scmp.ne.s32.totalorder %s40_s22, %s7575_s30  ;;  %p7581_p5 = scmp.lt.s32.totalorder %s7575_s30, %s7575_s30 }
   0xe   :  { %p7582_p6 = por %p7581_p5, %p7580_p4 }
  0x10   :  { %p7583_p7 = pnand %p7582_p6, %p7576_p3 }
  0x12   :  { %7586 = shalt.err (!%p7583_p7)
}
  0x13   :  { %s7752_s13 = smov 384   ;;  %s7753_s14 = smov 24  }
  0x14   :  { %45 = dma.hbm_to_vmem [thread:$0]  %s9747_s1, 768, %s40_s22, [#allocation6], %s7752_s13, %s7752_s13, %s7753_s14  }
  0x15   :  { %s7754_s17 = smov [#allocation8]   ;;  %s7587_s21 = scalar_lea.hbm %s9749_s3, 4096 }
  0x16   :  { %s61_s18 = sshll.u32 %s7754_s17, 4  ;;  %p7588_p8 = scmp.ne.s32.totalorder %s9749_s3, %s7587_s21  ;;  %s62_s18 = int_to_ptr.vmem [resolvable:$true] %s61_s18 }
  0x17   :  { %p7591_p9 = scmp.lt.u32.totalorder %s7587_s21, %s9749_s3 }
  0x19   :  { %p7593_p10 = pnand %p7591_p9, %p7588_p8 }
  0x1b   :  { %7596 = shalt.err (!%p7593_p10)
}
  0x1c   :  { %s7597_s27 = scalar_lea.vmem %s62_s18, 4096  ;;  %p7602_p12 = scmp.lt.s32.totalorder %s62_s18, %s62_s18 }
  0x1d   :  { %p7598_p11 = scmp.ne.s32.totalorder %s62_s18, %s7597_s27  ;;  %p7603_p13 = scmp.lt.s32.totalorder %s7597_s27, %s7597_s27 }
  0x1f   :  { %p7604_p0 = por %p7603_p13, %p7602_p12 }
  0x21   :  { %p7605_p1 = pnand %p7604_p0, %p7598_p11 }
  0x23   :  { %7608 = shalt.err (!%p7605_p1)
}
  0x24   :  { %s7755_s1 = smov 256   ;;  %s7756_s22 = smov 16  }
  0x25   :  { %67 = dma.hbm_to_vmem [thread:$0]  %s9749_s3, 4096, %s62_s18, [#allocation9], %s7755_s1, %s7755_s1, %s7756_s22  }
  0x26   :  { %s7757_s30 = smov [#allocation11]   ;;  %s7758_s16 = smov [#allocation2]  }
  0x27   :  { %s89_s15 = sshll.u32 %s7757_s30, 4  ;;  %s27_s17 = sshll.u32 %s7758_s16, 4  ;;  %s90_s15 = int_to_ptr.vmem [resolvable:$true] %s89_s15  ;;  %s7860_s17 = int_to_ptr.vmem [resolvable:$true] %s27_s17 }
  0x28   :  { %s7609_s21 = scalar_lea.hbm %s9753_s7, 12288 }
  0x29   :  { %p7610_p2 = scmp.ne.s32.totalorder %s9753_s7, %s7609_s21  ;;  %p7613_p3 = scmp.lt.u32.totalorder %s7609_s21, %s9753_s7 }
  0x2b   :  { %p7615_p4 = pnand %p7613_p3, %p7610_p2 }
  0x2d   :  { %7618 = shalt.err (!%p7615_p4)
}
  0x2e   :  { %s7619_s3 = scalar_lea.vmem %s90_s15, 12288  ;;  %p7624_p6 = scmp.lt.s32.totalorder %s90_s15, %s90_s15 }
  0x2f   :  { %p7620_p5 = scmp.ne.s32.totalorder %s90_s15, %s7619_s3  ;;  %p7625_p7 = scmp.lt.s32.totalorder %s7619_s3, %s7619_s3 }
  0x31   :  { %p7626_p8 = por %p7625_p7, %p7624_p6 }
  0x33   :  { %p7627_p9 = pnand %p7626_p8, %p7620_p5 }
  0x35   :  { %7630 = shalt.err (!%p7627_p9)
}
  0x36   :  { %95 = dma.hbm_to_vmem [thread:$0]  %s9753_s7, 12288, %s90_s15, [#allocation12], %s7752_s13, %s7752_s13, %s7753_s14  }
  0x37   :  { %s7631_s28 = scalar_lea.hbm %s9746_s0, 256 }
  0x38   :  { %p7632_p10 = scmp.ne.s32.totalorder %s9746_s0, %s7631_s28  ;;  %p7635_p11 = scmp.lt.u32.totalorder %s7631_s28, %s9746_s0 }
  0x3a   :  { %p7637_p12 = pnand %p7635_p11, %p7632_p10 }
  0x3c   :  { %7640 = shalt.err (!%p7637_p12)
}
  0x3d   :  { %s7641_s20 = scalar_lea.vmem %s7860_s17, 256  ;;  %p7646_p0 = scmp.lt.s32.totalorder %s7860_s17, %s7860_s17 }
  0x3e   :  { %p7642_p13 = scmp.ne.s32.totalorder %s7860_s17, %s7641_s20  ;;  %p7647_p1 = scmp.lt.s32.totalorder %s7641_s20, %s7641_s20 }
  0x40   :  { %p7648_p2 = por %p7647_p1, %p7646_p0 }
  0x42   :  { %p7649_p3 = pnand %p7648_p2, %p7642_p13 }
  0x44   :  { %7652 = shalt.err (!%p7649_p3)
}
  0x45   :  { %s7759_s7 = smov 128   ;;  %s7760_s13 = smov 8  }
  0x46   :  { %33 = dma.hbm_to_vmem [thread:$0]  %s9746_s0, 256, %s7860_s17, [#allocation3], %s7759_s7, %s7759_s7, %s7760_s13  }
  0x47   :  { %s7761_s21 = smov [#allocation7]   ;;  %s7762_s24 = smov [#allocation10]  }
  0x48   :  { %s52_s23 = sshll.u32 %s7761_s21, 4  ;;  %s73_s25 = sshll.u32 %s7762_s24, 4  ;;  %s53_s23 = int_to_ptr.vmem [resolvable:$true] %s52_s23  ;;  %s7897_s25 = int_to_ptr.vmem [resolvable:$true] %s73_s25 }
  0x49   :  { %s7653_s18 = scalar_lea.hbm %s9748_s2, 48 }
  0x4a   :  { %p7654_p4 = scmp.ne.s32.totalorder %s9748_s2, %s7653_s18  ;;  %p7657_p5 = scmp.lt.u32.totalorder %s7653_s18, %s9748_s2 }
  0x4c   :  { %p7659_p6 = pnand %p7657_p5, %p7654_p4 }
  0x4e   :  { %7662 = shalt.err (!%p7659_p6)
}
  0x4f   :  { %s7663_s0 = scalar_lea.vmem %s53_s23, 48  ;;  %s7667_s17 = scalar_lea.vmem %s53_s23, 64 }
  0x50   :  { %p7664_p7 = scmp.ne.s32.totalorder %s53_s23, %s7663_s0  ;;  %p7668_p8 = scmp.lt.s32.totalorder %s53_s23, %s53_s23 }
  0x51   :  { %p7669_p9 = scmp.lt.s32.totalorder %s7667_s17, %s7663_s0 }
  0x53   :  { %p7670_p10 = por %p7669_p9, %p7668_p8 }
  0x55   :  { %p7671_p11 = pnand %p7670_p10, %p7664_p7 }
  0x57   :  { %7674 = shalt.err (!%p7671_p11)
}
  0x58   :  { %55 = dma.hbm_to_vmem [thread:$0]  %s9748_s2, 48, %s53_s23, [#allocation6]  }
  0x59   :  { %s7675_s20 = scalar_lea.hbm %s9750_s4, 2048 }
  0x5a   :  { %p7676_p12 = scmp.ne.s32.totalorder %s9750_s4, %s7675_s20  ;;  %p7679_p13 = scmp.lt.u32.totalorder %s7675_s20, %s9750_s4 }
  0x5c   :  { %p7681_p0 = pnand %p7679_p13, %p7676_p12 }
  0x5e   :  { %7684 = shalt.err (!%p7681_p0)
}
  0x5f   :  { %s7685_s26 = scalar_lea.vmem %s7897_s25, 2048  ;;  %p7690_p2 = scmp.lt.s32.totalorder %s7897_s25, %s7897_s25 }
  0x60   :  { %p7686_p1 = scmp.ne.s32.totalorder %s7897_s25, %s7685_s26  ;;  %p7691_p3 = scmp.lt.s32.totalorder %s7685_s26, %s7685_s26 }
  0x62   :  { %p7692_p4 = por %p7691_p3, %p7690_p2 }
  0x64   :  { %p7693_p5 = pnand %p7692_p4, %p7686_p1 }
  0x66   :  { %7696 = shalt.err (!%p7693_p5)
}
  0x67   :  { %79 = dma.hbm_to_vmem [thread:$0]  %s9750_s4, 2048, %s7897_s25, [#allocation9], %s7759_s7, %s7759_s7, %s7760_s13  }
  0x68   :  { %s7763_s3 = smov [#allocation13]   ;;  %s7697_s22 = scalar_lea.hbm %s9755_s9, 2048 }
  0x69   :  { %s103_s18 = sshll.u32 %s7763_s3, 4  ;;  %p7698_p6 = scmp.ne.s32.totalorder %s9755_s9, %s7697_s22  ;;  %s104_s18 = int_to_ptr.vmem [resolvable:$true] %s103_s18 }
  0x6a   :  { %p7701_p7 = scmp.lt.u32.totalorder %s7697_s22, %s9755_s9 }
  0x6c   :  { %p7703_p8 = pnand %p7701_p7, %p7698_p6 }
  0x6e   :  { %7706 = shalt.err (!%p7703_p8)
}
  0x6f   :  { %s7707_s30 = scalar_lea.vmem %s104_s18, 2048  ;;  %p7712_p10 = scmp.lt.s32.totalorder %s104_s18, %s104_s18 }
  0x70   :  { %p7708_p9 = scmp.ne.s32.totalorder %s104_s18, %s7707_s30  ;;  %p7713_p11 = scmp.lt.s32.totalorder %s7707_s30, %s7707_s30 }
  0x72   :  { %p7714_p12 = por %p7713_p11, %p7712_p10 }
  0x74   :  { %p7715_p13 = pnand %p7714_p12, %p7708_p9 }
  0x76   :  { %7718 = shalt.err (!%p7715_p13)
}
  0x77   :  { %109 = dma.hbm_to_vmem [thread:$0]  %s9755_s9, 2048, %s104_s18, [#allocation12], %s7759_s7, %s7759_s7, %s7760_s13  }
  0x78   :  { %7741 = dma.done.wait [#allocation3], 256  }
  0x79   :  { %7742 = vsyncadd [#allocation3], 4294967040 }
  0x7a   :  { %7743 = dma.done.wait [#allocation6], 816  }
  0x7b   :  { %7744 = vsyncadd [#allocation6], 4294966480 }
  0x7c   :  { %7745 = dma.done.wait [#allocation9], 6144  }
  0x7d   :  { %7746 = vsyncadd [#allocation9], 4294961152 }
  0x7e   :  { %7747 = dma.done.wait [#allocation12], 14336  }
  0x7f   :  { %7748 = vsyncadd [#allocation12], 4294952960  ;;  %v9762_v0 = vmov 0.0   ;;  %v215_v1 = vld [vmem:[#allocation5 + $0x8] sm:$0xff]  ;;  %v218_v2 = vld [vmem:[#allocation5 + $0x20] sm:$0xff]  ;;  %vm237_vm0 = vcmask 130048   ;;  %v197_v57 = vlaneseq }
  0x80   :  { %308 = vmatprep.mubr.f32.mxu0 %v9762_v0  ;;  %v214_v3 = vld [vmem:[#allocation5] sm:$0xff]  ;;  %v5840_v4 = vpack.c.bf16 %v218_v2, %v215_v1  ;;  %v217_v5 = vld [vmem:[#allocation5 + $0x18] sm:$0xff]  ;;  %v212_v6 = vld [vmem:[#allocation2] sm:$0xff]  ;;  %vm500_vm1 = vcmask 1041408   ;;  %vm7766_vm2 = vmmov 0   ;;  %vm1127_vm3 = vcmask 1043458  }
  0x81   :  { %v397_v7 = vld [vmem:[#allocation8 + $0x8] sm:$0xff]  ;;  %v5842_v8 = vpack.c.bf16 %v217_v5, %v214_v3  ;;  %v399_v9 = vld [vmem:[#allocation8 + $0x18] sm:$0xff]  ;;  %v396_v10 = vld [vmem:[#allocation8] sm:$0xff]  ;;  %5277 = vmatprep.mubr.msk.f32.mxu1 %vm237_vm0, %v212_v6  ;;  %v8005_v58 = vshrl.u32 %v197_v57, 7  ;;  %vm1645_vm4 = vcmask 1045508   ;;  %vm2162_vm5 = vcmask 1047558  }
  0x82   :  { %v398_v11 = vld [vmem:[#allocation8 + $0x10] sm:$0xff]  ;;  %5841 = vmatprep.subr.bf16.mxu0 %v5840_v4  ;;  %v7948_v12 = vpack.c.bf16 %v399_v9, %v397_v7  ;;  %v401_v13 = vld [vmem:[#allocation8 + $0x28] sm:$0xff]  ;;  %v403_v14 = vld [vmem:[#allocation8 + $0x38] sm:$0xff]  ;;  %vm4649_vm6 = vcmask 254976  }
  0x83   :  { %5843 = vmatpush1.bf16.msra.mxu0 %v5842_v8  ;;  %v7950_v15 = vpack.c.bf16 %v398_v11, %v396_v10  ;;  %v7953_v16 = vpack.c.bf16 %v403_v14, %v401_v13  ;;  %v400_v17 = vld [vmem:[#allocation8 + $0x20] sm:$0xff]  ;;  %v402_v18 = vld [vmem:[#allocation8 + $0x30] sm:$0xff]  ;;  %v405_v19 = vld [vmem:[#allocation8 + $0x48] sm:$0xff]  ;;  %9908 = vst [vmem:[#allocation21_spill] sm:$0xff] %v8005_v58  ;;  %v9760_v60 = vsub.s32 0, %v8005_v58  ;;  %v9761_v63 = vsub.s32 1, %v8005_v58 }
  0x84   :  { %9907 = vst [vmem:[#allocation20_spill] sm:$0xff] %v7948_v12  ;;  %5849 = vmatprep.subr.bf16.mxu0 %v7948_v12  ;;  %v407_v20 = vld [vmem:[#allocation8 + $0x58] sm:$0xff]  ;;  %v7957_v21 = vpack.c.bf16 %v402_v18, %v400_v17  ;;  %v404_v23 = vld [vmem:[#allocation8 + $0x40] sm:$0xff]  ;;  %v406_v24 = vld [vmem:[#allocation8 + $0x50] sm:$0xff] }
  0x85   :  { %v7961_v22 = vpack.c.bf16 %v407_v20, %v405_v19  ;;  %v409_v25 = vld [vmem:[#allocation8 + $0x68] sm:$0xff]  ;;  %v411_v26 = vld [vmem:[#allocation8 + $0x78] sm:$0xff]  ;;  %v7966_v28 = vpack.c.bf16 %v406_v24, %v404_v23  ;;  %v408_v30 = vld [vmem:[#allocation8 + $0x60] sm:$0xff] }
  0x86   :  { %4681 = vmatmul.mubr.msk.f32.vlgmr.msra.gmra.mrb[0].mxu0 %vm237_vm0, %v212_v6  ;;  %v7963_v27 = vld [vmem:[#allocation2 + $0x8] sm:$0xff]  ;;  %v7969_v29 = vpack.c.bf16 %v411_v26, %v409_v25  ;;  %v410_v31 = vld [vmem:[#allocation8 + $0x70] sm:$0xff]  ;;  %v415_v33 = vld [vmem:[#allocation8 + $0x98] sm:$0xff] }
  0x87   :  { %5851 = vmatpush1.bf16.msra.mxu0 %v7950_v15  ;;  %314 = vmatprep.mubr.f32.mxu0 %v9762_v0  ;;  %v413_v32 = vld [vmem:[#allocation8 + $0x88] sm:$0xff]  ;;  %v7975_v34 = vpack.c.bf16 %v410_v31, %v408_v30  ;;  %v412_v36 = vld [vmem:[#allocation8 + $0x80] sm:$0xff]  ;;  %v414_v37 = vld [vmem:[#allocation8 + $0x90] sm:$0xff] }
  0x88   :  { %5853 = vmatprep.subr.bf16.mxu0 %v7953_v16  ;;  %v7978_v35 = vpack.c.bf16 %v415_v33, %v413_v32  ;;  %v417_v38 = vld [vmem:[#allocation8 + $0xa8] sm:$0xff]  ;;  %v419_v39 = vld [vmem:[#allocation8 + $0xb8] sm:$0xff]  ;;  %v7981_v40 = vpack.c.bf16 %v414_v37, %v412_v36  ;;  %v416_v42 = vld [vmem:[#allocation8 + $0xa0] sm:$0xff]  ;;  %v9764_v33 = vmov 0.0|0.0  }
  0x89   :  { %v7984_v41 = vpack.c.bf16 %v419_v39, %v417_v38  ;;  %v418_v43 = vld [vmem:[#allocation8 + $0xb0] sm:$0xff]  ;;  %v421_v44 = vld [vmem:[#allocation8 + $0xc8] sm:$0xff]  ;;  %v423_v45 = vld [vmem:[#allocation8 + $0xd8] sm:$0xff] }
  0x8a   :  { %4682 = vmatmul.mubr.msk.f32.gmra.mrb[2].mxu0 %vm237_vm0, %v7963_v27  ;;  %v7987_v46 = vpack.c.bf16 %v418_v43, %v416_v42  ;;  %v7990_v47 = vpack.c.bf16 %v423_v45, %v421_v44  ;;  %v420_v48 = vld [vmem:[#allocation8 + $0xc0] sm:$0xff]  ;;  %v422_v49 = vld [vmem:[#allocation8 + $0xd0] sm:$0xff]  ;;  %v425_v50 = vld [vmem:[#allocation8 + $0xe8] sm:$0xff] }
  0x8b   :  { %5855 = vmatpush1.bf16.msra.mxu0 %v7957_v21  ;;  %492 = vmatprep.mubr.f32.mxu0 %v9762_v0  ;;  %v427_v51 = vld [vmem:[#allocation8 + $0xf8] sm:$0xff]  ;;  %v7993_v52 = vpack.c.bf16 %v422_v49, %v420_v48  ;;  %v424_v54 = vld [vmem:[#allocation8 + $0xe0] sm:$0xff]  ;;  %v426_v55 = vld [vmem:[#allocation8 + $0xf0] sm:$0xff] }
  0x8c   :  { %5857 = vmatprep.subr.bf16.mxu0 %v7961_v22  ;;  %v7996_v53 = vpack.c.bf16 %v427_v51, %v425_v50  ;;  %v7999_v56 = vpack.c.bf16 %v426_v55, %v424_v54  ;;  %v8008_v62 = vld [vmem:[#allocation7] sm:$0x7]  ;;  %v219_v25 = vld [vmem:[#allocation5 + $0x28] sm:$0xff]  ;;  %v549_v30 = vld [vmem:[#allocation10] sm:$0xff] }
  0x8d   :  { %v225_v1 = vrot.slane %v8008_v62, %v9760_v60  ;;  %v229_v2 = vrot.slane %v8008_v62, %v9761_v63  ;;  %v216_v24 = vld [vmem:[#allocation5 + $0x10] sm:$0xff]  ;;  %v550_v31 = vld [vmem:[#allocation10 + $0x8] sm:$0xff]  ;;  %v551_v36 = vld [vmem:[#allocation10 + $0x10] sm:$0xff] }
  0x8e   :  { %v5844_v26 = vpack.c.bf16 %v219_v25, %v216_v24  ;;  %v8041_v32 = vpack.c.bf16 %v550_v31, %v549_v30  ;;  %v552_v37 = vld [vmem:[#allocation10 + $0x18] sm:$0xff]  ;;  %v553_v39 = vld [vmem:[#allocation10 + $0x20] sm:$0xff]  ;;  %v554_v42 = vld [vmem:[#allocation10 + $0x28] sm:$0xff] }
  0x8f   :  { %5859 = vmatpush1.bf16.msra.mxu0 %v7966_v28  ;;  %v8048_v38 = vpack.c.bf16 %v552_v37, %v551_v36  ;;  %v8052_v43 = vpack.c.bf16 %v554_v42, %v553_v39  ;;  %v556_v44 = vld [vmem:[#allocation10 + $0x38] sm:$0xff]  ;;  %v557_v48 = vld [vmem:[#allocation10 + $0x40] sm:$0xff]  ;;  %v558_v49 = vld [vmem:[#allocation10 + $0x48] sm:$0xff] }
  0x90   :  { %5861 = vmatprep.subr.bf16.mxu0 %v7969_v29  ;;  %5845 = vmatprep.subr.bf16.mxu1 %v5844_v26  ;;  %9913 = vst [vmem:[#allocation26_spill] sm:$0xff] %v8041_v32  ;;  %v8061_v50 = vpack.c.bf16 %v558_v49, %v557_v48  ;;  %v559_v51 = vld [vmem:[#allocation10 + $0x50] sm:$0xff]  ;;  %v560_v54 = vld [vmem:[#allocation10 + $0x58] sm:$0xff]  ;;  %v561_v57 = vld [vmem:[#allocation10 + $0x60] sm:$0xff] }
  0x91   :  { %5847 = vmatpush3.bf16.msra.mxu1 %v5844_v26  ;;  %9914 = vst [vmem:[#allocation27_spill] sm:$0xff] %v8048_v38  ;;  %9915 = vst [vmem:[#allocation28_spill] sm:$0xff] %v8052_v43  ;;  %v8065_v55 = vpack.c.bf16 %v560_v54, %v559_v51  ;;  %v8081_v24 = vld [vmem:[%s9751_s5 + $0x1] ss:$0 sm:$0xff]  ;;  %v659_v54 = vld [vmem:[#allocation11 + $0x8] sm:$0xff] }
  0x92   :  { %5880 = vmatprep.subr.bf16.mxu1 %v9764_v33  ;;  %9917 = vst [vmem:[#allocation30_spill] sm:$0xff] %v8061_v50  ;;  %9921 = vst [vmem:[#allocation34_spill] sm:$0xff] %v8081_v24  ;;  %v8086_v26 = vld [vmem:[%s9752_s6 + $0x1] ss:$0 sm:$0xff]  ;;  %v708_v60 = vld [vmem:[#allocation11 + $0x190] sm:$0xff] }
  0x93   :  { %5863 = vmatpush1.bf16.msra.mxu0 %v7975_v34  ;;  %9918 = vst [vmem:[#allocation31_spill] sm:$0xff] %v8065_v55  ;;  %9922 = vst [vmem:[#allocation35_spill] sm:$0xff] %v8086_v26 }
  0x94   :  { %5865 = vmatprep.subr.bf16.mxu0 %v7978_v35  ;;  %5278 = vmatmul.mubr.msk.f32.vlgmr.msra.gmra.mrb[0].mxu1 %vm237_vm0, %v7963_v27  ;;  %v555_v27 = vld [vmem:[#allocation10 + $0x30] sm:$0xff] }
  0x95   :  { %5882 = vmatpush3.bf16.msra.mxu1 %v8041_v32  ;;  %5312 = vmatprep.mubr.msk.f32.mxu1 %vm7766_vm2, %v9762_v0  ;;  %v8057_v45 = vpack.c.bf16 %v556_v44, %v555_v27  ;;  %v9759_v27 = vsub.s32 2, %v8005_v58  ;;  %v745_v32 = vld [vmem:[#allocation11 + $0x2b8] sm:$0xff] }
  0x96   :  { %5883 = vmatprep.subr.bf16.mxu1 %v9764_v33 }
  0x97   :  { %5867 = vmatpush1.bf16.msra.mxu0 %v7981_v40  ;;  %9916 = vst [vmem:[#allocation29_spill] sm:$0xff] %v8057_v45  ;;  %v233_v44 = vrot.slane %v8008_v62, %v9759_v27  ;;  %v674_v62 = vld [vmem:[#allocation11 + $0x80] sm:$0xff] }
  0x98   :  { %5869 = vmatprep.subr.bf16.mxu0 %v7984_v41 }
  0x99   :  { %5885 = vmatpush3.bf16.msra.mxu1 %v8048_v38  ;;  %v741_v38 = vld [vmem:[#allocation11 + $0x298] sm:$0xff] }
  0x9a   :  { %5886 = vmatprep.subr.bf16.mxu1 %v9764_v33 }
  0x9b   :  { %5871 = vmatpush1.bf16.msra.mxu0 %v7987_v46 }
  0x9c   :  { %5873 = vmatprep.subr.bf16.mxu0 %v7990_v47 }
  0x9d   :  { %5888 = vmatpush3.bf16.msra.mxu1 %v8052_v43 }
  0x9e   :  { %5889 = vmatprep.subr.bf16.mxu1 %v9764_v33 }
  0x9f   :  { %5875 = vmatpush1.bf16.msra.mxu0 %v7993_v52 }
  0xa0   :  { %5877 = vmatprep.subr.bf16.mxu0 %v7996_v53 }
  0xa1   :  { %5891 = vmatpush3.bf16.msra.mxu1 %v8057_v45  ;;  %v735_v45 = vld [vmem:[#allocation11 + $0x268] sm:$0xff] }
  0xa2   :  { %5892 = vmatprep.subr.bf16.mxu1 %v9764_v33 }
  0xa3   :  { %5879 = vmatpush1.bf16.msra.mxu0 %v7999_v56 }
  0xa5   :  { %5894 = vmatpush3.bf16.msra.mxu1 %v8061_v50 }
  0xa6   :  { %493 = vmatmul.mubr.f32.vlgmr.msra.gmra.mrb[4].mxu0 %v9762_v0  ;;  %5895 = vmatprep.subr.bf16.mxu1 %v9764_v33 }
  0xa7   :  { %818 = vmatprep.mubr.f32.mxu0 %v9762_v0 }
  0xa9   :  { %5897 = vmatpush3.bf16.msra.mxu1 %v8065_v55  ;;  %v729_v55 = vld [vmem:[#allocation11 + $0x238] sm:$0xff] }
  0xaa   :  { %5898 = vmatprep.subr.bf16.mxu1 %v9764_v33 }
 0x159   :  { %v310_v59 = vpop.f32.mrb[0].mxu0 }
 0x15a   :  { %v312_v61 = vpop.f32.mrb[1].mxu0  ;;  %v8021_v7 = vadd.f32 %v310_v59, %v225_v1  ;;  %v562_v59 = vld [vmem:[#allocation10 + $0x68] sm:$0xff] }
 0x15b   :  { %v8023_v8 = vadd.f32 %v312_v61, %v229_v2  ;;  %v8069_v61 = vpack.c.bf16 %v562_v59, %v561_v57  ;;  %v662_v57 = vld [vmem:[#allocation11 + $0x20] sm:$0xff] }
 0x15c   :  { %9911 = vst [vmem:[#allocation24_spill] sm:$0xff] %v8021_v7  ;;  %v658_v59 = vld [vmem:[#allocation11] sm:$0xff] }
 0x15d   :  { %v316_v3 = vpop.f32.mrb[2].mxu0  ;;  %9912 = vst [vmem:[#allocation25_spill] sm:$0xff] %v8023_v8  ;;  %9919 = vst [vmem:[#allocation32_spill] sm:$0xff] %v8069_v61  ;;  %5900 = vmatpush3.bf16.msra.mxu1 %v8069_v61 }
 0x15e   :  { %v8017_v4 = vadd.f32 %v316_v3, %v225_v1  ;;  %v318_v5 = vpop.f32.mrb[3].mxu0  ;;  %v563_v1 = vld [vmem:[#allocation10 + $0x70] sm:$0xff]  ;;  %5901 = vmatprep.subr.bf16.mxu1 %v9764_v33  ;;  %v713_v33 = vld [vmem:[#allocation11 + $0x1b8] sm:$0xff] }
 0x15f   :  { %v8019_v6 = vadd.f32 %v318_v5, %v229_v2  ;;  %v564_v2 = vld [vmem:[#allocation10 + $0x78] sm:$0xff] }
 0x160   :  { %9909 = vst [vmem:[#allocation22_spill] sm:$0xff] %v8017_v4  ;;  %v8073_v3 = vpack.c.bf16 %v564_v2, %v563_v1  ;;  %v8097_v1 = vpack.c.bf16 %v662_v57, %v659_v54  ;;  %v661_v2 = vld [vmem:[#allocation11 + $0x18] sm:$0xff]  ;;  %v686_v54 = vld [vmem:[#allocation11 + $0xe0] sm:$0xff] }
 0x161   :  { %9910 = vst [vmem:[#allocation23_spill] sm:$0xff] %v8019_v6  ;;  %v717_v6 = vld [vmem:[#allocation11 + $0x1d8] sm:$0xff] }
 0x162   :  { %9920 = vst [vmem:[#allocation33_spill] sm:$0xff] %v8073_v3  ;;  %5903 = vmatpush3.bf16.msra.mxu1 %v8073_v3  ;;  %5905 = vmatprep.subr.bf16.mxu0 %v8097_v1  ;;  %v723_v3 = vld [vmem:[#allocation11 + $0x208] sm:$0xff] }
 0x167   :  { %v5279_v48 = vpop.f32.mrb[0].mxu1 }
 0x168   :  { %v8095_v49 = vadd.f32 %v5279_v48, %v233_v44  ;;  %v387_v51 = vpop.f32.mrb[1].mxu1  ;;  %v683_v48 = vld [vmem:[#allocation11 + $0xc8] sm:$0xff] }
 0x16a   :  { %9923 = vst [vmem:[#allocation36_spill] sm:$0xff] %v8095_v49  ;;  %v716_v49 = vld [vmem:[#allocation11 + $0x1d0] sm:$0xff] }
 0x179   :  { %v494_v9 = vpop.f32.mrb[4].mxu0 }
 0x17a   :  { %v8026_v10 = vadd.f32 %v494_v9, %v8021_v7  ;;  %v496_v11 = vpop.f32.mrb[5].mxu0  ;;  %v751_v7 = vld [vmem:[#allocation11 + $0x2e8] sm:$0xff] }
 0x17b   :  { %v8029_v13 = vadd.f32 %v496_v11, %v8023_v8 }
 0x17c   :  { %v501_v14 = vsel %vm500_vm1, %v8026_v10, 0.0  ;;  %v505_v17 = vmul.f32 %v8026_v10, %v8026_v10 }
 0x17d   :  { %502 = vadd.xlane.f32.xlu1 %v501_v14  ;;  %v525_v18 = vsel %vm500_vm1, %v8029_v13, 0.0  ;;  %v529_v19 = vmul.f32 %v8029_v13, %v8029_v13 }
 0x17e   :  { %526 = vadd.xlane.f32.xlu0 %v525_v18  ;;  %v506_v20 = vsel %vm500_vm1, %v505_v17, 0.0 }
 0x17f   :  { %v530_v23 = vsel %vm500_vm1, %v529_v19, 0.0 }
 0x181   :  { %507 = vadd.xlane.f32.xlu1 %v506_v20 }
 0x182   :  { %531 = vadd.xlane.f32.xlu0 %v530_v23 }
 0x20b   :  { %v527_v5 = vpop.xlane.xlu0 %526 }
 0x20c   :  { %v528_v9 = vmul.f32 0.03125, %v527_v5  ;;  %v665_v5 = vld [vmem:[#allocation11 + $0x38] sm:$0xff] }
 0x20e   :  { %v534_v14 = vmul.f32 %v528_v9, %v528_v9  ;;  %v536_v20 = vsub.f32 %v8029_v13, %v528_v9  ;;  %v668_v9 = vld [vmem:[#allocation11 + $0x50] sm:$0xff] }
 0x20f   :  { %v532_v11 = vpop.xlane.xlu0 %531 }
 0x210   :  { %v533_v17 = vmul.f32 0.03125, %v532_v11  ;;  %v8099_v11 = vpack.c.bf16 %v661_v2, %v658_v59  ;;  %v8120_v59 = vpack.c.bf16 %v686_v54, %v683_v48  ;;  %v682_v2 = vld [vmem:[#allocation11 + $0xc0] sm:$0xff] }
 0x212   :  { %v535_v18 = vsub.f32 %v533_v17, %v534_v14  ;;  %v8101_v14 = vpack.c.bf16 %v668_v9, %v665_v5  ;;  %v664_v17 = vld [vmem:[#allocation11 + $0x30] sm:$0xff]  ;;  %5907 = vmatpush1.bf16.msra.mxu0 %v8099_v11  ;;  %v685_v5 = vld [vmem:[#allocation11 + $0xd8] sm:$0xff] }
 0x213   :  { %v689_v9 = vld [vmem:[#allocation11 + $0xf8] sm:$0xff] }
 0x214   :  { %v537_v19 = vadd.f32 1e-05, %v535_v18  ;;  %v667_v18 = vld [vmem:[#allocation11 + $0x48] sm:$0xff]  ;;  %5909 = vmatprep.subr.bf16.mxu0 %v8101_v14 }
 0x216   :  { %7273 = vrsqrt.f32 %v537_v19  ;;  %v671_v19 = vld [vmem:[#allocation11 + $0x68] sm:$0xff] }
 0x220   :  { %v7274_v23 = vpop.eup %7273 }
 0x221   :  { %v539_v25 = vmul.f32 %v7274_v23, %v536_v20  ;;  %v8105_v20 = vpack.c.bf16 %v667_v18, %v664_v17  ;;  %v8108_v23 = vpack.c.bf16 %v674_v62, %v671_v19  ;;  %v692_v17 = vld [vmem:[#allocation11 + $0x110] sm:$0xff]  ;;  %v8123_v18 = vpack.c.bf16 %v685_v5, %v682_v2 }
 0x222   :  { %v8126_v19 = vpack.c.bf16 %v692_v17, %v689_v9  ;;  %v688_v62 = vld [vmem:[#allocation11 + $0xf0] sm:$0xff] }
 0x223   :  { %v540_v30 = vmul.f32 %v8081_v24, %v539_v25  ;;  %v670_v25 = vld [vmem:[#allocation11 + $0x60] sm:$0xff]  ;;  %5911 = vmatpush1.bf16.msra.mxu0 %v8105_v20  ;;  %9924 = vst [vmem:[#allocation37_spill] sm:$0xff] %v8123_v18 }
 0x224   :  { %5913 = vmatprep.subr.bf16.mxu0 %v8108_v23  ;;  %9925 = vst [vmem:[#allocation38_spill] sm:$0xff] %v8126_v19 }
 0x225   :  { %v541_v31 = vadd.f32 %v8086_v26, %v540_v30  ;;  %v673_v30 = vld [vmem:[#allocation11 + $0x78] sm:$0xff]  ;;  %v743_v26 = vld [vmem:[#allocation11 + $0x2a8] sm:$0xff] }
 0x227   :  { %v4686_v36 = vmul.f32 -1.442695, %v541_v31  ;;  %v677_v31 = vld [vmem:[#allocation11 + $0x98] sm:$0xff] }
 0x229   :  { %7275 = vpow2.f32 %v4686_v36  ;;  %v680_v36 = vld [vmem:[#allocation11 + $0xb0] sm:$0xff] }
 0x233   :  { %v7276_v37 = vpop.eup %7275 }
 0x234   :  { %v545_v13 = vadd.f32 1.0, %v7276_v37  ;;  %v8111_v37 = vpack.c.bf16 %v673_v30, %v670_v25  ;;  %v691_v25 = vld [vmem:[#allocation11 + $0x108] sm:$0xff] }
 0x235   :  { %v695_v30 = vld [vmem:[#allocation11 + $0x128] sm:$0xff] }
 0x236   :  { %7277 = vrcp.f32 %v545_v13  ;;  %v8114_v13 = vpack.c.bf16 %v680_v36, %v677_v31  ;;  %5915 = vmatpush1.bf16.msra.mxu0 %v8111_v37  ;;  %v698_v31 = vld [vmem:[#allocation11 + $0x140] sm:$0xff]  ;;  %v8129_v36 = vpack.c.bf16 %v691_v25, %v688_v62  ;;  %v697_v25 = vld [vmem:[#allocation11 + $0x138] sm:$0xff] }
 0x237   :  { %v694_v62 = vld [vmem:[#allocation11 + $0x120] sm:$0xff] }
 0x238   :  { %5917 = vmatprep.subr.bf16.mxu0 %v8114_v13  ;;  %9926 = vst [vmem:[#allocation39_spill] sm:$0xff] %v8129_v36 }
 0x240   :  { %v7278_v39 = vpop.eup %7277 }
 0x241   :  { %v548_v42 = vmul.f32 0.0, %v7278_v39  ;;  %v676_v39 = vld [vmem:[#allocation11 + $0x90] sm:$0xff] }
 0x243   :  { %5313 = vmatmul.mubr.f32.vlgmr.msra.gmra.mrb[2].mxu1 %v548_v42  ;;  %v679_v42 = vld [vmem:[#allocation11 + $0xa8] sm:$0xff] }
 0x244   :  { %889 = vmatprep.mubr.f32.mxu1 %v9762_v0  ;;  %v8117_v57 = vpack.c.bf16 %v679_v42, %v676_v39  ;;  %v8132_v39 = vpack.c.bf16 %v698_v31, %v695_v30  ;;  %v8136_v42 = vadd.f32 %v387_v51, %v233_v44  ;;  %v8146_v30 = vpack.c.bf16 %v697_v25, %v694_v62  ;;  %v701_v44 = vld [vmem:[#allocation11 + $0x158] sm:$0xff]  ;;  %v704_v51 = vld [vmem:[#allocation11 + $0x170] sm:$0xff]  ;;  %v706_v62 = vld [vmem:[#allocation11 + $0x180] sm:$0xff] }
 0x245   :  { %v8149_v31 = vpack.c.bf16 %v704_v51, %v701_v44  ;;  %v709_v25 = vld [vmem:[#allocation11 + $0x198] sm:$0xff]  ;;  %v711_v0 = vld [vmem:[#allocation11 + $0x1a8] sm:$0xff]  ;;  %v660_v44 = vld [vmem:[#allocation11 + $0x10] sm:$0xff] }
 0x246   :  { %5919 = vmatpush1.bf16.msra.mxu0 %v8117_v57  ;;  %9927 = vst [vmem:[#allocation40_spill] sm:$0xff] %v8132_v39  ;;  %9928 = vst [vmem:[#allocation41_spill] sm:$0xff] %v8136_v42  ;;  %v8157_v63 = vpack.c.bf16 %v709_v25, %v706_v62  ;;  %v663_v51 = vld [vmem:[#allocation11 + $0x28] sm:$0xff]  ;;  %v714_v25 = vld [vmem:[#allocation11 + $0x1c0] sm:$0xff] }
 0x247   :  { %5921 = vmatprep.subr.bf16.mxu0 %v8120_v59  ;;  %9929 = vst [vmem:[#allocation42_spill] sm:$0xff] %v8146_v30  ;;  %9930 = vst [vmem:[#allocation43_spill] sm:$0xff] %v8149_v31  ;;  %v715_v62 = vld [vmem:[#allocation11 + $0x1c8] sm:$0xff] }
 0x248   :  { %9933 = vst [vmem:[#allocation46_spill] sm:$0xff] %v8157_v63 }
 0x24a   :  { %5923 = vmatpush1.bf16.msra.mxu0 %v8123_v18 }
 0x24b   :  { %5925 = vmatprep.subr.bf16.mxu0 %v8126_v19 }
 0x24e   :  { %5927 = vmatpush1.bf16.msra.mxu0 %v8129_v36 }
 0x24f   :  { %5929 = vmatprep.subr.bf16.mxu0 %v8132_v39 }
 0x252   :  { %5931 = vmatpush1.bf16.msra.mxu0 %v8146_v30 }
 0x253   :  { %5933 = vmatprep.subr.bf16.mxu0 %v8149_v31 }
 0x316   :  { %v631_v48 = vpop.f32.mrb[2].mxu1 }
 0x317   :  { %v8139_v54 = vadd.f32 %v631_v48, %v8136_v42  ;;  %v5314_v2 = vpop.f32.mrb[3].mxu1  ;;  %v700_v48 = vld [vmem:[#allocation11 + $0x150] sm:$0xff] }
 0x318   :  { %v703_v2 = vld [vmem:[#allocation11 + $0x168] sm:$0xff] }
 0x319   :  { %v636_v5 = vsel %vm500_vm1, %v8139_v54, 0.0  ;;  %v640_v9 = vmul.f32 %v8139_v54, %v8139_v54  ;;  %v8151_v27 = vpack.c.bf16 %v703_v2, %v700_v48  ;;  %v8160_v48 = vpack.c.bf16 %v711_v0, %v708_v60  ;;  %v666_v0 = vld [vmem:[#allocation11 + $0x40] sm:$0xff]  ;;  %v669_v60 = vld [vmem:[#allocation11 + $0x58] sm:$0xff] }
 0x31a   :  { %637 = vadd.xlane.f32.xlu0 %v636_v5  ;;  %v707_v5 = vld [vmem:[#allocation11 + $0x188] sm:$0xff]  ;;  %v8162_v2 = vpack.c.bf16 %v663_v51, %v660_v44  ;;  %v8172_v44 = vpack.c.bf16 %v717_v6, %v714_v25  ;;  %v8174_v51 = vpack.c.bf16 %v669_v60, %v666_v0  ;;  %v672_v6 = vld [vmem:[#allocation11 + $0x70] sm:$0xff] }
 0x31b   :  { %v641_v17 = vsel %vm500_vm1, %v640_v9, 0.0  ;;  %9931 = vst [vmem:[#allocation44_spill] sm:$0xff] %v8151_v27  ;;  %5935 = vmatpush1.bf16.msra.mxu0 %v8151_v27  ;;  %v710_v9 = vld [vmem:[#allocation11 + $0x1a0] sm:$0xff]  ;;  %9934 = vst [vmem:[#allocation47_spill] sm:$0xff] %v8160_v48  ;;  %5969 = vmatprep.subr.bf16.mxu1 %v8160_v48  ;;  %v675_v25 = vld [vmem:[#allocation11 + $0x88] sm:$0xff] }
 0x31c   :  { %642 = vadd.xlane.f32.xlu1 %v641_v17  ;;  %v8155_v17 = vpack.c.bf16 %v710_v9, %v707_v5  ;;  %9935 = vst [vmem:[#allocation48_spill] sm:$0xff] %v8162_v2  ;;  %v8166_v5 = vpack.c.bf16 %v716_v49, %v713_v33  ;;  %v712_v9 = vld [vmem:[#allocation11 + $0x1b0] sm:$0xff]  ;;  %5971 = vmatpush3.bf16.msra.mxu1 %v8162_v2  ;;  %9938 = vst [vmem:[#allocation51_spill] sm:$0xff] %v8172_v44  ;;  %v719_v33 = vld [vmem:[#allocation11 + $0x1e8] sm:$0xff] }
 0x31d   :  { %v8169_v4 = vpack.c.bf16 %v715_v62, %v712_v9  ;;  %9939 = vst [vmem:[#allocation52_spill] sm:$0xff] %v8174_v51  ;;  %v722_v49 = vld [vmem:[#allocation11 + $0x200] sm:$0xff]  ;;  %5973 = vmatprep.subr.bf16.mxu1 %v8172_v44  ;;  %v721_v9 = vld [vmem:[#allocation11 + $0x1f8] sm:$0xff]  ;;  %v720_v62 = vld [vmem:[#allocation11 + $0x1f0] sm:$0xff]  ;;  %v8186_v60 = vpack.c.bf16 %v675_v25, %v672_v6 }
 0x31e   :  { %9932 = vst [vmem:[#allocation45_spill] sm:$0xff] %v8155_v17  ;;  %5937 = vmatprep.subr.bf16.mxu0 %v8155_v17  ;;  %9936 = vst [vmem:[#allocation49_spill] sm:$0xff] %v8166_v5  ;;  %v8178_v42 = vpack.c.bf16 %v722_v49, %v719_v33  ;;  %v718_v2 = vld [vmem:[#allocation11 + $0x1e0] sm:$0xff]  ;;  %v8184_v0 = vpack.c.bf16 %v723_v3, %v720_v62  ;;  %v725_v33 = vld [vmem:[#allocation11 + $0x218] sm:$0xff] }
 0x31f   :  { %5939 = vmatpush1.bf16.msra.mxu0 %v8157_v63  ;;  %9937 = vst [vmem:[#allocation50_spill] sm:$0xff] %v8169_v4  ;;  %v8181_v48 = vpack.c.bf16 %v721_v9, %v718_v2  ;;  %9943 = vst [vmem:[#allocation56_spill] sm:$0xff] %v8186_v60  ;;  %v728_v49 = vld [vmem:[#allocation11 + $0x230] sm:$0xff]  ;;  %v727_v2 = vld [vmem:[#allocation11 + $0x228] sm:$0xff] }
 0x320   :  { %5941 = vmatprep.subr.bf16.mxu0 %v8166_v5  ;;  %9940 = vst [vmem:[#allocation53_spill] sm:$0xff] %v8178_v42  ;;  %5975 = vmatpush3.bf16.msra.mxu1 %v8174_v51  ;;  %9942 = vst [vmem:[#allocation55_spill] sm:$0xff] %v8184_v0  ;;  %v8190_v44 = vpack.c.bf16 %v728_v49, %v725_v33  ;;  %v724_v51 = vld [vmem:[#allocation11 + $0x210] sm:$0xff]  ;;  %v726_v9 = vld [vmem:[#allocation11 + $0x220] sm:$0xff] }
 0x321   :  { %9941 = vst [vmem:[#allocation54_spill] sm:$0xff] %v8181_v48  ;;  %5977 = vmatprep.subr.bf16.mxu1 %v8184_v0  ;;  %v8193_v61 = vpack.c.bf16 %v727_v2, %v724_v51  ;;  %v678_v3 = vld [vmem:[#allocation11 + $0xa0] sm:$0xff]  ;;  %v681_v62 = vld [vmem:[#allocation11 + $0xb8] sm:$0xff]  ;;  %v8196_v6 = vpack.c.bf16 %v729_v55, %v726_v9  ;;  %v731_v33 = vld [vmem:[#allocation11 + $0x248] sm:$0xff] }
 0x322   :  { %9944 = vst [vmem:[#allocation57_spill] sm:$0xff] %v8190_v44  ;;  %v8198_v25 = vpack.c.bf16 %v681_v62, %v678_v3  ;;  %v734_v49 = vld [vmem:[#allocation11 + $0x260] sm:$0xff]  ;;  %v733_v51 = vld [vmem:[#allocation11 + $0x258] sm:$0xff]  ;;  %v732_v2 = vld [vmem:[#allocation11 + $0x250] sm:$0xff] }
 0x323   :  { %5943 = vmatpush1.bf16.msra.mxu0 %v8169_v4  ;;  %9945 = vst [vmem:[#allocation58_spill] sm:$0xff] %v8193_v61  ;;  %9946 = vst [vmem:[#allocation59_spill] sm:$0xff] %v8196_v6  ;;  %v8202_v0 = vpack.c.bf16 %v734_v49, %v731_v33  ;;  %v684_v55 = vld [vmem:[#allocation11 + $0xd0] sm:$0xff]  ;;  %v687_v9 = vld [vmem:[#allocation11 + $0xe8] sm:$0xff]  ;;  %v8208_v3 = vpack.c.bf16 %v735_v45, %v732_v2 }
 0x324   :  { %5945 = vmatprep.subr.bf16.mxu0 %v8178_v42  ;;  %5979 = vmatpush3.bf16.msra.mxu1 %v8186_v60  ;;  %9947 = vst [vmem:[#allocation60_spill] sm:$0xff] %v8198_v25  ;;  %v730_v60 = vld [vmem:[#allocation11 + $0x240] sm:$0xff]  ;;  %v8210_v62 = vpack.c.bf16 %v687_v9, %v684_v55  ;;  %v737_v33 = vld [vmem:[#allocation11 + $0x278] sm:$0xff]  ;;  %v740_v49 = vld [vmem:[#allocation11 + $0x290] sm:$0xff] }
 0x325   :  { %5981 = vmatprep.subr.bf16.mxu1 %v8196_v6  ;;  %9948 = vst [vmem:[#allocation61_spill] sm:$0xff] %v8202_v0  ;;  %v8205_v50 = vpack.c.bf16 %v733_v51, %v730_v60  ;;  %9950 = vst [vmem:[#allocation63_spill] sm:$0xff] %v8208_v3  ;;  %v8214_v6 = vpack.c.bf16 %v740_v49, %v737_v33  ;;  %v739_v60 = vld [vmem:[#allocation11 + $0x288] sm:$0xff]  ;;  %v738_v51 = vld [vmem:[#allocation11 + $0x280] sm:$0xff] }
 0x326   :  { %9951 = vst [vmem:[#allocation64_spill] sm:$0xff] %v8210_v62  ;;  %v690_v45 = vld [vmem:[#allocation11 + $0x100] sm:$0xff]  ;;  %v693_v2 = vld [vmem:[#allocation11 + $0x118] sm:$0xff]  ;;  %v8220_v55 = vpack.c.bf16 %v741_v38, %v738_v51  ;;  %v696_v38 = vld [vmem:[#allocation11 + $0x130] sm:$0xff] }
 0x327   :  { %5947 = vmatpush1.bf16.msra.mxu0 %v8181_v48  ;;  %9949 = vst [vmem:[#allocation62_spill] sm:$0xff] %v8205_v50  ;;  %9952 = vst [vmem:[#allocation65_spill] sm:$0xff] %v8214_v6  ;;  %v8222_v9 = vpack.c.bf16 %v693_v2, %v690_v45  ;;  %v742_v33 = vld [vmem:[#allocation11 + $0x2a0] sm:$0xff]  ;;  %v699_v51 = vld [vmem:[#allocation11 + $0x148] sm:$0xff] }
 0x328   :  { %5949 = vmatprep.subr.bf16.mxu0 %v8190_v44  ;;  %5983 = vmatpush3.bf16.msra.mxu1 %v8198_v25  ;;  %v736_v25 = vld [vmem:[#allocation11 + $0x270] sm:$0xff]  ;;  %9954 = vst [vmem:[#allocation67_spill] sm:$0xff] %v8220_v55  ;;  %v749_v45 = vld [vmem:[#allocation11 + $0x2d8] sm:$0xff]  ;;  %v8234_v2 = vpack.c.bf16 %v699_v51, %v696_v38  ;;  %v9964_v51 = vmov 0.0|0.0  }
 0x329   :  { %5985 = vmatprep.subr.bf16.mxu1 %v8208_v3  ;;  %v8217_v43 = vpack.c.bf16 %v739_v60, %v736_v25  ;;  %9955 = vst [vmem:[#allocation68_spill] sm:$0xff] %v8222_v9  ;;  %v746_v3 = vld [vmem:[#allocation11 + $0x2c0] sm:$0xff]  ;;  %v747_v25 = vld [vmem:[#allocation11 + $0x2c8] sm:$0xff]  ;;  %v8228_v60 = vpack.c.bf16 %v745_v32, %v742_v33  ;;  %v753_v33 = vld [vmem:[#allocation11 + $0x2f8] sm:$0xff] }
 0x32a   :  { %v8225_v49 = vpack.c.bf16 %v746_v3, %v743_v26  ;;  %9959 = vst [vmem:[#allocation72_spill] sm:$0xff] %v8234_v2  ;;  %v752_v26 = vld [vmem:[#allocation11 + $0x2f0] sm:$0xff]  ;;  %v750_v32 = vld [vmem:[#allocation11 + $0x2e0] sm:$0xff] }
 0x32b   :  { %5951 = vmatpush1.bf16.msra.mxu0 %v8193_v61  ;;  %9953 = vst [vmem:[#allocation66_spill] sm:$0xff] %v8217_v43  ;;  %9957 = vst [vmem:[#allocation70_spill] sm:$0xff] %v8228_v60  ;;  %v748_v3 = vld [vmem:[#allocation11 + $0x2d0] sm:$0xff]  ;;  %v8237_v8 = vpack.c.bf16 %v752_v26, %v749_v45 }
 0x32c   :  { %5953 = vmatprep.subr.bf16.mxu0 %v8202_v0  ;;  %5987 = vmatpush3.bf16.msra.mxu1 %v8210_v62  ;;  %9956 = vst [vmem:[#allocation69_spill] sm:$0xff] %v8225_v49  ;;  %v744_v62 = vld [vmem:[#allocation11 + $0x2b0] sm:$0xff] }
 0x32d   :  { %5989 = vmatprep.subr.bf16.mxu1 %v8220_v55  ;;  %v8230_v24 = vpack.c.bf16 %v747_v25, %v744_v62  ;;  %9960 = vst [vmem:[#allocation73_spill] sm:$0xff] %v8237_v8  ;;  %v702_v62 = vld [vmem:[#allocation11 + $0x160] sm:$0xff]  ;;  %v8240_v25 = vpack.c.bf16 %v751_v7, %v748_v3  ;;  %v8242_v55 = vpack.c.bf16 %v753_v33, %v750_v32  ;;  %v503_v7 = vpop.xlane.xlu1 %502 }
 0x32e   :  { %v504_v26 = vmul.f32 0.03125, %v503_v7  ;;  %v8263_v7 = vld [vmem:[%s9752_s6] ss:$0 sm:$0xff] }
 0x32f   :  { %5955 = vmatpush1.bf16.msra.mxu0 %v8205_v50  ;;  %9958 = vst [vmem:[#allocation71_spill] sm:$0xff] %v8230_v24  ;;  %9961 = vst [vmem:[#allocation74_spill] sm:$0xff] %v8240_v25 }
 0x330   :  { %5957 = vmatprep.subr.bf16.mxu0 %v8214_v6  ;;  %5991 = vmatpush3.bf16.msra.mxu1 %v8222_v9  ;;  %9962 = vst [vmem:[#allocation75_spill] sm:$0xff] %v8242_v55  ;;  %v705_v9 = vld [vmem:[#allocation11 + $0x178] sm:$0xff]  ;;  %v510_v32 = vmul.f32 %v504_v26, %v504_v26 }
 0x331   :  { %5993 = vmatprep.subr.bf16.mxu1 %v8230_v24  ;;  %v8246_v38 = vpack.c.bf16 %v705_v9, %v702_v62  ;;  %v508_v45 = vpop.xlane.xlu1 %507  ;;  %v512_v62 = vsub.f32 %v8026_v10, %v504_v26 }
 0x332   :  { %v509_v3 = vmul.f32 0.03125, %v508_v45 }
 0x333   :  { %5959 = vmatpush1.bf16.msra.mxu0 %v8217_v43  ;;  %9963 = vst [vmem:[#allocation76_spill] sm:$0xff] %v8246_v38 }
 0x334   :  { %5961 = vmatprep.subr.bf16.mxu0 %v8225_v49  ;;  %5995 = vmatpush3.bf16.msra.mxu1 %v8234_v2  ;;  %v511_v33 = vsub.f32 %v509_v3, %v510_v32  ;;  %v8257_v2 = vld [vmem:[%s9751_s5] ss:$0 sm:$0xff] }
 0x335   :  { %5997 = vmatprep.subr.bf16.mxu1 %v8242_v55  ;;  %9965 = vst [vmem:[#allocation77_spill] sm:$0xff] %v8257_v2 }
 0x336   :  { %v513_v24 = vadd.f32 1e-05, %v511_v33 }
 0x337   :  { %5963 = vmatpush1.bf16.msra.mxu0 %v8228_v60 }
 0x338   :  { %5965 = vmatprep.subr.bf16.mxu0 %v8237_v8  ;;  %5999 = vmatpush3.bf16.msra.mxu1 %v8246_v38  ;;  %7279 = vrsqrt.f32 %v513_v24 }
 0x339   :  { %6000 = vmatprep.subr.bf16.mxu1 %v9964_v51 }
 0x33b   :  { %5967 = vmatpush1.bf16.msra.mxu0 %v8240_v25 }
 0x33c   :  { %6025 = vmatprep.subr.bf16.mxu0 %v7948_v12  ;;  %v8270_v12 = vld [vmem:[%s9751_s5 + $0x2] ss:$0 sm:$0xff] }
 0x342   :  { %v7280_v9 = vpop.eup %7279 }
 0x343   :  { %v515_v55 = vmul.f32 %v7280_v9, %v512_v62 }
 0x345   :  { %v516_v38 = vmul.f32 %v8257_v2, %v515_v55 }
 0x347   :  { %v517_v45 = vadd.f32 %v8263_v7, %v516_v38 }
 0x349   :  { %v4685_v3 = vmul.f32 -1.442695, %v517_v45  ;;  %v8275_v45 = vld [vmem:[%s9752_s6 + $0x2] ss:$0 sm:$0xff] }
 0x34b   :  { %7281 = vpow2.f32 %v4685_v3 }
 0x355   :  { %v7282_v51 = vpop.eup %7281 }
 0x356   :  { %v521_v58 = vadd.f32 1.0, %v7282_v51 }
 0x3a7   :  { %v638_v24 = vpop.xlane.xlu0 %637 }
 0x3a8   :  { %v639_v32 = vmul.f32 0.03125, %v638_v24 }
 0x3a9   :  { %v643_v33 = vpop.xlane.xlu1 %642 }
 0x3aa   :  { %v645_v10 = vmul.f32 %v639_v32, %v639_v32  ;;  %v644_v26 = vmul.f32 0.03125, %v643_v33  ;;  %v647_v55 = vsub.f32 %v8139_v54, %v639_v32 }
 0x3ac   :  { %v646_v9 = vsub.f32 %v644_v26, %v645_v10 }
 0x3ae   :  { %v648_v62 = vadd.f32 1e-05, %v646_v9  ;;  %v8338_v9 = vld [vmem:[%s9754_s8] sm:$0x7] }
 0x3b0   :  { %7283 = vrsqrt.f32 %v648_v62  ;;  %v9968_v62 = vld [vmem:[#allocation21_spill] sm:$0xff] }
 0x3b1   :  { %7285 = vrcp.f32 %v521_v58  ;;  %v9966_v58 = vmov 0.0  }
 0x3ba   :  { %v7284_v2 = vpop.eup %7283 }
 0x3bb   :  { %v650_v38 = vmul.f32 %v7284_v2, %v647_v55  ;;  %v7286_v51 = vpop.eup %7285  ;;  %v9967_v2 = vld [vmem:[#allocation20_spill] sm:$0xff]  ;;  %v9969_v55 = vsub.s32 1, %v9968_v62 }
 0x3bc   :  { %v654_v54 = vsub.f32 1.0, %v7286_v51 }
 0x3bd   :  { %v651_v3 = vmul.f32 %v8270_v12, %v650_v38  ;;  %v8343_v38 = vrot.slane %v8338_v9, %v9969_v55  ;;  %v9971_v55 = vsub.s32 0, %v9968_v62 }
 0x3be   :  { %v655_v33 = vmul.f32 0.0, %v654_v54 }
 0x3bf   :  { %v652_v24 = vadd.f32 %v8275_v45, %v651_v3  ;;  %9970 = vst [vmem:[#allocation21_spill] sm:$0xff] %v8343_v38 }
 0x3c1   :  { %7287 = vtanh.f32 %v652_v24 }
 0x3cb   :  { %v7288_v32 = vpop.eup %7287 }
 0x3cc   :  { %v656_v10 = vmul.f32 %v7288_v32, %v7286_v51 }
 0x3ce   :  { %v8279_v26 = vadd.f32 %v656_v10, %v655_v33 }
 0x3d0   :  { %819 = vmatmul.mubr.f32.vlgmr.msra.gmra.mrb[6].mxu0 %v8279_v26  ;;  %890 = vmatmul.mubr.f32.vlgmr.msra.gmra.mrb[4].mxu1 %v8279_v26 }
 0x3d1   :  { %6027 = vmatpush1.bf16.msra.mxu0 %v7950_v15  ;;  %1116 = vmatprep.mubr.f32.mxu0 %v9966_v58 }
 0x3d2   :  { %6029 = vmatprep.subr.bf16.mxu0 %v7953_v16  ;;  %5347 = vmatprep.mubr.msk.f32.mxu1 %vm7766_vm2, %v9966_v58 }
 0x3d5   :  { %6031 = vmatpush1.bf16.msra.mxu0 %v7957_v21 }
 0x3d6   :  { %6033 = vmatprep.subr.bf16.mxu0 %v7961_v22 }
 0x3d9   :  { %6035 = vmatpush1.bf16.msra.mxu0 %v7966_v28 }
 0x3da   :  { %6037 = vmatprep.subr.bf16.mxu0 %v7969_v29 }
 0x3dd   :  { %6039 = vmatpush1.bf16.msra.mxu0 %v7975_v34 }
 0x3de   :  { %6041 = vmatprep.subr.bf16.mxu0 %v7978_v35 }
 0x3e1   :  { %6043 = vmatpush1.bf16.msra.mxu0 %v7981_v40 }
 0x3e2   :  { %6045 = vmatprep.subr.bf16.mxu0 %v7984_v41 }
 0x3e5   :  { %6047 = vmatpush1.bf16.msra.mxu0 %v7987_v46 }
 0x3e6   :  { %6049 = vmatprep.subr.bf16.mxu0 %v7990_v47 }
 0x3e9   :  { %6051 = vmatpush1.bf16.msra.mxu0 %v7993_v52 }
 0x3ea   :  { %6053 = vmatprep.subr.bf16.mxu0 %v7996_v53 }
 0x3ed   :  { %6055 = vmatpush1.bf16.msra.mxu0 %v7999_v56 }
 0x3ee   :  { %6081 = vmatprep.subr.bf16.mxu0 %v8097_v1 }
 0x3f0   :  { %1117 = vmatmul.mubr.f32.vlgmr.msra.gmra.mrb[8].mxu0 %v8279_v26 }
 0x3f1   :  { %6083 = vmatpush1.bf16.msra.mxu0 %v8099_v11 }
 0x3f2   :  { %6085 = vmatprep.subr.bf16.mxu0 %v8101_v14 }
 0x3f5   :  { %6087 = vmatpush1.bf16.msra.mxu0 %v8105_v20 }
 0x3f6   :  { %6089 = vmatprep.subr.bf16.mxu0 %v8108_v23 }
 0x3f9   :  { %6091 = vmatpush1.bf16.msra.mxu0 %v8111_v37 }
 0x3fa   :  { %6093 = vmatprep.subr.bf16.mxu0 %v8114_v13 }
 0x3fd   :  { %6095 = vmatpush1.bf16.msra.mxu0 %v8117_v57 }
 0x3fe   :  { %6097 = vmatprep.subr.bf16.mxu0 %v8120_v59 }
 0x401   :  { %6099 = vmatpush1.bf16.msra.mxu0 %v8123_v18 }
 0x402   :  { %6101 = vmatprep.subr.bf16.mxu0 %v8126_v19 }
 0x405   :  { %6103 = vmatpush1.bf16.msra.mxu0 %v8129_v36 }
 0x406   :  { %6105 = vmatprep.subr.bf16.mxu0 %v8132_v39 }
 0x409   :  { %6107 = vmatpush1.bf16.msra.mxu0 %v8146_v30 }
 0x40a   :  { %6109 = vmatprep.subr.bf16.mxu0 %v8149_v31 }
 0x40d   :  { %6111 = vmatpush1.bf16.msra.mxu0 %v8151_v27 }
 0x40e   :  { %6113 = vmatprep.subr.bf16.mxu0 %v8155_v17  ;;  %v8425_v17 = vld [vmem:[%s9757_s11 + $0x1] ss:$0 sm:$0xff] }
 0x411   :  { %6115 = vmatpush1.bf16.msra.mxu0 %v8157_v63 }
 0x412   :  { %6117 = vmatprep.subr.bf16.mxu0 %v8166_v5 }
 0x415   :  { %6119 = vmatpush1.bf16.msra.mxu0 %v8169_v4 }
 0x416   :  { %6121 = vmatprep.subr.bf16.mxu0 %v8178_v42 }
 0x419   :  { %6123 = vmatpush1.bf16.msra.mxu0 %v8181_v48 }
 0x41a   :  { %6125 = vmatprep.subr.bf16.mxu0 %v8190_v44 }
 0x41d   :  { %6127 = vmatpush1.bf16.msra.mxu0 %v8193_v61 }
 0x41e   :  { %6129 = vmatprep.subr.bf16.mxu0 %v8202_v0  ;;  %v9974_v0 = vld [vmem:[#allocation24_spill] sm:$0xff] }
 0x421   :  { %6131 = vmatpush1.bf16.msra.mxu0 %v8205_v50 }
 0x422   :  { %6133 = vmatprep.subr.bf16.mxu0 %v8214_v6  ;;  %v944_v6 = vld [vmem:[#allocation13 + $0x10] sm:$0xff] }
 0x425   :  { %6135 = vmatpush1.bf16.msra.mxu0 %v8217_v43 }
 0x426   :  { %6137 = vmatprep.subr.bf16.mxu0 %v8225_v49  ;;  %v9973_v49 = vld [vmem:[#allocation25_spill] sm:$0xff] }
 0x429   :  { %6139 = vmatpush1.bf16.msra.mxu0 %v8228_v60 }
 0x42a   :  { %6141 = vmatprep.subr.bf16.mxu0 %v8237_v8  ;;  %v8358_v8 = vrot.slane %v8338_v9, %v9971_v55  ;;  %v943_v55 = vld [vmem:[#allocation13 + $0x8] sm:$0xff] }
 0x42c   :  { %9972 = vst [vmem:[#allocation78_spill] sm:$0xff] %v8358_v8 }
 0x42d   :  { %6143 = vmatpush1.bf16.msra.mxu0 %v8240_v25 }
 0x42e   :  { %6201 = vmatprep.subr.bf16.mxu0 %v9967_v2 }
 0x4a3   :  { %v820_v3 = vpop.f32.mrb[6].mxu0  ;;  %v4770_v24 = vpop.f32.mrb[4].mxu1 }
 0x4a4   :  { %v822_v51 = vpop.f32.mrb[7].mxu0  ;;  %v4771_v54 = vpop.f32.mrb[5].mxu1 }
 0x4a5   :  { %v8346_v32 = vadd.f32 %v822_v51, %v8343_v38  ;;  %v8348_v33 = vadd.f32 %v4771_v54, %v4770_v24  ;;  %v8361_v24 = vadd.f32 %v820_v3, %v8358_v8 }
 0x4a7   :  { %v918_v10 = vsel %vm500_vm1, %v8346_v32, 0.0  ;;  %v922_v2 = vmul.f32 %v8346_v32, %v8346_v32  ;;  %v895_v8 = vsel %vm500_vm1, %v8361_v24, 0.0 }
 0x4a8   :  { %919 = vadd.xlane.f32.xlu0 %v918_v10  ;;  %v942_v10 = vld [vmem:[#allocation13] sm:$0xff] }
 0x4a9   :  { %v923_v25 = vsel %vm500_vm1, %v922_v2, 0.0  ;;  %v8370_v50 = vpack.c.bf16 %v943_v55, %v942_v10  ;;  %v946_v10 = vld [vmem:[#allocation13 + $0x20] sm:$0xff]  ;;  %v947_v55 = vld [vmem:[#allocation13 + $0x28] sm:$0xff] }
 0x4aa   :  { %924 = vadd.xlane.f32.xlu1 %v923_v25 }
 0x4ab   :  { %6002 = vmatpush3.bf16.msra.mxu1 %v8370_v50 }
 0x4c3   :  { %v1118_v60 = vpop.f32.mrb[8].mxu0 }
 0x4c4   :  { %v1120_v51 = vpop.f32.mrb[9].mxu0  ;;  %v1124_v54 = vrot.slane %v1118_v60, 6 }
 0x4c5   :  { %v1152_v38 = vrot.slane %v1120_v51, 6  ;;  %v945_v51 = vld [vmem:[#allocation13 + $0x18] sm:$0xff] }
 0x4c6   :  { %v8373_v3 = vadd.f32 %v1124_v54, %v9974_v0 }
 0x4c7   :  { %v8364_v43 = vadd.f32 %v1152_v38, %v9973_v49  ;;  %v899_v38 = vmul.f32 %v8361_v24, %v8361_v24  ;;  %v8379_v49 = vpack.c.bf16 %v945_v51, %v944_v6 }
 0x4c8   :  { %v1128_v6 = vsel %vm1127_vm3, %v8373_v3, 0.0 }
 0x4c9   :  { %v1155_v2 = vsel %vm1127_vm3, %v8364_v43, 0.0  ;;  %v1159_v25 = vmul.f32 %v8364_v43, %v8364_v43  ;;  %v900_v54 = vsel %vm500_vm1, %v899_v38, 0.0  ;;  %v949_v38 = vld [vmem:[#allocation13 + $0x38] sm:$0xff] }
 0x4ca   :  { %1156 = vadd.xlane.f32.xlu0 %v1155_v2  ;;  %v9975_v2 = vmov 0.0|0.0  }
 0x4cb   :  { %v1160_v60 = vsel %vm1127_vm3, %v1159_v25, 0.0  ;;  %6003 = vmatprep.subr.bf16.mxu1 %v9975_v2  ;;  %v1132_v25 = vmul.f32 %v8373_v3, %v8373_v3 }
 0x4cc   :  { %1161 = vadd.xlane.f32.xlu1 %v1160_v60  ;;  %6005 = vmatpush3.bf16.msra.mxu1 %v8379_v49  ;;  %v8388_v60 = vpack.c.bf16 %v947_v55, %v946_v10  ;;  %v950_v10 = vld [vmem:[#allocation13 + $0x40] sm:$0xff]  ;;  %v951_v55 = vld [vmem:[#allocation13 + $0x48] sm:$0xff] }
 0x4cd   :  { %6006 = vmatprep.subr.bf16.mxu1 %v9975_v2  ;;  %v1133_v51 = vsel %vm1127_vm3, %v1132_v25, 0.0  ;;  %v8400_v0 = vpack.c.bf16 %v951_v55, %v950_v10  ;;  %v952_v25 = vld [vmem:[#allocation13 + $0x50] sm:$0xff]  ;;  %v957_v55 = vld [vmem:[#allocation13 + $0x78] sm:$0xff] }
 0x4ce   :  { %896 = vadd.xlane.f32.xlu0 %v895_v8  ;;  %v948_v8 = vld [vmem:[#allocation13 + $0x30] sm:$0xff] }
 0x4cf   :  { %v956_v10 = vld [vmem:[#allocation13 + $0x70] sm:$0xff] }
 0x4d0   :  { %901 = vadd.xlane.f32.xlu1 %v900_v54  ;;  %6008 = vmatpush3.bf16.msra.mxu1 %v8388_v60  ;;  %v8396_v54 = vpack.c.bf16 %v949_v38, %v948_v8  ;;  %v954_v8 = vld [vmem:[#allocation13 + $0x60] sm:$0xff]  ;;  %v955_v38 = vld [vmem:[#allocation13 + $0x68] sm:$0xff]  ;;  %v8412_v44 = vpack.c.bf16 %v957_v55, %v956_v10  ;;  %v8420_v10 = vld [vmem:[%s9756_s10 + $0x1] ss:$0 sm:$0xff] }
 0x4d1   :  { %6009 = vmatprep.subr.bf16.mxu1 %v9975_v2  ;;  %v8408_v61 = vpack.c.bf16 %v955_v38, %v954_v8  ;;  %9976 = vst [vmem:[#allocation79_spill] sm:$0xff] %v8420_v10 }
 0x4d2   :  { %1129 = vadd.xlane.f32.xlu0 %v1128_v6  ;;  %v953_v6 = vld [vmem:[#allocation13 + $0x58] sm:$0xff] }
 0x4d4   :  { %1134 = vadd.xlane.f32.xlu1 %v1133_v51  ;;  %6011 = vmatpush3.bf16.msra.mxu1 %v8396_v54  ;;  %v8404_v51 = vpack.c.bf16 %v953_v6, %v952_v25 }
 0x4d5   :  { %6012 = vmatprep.subr.bf16.mxu1 %v9975_v2 }
 0x4d8   :  { %6014 = vmatpush3.bf16.msra.mxu1 %v8400_v0 }
 0x4d9   :  { %6015 = vmatprep.subr.bf16.mxu1 %v9975_v2 }
 0x4dc   :  { %6017 = vmatpush3.bf16.msra.mxu1 %v8404_v51 }
 0x4dd   :  { %6018 = vmatprep.subr.bf16.mxu1 %v9975_v2 }
 0x4e0   :  { %6020 = vmatpush3.bf16.msra.mxu1 %v8408_v61 }
 0x4e1   :  { %6021 = vmatprep.subr.bf16.mxu1 %v9975_v2 }
 0x4e4   :  { %6023 = vmatpush3.bf16.msra.mxu1 %v8412_v44 }
 0x4e5   :  { %6056 = vmatprep.subr.bf16.mxu1 %v9975_v2 }
 0x535   :  { %v920_v25 = vpop.xlane.xlu0 %919 }
 0x536   :  { %v921_v6 = vmul.f32 0.03125, %v920_v25 }
 0x537   :  { %v925_v48 = vpop.xlane.xlu1 %924 }
 0x538   :  { %v927_v42 = vmul.f32 %v921_v6, %v921_v6  ;;  %v926_v4 = vmul.f32 0.03125, %v925_v48  ;;  %v929_v38 = vsub.f32 %v8346_v32, %v921_v6 }
 0x53a   :  { %v928_v5 = vsub.f32 %v926_v4, %v927_v42 }
 0x53c   :  { %v930_v8 = vadd.f32 1e-05, %v928_v5 }
 0x53e   :  { %7289 = vrsqrt.f32 %v930_v8 }
 0x548   :  { %v7290_v63 = vpop.eup %7289 }
 0x549   :  { %v932_v55 = vmul.f32 %v7290_v63, %v929_v38 }
 0x54b   :  { %v933_v25 = vmul.f32 %v8420_v10, %v932_v55 }
 0x54d   :  { %v934_v4 = vadd.f32 %v8425_v17, %v933_v25  ;;  %v9977_v25 = vld [vmem:[#allocation34_spill] sm:$0xff] }
 0x54f   :  { %v4688_v42 = vmul.f32 -1.442695, %v934_v4 }
 0x551   :  { %7291 = vpow2.f32 %v4688_v42  ;;  %v9978_v42 = vld [vmem:[#allocation26_spill] sm:$0xff] }
 0x557   :  { %v1157_v48 = vpop.xlane.xlu0 %1156 }
 0x558   :  { %v1158_v5 = vmul.f32 0.03125, %v1157_v48  ;;  %v9980_v48 = vld [vmem:[#allocation27_spill] sm:$0xff] }
 0x559   :  { %v1162_v32 = vpop.xlane.xlu1 %1161 }
 0x55a   :  { %v1164_v6 = vmul.f32 %v1158_v5, %v1158_v5  ;;  %v1163_v8 = vmul.f32 0.03125, %v1162_v32  ;;  %v1166_v39 = vsub.f32 %v8364_v43, %v1158_v5  ;;  %v9981_v43 = vld [vmem:[#allocation28_spill] sm:$0xff]  ;;  %v9984_v32 = vld [vmem:[#allocation31_spill] sm:$0xff] }
 0x55b   :  { %v7292_v27 = vpop.eup %7291 }
 0x55c   :  { %v1165_v31 = vsub.f32 %v1163_v8, %v1164_v6  ;;  %v938_v30 = vadd.f32 1.0, %v7292_v27  ;;  %v9979_v27 = vld [vmem:[#allocation35_spill] sm:$0xff]  ;;  %v9985_v6 = vld [vmem:[#allocation32_spill] sm:$0xff]  ;;  %v9986_v8 = vld [vmem:[#allocation33_spill] sm:$0xff] }
 0x55e   :  { %v1167_v63 = vadd.f32 1e-05, %v1165_v31  ;;  %7293 = vrcp.f32 %v938_v30 }
 0x560   :  { %7295 = vrsqrt.f32 %v1167_v63  ;;  %v9877_v63 = vrot.slane %v8279_v26, 6 }
 0x568   :  { %v7294_v38 = vpop.eup %7293 }
 0x569   :  { %v941_v55 = vmul.f32 0.0, %v7294_v38 }
 0x56a   :  { %v7296_v36 = vpop.eup %7295 }
 0x56b   :  { %v1169_v10 = vmul.f32 %v7296_v36, %v1166_v39  ;;  %5348 = vmatmul.mubr.f32.vlgmr.msra.gmra.mrb[6].mxu1 %v941_v55  ;;  %v9982_v36 = vld [vmem:[#allocation29_spill] sm:$0xff]  ;;  %v9987_v55 = vld [vmem:[#allocation47_spill] sm:$0xff] }
 0x56c   :  { %6058 = vmatpush3.bf16.msra.mxu1 %v9978_v42  ;;  %5382 = vmatprep.mubr.msk.f32.mxu1 %vm7766_vm2, %v9966_v58 }
 0x56d   :  { %v1170_v4 = vmul.f32 %v9977_v25, %v1169_v10  ;;  %6059 = vmatprep.subr.bf16.mxu1 %v9975_v2  ;;  %v9983_v10 = vld [vmem:[#allocation30_spill] sm:$0xff] }
 0x56f   :  { %v1171_v31 = vadd.f32 %v9979_v27, %v1170_v4  ;;  %v9988_v27 = vld [vmem:[#allocation48_spill] sm:$0xff] }
 0x570   :  { %6061 = vmatpush3.bf16.msra.mxu1 %v9980_v48 }
 0x571   :  { %v4690_v30 = vmul.f32 -1.442695, %v1171_v31  ;;  %6062 = vmatprep.subr.bf16.mxu1 %v9975_v2  ;;  %v9989_v31 = vld [vmem:[#allocation51_spill] sm:$0xff] }
 0x573   :  { %7297 = vpow2.f32 %v4690_v30  ;;  %v9990_v30 = vld [vmem:[#allocation52_spill] sm:$0xff] }
 0x574   :  { %6064 = vmatpush3.bf16.msra.mxu1 %v9981_v43 }
 0x575   :  { %6065 = vmatprep.subr.bf16.mxu1 %v9975_v2 }
 0x578   :  { %6067 = vmatpush3.bf16.msra.mxu1 %v9982_v36 }
 0x579   :  { %6068 = vmatprep.subr.bf16.mxu1 %v9975_v2 }
 0x57c   :  { %6070 = vmatpush3.bf16.msra.mxu1 %v9983_v10 }
 0x57d   :  { %v7298_v39 = vpop.eup %7297  ;;  %6071 = vmatprep.subr.bf16.mxu1 %v9975_v2 }
 0x57e   :  { %v1175_v5 = vadd.f32 1.0, %v7298_v39  ;;  %v9991_v39 = vld [vmem:[#allocation55_spill] sm:$0xff] }
 0x580   :  { %7299 = vrcp.f32 %v1175_v5  ;;  %6073 = vmatpush3.bf16.msra.mxu1 %v9984_v32  ;;  %v9992_v5 = vld [vmem:[#allocation56_spill] sm:$0xff] }
 0x581   :  { %6074 = vmatprep.subr.bf16.mxu1 %v9975_v2  ;;  %v9996_v32 = vld [vmem:[#allocation64_spill] sm:$0xff] }
 0x584   :  { %6076 = vmatpush3.bf16.msra.mxu1 %v9985_v6  ;;  %v9994_v6 = vld [vmem:[#allocation60_spill] sm:$0xff] }
 0x585   :  { %6077 = vmatprep.subr.bf16.mxu1 %v9975_v2 }
 0x588   :  { %6079 = vmatpush3.bf16.msra.mxu1 %v9986_v8  ;;  %v9993_v8 = vld [vmem:[#allocation59_spill] sm:$0xff] }
 0x589   :  { %6145 = vmatprep.subr.bf16.mxu1 %v9987_v55  ;;  %v9995_v55 = vld [vmem:[#allocation63_spill] sm:$0xff] }
 0x58a   :  { %v7300_v38 = vpop.eup %7299 }
 0x58b   :  { %v1181_v25 = vmul.f32 %v7300_v38, %v9877_v63  ;;  %v9997_v38 = vld [vmem:[#allocation67_spill] sm:$0xff]  ;;  %v10000_v63 = vld [vmem:[#allocation72_spill] sm:$0xff] }
 0x58d   :  { %v1183_v4 = vrot.slane %v1181_v25, 2  ;;  %v9998_v25 = vld [vmem:[#allocation68_spill] sm:$0xff] }
 0x58f   :  { %5383 = vmatmul.mubr.f32.vlgmr.msra.gmra.mrb[8].mxu1 %v1183_v4  ;;  %v9999_v4 = vld [vmem:[#allocation71_spill] sm:$0xff] }
 0x590   :  { %6147 = vmatpush3.bf16.msra.mxu1 %v9988_v27 }
 0x591   :  { %6149 = vmatprep.subr.bf16.mxu1 %v9989_v31 }
 0x594   :  { %6151 = vmatpush3.bf16.msra.mxu1 %v9990_v30  ;;  %v10001_v30 = vld [vmem:[#allocation75_spill] sm:$0xff] }
 0x595   :  { %6153 = vmatprep.subr.bf16.mxu1 %v9991_v39  ;;  %v10002_v39 = vld [vmem:[#allocation76_spill] sm:$0xff] }
 0x598   :  { %6155 = vmatpush3.bf16.msra.mxu1 %v9992_v5 }
 0x599   :  { %6157 = vmatprep.subr.bf16.mxu1 %v9993_v8 }
 0x59c   :  { %6159 = vmatpush3.bf16.msra.mxu1 %v9994_v6  ;;  %v10003_v6 = vsub.s32 2, %v9968_v62  ;;  %v10005_v62 = vld [vmem:[#allocation41_spill] sm:$0xff] }
 0x59d   :  { %6161 = vmatprep.subr.bf16.mxu1 %v9995_v55 }
 0x59e   :  { %v8472_v55 = vrot.slane %v8338_v9, %v10003_v6  ;;  %v897_v6 = vpop.xlane.xlu0 %896 }
 0x5a0   :  { %6163 = vmatpush3.bf16.msra.mxu1 %v9996_v32  ;;  %10004 = vst [vmem:[#allocation34_spill] sm:$0xff] %v8472_v55 }
 0x5a1   :  { %6165 = vmatprep.subr.bf16.mxu1 %v9997_v38  ;;  %v892_v38 = vadd.f32 %v8348_v33, %v8472_v55  ;;  %v8490_v55 = vld [vmem:[%s9756_s10] ss:$0 sm:$0xff] }
 0x5a2   :  { %10006 = vst [vmem:[#allocation35_spill] sm:$0xff] %v8490_v55 }
 0x5a4   :  { %6167 = vmatpush3.bf16.msra.mxu1 %v9998_v25 }
 0x5a5   :  { %6169 = vmatprep.subr.bf16.mxu1 %v9999_v4 }
 0x5a8   :  { %6171 = vmatpush3.bf16.msra.mxu1 %v10000_v63 }
 0x5a9   :  { %6173 = vmatprep.subr.bf16.mxu1 %v10001_v30 }
 0x5ac   :  { %6175 = vmatpush3.bf16.msra.mxu1 %v10002_v39 }
 0x5ad   :  { %6176 = vmatprep.subr.bf16.mxu1 %v9975_v2 }
 0x63e   :  { %v1024_v32 = vpop.f32.mrb[6].mxu1 }
 0x63f   :  { %v1028_v25 = vadd.f32 %v1024_v32, %v892_v38  ;;  %v5349_v8 = vpop.f32.mrb[7].mxu1 }
 0x640   :  { %v898_v8 = vmul.f32 0.03125, %v897_v6 }
 0x641   :  { %v1029_v4 = vsel %vm500_vm1, %v1028_v25, 0.0  ;;  %v1033_v63 = vmul.f32 %v1028_v25, %v1028_v25 }
 0x642   :  { %1030 = vadd.xlane.f32.xlu0 %v1029_v4  ;;  %v906_v4 = vsub.f32 %v8361_v24, %v898_v8 }
 0x643   :  { %v1034_v30 = vsel %vm500_vm1, %v1033_v63, 0.0  ;;  %v902_v63 = vpop.xlane.xlu1 %901 }
 0x644   :  { %1035 = vadd.xlane.f32.xlu1 %v1034_v30  ;;  %v904_v30 = vmul.f32 %v898_v8, %v898_v8  ;;  %v903_v38 = vmul.f32 0.03125, %v902_v63 }
 0x662   :  { %v1251_v39 = vpop.f32.mrb[8].mxu1 }
 0x663   :  { %v1256_v5 = vrot.slane %v1251_v39, 6  ;;  %v5384_v31 = vpop.f32.mrb[9].mxu1  ;;  %v905_v39 = vsub.f32 %v903_v38, %v904_v30  ;;  %v1135_v30 = vpop.xlane.xlu1 %1134 }
 0x664   :  { %v1136_v8 = vmul.f32 0.03125, %v1135_v30 }
 0x665   :  { %v8479_v27 = vadd.f32 %v1256_v5, %v10005_v62  ;;  %v907_v31 = vadd.f32 1e-05, %v905_v39 }
 0x667   :  { %v1259_v9 = vsel %vm1127_vm3, %v8479_v27, 0.0  ;;  %v1263_v33 = vmul.f32 %v8479_v27, %v8479_v27  ;;  %7301 = vrsqrt.f32 %v907_v31 }
 0x668   :  { %1260 = vadd.xlane.f32.xlu0 %v1259_v9 }
 0x669   :  { %v1264_v32 = vsel %vm1127_vm3, %v1263_v33, 0.0  ;;  %v8496_v33 = vld [vmem:[%s9757_s11] ss:$0 sm:$0xff] }
 0x66a   :  { %1265 = vadd.xlane.f32.xlu1 %v1264_v32  ;;  %10007 = vst [vmem:[#allocation80_spill] sm:$0xff] %v8496_v33  ;;  %v1130_v32 = vpop.xlane.xlu0 %1129 }
 0x66b   :  { %v1131_v63 = vmul.f32 0.03125, %v1130_v32 }
 0x66d   :  { %v1137_v24 = vmul.f32 %v1131_v63, %v1131_v63 }
 0x671   :  { %v7302_v5 = vpop.eup %7301 }
 0x672   :  { %v909_v62 = vmul.f32 %v7302_v5, %v906_v4  ;;  %v1138_v4 = vsub.f32 %v1136_v8, %v1137_v24 }
 0x674   :  { %v910_v9 = vmul.f32 %v8490_v55, %v909_v62  ;;  %v1140_v36 = vadd.f32 1e-05, %v1138_v4 }
 0x676   :  { %v911_v6 = vadd.f32 %v8496_v33, %v910_v9 }
 0x678   :  { %v4687_v38 = vmul.f32 -1.442695, %v911_v6  ;;  %v8502_v6 = vld [vmem:[%s9756_s10 + $0x2] ss:$0 sm:$0xff] }
 0x67a   :  { %7303 = vpow2.f32 %v4687_v38 }
 0x684   :  { %v7304_v48 = vpop.eup %7303 }
 0x685   :  { %v915_v42 = vadd.f32 1.0, %v7304_v48 }
 0x6cf   :  { %v1031_v39 = vpop.xlane.xlu0 %1030 }
 0x6d0   :  { %v1032_v31 = vmul.f32 0.03125, %v1031_v39 }
 0x6d1   :  { %v1036_v5 = vpop.xlane.xlu1 %1035 }
 0x6d2   :  { %v1038_v10 = vmul.f32 %v1032_v31, %v1032_v31  ;;  %v1037_v62 = vmul.f32 0.03125, %v1036_v5  ;;  %v1040_v9 = vsub.f32 %v1028_v25, %v1032_v31  ;;  %v10008_v25 = vld [vmem:[#allocation77_spill] sm:$0xff] }
 0x6d4   :  { %v1039_v55 = vsub.f32 %v1037_v62, %v1038_v10  ;;  %v8507_v10 = vld [vmem:[%s9757_s11 + $0x2] ss:$0 sm:$0xff] }
 0x6d6   :  { %v1041_v43 = vadd.f32 1e-05, %v1039_v55 }
 0x6d8   :  { %7305 = vrsqrt.f32 %v1041_v43  ;;  %v1139_v43 = vsub.f32 %v8373_v3, %v1131_v63 }
 0x6d9   :  { %7307 = vrsqrt.f32 %v1140_v36 }
 0x6da   :  { %7309 = vrcp.f32 %v915_v42 }
 0x6e2   :  { %v7306_v32 = vpop.eup %7305 }
 0x6e3   :  { %v1043_v30 = vmul.f32 %v7306_v32, %v1040_v9  ;;  %v7308_v38 = vpop.eup %7307 }
 0x6e4   :  { %v1142_v48 = vmul.f32 %v7308_v38, %v1139_v43  ;;  %v7310_v8 = vpop.eup %7309 }
 0x6e5   :  { %v1044_v36 = vmul.f32 %v8502_v6, %v1043_v30  ;;  %v1047_v39 = vsub.f32 1.0, %v7310_v8 }
 0x6e6   :  { %v1143_v24 = vmul.f32 %v10008_v25, %v1142_v48 }
 0x6e7   :  { %v1045_v55 = vadd.f32 %v8507_v10, %v1044_v36  ;;  %v1048_v62 = vmul.f32 0.0, %v1047_v39 }
 0x6e8   :  { %v1144_v42 = vadd.f32 %v8263_v7, %v1143_v24 }
 0x6e9   :  { %7311 = vtanh.f32 %v1045_v55 }
 0x6ea   :  { %v4689_v5 = vmul.f32 -1.442695, %v1144_v42 }
 0x6ec   :  { %7313 = vpow2.f32 %v4689_v5 }
 0x6f3   :  { %v7312_v31 = vpop.eup %7311 }
 0x6f4   :  { %v1049_v9 = vmul.f32 %v7312_v31, %v7310_v8 }
 0x6f5   :  { %v1261_v4 = vpop.xlane.xlu0 %1260 }
 0x6f6   :  { %v1262_v32 = vmul.f32 0.03125, %v1261_v4  ;;  %v8514_v3 = vadd.f32 %v1049_v9, %v1048_v62  ;;  %v7314_v7 = vpop.eup %7313  ;;  %v10010_v4 = vrot.slane %v8279_v26, 6  ;;  %v10013_v26 = vld [vmem:[#allocation42_spill] sm:$0xff] }
 0x6f7   :  { %v1266_v33 = vpop.xlane.xlu1 %1265  ;;  %v1148_v55 = vadd.f32 1.0, %v7314_v7  ;;  %v10020_v7 = vld [vmem:[#allocation53_spill] sm:$0xff] }
 0x6f8   :  { %10009 = vst [vmem:[#allocation77_spill] sm:$0xff] %v8514_v3  ;;  %v1268_v63 = vmul.f32 %v1262_v32, %v1262_v32  ;;  %v1267_v30 = vmul.f32 0.03125, %v1266_v33  ;;  %v1282_v38 = vrot.slane %v8514_v3, 6  ;;  %v1270_v25 = vsub.f32 %v8479_v27, %v1262_v32  ;;  %v10014_v27 = vld [vmem:[#allocation43_spill] sm:$0xff]  ;;  %v10015_v32 = vld [vmem:[#allocation44_spill] sm:$0xff] }
 0x6fa   :  { %v1269_v43 = vsub.f32 %v1267_v30, %v1268_v63  ;;  %v1285_v36 = vrot.slane %v1282_v38, 2  ;;  %v10016_v38 = vld [vmem:[#allocation45_spill] sm:$0xff] }
 0x6fc   :  { %v1271_v48 = vadd.f32 1e-05, %v1269_v43  ;;  %1352 = vmatprep.mubr.f32.mxu0 %v1285_v36  ;;  %1423 = vmatprep.mubr.f32.mxu1 %v1285_v36  ;;  %v10017_v43 = vld [vmem:[#allocation46_spill] sm:$0xff]  ;;  %v10018_v36 = vld [vmem:[#allocation49_spill] sm:$0xff] }
 0x6fe   :  { %7315 = vrsqrt.f32 %v1271_v48  ;;  %v10019_v48 = vld [vmem:[#allocation50_spill] sm:$0xff] }
 0x6ff   :  { %7317 = vrcp.f32 %v1148_v55  ;;  %v10021_v55 = vld [vmem:[#allocation54_spill] sm:$0xff] }
 0x708   :  { %v7316_v24 = vpop.eup %7315 }
 0x709   :  { %v1273_v8 = vmul.f32 %v7316_v24, %v1270_v25  ;;  %v7318_v33 = vpop.eup %7317  ;;  %v10022_v25 = vld [vmem:[#allocation57_spill] sm:$0xff]  ;;  %v10023_v24 = vld [vmem:[#allocation58_spill] sm:$0xff] }
 0x70a   :  { %v1277_v31 = vsub.f32 1.0, %v7318_v33 }
 0x70b   :  { %v1274_v42 = vmul.f32 %v8270_v12, %v1273_v8  ;;  %v10011_v12 = vld [vmem:[#allocation39_spill] sm:$0xff]  ;;  %v10024_v8 = vld [vmem:[#allocation61_spill] sm:$0xff] }
 0x70c   :  { %v1278_v62 = vmul.f32 %v1277_v31, %v10010_v4  ;;  %v10028_v31 = vld [vmem:[#allocation69_spill] sm:$0xff] }
 0x70d   :  { %v1275_v39 = vadd.f32 %v8275_v45, %v1274_v42  ;;  %v10012_v45 = vld [vmem:[#allocation40_spill] sm:$0xff]  ;;  %v10025_v42 = vld [vmem:[#allocation62_spill] sm:$0xff]  ;;  %v10030_v4 = vld [vmem:[#allocation73_spill] sm:$0xff] }
 0x70f   :  { %7319 = vtanh.f32 %v1275_v39  ;;  %v10026_v39 = vld [vmem:[#allocation65_spill] sm:$0xff] }
 0x719   :  { %v7320_v5 = vpop.eup %7319 }
 0x71a   :  { %v1279_v9 = vmul.f32 %v7320_v5, %v7318_v33  ;;  %v10027_v33 = vld [vmem:[#allocation66_spill] sm:$0xff] }
 0x71b   :  { %v10029_v5 = vld [vmem:[#allocation70_spill] sm:$0xff] }
 0x71c   :  { %v8522_v63 = vadd.f32 %v1279_v9, %v1278_v62  ;;  %v10031_v62 = vld [vmem:[#allocation74_spill] sm:$0xff]  ;;  %v10032_v9 = vld [vmem:[#allocation20_spill] sm:$0xff] }
 0x71e   :  { %v1284_v30 = vrot.slane %v8522_v63, 2 }
 0x720   :  { %1353 = vmatmul.mubr.f32.vlgmr.msra.gmra.mrb[10].mxu0 %v1284_v30  ;;  %1424 = vmatmul.mubr.f32.vlgmr.msra.gmra.mrb[10].mxu1 %v1284_v30 }
 0x721   :  { %6203 = vmatpush1.bf16.msra.mxu0 %v7950_v15  ;;  %1634 = vmatprep.mubr.f32.mxu0 %v9966_v58 }
 0x722   :  { %6205 = vmatprep.subr.bf16.mxu0 %v7953_v16  ;;  %6178 = vmatpush3.bf16.msra.mxu1 %v8370_v50 }
 0x723   :  { %6179 = vmatprep.subr.bf16.mxu1 %v9975_v2  ;;  %5417 = vmatprep.mubr.msk.f32.mxu1 %vm7766_vm2, %v9966_v58 }
 0x725   :  { %6207 = vmatpush1.bf16.msra.mxu0 %v7957_v21 }
 0x726   :  { %6209 = vmatprep.subr.bf16.mxu0 %v7961_v22  ;;  %6181 = vmatpush3.bf16.msra.mxu1 %v8379_v49 }
 0x727   :  { %6182 = vmatprep.subr.bf16.mxu1 %v9975_v2 }
 0x729   :  { %6211 = vmatpush1.bf16.msra.mxu0 %v7966_v28 }
 0x72a   :  { %6213 = vmatprep.subr.bf16.mxu0 %v7969_v29  ;;  %6184 = vmatpush3.bf16.msra.mxu1 %v8388_v60 }
 0x72b   :  { %6185 = vmatprep.subr.bf16.mxu1 %v9975_v2 }
 0x72d   :  { %6215 = vmatpush1.bf16.msra.mxu0 %v7975_v34 }
 0x72e   :  { %6217 = vmatprep.subr.bf16.mxu0 %v7978_v35  ;;  %6187 = vmatpush3.bf16.msra.mxu1 %v8396_v54 }
 0x72f   :  { %6188 = vmatprep.subr.bf16.mxu1 %v9975_v2 }
 0x731   :  { %6219 = vmatpush1.bf16.msra.mxu0 %v7981_v40 }
 0x732   :  { %6221 = vmatprep.subr.bf16.mxu0 %v7984_v41  ;;  %6190 = vmatpush3.bf16.msra.mxu1 %v8400_v0 }
 0x733   :  { %6191 = vmatprep.subr.bf16.mxu1 %v9975_v2 }
 0x735   :  { %6223 = vmatpush1.bf16.msra.mxu0 %v7987_v46 }
 0x736   :  { %6225 = vmatprep.subr.bf16.mxu0 %v7990_v47  ;;  %6193 = vmatpush3.bf16.msra.mxu1 %v8404_v51 }
 0x737   :  { %6194 = vmatprep.subr.bf16.mxu1 %v9975_v2 }
 0x739   :  { %6227 = vmatpush1.bf16.msra.mxu0 %v7993_v52 }
 0x73a   :  { %6229 = vmatprep.subr.bf16.mxu0 %v7996_v53  ;;  %6196 = vmatpush3.bf16.msra.mxu1 %v8408_v61 }
 0x73b   :  { %6197 = vmatprep.subr.bf16.mxu1 %v9975_v2 }
 0x73d   :  { %6231 = vmatpush1.bf16.msra.mxu0 %v7999_v56 }
 0x73e   :  { %6199 = vmatpush3.bf16.msra.mxu1 %v8412_v44  ;;  %6257 = vmatprep.subr.bf16.mxu0 %v8097_v1 }
 0x73f   :  { %6232 = vmatprep.subr.bf16.mxu1 %v9975_v2 }
 0x740   :  { %1635 = vmatmul.mubr.f32.vlgmr.msra.gmra.mrb[12].mxu0 %v1284_v30 }
 0x741   :  { %6259 = vmatpush1.bf16.msra.mxu0 %v8099_v11 }
 0x742   :  { %6261 = vmatprep.subr.bf16.mxu0 %v8101_v14 }
 0x745   :  { %6263 = vmatpush1.bf16.msra.mxu0 %v8105_v20 }
 0x746   :  { %6265 = vmatprep.subr.bf16.mxu0 %v8108_v23 }
 0x749   :  { %6267 = vmatpush1.bf16.msra.mxu0 %v8111_v37 }
 0x74a   :  { %6269 = vmatprep.subr.bf16.mxu0 %v8114_v13 }
 0x74d   :  { %6271 = vmatpush1.bf16.msra.mxu0 %v8117_v57 }
 0x74e   :  { %6273 = vmatprep.subr.bf16.mxu0 %v8120_v59 }
 0x751   :  { %6275 = vmatpush1.bf16.msra.mxu0 %v8123_v18 }
 0x752   :  { %6277 = vmatprep.subr.bf16.mxu0 %v8126_v19 }
 0x755   :  { %6279 = vmatpush1.bf16.msra.mxu0 %v10011_v12 }
 0x756   :  { %6281 = vmatprep.subr.bf16.mxu0 %v10012_v45 }
 0x759   :  { %6283 = vmatpush1.bf16.msra.mxu0 %v10013_v26 }
 0x75a   :  { %6285 = vmatprep.subr.bf16.mxu0 %v10014_v27  ;;  %v10037_v27 = vld [vmem:[#allocation79_spill] sm:$0xff] }
 0x75d   :  { %6287 = vmatpush1.bf16.msra.mxu0 %v10015_v32 }
 0x75e   :  { %6289 = vmatprep.subr.bf16.mxu0 %v10016_v38 }
 0x761   :  { %6291 = vmatpush1.bf16.msra.mxu0 %v10017_v43  ;;  %v10035_v43 = vld [vmem:[#allocation25_spill] sm:$0xff] }
 0x762   :  { %6293 = vmatprep.subr.bf16.mxu0 %v10018_v36 }
 0x765   :  { %6295 = vmatpush1.bf16.msra.mxu0 %v10019_v48 }
 0x766   :  { %6297 = vmatprep.subr.bf16.mxu0 %v10020_v7 }
 0x769   :  { %6299 = vmatpush1.bf16.msra.mxu0 %v10021_v55  ;;  %v10033_v55 = vld [vmem:[#allocation21_spill] sm:$0xff] }
 0x76a   :  { %6301 = vmatprep.subr.bf16.mxu0 %v10022_v25 }
 0x76d   :  { %6303 = vmatpush1.bf16.msra.mxu0 %v10023_v24 }
 0x76e   :  { %6305 = vmatprep.subr.bf16.mxu0 %v10024_v8 }
 0x771   :  { %6307 = vmatpush1.bf16.msra.mxu0 %v10025_v42 }
 0x772   :  { %6309 = vmatprep.subr.bf16.mxu0 %v10026_v39 }
 0x775   :  { %6311 = vmatpush1.bf16.msra.mxu0 %v10027_v33 }
 0x776   :  { %6313 = vmatprep.subr.bf16.mxu0 %v10028_v31 }
 0x779   :  { %6315 = vmatpush1.bf16.msra.mxu0 %v10029_v5 }
 0x77a   :  { %6317 = vmatprep.subr.bf16.mxu0 %v10030_v4 }
 0x77d   :  { %6319 = vmatpush1.bf16.msra.mxu0 %v10031_v62 }
 0x77e   :  { %6377 = vmatprep.subr.bf16.mxu0 %v10032_v9  ;;  %v10034_v9 = vld [vmem:[#allocation78_spill] sm:$0xff] }
 0x7f3   :  { %v1354_v30 = vpop.f32.mrb[10].mxu0  ;;  %v4839_v24 = vpop.f32.mrb[10].mxu1 }
 0x7f4   :  { %v1356_v25 = vpop.f32.mrb[11].mxu0  ;;  %v4840_v8 = vpop.f32.mrb[11].mxu1  ;;  %v8598_v48 = vadd.f32 %v1354_v30, %v10034_v9 }
 0x7f5   :  { %v1357_v42 = vadd.f32 %v1356_v25, %v10033_v55  ;;  %v8593_v7 = vadd.f32 %v4840_v8, %v4839_v24  ;;  %v10036_v8 = vld [vmem:[#allocation24_spill] sm:$0xff] }
 0x7f7   :  { %v1452_v33 = vsel %vm500_vm1, %v1357_v42, 0.0  ;;  %v1456_v39 = vmul.f32 %v1357_v42, %v1357_v42 }
 0x7f8   :  { %1453 = vadd.xlane.f32.xlu0 %v1452_v33  ;;  %v1433_v33 = vmul.f32 %v8598_v48, %v8598_v48 }
 0x7f9   :  { %v1457_v5 = vsel %vm500_vm1, %v1456_v39, 0.0 }
 0x7fa   :  { %1458 = vadd.xlane.f32.xlu1 %v1457_v5  ;;  %v1434_v5 = vsel %vm500_vm1, %v1433_v33, 0.0 }
 0x813   :  { %v1636_v4 = vpop.f32.mrb[12].mxu0 }
 0x814   :  { %v1638_v31 = vpop.f32.mrb[13].mxu0  ;;  %v1642_v36 = vrot.slane %v1636_v4, 4 }
 0x815   :  { %v1670_v62 = vrot.slane %v1638_v31, 4  ;;  %v1429_v31 = vsel %vm500_vm1, %v8598_v48, 0.0 }
 0x816   :  { %v8603_v55 = vadd.f32 %v1642_v36, %v10036_v8 }
 0x817   :  { %v1672_v38 = vadd.f32 %v1670_v62, %v10035_v43 }
 0x818   :  { %v1650_v4 = vmul.f32 %v8603_v55, %v8603_v55  ;;  %v1646_v36 = vsel %vm1645_vm4, %v8603_v55, 0.0 }
 0x819   :  { %v1673_v25 = vsel %vm1645_vm4, %v1672_v38, 0.0  ;;  %v1677_v24 = vmul.f32 %v1672_v38, %v1672_v38 }
 0x81a   :  { %1674 = vadd.xlane.f32.xlu0 %v1673_v25  ;;  %v1651_v62 = vsel %vm1645_vm4, %v1650_v4, 0.0 }
 0x81b   :  { %v1678_v39 = vsel %vm1645_vm4, %v1677_v24, 0.0 }
 0x81c   :  { %1679 = vadd.xlane.f32.xlu1 %v1678_v39 }
 0x81e   :  { %1430 = vadd.xlane.f32.xlu0 %v1429_v31 }
 0x820   :  { %1435 = vadd.xlane.f32.xlu1 %v1434_v5 }
 0x822   :  { %1647 = vadd.xlane.f32.xlu0 %v1646_v36 }
 0x824   :  { %1652 = vadd.xlane.f32.xlu1 %v1651_v62 }
 0x885   :  { %v1454_v30 = vpop.xlane.xlu0 %1453 }
 0x886   :  { %v1455_v25 = vmul.f32 0.03125, %v1454_v30 }
 0x887   :  { %v1459_v24 = vpop.xlane.xlu1 %1458 }
 0x888   :  { %v1461_v39 = vmul.f32 %v1455_v25, %v1455_v25  ;;  %v1460_v8 = vmul.f32 0.03125, %v1459_v24  ;;  %v1463_v33 = vsub.f32 %v1357_v42, %v1455_v25  ;;  %v10041_v25 = vld [vmem:[#allocation28_spill] sm:$0xff] }
 0x88a   :  { %v1462_v43 = vsub.f32 %v1460_v8, %v1461_v39  ;;  %v10042_v39 = vld [vmem:[#allocation29_spill] sm:$0xff] }
 0x88c   :  { %v1464_v31 = vadd.f32 1e-05, %v1462_v43 }
 0x88e   :  { %7321 = vrsqrt.f32 %v1464_v31 }
 0x898   :  { %v7322_v9 = vpop.eup %7321 }
 0x899   :  { %v1466_v32 = vmul.f32 %v7322_v9, %v1463_v33  ;;  %v10043_v33 = vld [vmem:[#allocation30_spill] sm:$0xff] }
 0x89b   :  { %v1467_v5 = vmul.f32 %v10037_v27, %v1466_v32 }
 0x89d   :  { %v1468_v26 = vadd.f32 %v8425_v17, %v1467_v5  ;;  %v8622_v17 = vld [vmem:[%s9751_s5 + $0x1] ss:$0 sm:$0xff] }
 0x89f   :  { %v4692_v45 = vmul.f32 -1.442695, %v1468_v26  ;;  %v10038_v26 = vld [vmem:[#allocation26_spill] sm:$0xff] }
 0x8a1   :  { %7323 = vpow2.f32 %v4692_v45 }
 0x8a7   :  { %v1675_v36 = vpop.xlane.xlu0 %1674 }
 0x8a8   :  { %v1676_v4 = vmul.f32 0.03125, %v1675_v36  ;;  %v10044_v36 = vld [vmem:[#allocation31_spill] sm:$0xff] }
 0x8a9   :  { %v1680_v62 = vpop.xlane.xlu1 %1679 }
 0x8aa   :  { %v1682_v12 = vmul.f32 %v1676_v4, %v1676_v4  ;;  %v1681_v30 = vmul.f32 0.03125, %v1680_v62  ;;  %v1684_v42 = vsub.f32 %v1672_v38, %v1676_v4  ;;  %v10040_v38 = vld [vmem:[#allocation27_spill] sm:$0xff]  ;;  %v10045_v4 = vld [vmem:[#allocation32_spill] sm:$0xff]  ;;  %v10046_v62 = vld [vmem:[#allocation33_spill] sm:$0xff] }
 0x8ab   :  { %v7324_v19 = vpop.eup %7323 }
 0x8ac   :  { %v1683_v18 = vsub.f32 %v1681_v30, %v1682_v12  ;;  %v1472_v24 = vadd.f32 1.0, %v7324_v19  ;;  %v9886_v30 = vrot.slane %v8522_v63, 6 }
 0x8ae   :  { %v1685_v8 = vadd.f32 1e-05, %v1683_v18  ;;  %7325 = vrcp.f32 %v1472_v24  ;;  %v8632_v18 = vld [vmem:[%s9752_s6 + $0x1] ss:$0 sm:$0xff] }
 0x8af   :  { %10039 = vst [vmem:[#allocation79_spill] sm:$0xff] %v8632_v18 }
 0x8b0   :  { %7327 = vrsqrt.f32 %v1685_v8  ;;  %v10047_v8 = vld [vmem:[#allocation47_spill] sm:$0xff] }
 0x8b8   :  { %v7326_v43 = vpop.eup %7325 }
 0x8b9   :  { %v1475_v27 = vmul.f32 %v7326_v43, %v8514_v3 }
 0x8ba   :  { %v7328_v9 = vpop.eup %7327 }
 0x8bb   :  { %v1687_v32 = vmul.f32 %v7328_v9, %v1684_v42  ;;  %5418 = vmatmul.mubr.f32.vlgmr.msra.gmra.mrb[12].mxu1 %v1475_v27  ;;  %v10048_v9 = vld [vmem:[#allocation48_spill] sm:$0xff]  ;;  %v10049_v27 = vld [vmem:[#allocation51_spill] sm:$0xff] }
 0x8bc   :  { %6234 = vmatpush3.bf16.msra.mxu1 %v10038_v26  ;;  %5452 = vmatprep.mubr.msk.f32.mxu1 %vm7766_vm2, %v9966_v58 }
 0x8bd   :  { %v1688_v45 = vmul.f32 %v8622_v17, %v1687_v32  ;;  %6235 = vmatprep.subr.bf16.mxu1 %v9975_v2  ;;  %v10050_v32 = vld [vmem:[#allocation52_spill] sm:$0xff] }
 0x8bf   :  { %v1689_v19 = vadd.f32 %v8632_v18, %v1688_v45  ;;  %v10051_v45 = vld [vmem:[#allocation55_spill] sm:$0xff] }
 0x8c0   :  { %6237 = vmatpush3.bf16.msra.mxu1 %v10040_v38 }
 0x8c1   :  { %v4694_v12 = vmul.f32 -1.442695, %v1689_v19  ;;  %6238 = vmatprep.subr.bf16.mxu1 %v9975_v2  ;;  %v10052_v19 = vld [vmem:[#allocation56_spill] sm:$0xff] }
 0x8c3   :  { %7329 = vpow2.f32 %v4694_v12  ;;  %v10053_v12 = vld [vmem:[#allocation59_spill] sm:$0xff] }
 0x8c4   :  { %6240 = vmatpush3.bf16.msra.mxu1 %v10041_v25 }
 0x8c5   :  { %6241 = vmatprep.subr.bf16.mxu1 %v9975_v2 }
 0x8c8   :  { %6243 = vmatpush3.bf16.msra.mxu1 %v10042_v39  ;;  %v10066_v39 = vld [vmem:[#allocation80_spill] sm:$0xff] }
 0x8c9   :  { %6244 = vmatprep.subr.bf16.mxu1 %v9975_v2 }
 0x8cc   :  { %6246 = vmatpush3.bf16.msra.mxu1 %v10043_v33 }
 0x8cd   :  { %v7330_v31 = vpop.eup %7329  ;;  %6247 = vmatprep.subr.bf16.mxu1 %v9975_v2 }
 0x8ce   :  { %v1693_v5 = vadd.f32 1.0, %v7330_v31  ;;  %v10054_v31 = vld [vmem:[#allocation60_spill] sm:$0xff] }
 0x8d0   :  { %7331 = vrcp.f32 %v1693_v5  ;;  %6249 = vmatpush3.bf16.msra.mxu1 %v10044_v36  ;;  %v10055_v5 = vld [vmem:[#allocation63_spill] sm:$0xff] }
 0x8d1   :  { %6250 = vmatprep.subr.bf16.mxu1 %v9975_v2 }
 0x8d4   :  { %6252 = vmatpush3.bf16.msra.mxu1 %v10045_v4  ;;  %v10065_v4 = vld [vmem:[#allocation35_spill] sm:$0xff] }
 0x8d5   :  { %6253 = vmatprep.subr.bf16.mxu1 %v9975_v2 }
 0x8d8   :  { %6255 = vmatpush3.bf16.msra.mxu1 %v10046_v62 }
 0x8d9   :  { %6321 = vmatprep.subr.bf16.mxu1 %v10047_v8  ;;  %v10056_v8 = vld [vmem:[#allocation64_spill] sm:$0xff] }
 0x8da   :  { %v7332_v24 = vpop.eup %7331 }
 0x8db   :  { %v1698_v43 = vmul.f32 %v7332_v24, %v9886_v30  ;;  %v10057_v24 = vld [vmem:[#allocation67_spill] sm:$0xff]  ;;  %v10060_v30 = vld [vmem:[#allocation72_spill] sm:$0xff] }
 0x8dd   :  { %v1700_v42 = vrot.slane %v1698_v43, 4  ;;  %v10058_v43 = vld [vmem:[#allocation68_spill] sm:$0xff] }
 0x8df   :  { %5453 = vmatmul.mubr.f32.vlgmr.msra.gmra.mrb[14].mxu1 %v1700_v42  ;;  %v10059_v42 = vld [vmem:[#allocation71_spill] sm:$0xff] }
 0x8e0   :  { %6323 = vmatpush3.bf16.msra.mxu1 %v10048_v9  ;;  %v10064_v9 = vld [vmem:[#allocation41_spill] sm:$0xff] }
 0x8e1   :  { %6325 = vmatprep.subr.bf16.mxu1 %v10049_v27 }
 0x8e4   :  { %6327 = vmatpush3.bf16.msra.mxu1 %v10050_v32  ;;  %v10061_v32 = vld [vmem:[#allocation75_spill] sm:$0xff] }
 0x8e5   :  { %6329 = vmatprep.subr.bf16.mxu1 %v10051_v45  ;;  %v10062_v45 = vld [vmem:[#allocation76_spill] sm:$0xff] }
 0x8e8   :  { %6331 = vmatpush3.bf16.msra.mxu1 %v10052_v19 }
 0x8e9   :  { %6333 = vmatprep.subr.bf16.mxu1 %v10053_v12  ;;  %v10063_v12 = vld [vmem:[#allocation34_spill] sm:$0xff] }
 0x8ec   :  { %6335 = vmatpush3.bf16.msra.mxu1 %v10054_v31  ;;  %v1426_v31 = vadd.f32 %v8593_v7, %v10063_v12 }
 0x8ed   :  { %6337 = vmatprep.subr.bf16.mxu1 %v10055_v5 }
 0x8f0   :  { %6339 = vmatpush3.bf16.msra.mxu1 %v10056_v8 }
 0x8f1   :  { %6341 = vmatprep.subr.bf16.mxu1 %v10057_v24 }
 0x8f4   :  { %6343 = vmatpush3.bf16.msra.mxu1 %v10058_v43 }
 0x8f5   :  { %6345 = vmatprep.subr.bf16.mxu1 %v10059_v42 }
 0x8f8   :  { %6347 = vmatpush3.bf16.msra.mxu1 %v10060_v30 }
 0x8f9   :  { %6349 = vmatprep.subr.bf16.mxu1 %v10061_v32 }
 0x8fc   :  { %6351 = vmatpush3.bf16.msra.mxu1 %v10062_v45 }
 0x8fd   :  { %6352 = vmatprep.subr.bf16.mxu1 %v9975_v2 }
 0x98e   :  { %v1542_v5 = vpop.f32.mrb[12].mxu1 }
 0x98f   :  { %v1546_v19 = vadd.f32 %v1542_v5, %v1426_v31  ;;  %v5419_v8 = vpop.f32.mrb[13].mxu1  ;;  %v1431_v31 = vpop.xlane.xlu0 %1430 }
 0x990   :  { %v1432_v5 = vmul.f32 0.03125, %v1431_v31 }
 0x991   :  { %v1547_v24 = vsel %vm500_vm1, %v1546_v19, 0.0  ;;  %v1551_v27 = vmul.f32 %v1546_v19, %v1546_v19 }
 0x992   :  { %1548 = vadd.xlane.f32.xlu0 %v1547_v24  ;;  %v1438_v24 = vmul.f32 %v1432_v5, %v1432_v5 }
 0x993   :  { %v1552_v42 = vsel %vm500_vm1, %v1551_v27, 0.0  ;;  %v1436_v27 = vpop.xlane.xlu1 %1435  ;;  %v1648_v33 = vpop.xlane.xlu0 %1647 }
 0x994   :  { %1553 = vadd.xlane.f32.xlu1 %v1552_v42  ;;  %v1437_v42 = vmul.f32 0.03125, %v1436_v27  ;;  %v1649_v25 = vmul.f32 0.03125, %v1648_v33 }
 0x996   :  { %v1655_v38 = vmul.f32 %v1649_v25, %v1649_v25 }
 0x9b2   :  { %v1768_v30 = vpop.f32.mrb[14].mxu1 }
 0x9b3   :  { %v1773_v43 = vrot.slane %v1768_v30, 4  ;;  %v5454_v32 = vpop.f32.mrb[15].mxu1  ;;  %v1439_v30 = vsub.f32 %v1437_v42, %v1438_v24 }
 0x9b5   :  { %v8673_v45 = vadd.f32 %v1773_v43, %v10064_v9  ;;  %v1441_v32 = vadd.f32 1e-05, %v1439_v30  ;;  %v1440_v9 = vsub.f32 %v8598_v48, %v1432_v5 }
 0x9b7   :  { %v1776_v62 = vsel %vm1645_vm4, %v8673_v45, 0.0  ;;  %v1780_v7 = vmul.f32 %v8673_v45, %v8673_v45  ;;  %7333 = vrsqrt.f32 %v1441_v32 }
 0x9b8   :  { %1777 = vadd.xlane.f32.xlu0 %v1776_v62 }
 0x9b9   :  { %v1781_v8 = vsel %vm1645_vm4, %v1780_v7, 0.0  ;;  %v1653_v7 = vpop.xlane.xlu1 %1652 }
 0x9ba   :  { %1782 = vadd.xlane.f32.xlu1 %v1781_v8  ;;  %v1654_v31 = vmul.f32 0.03125, %v1653_v7  ;;  %v8689_v7 = vld [vmem:[%s9751_s5] ss:$0 sm:$0xff] }
 0x9bc   :  { %v1656_v24 = vsub.f32 %v1654_v31, %v1655_v38 }
 0x9be   :  { %v1658_v48 = vadd.f32 1e-05, %v1656_v24 }
 0x9c1   :  { %v7334_v43 = vpop.eup %7333 }
 0x9c2   :  { %v1443_v12 = vmul.f32 %v7334_v43, %v1440_v9  ;;  %v1657_v43 = vsub.f32 %v8603_v55, %v1649_v25 }
 0x9c4   :  { %v1444_v36 = vmul.f32 %v10065_v4, %v1443_v12 }
 0x9c6   :  { %v1445_v62 = vadd.f32 %v10066_v39, %v1444_v36 }
 0x9c8   :  { %v4691_v8 = vmul.f32 -1.442695, %v1445_v62 }
 0x9ca   :  { %7335 = vpow2.f32 %v4691_v8 }
 0x9d4   :  { %v7336_v4 = vpop.eup %7335 }
 0x9d5   :  { %v1449_v12 = vadd.f32 1.0, %v7336_v4 }
 0xa1f   :  { %v1549_v18 = vpop.xlane.xlu0 %1548 }
 0xa20   :  { %v1550_v26 = vmul.f32 0.03125, %v1549_v18 }
 0xa21   :  { %v1554_v27 = vpop.xlane.xlu1 %1553 }
 0xa22   :  { %v1556_v42 = vmul.f32 %v1550_v26, %v1550_v26  ;;  %v1555_v30 = vmul.f32 0.03125, %v1554_v27  ;;  %v1558_v39 = vsub.f32 %v1546_v19, %v1550_v26  ;;  %v8695_v19 = vld [vmem:[%s9752_s6] ss:$0 sm:$0xff] }
 0xa24   :  { %v1557_v32 = vsub.f32 %v1555_v30, %v1556_v42 }
 0xa26   :  { %v1559_v9 = vadd.f32 1e-05, %v1557_v32 }
 0xa28   :  { %7337 = vrsqrt.f32 %v1559_v9 }
 0xa29   :  { %7339 = vrsqrt.f32 %v1658_v48 }
 0xa2a   :  { %7341 = vrcp.f32 %v1449_v12 }
 0xa32   :  { %v7338_v33 = vpop.eup %7337 }
 0xa33   :  { %v1561_v36 = vmul.f32 %v7338_v33, %v1558_v39  ;;  %v7340_v5 = vpop.eup %7339 }
 0xa34   :  { %v1660_v62 = vmul.f32 %v7340_v5, %v1657_v43  ;;  %v7342_v26 = vpop.eup %7341 }
 0xa35   :  { %v1562_v18 = vmul.f32 %v8502_v6, %v1561_v36  ;;  %v1565_v6 = vsub.f32 1.0, %v7342_v26 }
 0xa36   :  { %v1661_v8 = vmul.f32 %v8689_v7, %v1660_v62 }
 0xa37   :  { %v1563_v38 = vadd.f32 %v8507_v10, %v1562_v18  ;;  %v1566_v27 = vmul.f32 %v1565_v6, %v8514_v3  ;;  %v10091_v3 = vld [vmem:[#allocation74_spill] sm:$0xff] }
 0xa38   :  { %v1662_v55 = vadd.f32 %v8695_v19, %v1661_v8 }
 0xa39   :  { %7343 = vtanh.f32 %v1563_v38  ;;  %v8706_v38 = vld [vmem:[%s9751_s5 + $0x2] ss:$0 sm:$0xff] }
 0xa3a   :  { %v4693_v31 = vmul.f32 -1.442695, %v1662_v55 }
 0xa3c   :  { %7345 = vpow2.f32 %v4693_v31  ;;  %v10068_v31 = vrot.slane %v8522_v63, 6  ;;  %v10069_v63 = vld [vmem:[#allocation37_spill] sm:$0xff] }
 0xa43   :  { %v7344_v25 = vpop.eup %7343 }
 0xa44   :  { %v1567_v24 = vmul.f32 %v7344_v25, %v7342_v26  ;;  %v8712_v26 = vld [vmem:[%s9752_s6 + $0x2] ss:$0 sm:$0xff] }
 0xa45   :  { %v1778_v10 = vpop.xlane.xlu0 %1777 }
 0xa46   :  { %v1779_v42 = vmul.f32 0.03125, %v1778_v10  ;;  %v8699_v32 = vadd.f32 %v1567_v24, %v1566_v27  ;;  %v7346_v36 = vpop.eup %7345 }
 0xa47   :  { %v1783_v30 = vpop.xlane.xlu1 %1782  ;;  %v1666_v5 = vadd.f32 1.0, %v7346_v36  ;;  %v10077_v36 = vld [vmem:[#allocation46_spill] sm:$0xff] }
 0xa48   :  { %10067 = vst [vmem:[#allocation35_spill] sm:$0xff] %v8699_v32  ;;  %v1785_v48 = vmul.f32 %v1779_v42, %v1779_v42  ;;  %v1784_v9 = vmul.f32 0.03125, %v1783_v30  ;;  %v1799_v4 = vrot.slane %v8699_v32, 4  ;;  %v1787_v43 = vsub.f32 %v8673_v45, %v1779_v42  ;;  %v10070_v30 = vld [vmem:[#allocation38_spill] sm:$0xff] }
 0xa4a   :  { %v1786_v12 = vsub.f32 %v1784_v9, %v1785_v48  ;;  %v1802_v39 = vrot.slane %v1799_v4, 4  ;;  %v10071_v48 = vld [vmem:[#allocation39_spill] sm:$0xff]  ;;  %v10072_v9 = vld [vmem:[#allocation40_spill] sm:$0xff]  ;;  %v10073_v4 = vld [vmem:[#allocation42_spill] sm:$0xff] }
 0xa4c   :  { %v1788_v33 = vadd.f32 1e-05, %v1786_v12  ;;  %1869 = vmatprep.mubr.f32.mxu0 %v1802_v39  ;;  %1940 = vmatprep.mubr.f32.mxu1 %v1802_v39  ;;  %v10074_v12 = vld [vmem:[#allocation43_spill] sm:$0xff]  ;;  %v10075_v39 = vld [vmem:[#allocation44_spill] sm:$0xff] }
 0xa4e   :  { %7347 = vrsqrt.f32 %v1788_v33  ;;  %v10076_v33 = vld [vmem:[#allocation45_spill] sm:$0xff] }
 0xa4f   :  { %7349 = vrcp.f32 %v1666_v5  ;;  %v10078_v5 = vld [vmem:[#allocation49_spill] sm:$0xff] }
 0xa58   :  { %v7348_v18 = vpop.eup %7347 }
 0xa59   :  { %v1790_v62 = vmul.f32 %v7348_v18, %v1787_v43  ;;  %v7350_v6 = vpop.eup %7349  ;;  %v10079_v43 = vld [vmem:[#allocation50_spill] sm:$0xff]  ;;  %v10080_v18 = vld [vmem:[#allocation53_spill] sm:$0xff] }
 0xa5a   :  { %v1794_v45 = vsub.f32 1.0, %v7350_v6 }
 0xa5b   :  { %v1791_v8 = vmul.f32 %v8706_v38, %v1790_v62  ;;  %v10081_v62 = vld [vmem:[#allocation54_spill] sm:$0xff] }
 0xa5c   :  { %v1795_v10 = vmul.f32 %v1794_v45, %v10068_v31  ;;  %v10085_v45 = vld [vmem:[#allocation62_spill] sm:$0xff] }
 0xa5d   :  { %v1792_v55 = vadd.f32 %v8712_v26, %v1791_v8  ;;  %v10082_v8 = vld [vmem:[#allocation57_spill] sm:$0xff]  ;;  %v10087_v31 = vld [vmem:[#allocation66_spill] sm:$0xff] }
 0xa5f   :  { %7351 = vtanh.f32 %v1792_v55  ;;  %v10083_v55 = vld [vmem:[#allocation58_spill] sm:$0xff] }
 0xa69   :  { %v7352_v25 = vpop.eup %7351 }
 0xa6a   :  { %v1796_v27 = vmul.f32 %v7352_v25, %v7350_v6  ;;  %v10084_v6 = vld [vmem:[#allocation61_spill] sm:$0xff] }
 0xa6b   :  { %v10086_v25 = vld [vmem:[#allocation65_spill] sm:$0xff] }
 0xa6c   :  { %v8717_v24 = vadd.f32 %v1796_v27, %v1795_v10  ;;  %v10088_v10 = vld [vmem:[#allocation69_spill] sm:$0xff]  ;;  %v10089_v27 = vld [vmem:[#allocation70_spill] sm:$0xff] }
 0xa6e   :  { %v1801_v42 = vrot.slane %v8717_v24, 4 }
 0xa70   :  { %1870 = vmatmul.mubr.f32.vlgmr.msra.gmra.mrb[14].mxu0 %v1801_v42  ;;  %1941 = vmatmul.mubr.f32.vlgmr.msra.gmra.mrb[16].mxu1 %v1801_v42 }
 0xa71   :  { %6379 = vmatpush1.bf16.msra.mxu0 %v7950_v15  ;;  %2151 = vmatprep.mubr.f32.mxu0 %v9966_v58 }
 0xa72   :  { %6381 = vmatprep.subr.bf16.mxu0 %v7953_v16  ;;  %6354 = vmatpush3.bf16.msra.mxu1 %v8370_v50 }
 0xa73   :  { %6355 = vmatprep.subr.bf16.mxu1 %v9975_v2  ;;  %5487 = vmatprep.mubr.msk.f32.mxu1 %vm7766_vm2, %v9966_v58 }
 0xa75   :  { %6383 = vmatpush1.bf16.msra.mxu0 %v7957_v21 }
 0xa76   :  { %6385 = vmatprep.subr.bf16.mxu0 %v7961_v22  ;;  %6357 = vmatpush3.bf16.msra.mxu1 %v8379_v49 }
 0xa77   :  { %6358 = vmatprep.subr.bf16.mxu1 %v9975_v2 }
 0xa79   :  { %6387 = vmatpush1.bf16.msra.mxu0 %v7966_v28 }
 0xa7a   :  { %6389 = vmatprep.subr.bf16.mxu0 %v7969_v29  ;;  %6360 = vmatpush3.bf16.msra.mxu1 %v8388_v60 }
 0xa7b   :  { %6361 = vmatprep.subr.bf16.mxu1 %v9975_v2 }
 0xa7d   :  { %6391 = vmatpush1.bf16.msra.mxu0 %v7975_v34 }
 0xa7e   :  { %6393 = vmatprep.subr.bf16.mxu0 %v7978_v35  ;;  %6363 = vmatpush3.bf16.msra.mxu1 %v8396_v54 }
 0xa7f   :  { %6364 = vmatprep.subr.bf16.mxu1 %v9975_v2 }
 0xa81   :  { %6395 = vmatpush1.bf16.msra.mxu0 %v7981_v40 }
 0xa82   :  { %6397 = vmatprep.subr.bf16.mxu0 %v7984_v41  ;;  %6366 = vmatpush3.bf16.msra.mxu1 %v8400_v0 }
 0xa83   :  { %6367 = vmatprep.subr.bf16.mxu1 %v9975_v2 }
 0xa85   :  { %6399 = vmatpush1.bf16.msra.mxu0 %v7987_v46 }
 0xa86   :  { %6401 = vmatprep.subr.bf16.mxu0 %v7990_v47  ;;  %6369 = vmatpush3.bf16.msra.mxu1 %v8404_v51 }
 0xa87   :  { %6370 = vmatprep.subr.bf16.mxu1 %v9975_v2 }
 0xa89   :  { %6403 = vmatpush1.bf16.msra.mxu0 %v7993_v52 }
 0xa8a   :  { %6405 = vmatprep.subr.bf16.mxu0 %v7996_v53  ;;  %6372 = vmatpush3.bf16.msra.mxu1 %v8408_v61 }
 0xa8b   :  { %6373 = vmatprep.subr.bf16.mxu1 %v9975_v2 }
 0xa8d   :  { %6407 = vmatpush1.bf16.msra.mxu0 %v7999_v56 }
 0xa8e   :  { %6375 = vmatpush3.bf16.msra.mxu1 %v8412_v44  ;;  %6433 = vmatprep.subr.bf16.mxu0 %v8097_v1 }
 0xa8f   :  { %6408 = vmatprep.subr.bf16.mxu1 %v9975_v2 }
 0xa90   :  { %2152 = vmatmul.mubr.f32.vlgmr.msra.gmra.mrb[16].mxu0 %v1801_v42  ;;  %v10090_v42 = vld [vmem:[#allocation73_spill] sm:$0xff] }
 0xa91   :  { %6435 = vmatpush1.bf16.msra.mxu0 %v8099_v11 }
 0xa92   :  { %6437 = vmatprep.subr.bf16.mxu0 %v8101_v14 }
 0xa95   :  { %6439 = vmatpush1.bf16.msra.mxu0 %v8105_v20 }
 0xa96   :  { %6441 = vmatprep.subr.bf16.mxu0 %v8108_v23 }
 0xa99   :  { %6443 = vmatpush1.bf16.msra.mxu0 %v8111_v37 }
 0xa9a   :  { %6445 = vmatprep.subr.bf16.mxu0 %v8114_v13 }
 0xa9d   :  { %6447 = vmatpush1.bf16.msra.mxu0 %v8117_v57 }
 0xa9e   :  { %6449 = vmatprep.subr.bf16.mxu0 %v8120_v59 }
 0xaa1   :  { %6451 = vmatpush1.bf16.msra.mxu0 %v10069_v63 }
 0xaa2   :  { %6453 = vmatprep.subr.bf16.mxu0 %v10070_v30 }
 0xaa5   :  { %6455 = vmatpush1.bf16.msra.mxu0 %v10071_v48 }
 0xaa6   :  { %6457 = vmatprep.subr.bf16.mxu0 %v10072_v9 }
 0xaa9   :  { %6459 = vmatpush1.bf16.msra.mxu0 %v10073_v4 }
 0xaaa   :  { %6461 = vmatprep.subr.bf16.mxu0 %v10074_v12 }
 0xaad   :  { %6463 = vmatpush1.bf16.msra.mxu0 %v10075_v39  ;;  %v10095_v39 = vld [vmem:[#allocation25_spill] sm:$0xff] }
 0xaae   :  { %6465 = vmatprep.subr.bf16.mxu0 %v10076_v33 }
 0xab1   :  { %6467 = vmatpush1.bf16.msra.mxu0 %v10077_v36 }
 0xab2   :  { %6469 = vmatprep.subr.bf16.mxu0 %v10078_v5 }
 0xab5   :  { %6471 = vmatpush1.bf16.msra.mxu0 %v10079_v43  ;;  %v10093_v43 = vld [vmem:[#allocation21_spill] sm:$0xff] }
 0xab6   :  { %6473 = vmatprep.subr.bf16.mxu0 %v10080_v18 }
 0xab9   :  { %6475 = vmatpush1.bf16.msra.mxu0 %v10081_v62  ;;  %v10092_v62 = vld [vmem:[#allocation20_spill] sm:$0xff] }
 0xaba   :  { %6477 = vmatprep.subr.bf16.mxu0 %v10082_v8 }
 0xabd   :  { %6479 = vmatpush1.bf16.msra.mxu0 %v10083_v55 }
 0xabe   :  { %6481 = vmatprep.subr.bf16.mxu0 %v10084_v6 }
 0xac1   :  { %6483 = vmatpush1.bf16.msra.mxu0 %v10085_v45 }
 0xac2   :  { %6485 = vmatprep.subr.bf16.mxu0 %v10086_v25 }
 0xac5   :  { %6487 = vmatpush1.bf16.msra.mxu0 %v10087_v31 }
 0xac6   :  { %6489 = vmatprep.subr.bf16.mxu0 %v10088_v10 }
 0xac9   :  { %6491 = vmatpush1.bf16.msra.mxu0 %v10089_v27 }
 0xaca   :  { %6493 = vmatprep.subr.bf16.mxu0 %v10090_v42 }
 0xacd   :  { %6495 = vmatpush1.bf16.msra.mxu0 %v10091_v3 }
 0xace   :  { %6553 = vmatprep.subr.bf16.mxu0 %v10092_v62  ;;  %v10094_v62 = vld [vmem:[#allocation78_spill] sm:$0xff] }
 0xb43   :  { %v1871_v8 = vpop.f32.mrb[14].mxu0  ;;  %v4908_v55 = vpop.f32.mrb[16].mxu1 }
 0xb44   :  { %v1873_v18 = vpop.f32.mrb[15].mxu0  ;;  %v4909_v6 = vpop.f32.mrb[17].mxu1  ;;  %v8793_v36 = vadd.f32 %v1871_v8, %v10094_v62 }
 0xb45   :  { %v1874_v45 = vadd.f32 %v1873_v18, %v10093_v43  ;;  %v8788_v5 = vadd.f32 %v4909_v6, %v4908_v55  ;;  %v10096_v6 = vld [vmem:[#allocation24_spill] sm:$0xff] }
 0xb46   :  { %v1946_v8 = vsel %vm500_vm1, %v8793_v36, 0.0 }
 0xb47   :  { %v1969_v31 = vsel %vm500_vm1, %v1874_v45, 0.0  ;;  %v1973_v25 = vmul.f32 %v1874_v45, %v1874_v45 }
 0xb48   :  { %1970 = vadd.xlane.f32.xlu0 %v1969_v31  ;;  %v1950_v31 = vmul.f32 %v8793_v36, %v8793_v36 }
 0xb49   :  { %v1974_v27 = vsel %vm500_vm1, %v1973_v25, 0.0 }
 0xb4a   :  { %1975 = vadd.xlane.f32.xlu1 %v1974_v27 }
 0xb63   :  { %v2153_v42 = vpop.f32.mrb[16].mxu0 }
 0xb64   :  { %v2155_v10 = vpop.f32.mrb[17].mxu0  ;;  %v2159_v33 = vrot.slane %v2153_v42, 2 }
 0xb65   :  { %v2187_v3 = vrot.slane %v2155_v10, 2  ;;  %v1951_v10 = vsel %vm500_vm1, %v1950_v31, 0.0 }
 0xb66   :  { %v8798_v43 = vadd.f32 %v2159_v33, %v10096_v6 }
 0xb67   :  { %v2189_v12 = vadd.f32 %v2187_v3, %v10095_v39 }
 0xb68   :  { %v2167_v3 = vmul.f32 %v8798_v43, %v8798_v43  ;;  %v2163_v39 = vsel %vm2162_vm5, %v8798_v43, 0.0 }
 0xb69   :  { %v2190_v18 = vsel %vm2162_vm5, %v2189_v12, 0.0  ;;  %v2194_v55 = vmul.f32 %v2189_v12, %v2189_v12 }
 0xb6a   :  { %2191 = vadd.xlane.f32.xlu0 %v2190_v18  ;;  %v2168_v33 = vsel %vm2162_vm5, %v2167_v3, 0.0  ;;  %v8820_v3 = vld [vmem:[%s9757_s11 + $0x1] ss:$0 sm:$0xff] }
 0xb6b   :  { %v2195_v25 = vsel %vm2162_vm5, %v2194_v55, 0.0  ;;  %10098 = vst [vmem:[#allocation25_spill] sm:$0xff] %v8820_v3 }
 0xb6c   :  { %2196 = vadd.xlane.f32.xlu1 %v2195_v25 }
 0xb6e   :  { %1947 = vadd.xlane.f32.xlu0 %v1946_v8 }
 0xb70   :  { %1952 = vadd.xlane.f32.xlu1 %v1951_v10  ;;  %v8814_v10 = vld [vmem:[%s9756_s10 + $0x1] ss:$0 sm:$0xff] }
 0xb71   :  { %10097 = vst [vmem:[#allocation80_spill] sm:$0xff] %v8814_v10 }
 0xb72   :  { %2164 = vadd.xlane.f32.xlu0 %v2163_v39 }
 0xb74   :  { %2169 = vadd.xlane.f32.xlu1 %v2168_v33 }
 0xbd5   :  { %v1971_v27 = vpop.xlane.xlu0 %1970 }
 0xbd6   :  { %v1972_v42 = vmul.f32 0.03125, %v1971_v27 }
 0xbd7   :  { %v1976_v18 = vpop.xlane.xlu1 %1975 }
 0xbd8   :  { %v1978_v55 = vmul.f32 %v1972_v42, %v1972_v42  ;;  %v1977_v6 = vmul.f32 0.03125, %v1976_v18  ;;  %v1980_v31 = vsub.f32 %v1874_v45, %v1972_v42 }
 0xbda   :  { %v1979_v25 = vsub.f32 %v1977_v6, %v1978_v55 }
 0xbdc   :  { %v1981_v8 = vadd.f32 1e-05, %v1979_v25 }
 0xbde   :  { %7353 = vrsqrt.f32 %v1981_v8 }
 0xbe8   :  { %v7354_v62 = vpop.eup %7353 }
 0xbe9   :  { %v1983_v4 = vmul.f32 %v7354_v62, %v1980_v31 }
 0xbeb   :  { %v1984_v39 = vmul.f32 %v8814_v10, %v1983_v4 }
 0xbed   :  { %v1985_v33 = vadd.f32 %v8820_v3, %v1984_v39 }
 0xbef   :  { %v4696_v27 = vmul.f32 -1.442695, %v1985_v33  ;;  %v10099_v33 = vld [vmem:[#allocation26_spill] sm:$0xff] }
 0xbf1   :  { %7355 = vpow2.f32 %v4696_v27  ;;  %v10100_v27 = vld [vmem:[#allocation79_spill] sm:$0xff] }
 0xbf7   :  { %v2192_v18 = vpop.xlane.xlu0 %2191 }
 0xbf8   :  { %v2193_v45 = vmul.f32 0.03125, %v2192_v18 }
 0xbf9   :  { %v2197_v42 = vpop.xlane.xlu1 %2196 }
 0xbfa   :  { %v2199_v62 = vmul.f32 %v2193_v45, %v2193_v45  ;;  %v2198_v55 = vmul.f32 0.03125, %v2197_v42  ;;  %v2201_v10 = vsub.f32 %v2189_v12, %v2193_v45  ;;  %v10102_v12 = vld [vmem:[#allocation28_spill] sm:$0xff] }
 0xbfb   :  { %v7356_v6 = vpop.eup %7355  ;;  %v10106_v45 = vld [vmem:[#allocation32_spill] sm:$0xff] }
 0xbfc   :  { %v2200_v25 = vsub.f32 %v2198_v55, %v2199_v62  ;;  %v1989_v8 = vadd.f32 1.0, %v7356_v6  ;;  %v10101_v62 = vld [vmem:[#allocation27_spill] sm:$0xff]  ;;  %v10107_v55 = vld [vmem:[#allocation33_spill] sm:$0xff]  ;;  %v9890_v6 = vrot.slane %v8717_v24, 6 }
 0xbfe   :  { %v2202_v31 = vadd.f32 1e-05, %v2200_v25  ;;  %7357 = vrcp.f32 %v1989_v8  ;;  %v10108_v8 = vld [vmem:[#allocation47_spill] sm:$0xff] }
 0xc00   :  { %7359 = vrsqrt.f32 %v2202_v31 }
 0xc08   :  { %v7358_v4 = vpop.eup %7357 }
 0xc09   :  { %v1992_v48 = vmul.f32 %v7358_v4, %v8699_v32 }
 0xc0a   :  { %v7360_v9 = vpop.eup %7359 }
 0xc0b   :  { %v2204_v30 = vmul.f32 %v7360_v9, %v2201_v10  ;;  %5488 = vmatmul.mubr.f32.vlgmr.msra.gmra.mrb[18].mxu1 %v1992_v48  ;;  %v10104_v48 = vld [vmem:[#allocation30_spill] sm:$0xff]  ;;  %v10105_v10 = vld [vmem:[#allocation31_spill] sm:$0xff] }
 0xc0c   :  { %6410 = vmatpush3.bf16.msra.mxu1 %v10099_v33  ;;  %5522 = vmatprep.mubr.msk.f32.mxu1 %vm7766_vm2, %v9966_v58 }
 0xc0d   :  { %v2205_v39 = vmul.f32 %v8622_v17, %v2204_v30  ;;  %6411 = vmatprep.subr.bf16.mxu1 %v9975_v2  ;;  %v10103_v17 = vld [vmem:[#allocation29_spill] sm:$0xff] }
 0xc0f   :  { %v2206_v18 = vadd.f32 %v10100_v27, %v2205_v39  ;;  %v10109_v39 = vld [vmem:[#allocation48_spill] sm:$0xff]  ;;  %v10110_v27 = vld [vmem:[#allocation51_spill] sm:$0xff] }
 0xc10   :  { %6413 = vmatpush3.bf16.msra.mxu1 %v10101_v62 }
 0xc11   :  { %v4698_v42 = vmul.f32 -1.442695, %v2206_v18  ;;  %6414 = vmatprep.subr.bf16.mxu1 %v9975_v2  ;;  %v10111_v18 = vld [vmem:[#allocation52_spill] sm:$0xff] }
 0xc13   :  { %7361 = vpow2.f32 %v4698_v42  ;;  %v10112_v42 = vld [vmem:[#allocation55_spill] sm:$0xff] }
 0xc14   :  { %6416 = vmatpush3.bf16.msra.mxu1 %v10102_v12 }
 0xc15   :  { %6417 = vmatprep.subr.bf16.mxu1 %v9975_v2 }
 0xc18   :  { %6419 = vmatpush3.bf16.msra.mxu1 %v10103_v17 }
 0xc19   :  { %6420 = vmatprep.subr.bf16.mxu1 %v9975_v2 }
 0xc1c   :  { %6422 = vmatpush3.bf16.msra.mxu1 %v10104_v48  ;;  %v8879_v48 = vld [vmem:[%s9756_s10] ss:$0 sm:$0xff] }
 0xc1d   :  { %v7362_v30 = vpop.eup %7361  ;;  %6423 = vmatprep.subr.bf16.mxu1 %v9975_v2  ;;  %10126 = vst [vmem:[#allocation24_spill] sm:$0xff] %v8879_v48 }
 0xc1e   :  { %v2210_v9 = vadd.f32 1.0, %v7362_v30  ;;  %v10113_v30 = vld [vmem:[#allocation56_spill] sm:$0xff] }
 0xc20   :  { %7363 = vrcp.f32 %v2210_v9  ;;  %6425 = vmatpush3.bf16.msra.mxu1 %v10105_v10  ;;  %v10114_v9 = vld [vmem:[#allocation59_spill] sm:$0xff] }
 0xc21   :  { %6426 = vmatprep.subr.bf16.mxu1 %v9975_v2 }
 0xc24   :  { %6428 = vmatpush3.bf16.msra.mxu1 %v10106_v45  ;;  %v10117_v45 = vld [vmem:[#allocation64_spill] sm:$0xff] }
 0xc25   :  { %6429 = vmatprep.subr.bf16.mxu1 %v9975_v2 }
 0xc28   :  { %6431 = vmatpush3.bf16.msra.mxu1 %v10107_v55  ;;  %v10115_v55 = vld [vmem:[#allocation60_spill] sm:$0xff] }
 0xc29   :  { %6497 = vmatprep.subr.bf16.mxu1 %v10108_v8  ;;  %v10116_v8 = vld [vmem:[#allocation63_spill] sm:$0xff] }
 0xc2a   :  { %v7364_v25 = vpop.eup %7363 }
 0xc2b   :  { %v2215_v31 = vmul.f32 %v7364_v25, %v9890_v6  ;;  %v10118_v25 = vld [vmem:[#allocation67_spill] sm:$0xff]  ;;  %v10121_v6 = vld [vmem:[#allocation72_spill] sm:$0xff] }
 0xc2d   :  { %v2217_v4 = vrot.slane %v2215_v31, 6  ;;  %v10119_v31 = vld [vmem:[#allocation68_spill] sm:$0xff] }
 0xc2f   :  { %5523 = vmatmul.mubr.f32.vlgmr.msra.gmra.mrb[20].mxu1 %v2217_v4  ;;  %v10120_v4 = vld [vmem:[#allocation71_spill] sm:$0xff] }
 0xc30   :  { %6499 = vmatpush3.bf16.msra.mxu1 %v10109_v39  ;;  %v10125_v39 = vld [vmem:[#allocation41_spill] sm:$0xff] }
 0xc31   :  { %6501 = vmatprep.subr.bf16.mxu1 %v10110_v27 }
 0xc34   :  { %6503 = vmatpush3.bf16.msra.mxu1 %v10111_v18  ;;  %v10122_v18 = vld [vmem:[#allocation75_spill] sm:$0xff] }
 0xc35   :  { %6505 = vmatprep.subr.bf16.mxu1 %v10112_v42  ;;  %v10123_v42 = vld [vmem:[#allocation76_spill] sm:$0xff] }
 0xc38   :  { %6507 = vmatpush3.bf16.msra.mxu1 %v10113_v30 }
 0xc39   :  { %6509 = vmatprep.subr.bf16.mxu1 %v10114_v9  ;;  %v10124_v9 = vld [vmem:[#allocation34_spill] sm:$0xff] }
 0xc3c   :  { %6511 = vmatpush3.bf16.msra.mxu1 %v10115_v55  ;;  %v1943_v55 = vadd.f32 %v8788_v5, %v10124_v9 }
 0xc3d   :  { %6513 = vmatprep.subr.bf16.mxu1 %v10116_v8 }
 0xc40   :  { %6515 = vmatpush3.bf16.msra.mxu1 %v10117_v45 }
 0xc41   :  { %6517 = vmatprep.subr.bf16.mxu1 %v10118_v25 }
 0xc44   :  { %6519 = vmatpush3.bf16.msra.mxu1 %v10119_v31 }
 0xc45   :  { %6521 = vmatprep.subr.bf16.mxu1 %v10120_v4 }
 0xc48   :  { %6523 = vmatpush3.bf16.msra.mxu1 %v10121_v6 }
 0xc49   :  { %6525 = vmatprep.subr.bf16.mxu1 %v10122_v18 }
 0xc4c   :  { %6527 = vmatpush3.bf16.msra.mxu1 %v10123_v42 }
 0xc4d   :  { %6528 = vmatprep.subr.bf16.mxu1 %v9975_v2 }
 0xcde   :  { %v2059_v8 = vpop.f32.mrb[18].mxu1 }
 0xcdf   :  { %v2063_v30 = vadd.f32 %v2059_v8, %v1943_v55  ;;  %v5489_v45 = vpop.f32.mrb[19].mxu1  ;;  %v1948_v55 = vpop.xlane.xlu0 %1947 }
 0xce0   :  { %v1949_v8 = vmul.f32 0.03125, %v1948_v55 }
 0xce1   :  { %v2064_v25 = vsel %vm500_vm1, %v2063_v30, 0.0  ;;  %v2068_v27 = vmul.f32 %v2063_v30, %v2063_v30 }
 0xce2   :  { %2065 = vadd.xlane.f32.xlu0 %v2064_v25  ;;  %v1955_v25 = vmul.f32 %v1949_v8, %v1949_v8 }
 0xce3   :  { %v2069_v4 = vsel %vm500_vm1, %v2068_v27, 0.0  ;;  %v1953_v27 = vpop.xlane.xlu1 %1952 }
 0xce4   :  { %2070 = vadd.xlane.f32.xlu1 %v2069_v4  ;;  %v1954_v4 = vmul.f32 0.03125, %v1953_v27 }
 0xd02   :  { %v2285_v6 = vpop.f32.mrb[20].mxu1 }
 0xd03   :  { %v2290_v31 = vrot.slane %v2285_v6, 2  ;;  %v5524_v18 = vpop.f32.mrb[21].mxu1  ;;  %v1956_v6 = vsub.f32 %v1954_v4, %v1955_v25  ;;  %v2170_v25 = vpop.xlane.xlu1 %2169 }
 0xd05   :  { %v8868_v42 = vadd.f32 %v2290_v31, %v10125_v39  ;;  %v1958_v18 = vadd.f32 1e-05, %v1956_v6  ;;  %v1957_v31 = vsub.f32 %v8793_v36, %v1949_v8  ;;  %v2171_v8 = vmul.f32 0.03125, %v2170_v25 }
 0xd07   :  { %v2293_v10 = vsel %vm2162_vm5, %v8868_v42, 0.0  ;;  %v2297_v5 = vmul.f32 %v8868_v42, %v8868_v42  ;;  %7365 = vrsqrt.f32 %v1958_v18 }
 0xd08   :  { %2294 = vadd.xlane.f32.xlu0 %v2293_v10 }
 0xd09   :  { %v2298_v45 = vsel %vm2162_vm5, %v2297_v5, 0.0  ;;  %v2165_v5 = vpop.xlane.xlu0 %2164 }
 0xd0a   :  { %2299 = vadd.xlane.f32.xlu1 %v2298_v45  ;;  %v8885_v45 = vld [vmem:[%s9757_s11] ss:$0 sm:$0xff]  ;;  %v2166_v27 = vmul.f32 0.03125, %v2165_v5 }
 0xd0b   :  { %10127 = vst [vmem:[#allocation79_spill] sm:$0xff] %v8885_v45 }
 0xd0c   :  { %v2172_v36 = vmul.f32 %v2166_v27, %v2166_v27  ;;  %v2174_v25 = vsub.f32 %v8798_v43, %v2166_v27 }
 0xd11   :  { %v7366_v39 = vpop.eup %7365 }
 0xd12   :  { %v1960_v9 = vmul.f32 %v7366_v39, %v1957_v31  ;;  %v2173_v31 = vsub.f32 %v2171_v8, %v2172_v36 }
 0xd14   :  { %v1961_v10 = vmul.f32 %v8879_v48, %v1960_v9  ;;  %v2175_v12 = vadd.f32 1e-05, %v2173_v31 }
 0xd16   :  { %v1962_v55 = vadd.f32 %v8885_v45, %v1961_v10 }
 0xd18   :  { %v4695_v4 = vmul.f32 -1.442695, %v1962_v55 }
 0xd1a   :  { %7367 = vpow2.f32 %v4695_v4  ;;  %v8892_v4 = vld [vmem:[%s9756_s10 + $0x2] ss:$0 sm:$0xff] }
 0xd24   :  { %v7368_v33 = vpop.eup %7367 }
 0xd25   :  { %v1966_v3 = vadd.f32 1.0, %v7368_v33 }
 0xd6f   :  { %v2066_v6 = vpop.xlane.xlu0 %2065 }
 0xd70   :  { %v2067_v18 = vmul.f32 0.03125, %v2066_v6 }
 0xd71   :  { %v2071_v39 = vpop.xlane.xlu1 %2070 }
 0xd72   :  { %v2073_v17 = vmul.f32 %v2067_v18, %v2067_v18  ;;  %v2072_v9 = vmul.f32 0.03125, %v2071_v39  ;;  %v2075_v10 = vsub.f32 %v2063_v30, %v2067_v18 }
 0xd74   :  { %v2074_v48 = vsub.f32 %v2072_v9, %v2073_v17 }
 0xd76   :  { %v2076_v62 = vadd.f32 1e-05, %v2074_v48 }
 0xd78   :  { %7369 = vrsqrt.f32 %v2076_v62  ;;  %v8898_v62 = vld [vmem:[%s9757_s11 + $0x2] ss:$0 sm:$0xff] }
 0xd79   :  { %7371 = vrsqrt.f32 %v2175_v12 }
 0xd7a   :  { %7373 = vrcp.f32 %v1966_v3 }
 0xd82   :  { %v7370_v5 = vpop.eup %7369 }
 0xd83   :  { %v2078_v55 = vmul.f32 %v7370_v5, %v2075_v10  ;;  %v7372_v45 = vpop.eup %7371 }
 0xd84   :  { %v2177_v36 = vmul.f32 %v7372_v45, %v2174_v25  ;;  %v7374_v12 = vpop.eup %7373 }
 0xd85   :  { %v2079_v17 = vmul.f32 %v8892_v4, %v2078_v55  ;;  %v2082_v48 = vsub.f32 1.0, %v7374_v12 }
 0xd86   :  { %v2178_v3 = vmul.f32 %v8689_v7, %v2177_v36 }
 0xd87   :  { %v2080_v33 = vadd.f32 %v8898_v62, %v2079_v17  ;;  %v2083_v6 = vmul.f32 %v2082_v48, %v8699_v32 }
 0xd88   :  { %v2179_v43 = vadd.f32 %v8695_v19, %v2178_v3 }
 0xd89   :  { %7375 = vtanh.f32 %v2080_v33 }
 0xd8a   :  { %v4697_v27 = vmul.f32 -1.442695, %v2179_v43 }
 0xd8c   :  { %7377 = vpow2.f32 %v4697_v27 }
 0xd93   :  { %v7376_v30 = vpop.eup %7375 }
 0xd94   :  { %v2084_v45 = vmul.f32 %v7376_v30, %v7374_v12 }
 0xd95   :  { %v2295_v8 = vpop.xlane.xlu0 %2294 }
 0xd96   :  { %v2296_v18 = vmul.f32 0.03125, %v2295_v8  ;;  %v8904_v31 = vadd.f32 %v2084_v45, %v2083_v6  ;;  %v7378_v19 = vpop.eup %7377  ;;  %v10129_v8 = vrot.slane %v8717_v24, 6  ;;  %v10132_v24 = vld [vmem:[#allocation40_spill] sm:$0xff] }
 0xd97   :  { %v2300_v39 = vpop.xlane.xlu1 %2299  ;;  %v2183_v17 = vadd.f32 1.0, %v7378_v19  ;;  %v10140_v19 = vld [vmem:[#allocation53_spill] sm:$0xff] }
 0xd98   :  { %10128 = vst [vmem:[#allocation41_spill] sm:$0xff] %v8904_v31  ;;  %v2302_v9 = vmul.f32 %v2296_v18, %v2296_v18  ;;  %v2301_v10 = vmul.f32 0.03125, %v2300_v39  ;;  %v2316_v5 = vrot.slane %v8904_v31, 2  ;;  %v2304_v36 = vsub.f32 %v8868_v42, %v2296_v18  ;;  %v10133_v42 = vld [vmem:[#allocation42_spill] sm:$0xff]  ;;  %v10134_v18 = vld [vmem:[#allocation43_spill] sm:$0xff] }
 0xd9a   :  { %v2303_v7 = vsub.f32 %v2301_v10, %v2302_v9  ;;  %v2319_v55 = vrot.slane %v2316_v5, 6  ;;  %v10135_v10 = vld [vmem:[#allocation44_spill] sm:$0xff]  ;;  %v10136_v5 = vld [vmem:[#allocation45_spill] sm:$0xff] }
 0xd9c   :  { %v2305_v25 = vadd.f32 1e-05, %v2303_v7  ;;  %2386 = vmatprep.mubr.f32.mxu0 %v2319_v55  ;;  %2457 = vmatprep.mubr.f32.mxu1 %v2319_v55  ;;  %v10137_v7 = vld [vmem:[#allocation46_spill] sm:$0xff]  ;;  %v10138_v55 = vld [vmem:[#allocation49_spill] sm:$0xff] }
 0xd9e   :  { %7379 = vrsqrt.f32 %v2305_v25  ;;  %v10139_v25 = vld [vmem:[#allocation50_spill] sm:$0xff] }
 0xd9f   :  { %7381 = vrcp.f32 %v2183_v17  ;;  %v10141_v17 = vld [vmem:[#allocation54_spill] sm:$0xff] }
 0xda8   :  { %v7380_v33 = vpop.eup %7379 }
 0xda9   :  { %v2307_v3 = vmul.f32 %v7380_v33, %v2304_v36  ;;  %v7382_v48 = vpop.eup %7381  ;;  %v10142_v36 = vld [vmem:[#allocation57_spill] sm:$0xff]  ;;  %v10143_v33 = vld [vmem:[#allocation58_spill] sm:$0xff] }
 0xdaa   :  { %v2311_v30 = vsub.f32 1.0, %v7382_v48 }
 0xdab   :  { %v2308_v12 = vmul.f32 %v8706_v38, %v2307_v3  ;;  %v10130_v38 = vld [vmem:[#allocation38_spill] sm:$0xff]  ;;  %v10144_v3 = vld [vmem:[#allocation61_spill] sm:$0xff] }
 0xdac   :  { %v2312_v6 = vmul.f32 %v2311_v30, %v10129_v8  ;;  %v10148_v30 = vld [vmem:[#allocation69_spill] sm:$0xff] }
 0xdad   :  { %v2309_v43 = vadd.f32 %v8712_v26, %v2308_v12  ;;  %v10131_v26 = vld [vmem:[#allocation39_spill] sm:$0xff]  ;;  %v10145_v12 = vld [vmem:[#allocation62_spill] sm:$0xff]  ;;  %v10150_v8 = vld [vmem:[#allocation73_spill] sm:$0xff] }
 0xdaf   :  { %7383 = vtanh.f32 %v2309_v43  ;;  %v10146_v43 = vld [vmem:[#allocation65_spill] sm:$0xff] }
 0xdb9   :  { %v7384_v27 = vpop.eup %7383 }
 0xdba   :  { %v2313_v45 = vmul.f32 %v7384_v27, %v7382_v48  ;;  %v10147_v48 = vld [vmem:[#allocation66_spill] sm:$0xff] }
 0xdbb   :  { %v10149_v27 = vld [vmem:[#allocation70_spill] sm:$0xff] }
 0xdbc   :  { %v2314_v39 = vadd.f32 %v2313_v45, %v2312_v6  ;;  %v10151_v6 = vld [vmem:[#allocation74_spill] sm:$0xff]  ;;  %v10152_v45 = vld [vmem:[#allocation20_spill] sm:$0xff] }
 0xdbe   :  { %v8912_v9 = vrot.slane %v2314_v39, 6 }
 0xdc0   :  { %2387 = vmatmul.mubr.f32.vlgmr.msra.gmra.mrb[18].mxu0 %v8912_v9  ;;  %2458 = vmatmul.mubr.f32.vlgmr.msra.gmra.mrb[22].mxu1 %v8912_v9 }
 0xdc1   :  { %6555 = vmatpush1.bf16.msra.mxu0 %v7950_v15  ;;  %2668 = vmatprep.mubr.f32.mxu0 %v9966_v58 }
 0xdc2   :  { %6557 = vmatprep.subr.bf16.mxu0 %v7953_v16  ;;  %6530 = vmatpush3.bf16.msra.mxu1 %v8370_v50 }
 0xdc3   :  { %6531 = vmatprep.subr.bf16.mxu1 %v9975_v2  ;;  %5557 = vmatprep.mubr.msk.f32.mxu1 %vm7766_vm2, %v9966_v58 }
 0xdc5   :  { %6559 = vmatpush1.bf16.msra.mxu0 %v7957_v21 }
 0xdc6   :  { %6561 = vmatprep.subr.bf16.mxu0 %v7961_v22  ;;  %6533 = vmatpush3.bf16.msra.mxu1 %v8379_v49 }
 0xdc7   :  { %6534 = vmatprep.subr.bf16.mxu1 %v9975_v2 }
 0xdc9   :  { %6563 = vmatpush1.bf16.msra.mxu0 %v7966_v28 }
 0xdca   :  { %6565 = vmatprep.subr.bf16.mxu0 %v7969_v29  ;;  %6536 = vmatpush3.bf16.msra.mxu1 %v8388_v60 }
 0xdcb   :  { %6537 = vmatprep.subr.bf16.mxu1 %v9975_v2 }
 0xdcd   :  { %6567 = vmatpush1.bf16.msra.mxu0 %v7975_v34 }
 0xdce   :  { %6569 = vmatprep.subr.bf16.mxu0 %v7978_v35  ;;  %6539 = vmatpush3.bf16.msra.mxu1 %v8396_v54 }
 0xdcf   :  { %6540 = vmatprep.subr.bf16.mxu1 %v9975_v2 }
 0xdd1   :  { %6571 = vmatpush1.bf16.msra.mxu0 %v7981_v40 }
 0xdd2   :  { %6573 = vmatprep.subr.bf16.mxu0 %v7984_v41  ;;  %6542 = vmatpush3.bf16.msra.mxu1 %v8400_v0 }
 0xdd3   :  { %6543 = vmatprep.subr.bf16.mxu1 %v9975_v2 }
 0xdd5   :  { %6575 = vmatpush1.bf16.msra.mxu0 %v7987_v46 }
 0xdd6   :  { %6577 = vmatprep.subr.bf16.mxu0 %v7990_v47  ;;  %6545 = vmatpush3.bf16.msra.mxu1 %v8404_v51 }
 0xdd7   :  { %6546 = vmatprep.subr.bf16.mxu1 %v9975_v2 }
 0xdd9   :  { %6579 = vmatpush1.bf16.msra.mxu0 %v7993_v52 }
 0xdda   :  { %6581 = vmatprep.subr.bf16.mxu0 %v7996_v53  ;;  %6548 = vmatpush3.bf16.msra.mxu1 %v8408_v61 }
 0xddb   :  { %6549 = vmatprep.subr.bf16.mxu1 %v9975_v2 }
 0xddd   :  { %6583 = vmatpush1.bf16.msra.mxu0 %v7999_v56 }
 0xdde   :  { %6551 = vmatpush3.bf16.msra.mxu1 %v8412_v44  ;;  %6609 = vmatprep.subr.bf16.mxu0 %v8097_v1 }
 0xddf   :  { %6584 = vmatprep.subr.bf16.mxu1 %v9975_v2 }
 0xde0   :  { %2669 = vmatmul.mubr.f32.vlgmr.msra.gmra.mrb[20].mxu0 %v8912_v9 }
 0xde1   :  { %6611 = vmatpush1.bf16.msra.mxu0 %v8099_v11 }
 0xde2   :  { %6613 = vmatprep.subr.bf16.mxu0 %v8101_v14 }
 0xde5   :  { %6615 = vmatpush1.bf16.msra.mxu0 %v8105_v20 }
 0xde6   :  { %6617 = vmatprep.subr.bf16.mxu0 %v8108_v23 }
 0xde9   :  { %6619 = vmatpush1.bf16.msra.mxu0 %v8111_v37 }
 0xdea   :  { %6621 = vmatprep.subr.bf16.mxu0 %v8114_v13 }
 0xded   :  { %6623 = vmatpush1.bf16.msra.mxu0 %v8117_v57 }
 0xdee   :  { %6625 = vmatprep.subr.bf16.mxu0 %v8120_v59 }
 0xdf1   :  { %6627 = vmatpush1.bf16.msra.mxu0 %v10069_v63 }
 0xdf2   :  { %6629 = vmatprep.subr.bf16.mxu0 %v10130_v38 }
 0xdf5   :  { %6631 = vmatpush1.bf16.msra.mxu0 %v10131_v26 }
 0xdf6   :  { %6633 = vmatprep.subr.bf16.mxu0 %v10132_v24 }
 0xdf9   :  { %6635 = vmatpush1.bf16.msra.mxu0 %v10133_v42 }
 0xdfa   :  { %6637 = vmatprep.subr.bf16.mxu0 %v10134_v18  ;;  %v10157_v18 = vld [vmem:[#allocation80_spill] sm:$0xff] }
 0xdfd   :  { %6639 = vmatpush1.bf16.msra.mxu0 %v10135_v10 }
 0xdfe   :  { %6641 = vmatprep.subr.bf16.mxu0 %v10136_v5 }
 0xe01   :  { %6643 = vmatpush1.bf16.msra.mxu0 %v10137_v7 }
 0xe02   :  { %6645 = vmatprep.subr.bf16.mxu0 %v10138_v55 }
 0xe05   :  { %6647 = vmatpush1.bf16.msra.mxu0 %v10139_v25 }
 0xe06   :  { %6649 = vmatprep.subr.bf16.mxu0 %v10140_v19 }
 0xe09   :  { %6651 = vmatpush1.bf16.msra.mxu0 %v10141_v17 }
 0xe0a   :  { %6653 = vmatprep.subr.bf16.mxu0 %v10142_v36  ;;  %v10153_v36 = vld [vmem:[#allocation21_spill] sm:$0xff] }
 0xe0d   :  { %6655 = vmatpush1.bf16.msra.mxu0 %v10143_v33 }
 0xe0e   :  { %6657 = vmatprep.subr.bf16.mxu0 %v10144_v3 }
 0xe11   :  { %6659 = vmatpush1.bf16.msra.mxu0 %v10145_v12 }
 0xe12   :  { %6661 = vmatprep.subr.bf16.mxu0 %v10146_v43 }
 0xe15   :  { %6663 = vmatpush1.bf16.msra.mxu0 %v10147_v48 }
 0xe16   :  { %6665 = vmatprep.subr.bf16.mxu0 %v10148_v30 }
 0xe19   :  { %6667 = vmatpush1.bf16.msra.mxu0 %v10149_v27 }
 0xe1a   :  { %6669 = vmatprep.subr.bf16.mxu0 %v10150_v8 }
 0xe1d   :  { %6671 = vmatpush1.bf16.msra.mxu0 %v10151_v6  ;;  %v10154_v6 = vld [vmem:[#allocation23_spill] sm:$0xff] }
 0xe1e   :  { %6729 = vmatprep.subr.bf16.mxu0 %v10152_v45  ;;  %v10155_v45 = vld [vmem:[#allocation78_spill] sm:$0xff] }
 0xe93   :  { %v2388_v39 = vpop.f32.mrb[18].mxu0  ;;  %v4977_v32 = vpop.f32.mrb[22].mxu1 }
 0xe94   :  { %v2390_v33 = vpop.f32.mrb[19].mxu0  ;;  %v4978_v3 = vpop.f32.mrb[23].mxu1  ;;  %v8991_v25 = vadd.f32 %v2388_v39, %v10155_v45 }
 0xe95   :  { %v2391_v12 = vadd.f32 %v2390_v33, %v10153_v36  ;;  %v8985_v17 = vadd.f32 %v4978_v3, %v4977_v32  ;;  %v10156_v32 = vld [vmem:[#allocation22_spill] sm:$0xff] }
 0xe97   :  { %v2486_v48 = vsel %vm500_vm1, %v2391_v12, 0.0  ;;  %v2490_v43 = vmul.f32 %v2391_v12, %v2391_v12 }
 0xe98   :  { %2487 = vadd.xlane.f32.xlu0 %v2486_v48  ;;  %v2467_v48 = vmul.f32 %v8991_v25, %v8991_v25 }
 0xe99   :  { %v2491_v27 = vsel %vm500_vm1, %v2490_v43, 0.0  ;;  %v2463_v43 = vsel %vm500_vm1, %v8991_v25, 0.0 }
 0xe9a   :  { %2492 = vadd.xlane.f32.xlu1 %v2491_v27 }
 0xeb3   :  { %v2670_v8 = vpop.f32.mrb[20].mxu0 }
 0xeb4   :  { %v2672_v30 = vpop.f32.mrb[21].mxu0  ;;  %v8995_v33 = vadd.f32 %v2670_v8, %v10156_v32 }
 0xeb5   :  { %v2699_v19 = vadd.f32 %v2672_v30, %v10154_v6 }
 0xeb6   :  { %v2676_v30 = vsel %vm500_vm1, %v8995_v33, 0.0  ;;  %v2680_v27 = vmul.f32 %v8995_v33, %v8995_v33 }
 0xeb7   :  { %v2700_v55 = vsel %vm500_vm1, %v2699_v19, 0.0  ;;  %v2704_v7 = vmul.f32 %v2699_v19, %v2699_v19 }
 0xeb8   :  { %2701 = vadd.xlane.f32.xlu0 %v2700_v55  ;;  %v2468_v55 = vsel %vm500_vm1, %v2467_v48, 0.0 }
 0xeb9   :  { %v2705_v3 = vsel %vm500_vm1, %v2704_v7, 0.0  ;;  %v2681_v7 = vsel %vm500_vm1, %v2680_v27, 0.0 }
 0xeba   :  { %2706 = vadd.xlane.f32.xlu1 %v2705_v3 }
 0xebc   :  { %2464 = vadd.xlane.f32.xlu0 %v2463_v43 }
 0xebe   :  { %2677 = vadd.xlane.f32.xlu1 %v2676_v30  ;;  %v10158_v30 = vld [vmem:[#allocation25_spill] sm:$0xff] }
 0xec0   :  { %2469 = vadd.xlane.f32.xlu0 %v2468_v55 }
 0xec2   :  { %2682 = vadd.xlane.f32.xlu1 %v2681_v7 }
 0xf25   :  { %v2488_v8 = vpop.xlane.xlu0 %2487 }
 0xf26   :  { %v2489_v39 = vmul.f32 0.03125, %v2488_v8 }
 0xf27   :  { %v2493_v3 = vpop.xlane.xlu1 %2492 }
 0xf28   :  { %v2495_v32 = vmul.f32 %v2489_v39, %v2489_v39  ;;  %v2494_v6 = vmul.f32 0.03125, %v2493_v3  ;;  %v2497_v36 = vsub.f32 %v2391_v12, %v2489_v39  ;;  %v10163_v39 = vld [vmem:[#allocation29_spill] sm:$0xff] }
 0xf2a   :  { %v2496_v45 = vsub.f32 %v2494_v6, %v2495_v32  ;;  %v10162_v32 = vld [vmem:[#allocation28_spill] sm:$0xff] }
 0xf2c   :  { %v2498_v43 = vadd.f32 1e-05, %v2496_v45 }
 0xf2e   :  { %7385 = vrsqrt.f32 %v2498_v43 }
 0xf38   :  { %v7386_v5 = vpop.eup %7385 }
 0xf39   :  { %v2500_v10 = vmul.f32 %v7386_v5, %v2497_v36 }
 0xf3b   :  { %v2501_v42 = vmul.f32 %v10157_v18, %v2500_v10 }
 0xf3d   :  { %v2502_v24 = vadd.f32 %v10158_v30, %v2501_v42 }
 0xf3f   :  { %v4700_v48 = vmul.f32 -1.442695, %v2502_v24  ;;  %v9014_v24 = vld [vmem:[%s9751_s5 + $0x1] ss:$0 sm:$0xff] }
 0xf41   :  { %7387 = vpow2.f32 %v4700_v48  ;;  %v10164_v48 = vld [vmem:[#allocation30_spill] sm:$0xff] }
 0xf45   :  { %v2702_v55 = vpop.xlane.xlu0 %2701 }
 0xf46   :  { %v2703_v27 = vmul.f32 0.03125, %v2702_v55  ;;  %v10165_v55 = vld [vmem:[#allocation31_spill] sm:$0xff] }
 0xf47   :  { %v2707_v7 = vpop.xlane.xlu1 %2706 }
 0xf48   :  { %v2709_v26 = vmul.f32 %v2703_v27, %v2703_v27  ;;  %v2708_v8 = vmul.f32 0.03125, %v2707_v7  ;;  %v2711_v12 = vsub.f32 %v2699_v19, %v2703_v27  ;;  %v10161_v19 = vld [vmem:[#allocation27_spill] sm:$0xff]  ;;  %v10166_v27 = vld [vmem:[#allocation32_spill] sm:$0xff] }
 0xf4a   :  { %v2710_v38 = vsub.f32 %v2708_v8, %v2709_v26  ;;  %v10160_v26 = vld [vmem:[#allocation26_spill] sm:$0xff]  ;;  %v10167_v8 = vld [vmem:[#allocation33_spill] sm:$0xff] }
 0xf4b   :  { %v7388_v63 = vpop.eup %7387 }
 0xf4c   :  { %v2712_v3 = vadd.f32 1e-05, %v2710_v38  ;;  %v2506_v6 = vadd.f32 1.0, %v7388_v63  ;;  %v9020_v63 = vld [vmem:[%s9752_s6 + $0x1] ss:$0 sm:$0xff] }
 0xf4d   :  { %10159 = vst [vmem:[#allocation80_spill] sm:$0xff] %v9020_v63 }
 0xf4e   :  { %7389 = vrsqrt.f32 %v2712_v3 }
 0xf4f   :  { %7391 = vrcp.f32 %v2506_v6  ;;  %v10168_v6 = vld [vmem:[#allocation47_spill] sm:$0xff] }
 0xf58   :  { %v7390_v45 = vpop.eup %7389 }
 0xf59   :  { %v7392_v5 = vpop.eup %7391  ;;  %v2714_v36 = vmul.f32 %v7390_v45, %v2711_v12  ;;  %v10169_v12 = vld [vmem:[#allocation48_spill] sm:$0xff]  ;;  %v10170_v45 = vld [vmem:[#allocation51_spill] sm:$0xff] }
 0xf5a   :  { %v2509_v18 = vmul.f32 %v7392_v5, %v8904_v31  ;;  %v10171_v5 = vld [vmem:[#allocation52_spill] sm:$0xff] }
 0xf5b   :  { %v2715_v42 = vmul.f32 %v9014_v24, %v2714_v36  ;;  %v10172_v36 = vld [vmem:[#allocation55_spill] sm:$0xff] }
 0xf5c   :  { %5558 = vmatmul.mubr.f32.vlgmr.msra.gmra.mrb[24].mxu1 %v2509_v18  ;;  %v10173_v18 = vld [vmem:[#allocation56_spill] sm:$0xff] }
 0xf5d   :  { %v2716_v38 = vadd.f32 %v9020_v63, %v2715_v42  ;;  %6586 = vmatpush3.bf16.msra.mxu1 %v10160_v26  ;;  %5592 = vmatprep.mubr.msk.f32.mxu1 %vm7766_vm2, %v9966_v58  ;;  %v10174_v42 = vld [vmem:[#allocation59_spill] sm:$0xff] }
 0xf5e   :  { %6587 = vmatprep.subr.bf16.mxu1 %v9975_v2 }
 0xf5f   :  { %v4702_v10 = vmul.f32 -1.442695, %v2716_v38  ;;  %v10175_v38 = vld [vmem:[#allocation60_spill] sm:$0xff] }
 0xf61   :  { %7393 = vpow2.f32 %v4702_v10  ;;  %6589 = vmatpush3.bf16.msra.mxu1 %v10161_v19  ;;  %v10176_v10 = vld [vmem:[#allocation63_spill] sm:$0xff] }
 0xf62   :  { %6590 = vmatprep.subr.bf16.mxu1 %v9975_v2 }
 0xf65   :  { %6592 = vmatpush3.bf16.msra.mxu1 %v10162_v32 }
 0xf66   :  { %6593 = vmatprep.subr.bf16.mxu1 %v9975_v2 }
 0xf69   :  { %6595 = vmatpush3.bf16.msra.mxu1 %v10163_v39 }
 0xf6a   :  { %6596 = vmatprep.subr.bf16.mxu1 %v9975_v2 }
 0xf6b   :  { %v7394_v43 = vpop.eup %7393 }
 0xf6c   :  { %v2720_v30 = vadd.f32 1.0, %v7394_v43  ;;  %v10177_v43 = vld [vmem:[#allocation64_spill] sm:$0xff] }
 0xf6d   :  { %6598 = vmatpush3.bf16.msra.mxu1 %v10164_v48 }
 0xf6e   :  { %6599 = vmatprep.subr.bf16.mxu1 %v9975_v2  ;;  %7395 = vrcp.f32 %v2720_v30  ;;  %v10178_v30 = vld [vmem:[#allocation67_spill] sm:$0xff] }
 0xf71   :  { %6601 = vmatpush3.bf16.msra.mxu1 %v10165_v55  ;;  %v10186_v55 = vld [vmem:[#allocation24_spill] sm:$0xff] }
 0xf72   :  { %6602 = vmatprep.subr.bf16.mxu1 %v9975_v2 }
 0xf75   :  { %6604 = vmatpush3.bf16.msra.mxu1 %v10166_v27 }
 0xf76   :  { %6605 = vmatprep.subr.bf16.mxu1 %v9975_v2 }
 0xf78   :  { %v7396_v7 = vpop.eup %7395 }
 0xf79   :  { %6607 = vmatpush3.bf16.msra.mxu1 %v10167_v8  ;;  %v2723_v3 = vmul.f32 %v7396_v7, %v8912_v9  ;;  %v10179_v7 = vld [vmem:[#allocation68_spill] sm:$0xff] }
 0xf7a   :  { %6673 = vmatprep.subr.bf16.mxu1 %v10168_v6 }
 0xf7c   :  { %5593 = vmatmul.mubr.f32.vlgmr.msra.gmra.mrb[26].mxu1 %v2723_v3  ;;  %v10180_v3 = vld [vmem:[#allocation71_spill] sm:$0xff] }
 0xf7d   :  { %6675 = vmatpush3.bf16.msra.mxu1 %v10169_v12 }
 0xf7e   :  { %6677 = vmatprep.subr.bf16.mxu1 %v10170_v45  ;;  %v10181_v45 = vld [vmem:[#allocation72_spill] sm:$0xff] }
 0xf81   :  { %6679 = vmatpush3.bf16.msra.mxu1 %v10171_v5  ;;  %v10182_v5 = vld [vmem:[#allocation75_spill] sm:$0xff] }
 0xf82   :  { %6681 = vmatprep.subr.bf16.mxu1 %v10172_v36  ;;  %v10183_v36 = vld [vmem:[#allocation76_spill] sm:$0xff] }
 0xf85   :  { %6683 = vmatpush3.bf16.msra.mxu1 %v10173_v18 }
 0xf86   :  { %6685 = vmatprep.subr.bf16.mxu1 %v10174_v42  ;;  %v10184_v42 = vld [vmem:[#allocation34_spill] sm:$0xff] }
 0xf89   :  { %6687 = vmatpush3.bf16.msra.mxu1 %v10175_v38  ;;  %v2460_v38 = vadd.f32 %v8985_v17, %v10184_v42 }
 0xf8a   :  { %6689 = vmatprep.subr.bf16.mxu1 %v10176_v10 }
 0xf8d   :  { %6691 = vmatpush3.bf16.msra.mxu1 %v10177_v43 }
 0xf8e   :  { %6693 = vmatprep.subr.bf16.mxu1 %v10178_v30 }
 0xf91   :  { %6695 = vmatpush3.bf16.msra.mxu1 %v10179_v7  ;;  %v10185_v7 = vld [vmem:[#allocation36_spill] sm:$0xff] }
 0xf92   :  { %6697 = vmatprep.subr.bf16.mxu1 %v10180_v3 }
 0xf95   :  { %6699 = vmatpush3.bf16.msra.mxu1 %v10181_v45 }
 0xf96   :  { %6701 = vmatprep.subr.bf16.mxu1 %v10182_v5 }
 0xf99   :  { %6703 = vmatpush3.bf16.msra.mxu1 %v10183_v36 }
 0xf9a   :  { %6704 = vmatprep.subr.bf16.mxu1 %v9975_v2 }
0x102f   :  { %v2576_v10 = vpop.f32.mrb[24].mxu1 }
0x1030   :  { %v2580_v18 = vadd.f32 %v2576_v10, %v2460_v38  ;;  %v5559_v43 = vpop.f32.mrb[25].mxu1  ;;  %v2465_v10 = vpop.xlane.xlu0 %2464 }
0x1032   :  { %v2581_v30 = vsel %vm500_vm1, %v2580_v18, 0.0  ;;  %v2585_v12 = vmul.f32 %v2580_v18, %v2580_v18 }
0x1033   :  { %2582 = vadd.xlane.f32.xlu0 %v2581_v30  ;;  %v2466_v30 = vmul.f32 0.03125, %v2465_v10 }
0x1034   :  { %v2586_v3 = vsel %vm500_vm1, %v2585_v12, 0.0  ;;  %v2470_v43 = vpop.xlane.xlu0 %2469 }
0x1035   :  { %v2471_v12 = vmul.f32 0.03125, %v2470_v43 }
0x1037   :  { %2587 = vadd.xlane.f32.xlu0 %v2586_v3  ;;  %v2472_v3 = vmul.f32 %v2466_v30, %v2466_v30 }
0x1039   :  { %v2473_v42 = vsub.f32 %v2471_v12, %v2472_v3 }
0x103b   :  { %v2475_v8 = vadd.f32 1e-05, %v2473_v42 }
0x103d   :  { %7397 = vrsqrt.f32 %v2475_v8 }
0x104f   :  { %v2790_v45 = vpop.f32.mrb[26].mxu1 }
0x1050   :  { %v9063_v5 = vadd.f32 %v2790_v45, %v10185_v7  ;;  %v5594_v36 = vpop.f32.mrb[27].mxu1  ;;  %v7398_v45 = vpop.eup %7397 }
0x1051   :  { %v2474_v36 = vsub.f32 %v8991_v25, %v2466_v30  ;;  %v2678_v7 = vpop.xlane.xlu1 %2677 }
0x1052   :  { %v2795_v6 = vsel %vm500_vm1, %v9063_v5, 0.0  ;;  %v2799_v17 = vmul.f32 %v9063_v5, %v9063_v5 }
0x1053   :  { %2796 = vadd.xlane.f32.xlu1 %v2795_v6  ;;  %v2477_v27 = vmul.f32 %v7398_v45, %v2474_v36  ;;  %v2679_v6 = vmul.f32 0.03125, %v2678_v7  ;;  %v9078_v36 = vld [vmem:[%s9751_s5] ss:$0 sm:$0xff] }
0x1054   :  { %v2800_v38 = vsel %vm500_vm1, %v2799_v17, 0.0  ;;  %v10187_v17 = vld [vmem:[#allocation79_spill] sm:$0xff] }
0x1055   :  { %v2478_v48 = vmul.f32 %v10186_v55, %v2477_v27  ;;  %v2683_v39 = vpop.xlane.xlu1 %2682  ;;  %v2685_v19 = vmul.f32 %v2679_v6, %v2679_v6 }
0x1056   :  { %v2684_v32 = vmul.f32 0.03125, %v2683_v39  ;;  %v2687_v39 = vsub.f32 %v8995_v33, %v2679_v6  ;;  %v9085_v33 = vld [vmem:[%s9752_s6] ss:$0 sm:$0xff] }
0x1057   :  { %2801 = vadd.xlane.f32.xlu1 %v2800_v38  ;;  %v2479_v38 = vadd.f32 %v10187_v17, %v2478_v48 }
0x1058   :  { %v2686_v63 = vsub.f32 %v2684_v32, %v2685_v19 }
0x1059   :  { %v4699_v43 = vmul.f32 -1.442695, %v2479_v38 }
0x105a   :  { %v2688_v12 = vadd.f32 1e-05, %v2686_v63 }
0x105b   :  { %7399 = vpow2.f32 %v4699_v43 }
0x105c   :  { %7401 = vrsqrt.f32 %v2688_v12 }
0x1065   :  { %v7400_v55 = vpop.eup %7399 }
0x1066   :  { %v7402_v27 = vpop.eup %7401  ;;  %v2483_v7 = vadd.f32 1.0, %v7400_v55 }
0x1067   :  { %v2690_v19 = vmul.f32 %v7402_v27, %v2687_v39 }
0x1069   :  { %v2691_v17 = vmul.f32 %v9078_v36, %v2690_v19 }
0x10c0   :  { %v2583_v10 = vpop.xlane.xlu0 %2582 }
0x10c1   :  { %v2584_v26 = vmul.f32 0.03125, %v2583_v10 }
0x10c3   :  { %v2590_v8 = vmul.f32 %v2584_v26, %v2584_v26  ;;  %v2592_v48 = vsub.f32 %v2580_v18, %v2584_v26  ;;  %v2692_v26 = vadd.f32 %v9085_v33, %v2691_v17  ;;  %v9103_v17 = vld [vmem:[%s9752_s6 + $0x2] ss:$0 sm:$0xff] }
0x10c4   :  { %v2588_v42 = vpop.xlane.xlu0 %2587 }
0x10c5   :  { %v2589_v3 = vmul.f32 0.03125, %v2588_v42 }
0x10c7   :  { %v2591_v25 = vsub.f32 %v2589_v3, %v2590_v8 }
0x10c9   :  { %v2593_v30 = vadd.f32 1e-05, %v2591_v25 }
0x10cb   :  { %7403 = vrsqrt.f32 %v2593_v30 }
0x10cc   :  { %7405 = vrcp.f32 %v2483_v7 }
0x10d5   :  { %v7404_v45 = vpop.eup %7403 }
0x10d6   :  { %v2595_v32 = vmul.f32 %v7404_v45, %v2592_v48  ;;  %v7406_v18 = vpop.eup %7405 }
0x10d7   :  { %v2599_v43 = vsub.f32 1.0, %v7406_v18 }
0x10d8   :  { %v2596_v63 = vmul.f32 %v8892_v4, %v2595_v32  ;;  %v4701_v4 = vmul.f32 -1.442695, %v2692_v26  ;;  %v9097_v32 = vld [vmem:[%s9751_s5 + $0x2] ss:$0 sm:$0xff] }
0x10da   :  { %v2597_v38 = vadd.f32 %v8898_v62, %v2596_v63  ;;  %v2600_v62 = vmul.f32 %v2599_v43, %v8904_v31  ;;  %v10190_v43 = vld [vmem:[#allocation38_spill] sm:$0xff] }
0x10db   :  { %v10211_v31 = vld [vmem:[#allocation74_spill] sm:$0xff] }
0x10dc   :  { %7407 = vtanh.f32 %v2597_v38 }
0x10dd   :  { %7409 = vpow2.f32 %v4701_v4 }
0x10e0   :  { %v2797_v6 = vpop.xlane.xlu1 %2796 }
0x10e1   :  { %v2798_v10 = vmul.f32 0.03125, %v2797_v6 }
0x10e3   :  { %v2804_v42 = vmul.f32 %v2798_v10, %v2798_v10  ;;  %v2806_v48 = vsub.f32 %v9063_v5, %v2798_v10 }
0x10e4   :  { %v2802_v12 = vpop.xlane.xlu1 %2801 }
0x10e5   :  { %v2803_v8 = vmul.f32 0.03125, %v2802_v12  ;;  %v10191_v12 = vld [vmem:[#allocation39_spill] sm:$0xff] }
0x10e6   :  { %v7408_v3 = vpop.eup %7407 }
0x10e7   :  { %v2805_v25 = vsub.f32 %v2803_v8, %v2804_v42  ;;  %v2601_v30 = vmul.f32 %v7408_v3, %v7406_v18  ;;  %v7410_v7 = vpop.eup %7409  ;;  %v10192_v42 = vld [vmem:[#allocation40_spill] sm:$0xff]  ;;  %v10193_v8 = vld [vmem:[#allocation42_spill] sm:$0xff]  ;;  %v10194_v3 = vld [vmem:[#allocation43_spill] sm:$0xff] }
0x10e8   :  { %v2696_v39 = vadd.f32 1.0, %v7410_v7  ;;  %v10199_v7 = vld [vmem:[#allocation50_spill] sm:$0xff] }
0x10e9   :  { %v2807_v55 = vadd.f32 1e-05, %v2805_v25  ;;  %v9089_v27 = vadd.f32 %v2601_v30, %v2600_v62  ;;  %v10195_v25 = vld [vmem:[#allocation44_spill] sm:$0xff]  ;;  %v10196_v62 = vld [vmem:[#allocation45_spill] sm:$0xff]  ;;  %v10197_v30 = vld [vmem:[#allocation46_spill] sm:$0xff] }
0x10eb   :  { %10188 = vst [vmem:[#allocation25_spill] sm:$0xff] %v9089_v27  ;;  %7411 = vrsqrt.f32 %v2807_v55  ;;  %2881 = vmatprep.mubr.f32.mxu0 %v9089_v27  ;;  %2952 = vmatprep.mubr.f32.mxu1 %v9089_v27  ;;  %v10198_v55 = vld [vmem:[#allocation49_spill] sm:$0xff] }
0x10ec   :  { %7413 = vrcp.f32 %v2696_v39  ;;  %v10200_v39 = vld [vmem:[#allocation53_spill] sm:$0xff] }
0x10f5   :  { %v7412_v45 = vpop.eup %7411 }
0x10f6   :  { %v2809_v19 = vmul.f32 %v7412_v45, %v2806_v48  ;;  %v7414_v26 = vpop.eup %7413  ;;  %v10201_v48 = vld [vmem:[#allocation54_spill] sm:$0xff]  ;;  %v10202_v45 = vld [vmem:[#allocation57_spill] sm:$0xff] }
0x10f7   :  { %v2813_v5 = vsub.f32 1.0, %v7414_v26 }
0x10f8   :  { %v2810_v63 = vmul.f32 %v9097_v32, %v2809_v19  ;;  %v10203_v19 = vld [vmem:[#allocation58_spill] sm:$0xff] }
0x10f9   :  { %v2814_v6 = vmul.f32 %v2813_v5, %v8912_v9  ;;  %v10189_v9 = vld [vmem:[#allocation37_spill] sm:$0xff]  ;;  %v10207_v5 = vld [vmem:[#allocation66_spill] sm:$0xff] }
0x10fa   :  { %v2811_v38 = vadd.f32 %v9103_v17, %v2810_v63  ;;  %v10204_v63 = vld [vmem:[#allocation61_spill] sm:$0xff] }
0x10fc   :  { %7415 = vtanh.f32 %v2811_v38  ;;  %v10205_v38 = vld [vmem:[#allocation62_spill] sm:$0xff] }
0x1106   :  { %v7416_v18 = vpop.eup %7415 }
0x1107   :  { %v2815_v4 = vmul.f32 %v7416_v18, %v7414_v26  ;;  %v10206_v26 = vld [vmem:[#allocation65_spill] sm:$0xff] }
0x1108   :  { %v10208_v18 = vld [vmem:[#allocation69_spill] sm:$0xff] }
0x1109   :  { %v9107_v10 = vadd.f32 %v2815_v4, %v2814_v6  ;;  %v10209_v6 = vld [vmem:[#allocation70_spill] sm:$0xff]  ;;  %v10210_v4 = vld [vmem:[#allocation73_spill] sm:$0xff] }
0x110b   :  { %2882 = vmatmul.mubr.f32.vlgmr.msra.gmra.mrb[22].mxu0 %v9107_v10  ;;  %2953 = vmatmul.mubr.f32.vlgmr.msra.gmra.mrb[28].mxu1 %v9107_v10 }
0x110c   :  { %6731 = vmatpush1.bf16.msra.mxu0 %v7950_v15  ;;  %3163 = vmatprep.mubr.f32.mxu0 %v9966_v58 }
0x110d   :  { %6733 = vmatprep.subr.bf16.mxu0 %v7953_v16  ;;  %6706 = vmatpush3.bf16.msra.mxu1 %v8370_v50 }
0x110e   :  { %6707 = vmatprep.subr.bf16.mxu1 %v9975_v2  ;;  %5627 = vmatprep.mubr.msk.f32.mxu1 %vm7766_vm2, %v9966_v58 }
0x1110   :  { %6735 = vmatpush1.bf16.msra.mxu0 %v7957_v21 }
0x1111   :  { %6737 = vmatprep.subr.bf16.mxu0 %v7961_v22  ;;  %6709 = vmatpush3.bf16.msra.mxu1 %v8379_v49 }
0x1112   :  { %6710 = vmatprep.subr.bf16.mxu1 %v9975_v2 }
0x1114   :  { %6739 = vmatpush1.bf16.msra.mxu0 %v7966_v28 }
0x1115   :  { %6741 = vmatprep.subr.bf16.mxu0 %v7969_v29  ;;  %6712 = vmatpush3.bf16.msra.mxu1 %v8388_v60 }
0x1116   :  { %6713 = vmatprep.subr.bf16.mxu1 %v9975_v2 }
0x1118   :  { %6743 = vmatpush1.bf16.msra.mxu0 %v7975_v34 }
0x1119   :  { %6745 = vmatprep.subr.bf16.mxu0 %v7978_v35  ;;  %6715 = vmatpush3.bf16.msra.mxu1 %v8396_v54 }
0x111a   :  { %6716 = vmatprep.subr.bf16.mxu1 %v9975_v2 }
0x111c   :  { %6747 = vmatpush1.bf16.msra.mxu0 %v7981_v40 }
0x111d   :  { %6749 = vmatprep.subr.bf16.mxu0 %v7984_v41  ;;  %6718 = vmatpush3.bf16.msra.mxu1 %v8400_v0 }
0x111e   :  { %6719 = vmatprep.subr.bf16.mxu1 %v9975_v2 }
0x1120   :  { %6751 = vmatpush1.bf16.msra.mxu0 %v7987_v46 }
0x1121   :  { %6753 = vmatprep.subr.bf16.mxu0 %v7990_v47  ;;  %6721 = vmatpush3.bf16.msra.mxu1 %v8404_v51 }
0x1122   :  { %6722 = vmatprep.subr.bf16.mxu1 %v9975_v2 }
0x1124   :  { %6755 = vmatpush1.bf16.msra.mxu0 %v7993_v52 }
0x1125   :  { %6757 = vmatprep.subr.bf16.mxu0 %v7996_v53  ;;  %6724 = vmatpush3.bf16.msra.mxu1 %v8408_v61 }
0x1126   :  { %6725 = vmatprep.subr.bf16.mxu1 %v9975_v2 }
0x1128   :  { %6759 = vmatpush1.bf16.msra.mxu0 %v7999_v56 }
0x1129   :  { %6727 = vmatpush3.bf16.msra.mxu1 %v8412_v44  ;;  %6785 = vmatprep.subr.bf16.mxu0 %v8097_v1 }
0x112a   :  { %6760 = vmatprep.subr.bf16.mxu1 %v9975_v2 }
0x112b   :  { %3164 = vmatmul.mubr.f32.vlgmr.msra.gmra.mrb[24].mxu0 %v9107_v10 }
0x112c   :  { %6787 = vmatpush1.bf16.msra.mxu0 %v8099_v11 }
0x112d   :  { %6789 = vmatprep.subr.bf16.mxu0 %v8101_v14 }
0x1130   :  { %6791 = vmatpush1.bf16.msra.mxu0 %v8105_v20 }
0x1131   :  { %6793 = vmatprep.subr.bf16.mxu0 %v8108_v23 }
0x1134   :  { %6795 = vmatpush1.bf16.msra.mxu0 %v8111_v37 }
0x1135   :  { %6797 = vmatprep.subr.bf16.mxu0 %v8114_v13 }
0x1138   :  { %6799 = vmatpush1.bf16.msra.mxu0 %v8117_v57 }
0x1139   :  { %6801 = vmatprep.subr.bf16.mxu0 %v8120_v59 }
0x113c   :  { %6803 = vmatpush1.bf16.msra.mxu0 %v10189_v9 }
0x113d   :  { %6805 = vmatprep.subr.bf16.mxu0 %v10190_v43 }
0x1140   :  { %6807 = vmatpush1.bf16.msra.mxu0 %v10191_v12 }
0x1141   :  { %6809 = vmatprep.subr.bf16.mxu0 %v10192_v42 }
0x1144   :  { %6811 = vmatpush1.bf16.msra.mxu0 %v10193_v8 }
0x1145   :  { %6813 = vmatprep.subr.bf16.mxu0 %v10194_v3 }
0x1148   :  { %6815 = vmatpush1.bf16.msra.mxu0 %v10195_v25  ;;  %v10215_v25 = vld [vmem:[#allocation23_spill] sm:$0xff] }
0x1149   :  { %6817 = vmatprep.subr.bf16.mxu0 %v10196_v62 }
0x114c   :  { %6819 = vmatpush1.bf16.msra.mxu0 %v10197_v30  ;;  %v10214_v30 = vld [vmem:[#allocation78_spill] sm:$0xff] }
0x114d   :  { %6821 = vmatprep.subr.bf16.mxu0 %v10198_v55 }
0x1150   :  { %6823 = vmatpush1.bf16.msra.mxu0 %v10199_v7  ;;  %v10213_v7 = vld [vmem:[#allocation21_spill] sm:$0xff] }
0x1151   :  { %6825 = vmatprep.subr.bf16.mxu0 %v10200_v39 }
0x1154   :  { %6827 = vmatpush1.bf16.msra.mxu0 %v10201_v48  ;;  %v10212_v48 = vld [vmem:[#allocation20_spill] sm:$0xff] }
0x1155   :  { %6829 = vmatprep.subr.bf16.mxu0 %v10202_v45 }
0x1158   :  { %6831 = vmatpush1.bf16.msra.mxu0 %v10203_v19 }
0x1159   :  { %6833 = vmatprep.subr.bf16.mxu0 %v10204_v63 }
0x115c   :  { %6835 = vmatpush1.bf16.msra.mxu0 %v10205_v38 }
0x115d   :  { %6837 = vmatprep.subr.bf16.mxu0 %v10206_v26 }
0x1160   :  { %6839 = vmatpush1.bf16.msra.mxu0 %v10207_v5 }
0x1161   :  { %6841 = vmatprep.subr.bf16.mxu0 %v10208_v18 }
0x1164   :  { %6843 = vmatpush1.bf16.msra.mxu0 %v10209_v6 }
0x1165   :  { %6845 = vmatprep.subr.bf16.mxu0 %v10210_v4 }
0x1168   :  { %6847 = vmatpush1.bf16.msra.mxu0 %v10211_v31 }
0x1169   :  { %6905 = vmatprep.subr.bf16.mxu0 %v10212_v48 }
0x11de   :  { %v2883_v45 = vpop.f32.mrb[22].mxu0  ;;  %v5046_v19 = vpop.f32.mrb[28].mxu1 }
0x11df   :  { %v2885_v39 = vpop.f32.mrb[23].mxu0  ;;  %v5047_v63 = vpop.f32.mrb[29].mxu1  ;;  %v9185_v48 = vadd.f32 %v2883_v45, %v10214_v30 }
0x11e0   :  { %v2886_v38 = vadd.f32 %v2885_v39, %v10213_v7  ;;  %v9180_v55 = vadd.f32 %v5047_v63, %v5046_v19  ;;  %v10216_v63 = vld [vmem:[#allocation22_spill] sm:$0xff] }
0x11e1   :  { %v2958_v45 = vsel %vm500_vm1, %v9185_v48, 0.0 }
0x11e2   :  { %v2981_v5 = vsel %vm500_vm1, %v2886_v38, 0.0  ;;  %v2985_v26 = vmul.f32 %v2886_v38, %v2886_v38 }
0x11e3   :  { %2982 = vadd.xlane.f32.xlu0 %v2981_v5 }
0x11e4   :  { %v2986_v6 = vsel %vm500_vm1, %v2985_v26, 0.0  ;;  %v2962_v26 = vmul.f32 %v9185_v48, %v9185_v48 }
0x11e5   :  { %2987 = vadd.xlane.f32.xlu1 %v2986_v6 }
0x11fe   :  { %v3165_v4 = vpop.f32.mrb[24].mxu0 }
0x11ff   :  { %v3167_v18 = vpop.f32.mrb[25].mxu0  ;;  %v3171_v62 = vrot.slane %v3165_v4, 6 }
0x1200   :  { %v3198_v31 = vrot.slane %v3167_v18, 6  ;;  %v2963_v18 = vsel %vm500_vm1, %v2962_v26, 0.0 }
0x1201   :  { %v9190_v7 = vadd.f32 %v3171_v62, %v10216_v63 }
0x1202   :  { %v3200_v3 = vadd.f32 %v3198_v31, %v10215_v25 }
0x1203   :  { %v3178_v31 = vmul.f32 %v9190_v7, %v9190_v7  ;;  %v3174_v62 = vsel %vm1127_vm3, %v9190_v7, 0.0 }
0x1204   :  { %v3201_v39 = vsel %vm1127_vm3, %v3200_v3, 0.0  ;;  %v3205_v19 = vmul.f32 %v3200_v3, %v3200_v3 }
0x1205   :  { %3202 = vadd.xlane.f32.xlu0 %v3201_v39  ;;  %v3179_v6 = vsel %vm1127_vm3, %v3178_v31, 0.0  ;;  %v9212_v31 = vld [vmem:[%s9757_s11 + $0x1] ss:$0 sm:$0xff] }
0x1206   :  { %v3206_v5 = vsel %vm1127_vm3, %v3205_v19, 0.0  ;;  %10218 = vst [vmem:[#allocation79_spill] sm:$0xff] %v9212_v31 }
0x1207   :  { %3207 = vadd.xlane.f32.xlu1 %v3206_v5 }
0x1209   :  { %2959 = vadd.xlane.f32.xlu0 %v2958_v45 }
0x120b   :  { %2964 = vadd.xlane.f32.xlu1 %v2963_v18  ;;  %v9206_v18 = vld [vmem:[%s9756_s10 + $0x1] ss:$0 sm:$0xff] }
0x120c   :  { %10217 = vst [vmem:[#allocation24_spill] sm:$0xff] %v9206_v18 }
0x120d   :  { %3175 = vadd.xlane.f32.xlu0 %v3174_v62 }
0x120f   :  { %3180 = vadd.xlane.f32.xlu1 %v3179_v6 }
0x1270   :  { %v2983_v4 = vpop.xlane.xlu0 %2982 }
0x1271   :  { %v2984_v39 = vmul.f32 0.03125, %v2983_v4 }
0x1272   :  { %v2988_v19 = vpop.xlane.xlu1 %2987 }
0x1273   :  { %v2990_v5 = vmul.f32 %v2984_v39, %v2984_v39  ;;  %v2989_v63 = vmul.f32 0.03125, %v2988_v19  ;;  %v2992_v26 = vsub.f32 %v2886_v38, %v2984_v39 }
0x1275   :  { %v2991_v25 = vsub.f32 %v2989_v63, %v2990_v5 }
0x1277   :  { %v2993_v45 = vadd.f32 1e-05, %v2991_v25 }
0x1279   :  { %7417 = vrsqrt.f32 %v2993_v45 }
0x1283   :  { %v7418_v30 = vpop.eup %7417 }
0x1284   :  { %v2995_v8 = vmul.f32 %v7418_v30, %v2992_v26 }
0x1286   :  { %v2996_v62 = vmul.f32 %v9206_v18, %v2995_v8 }
0x1288   :  { %v2997_v6 = vadd.f32 %v9212_v31, %v2996_v62 }
0x128a   :  { %v4704_v63 = vmul.f32 -1.442695, %v2997_v6  ;;  %v10219_v6 = vld [vmem:[#allocation26_spill] sm:$0xff] }
0x128c   :  { %7419 = vpow2.f32 %v4704_v63  ;;  %v10220_v63 = vld [vmem:[#allocation80_spill] sm:$0xff] }
0x1292   :  { %v3203_v25 = vpop.xlane.xlu0 %3202 }
0x1293   :  { %v3204_v38 = vmul.f32 0.03125, %v3203_v25 }
0x1294   :  { %v3208_v4 = vpop.xlane.xlu1 %3207 }
0x1295   :  { %v3210_v30 = vmul.f32 %v3204_v38, %v3204_v38  ;;  %v3209_v39 = vmul.f32 0.03125, %v3208_v4  ;;  %v3212_v18 = vsub.f32 %v3200_v3, %v3204_v38  ;;  %v10222_v3 = vld [vmem:[#allocation28_spill] sm:$0xff] }
0x1296   :  { %v7420_v19 = vpop.eup %7419  ;;  %v10226_v38 = vld [vmem:[#allocation32_spill] sm:$0xff] }
0x1297   :  { %v3211_v5 = vsub.f32 %v3209_v39, %v3210_v30  ;;  %v3001_v45 = vadd.f32 1.0, %v7420_v19  ;;  %v10221_v30 = vld [vmem:[#allocation27_spill] sm:$0xff]  ;;  %v10227_v39 = vld [vmem:[#allocation33_spill] sm:$0xff]  ;;  %v9899_v19 = vrot.slane %v9107_v10, 6 }
0x1299   :  { %v3213_v26 = vadd.f32 1e-05, %v3211_v5  ;;  %7421 = vrcp.f32 %v3001_v45  ;;  %v10228_v45 = vld [vmem:[#allocation47_spill] sm:$0xff] }
0x129b   :  { %7423 = vrsqrt.f32 %v3213_v26 }
0x12a3   :  { %v7422_v8 = vpop.eup %7421 }
0x12a4   :  { %v3004_v12 = vmul.f32 %v7422_v8, %v9089_v27 }
0x12a5   :  { %v7424_v42 = vpop.eup %7423 }
0x12a6   :  { %v3215_v43 = vmul.f32 %v7424_v42, %v3212_v18  ;;  %5628 = vmatmul.mubr.f32.vlgmr.msra.gmra.mrb[30].mxu1 %v3004_v12  ;;  %v10224_v12 = vld [vmem:[#allocation30_spill] sm:$0xff]  ;;  %v10225_v18 = vld [vmem:[#allocation31_spill] sm:$0xff] }
0x12a7   :  { %6762 = vmatpush3.bf16.msra.mxu1 %v10219_v6  ;;  %5662 = vmatprep.mubr.msk.f32.mxu1 %vm7766_vm2, %v9966_v58 }
0x12a8   :  { %v3216_v62 = vmul.f32 %v9014_v24, %v3215_v43  ;;  %6763 = vmatprep.subr.bf16.mxu1 %v9975_v2  ;;  %v10223_v24 = vld [vmem:[#allocation29_spill] sm:$0xff] }
0x12aa   :  { %v3217_v25 = vadd.f32 %v10220_v63, %v3216_v62  ;;  %v10229_v62 = vld [vmem:[#allocation48_spill] sm:$0xff]  ;;  %v10230_v63 = vld [vmem:[#allocation51_spill] sm:$0xff] }
0x12ab   :  { %6765 = vmatpush3.bf16.msra.mxu1 %v10221_v30 }
0x12ac   :  { %v4706_v4 = vmul.f32 -1.442695, %v3217_v25  ;;  %6766 = vmatprep.subr.bf16.mxu1 %v9975_v2  ;;  %v10231_v25 = vld [vmem:[#allocation52_spill] sm:$0xff] }
0x12ae   :  { %7425 = vpow2.f32 %v4706_v4  ;;  %v10232_v4 = vld [vmem:[#allocation55_spill] sm:$0xff] }
0x12af   :  { %6768 = vmatpush3.bf16.msra.mxu1 %v10222_v3 }
0x12b0   :  { %6769 = vmatprep.subr.bf16.mxu1 %v9975_v2 }
0x12b3   :  { %6771 = vmatpush3.bf16.msra.mxu1 %v10223_v24 }
0x12b4   :  { %6772 = vmatprep.subr.bf16.mxu1 %v9975_v2 }
0x12b7   :  { %6774 = vmatpush3.bf16.msra.mxu1 %v10224_v12  ;;  %v9271_v12 = vld [vmem:[%s9756_s10] ss:$0 sm:$0xff] }
0x12b8   :  { %v7426_v43 = vpop.eup %7425  ;;  %6775 = vmatprep.subr.bf16.mxu1 %v9975_v2  ;;  %10246 = vst [vmem:[#allocation80_spill] sm:$0xff] %v9271_v12 }
0x12b9   :  { %v3221_v42 = vadd.f32 1.0, %v7426_v43  ;;  %v10233_v43 = vld [vmem:[#allocation56_spill] sm:$0xff] }
0x12bb   :  { %7427 = vrcp.f32 %v3221_v42  ;;  %6777 = vmatpush3.bf16.msra.mxu1 %v10225_v18  ;;  %v10234_v42 = vld [vmem:[#allocation59_spill] sm:$0xff] }
0x12bc   :  { %6778 = vmatprep.subr.bf16.mxu1 %v9975_v2 }
0x12bf   :  { %6780 = vmatpush3.bf16.msra.mxu1 %v10226_v38  ;;  %v10237_v38 = vld [vmem:[#allocation64_spill] sm:$0xff] }
0x12c0   :  { %6781 = vmatprep.subr.bf16.mxu1 %v9975_v2 }
0x12c3   :  { %6783 = vmatpush3.bf16.msra.mxu1 %v10227_v39  ;;  %v10235_v39 = vld [vmem:[#allocation60_spill] sm:$0xff] }
0x12c4   :  { %6849 = vmatprep.subr.bf16.mxu1 %v10228_v45  ;;  %v10236_v45 = vld [vmem:[#allocation63_spill] sm:$0xff] }
0x12c5   :  { %v7428_v5 = vpop.eup %7427 }
0x12c6   :  { %v3227_v26 = vmul.f32 %v7428_v5, %v9899_v19  ;;  %v10238_v5 = vld [vmem:[#allocation67_spill] sm:$0xff]  ;;  %v10241_v19 = vld [vmem:[#allocation72_spill] sm:$0xff] }
0x12c8   :  { %v3229_v8 = vrot.slane %v3227_v26, 2  ;;  %v10239_v26 = vld [vmem:[#allocation68_spill] sm:$0xff] }
0x12ca   :  { %5663 = vmatmul.mubr.f32.vlgmr.msra.gmra.mrb[32].mxu1 %v3229_v8  ;;  %v10240_v8 = vld [vmem:[#allocation71_spill] sm:$0xff] }
0x12cb   :  { %6851 = vmatpush3.bf16.msra.mxu1 %v10229_v62  ;;  %v10245_v62 = vld [vmem:[#allocation36_spill] sm:$0xff] }
0x12cc   :  { %6853 = vmatprep.subr.bf16.mxu1 %v10230_v63 }
0x12cf   :  { %6855 = vmatpush3.bf16.msra.mxu1 %v10231_v25  ;;  %v10242_v25 = vld [vmem:[#allocation75_spill] sm:$0xff] }
0x12d0   :  { %6857 = vmatprep.subr.bf16.mxu1 %v10232_v4  ;;  %v10243_v4 = vld [vmem:[#allocation76_spill] sm:$0xff] }
0x12d3   :  { %6859 = vmatpush3.bf16.msra.mxu1 %v10233_v43 }
0x12d4   :  { %6861 = vmatprep.subr.bf16.mxu1 %v10234_v42  ;;  %v10244_v42 = vld [vmem:[#allocation34_spill] sm:$0xff] }
0x12d7   :  { %6863 = vmatpush3.bf16.msra.mxu1 %v10235_v39  ;;  %v2955_v39 = vadd.f32 %v9180_v55, %v10244_v42 }
0x12d8   :  { %6865 = vmatprep.subr.bf16.mxu1 %v10236_v45 }
0x12db   :  { %6867 = vmatpush3.bf16.msra.mxu1 %v10237_v38 }
0x12dc   :  { %6869 = vmatprep.subr.bf16.mxu1 %v10238_v5 }
0x12df   :  { %6871 = vmatpush3.bf16.msra.mxu1 %v10239_v26 }
0x12e0   :  { %6873 = vmatprep.subr.bf16.mxu1 %v10240_v8 }
0x12e3   :  { %6875 = vmatpush3.bf16.msra.mxu1 %v10241_v19 }
0x12e4   :  { %6877 = vmatprep.subr.bf16.mxu1 %v10242_v25 }
0x12e7   :  { %6879 = vmatpush3.bf16.msra.mxu1 %v10243_v4 }
0x12e8   :  { %6880 = vmatprep.subr.bf16.mxu1 %v9975_v2 }
0x1379   :  { %v3071_v45 = vpop.f32.mrb[30].mxu1 }
0x137a   :  { %v3075_v43 = vadd.f32 %v3071_v45, %v2955_v39  ;;  %v5629_v38 = vpop.f32.mrb[31].mxu1  ;;  %v2960_v39 = vpop.xlane.xlu0 %2959 }
0x137b   :  { %v2961_v45 = vmul.f32 0.03125, %v2960_v39 }
0x137c   :  { %v3076_v5 = vsel %vm500_vm1, %v3075_v43, 0.0  ;;  %v3080_v63 = vmul.f32 %v3075_v43, %v3075_v43 }
0x137d   :  { %3077 = vadd.xlane.f32.xlu0 %v3076_v5  ;;  %v2967_v5 = vmul.f32 %v2961_v45, %v2961_v45 }
0x137e   :  { %v3081_v8 = vsel %vm500_vm1, %v3080_v63, 0.0  ;;  %v2965_v63 = vpop.xlane.xlu1 %2964 }
0x137f   :  { %3082 = vadd.xlane.f32.xlu1 %v3081_v8  ;;  %v2966_v8 = vmul.f32 0.03125, %v2965_v63 }
0x139d   :  { %v3297_v19 = vpop.f32.mrb[32].mxu1 }
0x139e   :  { %v3302_v26 = vrot.slane %v3297_v19, 6  ;;  %v5664_v25 = vpop.f32.mrb[33].mxu1  ;;  %v2968_v19 = vsub.f32 %v2966_v8, %v2967_v5  ;;  %v3181_v5 = vpop.xlane.xlu1 %3180 }
0x13a0   :  { %v9260_v4 = vadd.f32 %v3302_v26, %v10245_v62  ;;  %v2970_v25 = vadd.f32 1e-05, %v2968_v19  ;;  %v2969_v62 = vsub.f32 %v9185_v48, %v2961_v45 }
0x13a2   :  { %v3305_v18 = vsel %vm1127_vm3, %v9260_v4, 0.0  ;;  %v3309_v55 = vmul.f32 %v9260_v4, %v9260_v4  ;;  %7429 = vrsqrt.f32 %v2970_v25 }
0x13a3   :  { %3306 = vadd.xlane.f32.xlu0 %v3305_v18 }
0x13a4   :  { %v3310_v38 = vsel %vm1127_vm3, %v3309_v55, 0.0  ;;  %v3176_v55 = vpop.xlane.xlu0 %3175 }
0x13a5   :  { %3311 = vadd.xlane.f32.xlu1 %v3310_v38  ;;  %v9277_v38 = vld [vmem:[%s9757_s11] ss:$0 sm:$0xff]  ;;  %v3177_v63 = vmul.f32 0.03125, %v3176_v55 }
0x13a6   :  { %10247 = vst [vmem:[#allocation81_spill] sm:$0xff] %v9277_v38 }
0x13a7   :  { %v3183_v48 = vmul.f32 %v3177_v63, %v3177_v63 }
0x13ac   :  { %v7430_v26 = vpop.eup %7429 }
0x13ad   :  { %v2972_v42 = vmul.f32 %v7430_v26, %v2969_v62  ;;  %v3182_v62 = vmul.f32 0.03125, %v3181_v5  ;;  %v3185_v5 = vsub.f32 %v9190_v7, %v3177_v63 }
0x13af   :  { %v2973_v18 = vmul.f32 %v9271_v12, %v2972_v42  ;;  %v3184_v26 = vsub.f32 %v3182_v62, %v3183_v48 }
0x13b1   :  { %v2974_v39 = vadd.f32 %v9277_v38, %v2973_v18  ;;  %v3186_v3 = vadd.f32 1e-05, %v3184_v26 }
0x13b3   :  { %v4703_v8 = vmul.f32 -1.442695, %v2974_v39 }
0x13b5   :  { %7431 = vpow2.f32 %v4703_v8  ;;  %v9284_v8 = vld [vmem:[%s9756_s10 + $0x2] ss:$0 sm:$0xff] }
0x13bf   :  { %v7432_v6 = vpop.eup %7431 }
0x13c0   :  { %v2978_v31 = vadd.f32 1.0, %v7432_v6 }
0x140a   :  { %v3078_v45 = vpop.xlane.xlu0 %3077 }
0x140b   :  { %v3079_v19 = vmul.f32 0.03125, %v3078_v45 }
0x140c   :  { %v3083_v25 = vpop.xlane.xlu1 %3082 }
0x140d   :  { %v3085_v24 = vmul.f32 %v3079_v19, %v3079_v19  ;;  %v3084_v42 = vmul.f32 0.03125, %v3083_v25  ;;  %v3087_v18 = vsub.f32 %v3075_v43, %v3079_v19 }
0x140f   :  { %v3086_v12 = vsub.f32 %v3084_v42, %v3085_v24 }
0x1411   :  { %v3088_v30 = vadd.f32 1e-05, %v3086_v12 }
0x1413   :  { %7433 = vrsqrt.f32 %v3088_v30  ;;  %v9290_v30 = vld [vmem:[%s9757_s11 + $0x2] ss:$0 sm:$0xff] }
0x1414   :  { %7435 = vrsqrt.f32 %v3186_v3 }
0x1415   :  { %7437 = vrcp.f32 %v2978_v31 }
0x141d   :  { %v7434_v55 = vpop.eup %7433 }
0x141e   :  { %v3090_v39 = vmul.f32 %v7434_v55, %v3087_v18  ;;  %v7436_v38 = vpop.eup %7435 }
0x141f   :  { %v3188_v48 = vmul.f32 %v7436_v38, %v3185_v5  ;;  %v7438_v3 = vpop.eup %7437 }
0x1420   :  { %v3091_v24 = vmul.f32 %v9284_v8, %v3090_v39  ;;  %v3094_v12 = vsub.f32 1.0, %v7438_v3 }
0x1421   :  { %v3189_v31 = vmul.f32 %v9078_v36, %v3188_v48 }
0x1422   :  { %v3092_v6 = vadd.f32 %v9290_v30, %v3091_v24  ;;  %v3095_v45 = vmul.f32 %v3094_v12, %v9089_v27 }
0x1423   :  { %v3190_v7 = vadd.f32 %v9085_v33, %v3189_v31 }
0x1424   :  { %7439 = vtanh.f32 %v3092_v6 }
0x1425   :  { %v4705_v63 = vmul.f32 -1.442695, %v3190_v7 }
0x1427   :  { %7441 = vpow2.f32 %v4705_v63 }
0x142e   :  { %v7440_v43 = vpop.eup %7439 }
0x142f   :  { %v3096_v38 = vmul.f32 %v7440_v43, %v7438_v3 }
0x1430   :  { %v3307_v62 = vpop.xlane.xlu0 %3306 }
0x1431   :  { %v3308_v19 = vmul.f32 0.03125, %v3307_v62  ;;  %v9296_v26 = vadd.f32 %v3096_v38, %v3095_v45  ;;  %v7442_v33 = vpop.eup %7441  ;;  %v10248_v62 = vrot.slane %v9107_v10, 6  ;;  %v10251_v10 = vld [vmem:[#allocation40_spill] sm:$0xff] }
0x1432   :  { %v3312_v25 = vpop.xlane.xlu1 %3311  ;;  %v3194_v24 = vadd.f32 1.0, %v7442_v33  ;;  %v10259_v33 = vld [vmem:[#allocation53_spill] sm:$0xff] }
0x1433   :  { %v3314_v42 = vmul.f32 %v3308_v19, %v3308_v19  ;;  %v3313_v18 = vmul.f32 0.03125, %v3312_v25  ;;  %v3328_v55 = vrot.slane %v9296_v26, 6  ;;  %v3316_v48 = vsub.f32 %v9260_v4, %v3308_v19  ;;  %v10252_v4 = vld [vmem:[#allocation42_spill] sm:$0xff]  ;;  %v10253_v19 = vld [vmem:[#allocation43_spill] sm:$0xff] }
0x1435   :  { %v3315_v36 = vsub.f32 %v3313_v18, %v3314_v42  ;;  %v3331_v39 = vrot.slane %v3328_v55, 2  ;;  %v10254_v18 = vld [vmem:[#allocation44_spill] sm:$0xff]  ;;  %v10255_v55 = vld [vmem:[#allocation45_spill] sm:$0xff] }
0x1437   :  { %v3317_v5 = vadd.f32 1e-05, %v3315_v36  ;;  %3398 = vmatprep.mubr.f32.mxu0 %v3331_v39  ;;  %3469 = vmatprep.mubr.f32.mxu1 %v3331_v39  ;;  %v10256_v36 = vld [vmem:[#allocation46_spill] sm:$0xff]  ;;  %v10257_v39 = vld [vmem:[#allocation49_spill] sm:$0xff] }
0x1439   :  { %7443 = vrsqrt.f32 %v3317_v5  ;;  %v10258_v5 = vld [vmem:[#allocation50_spill] sm:$0xff] }
0x143a   :  { %7445 = vrcp.f32 %v3194_v24  ;;  %v10260_v24 = vld [vmem:[#allocation54_spill] sm:$0xff] }
0x1443   :  { %v7444_v6 = vpop.eup %7443 }
0x1444   :  { %v3319_v31 = vmul.f32 %v7444_v6, %v3316_v48  ;;  %v7446_v12 = vpop.eup %7445  ;;  %v10261_v48 = vld [vmem:[#allocation57_spill] sm:$0xff]  ;;  %v10262_v6 = vld [vmem:[#allocation58_spill] sm:$0xff] }
0x1445   :  { %v3323_v43 = vsub.f32 1.0, %v7446_v12 }
0x1446   :  { %v3320_v3 = vmul.f32 %v9097_v32, %v3319_v31  ;;  %v10249_v32 = vld [vmem:[#allocation38_spill] sm:$0xff]  ;;  %v10263_v31 = vld [vmem:[#allocation61_spill] sm:$0xff] }
0x1447   :  { %v3324_v45 = vmul.f32 %v3323_v43, %v10248_v62  ;;  %v10267_v43 = vld [vmem:[#allocation69_spill] sm:$0xff] }
0x1448   :  { %v3321_v7 = vadd.f32 %v9103_v17, %v3320_v3  ;;  %v10250_v17 = vld [vmem:[#allocation39_spill] sm:$0xff]  ;;  %v10264_v3 = vld [vmem:[#allocation62_spill] sm:$0xff]  ;;  %v10269_v62 = vld [vmem:[#allocation73_spill] sm:$0xff] }
0x144a   :  { %7447 = vtanh.f32 %v3321_v7  ;;  %v10265_v7 = vld [vmem:[#allocation65_spill] sm:$0xff] }
0x1454   :  { %v7448_v63 = vpop.eup %7447 }
0x1455   :  { %v3325_v38 = vmul.f32 %v7448_v63, %v7446_v12  ;;  %v10266_v12 = vld [vmem:[#allocation66_spill] sm:$0xff] }
0x1456   :  { %v10268_v63 = vld [vmem:[#allocation70_spill] sm:$0xff] }
0x1457   :  { %v9304_v25 = vadd.f32 %v3325_v38, %v3324_v45  ;;  %v10270_v45 = vld [vmem:[#allocation74_spill] sm:$0xff]  ;;  %v10271_v38 = vld [vmem:[#allocation20_spill] sm:$0xff] }
0x1459   :  { %v3330_v42 = vrot.slane %v9304_v25, 2 }
0x145b   :  { %3399 = vmatmul.mubr.f32.vlgmr.msra.gmra.mrb[26].mxu0 %v3330_v42  ;;  %3470 = vmatmul.mubr.f32.vlgmr.msra.gmra.mrb[34].mxu1 %v3330_v42 }
0x145c   :  { %6907 = vmatpush1.bf16.msra.mxu0 %v7950_v15  ;;  %3680 = vmatprep.mubr.f32.mxu0 %v9966_v58 }
0x145d   :  { %6909 = vmatprep.subr.bf16.mxu0 %v7953_v16  ;;  %6882 = vmatpush3.bf16.msra.mxu1 %v8370_v50 }
0x145e   :  { %6883 = vmatprep.subr.bf16.mxu1 %v9975_v2  ;;  %5697 = vmatprep.mubr.msk.f32.mxu1 %vm7766_vm2, %v9966_v58 }
0x1460   :  { %6911 = vmatpush1.bf16.msra.mxu0 %v7957_v21 }
0x1461   :  { %6913 = vmatprep.subr.bf16.mxu0 %v7961_v22  ;;  %6885 = vmatpush3.bf16.msra.mxu1 %v8379_v49 }
0x1462   :  { %6886 = vmatprep.subr.bf16.mxu1 %v9975_v2 }
0x1464   :  { %6915 = vmatpush1.bf16.msra.mxu0 %v7966_v28 }
0x1465   :  { %6917 = vmatprep.subr.bf16.mxu0 %v7969_v29  ;;  %6888 = vmatpush3.bf16.msra.mxu1 %v8388_v60 }
0x1466   :  { %6889 = vmatprep.subr.bf16.mxu1 %v9975_v2 }
0x1468   :  { %6919 = vmatpush1.bf16.msra.mxu0 %v7975_v34 }
0x1469   :  { %6921 = vmatprep.subr.bf16.mxu0 %v7978_v35  ;;  %6891 = vmatpush3.bf16.msra.mxu1 %v8396_v54 }
0x146a   :  { %6892 = vmatprep.subr.bf16.mxu1 %v9975_v2 }
0x146c   :  { %6923 = vmatpush1.bf16.msra.mxu0 %v7981_v40 }
0x146d   :  { %6925 = vmatprep.subr.bf16.mxu0 %v7984_v41  ;;  %6894 = vmatpush3.bf16.msra.mxu1 %v8400_v0 }
0x146e   :  { %6895 = vmatprep.subr.bf16.mxu1 %v9975_v2 }
0x1470   :  { %6927 = vmatpush1.bf16.msra.mxu0 %v7987_v46 }
0x1471   :  { %6929 = vmatprep.subr.bf16.mxu0 %v7990_v47  ;;  %6897 = vmatpush3.bf16.msra.mxu1 %v8404_v51 }
0x1472   :  { %6898 = vmatprep.subr.bf16.mxu1 %v9975_v2 }
0x1474   :  { %6931 = vmatpush1.bf16.msra.mxu0 %v7993_v52 }
0x1475   :  { %6933 = vmatprep.subr.bf16.mxu0 %v7996_v53  ;;  %6900 = vmatpush3.bf16.msra.mxu1 %v8408_v61 }
0x1476   :  { %6901 = vmatprep.subr.bf16.mxu1 %v9975_v2 }
0x1478   :  { %6935 = vmatpush1.bf16.msra.mxu0 %v7999_v56 }
0x1479   :  { %6903 = vmatpush3.bf16.msra.mxu1 %v8412_v44  ;;  %6961 = vmatprep.subr.bf16.mxu0 %v8097_v1 }
0x147a   :  { %6936 = vmatprep.subr.bf16.mxu1 %v9975_v2 }
0x147b   :  { %3681 = vmatmul.mubr.f32.vlgmr.msra.gmra.mrb[28].mxu0 %v3330_v42 }
0x147c   :  { %6963 = vmatpush1.bf16.msra.mxu0 %v8099_v11 }
0x147d   :  { %6965 = vmatprep.subr.bf16.mxu0 %v8101_v14 }
0x1480   :  { %6967 = vmatpush1.bf16.msra.mxu0 %v8105_v20 }
0x1481   :  { %6969 = vmatprep.subr.bf16.mxu0 %v8108_v23 }
0x1484   :  { %6971 = vmatpush1.bf16.msra.mxu0 %v8111_v37 }
0x1485   :  { %6973 = vmatprep.subr.bf16.mxu0 %v8114_v13 }
0x1488   :  { %6975 = vmatpush1.bf16.msra.mxu0 %v8117_v57 }
0x1489   :  { %6977 = vmatprep.subr.bf16.mxu0 %v8120_v59 }
0x148c   :  { %6979 = vmatpush1.bf16.msra.mxu0 %v10189_v9 }
0x148d   :  { %6981 = vmatprep.subr.bf16.mxu0 %v10249_v32 }
0x1490   :  { %6983 = vmatpush1.bf16.msra.mxu0 %v10250_v17 }
0x1491   :  { %6985 = vmatprep.subr.bf16.mxu0 %v10251_v10 }
0x1494   :  { %6987 = vmatpush1.bf16.msra.mxu0 %v10252_v4 }
0x1495   :  { %6989 = vmatprep.subr.bf16.mxu0 %v10253_v19  ;;  %v10277_v19 = vld [vmem:[#allocation79_spill] sm:$0xff] }
0x1498   :  { %6991 = vmatpush1.bf16.msra.mxu0 %v10254_v18  ;;  %v10276_v18 = vld [vmem:[#allocation24_spill] sm:$0xff] }
0x1499   :  { %6993 = vmatprep.subr.bf16.mxu0 %v10255_v55 }
0x149c   :  { %6995 = vmatpush1.bf16.msra.mxu0 %v10256_v36 }
0x149d   :  { %6997 = vmatprep.subr.bf16.mxu0 %v10257_v39  ;;  %v10274_v39 = vld [vmem:[#allocation23_spill] sm:$0xff] }
0x14a0   :  { %6999 = vmatpush1.bf16.msra.mxu0 %v10258_v5 }
0x14a1   :  { %7001 = vmatprep.subr.bf16.mxu0 %v10259_v33  ;;  %v10273_v33 = vld [vmem:[#allocation78_spill] sm:$0xff] }
0x14a4   :  { %7003 = vmatpush1.bf16.msra.mxu0 %v10260_v24 }
0x14a5   :  { %7005 = vmatprep.subr.bf16.mxu0 %v10261_v48  ;;  %v10272_v48 = vld [vmem:[#allocation21_spill] sm:$0xff] }
0x14a8   :  { %7007 = vmatpush1.bf16.msra.mxu0 %v10262_v6 }
0x14a9   :  { %7009 = vmatprep.subr.bf16.mxu0 %v10263_v31 }
0x14ac   :  { %7011 = vmatpush1.bf16.msra.mxu0 %v10264_v3 }
0x14ad   :  { %7013 = vmatprep.subr.bf16.mxu0 %v10265_v7 }
0x14b0   :  { %7015 = vmatpush1.bf16.msra.mxu0 %v10266_v12 }
0x14b1   :  { %7017 = vmatprep.subr.bf16.mxu0 %v10267_v43 }
0x14b4   :  { %7019 = vmatpush1.bf16.msra.mxu0 %v10268_v63 }
0x14b5   :  { %7021 = vmatprep.subr.bf16.mxu0 %v10269_v62 }
0x14b8   :  { %7023 = vmatpush1.bf16.msra.mxu0 %v10270_v45 }
0x14b9   :  { %7081 = vmatprep.subr.bf16.mxu0 %v10271_v38 }
0x152e   :  { %v3400_v42 = vpop.f32.mrb[26].mxu0  ;;  %v5115_v27 = vpop.f32.mrb[34].mxu1 }
0x152f   :  { %v3402_v6 = vpop.f32.mrb[27].mxu0  ;;  %v5116_v31 = vpop.f32.mrb[35].mxu1  ;;  %v9380_v38 = vadd.f32 %v3400_v42, %v10273_v33 }
0x1530   :  { %v3403_v3 = vadd.f32 %v3402_v6, %v10272_v48  ;;  %v9375_v24 = vadd.f32 %v5116_v31, %v5115_v27  ;;  %v10275_v31 = vld [vmem:[#allocation22_spill] sm:$0xff] }
0x1532   :  { %v3498_v12 = vsel %vm500_vm1, %v3403_v3, 0.0  ;;  %v3502_v7 = vmul.f32 %v3403_v3, %v3403_v3 }
0x1533   :  { %3499 = vadd.xlane.f32.xlu0 %v3498_v12 }
0x1534   :  { %v3503_v63 = vsel %vm500_vm1, %v3502_v7, 0.0  ;;  %v3479_v7 = vmul.f32 %v9380_v38, %v9380_v38 }
0x1535   :  { %3504 = vadd.xlane.f32.xlu1 %v3503_v63 }
0x1536   :  { %v3480_v63 = vsel %vm500_vm1, %v3479_v7, 0.0 }
0x154e   :  { %v3682_v62 = vpop.f32.mrb[28].mxu0 }
0x154f   :  { %v3684_v43 = vpop.f32.mrb[29].mxu0  ;;  %v3688_v5 = vrot.slane %v3682_v62, 4 }
0x1550   :  { %v3715_v45 = vrot.slane %v3684_v43, 4  ;;  %v3475_v43 = vsel %vm500_vm1, %v9380_v38, 0.0 }
0x1551   :  { %v9385_v48 = vadd.f32 %v3688_v5, %v10275_v31 }
0x1552   :  { %v3717_v36 = vadd.f32 %v3715_v45, %v10274_v39 }
0x1553   :  { %v3695_v62 = vmul.f32 %v9385_v48, %v9385_v48  ;;  %v3691_v5 = vsel %vm1645_vm4, %v9385_v48, 0.0 }
0x1554   :  { %v3718_v6 = vsel %vm1645_vm4, %v3717_v36, 0.0  ;;  %v3722_v27 = vmul.f32 %v3717_v36, %v3717_v36 }
0x1555   :  { %3719 = vadd.xlane.f32.xlu0 %v3718_v6  ;;  %v3696_v45 = vsel %vm1645_vm4, %v3695_v62, 0.0 }
0x1556   :  { %v3723_v12 = vsel %vm1645_vm4, %v3722_v27, 0.0 }
0x1557   :  { %3724 = vadd.xlane.f32.xlu1 %v3723_v12 }
0x1559   :  { %3476 = vadd.xlane.f32.xlu0 %v3475_v43 }
0x155b   :  { %3481 = vadd.xlane.f32.xlu1 %v3480_v63 }
0x155d   :  { %3692 = vadd.xlane.f32.xlu0 %v3691_v5 }
0x155f   :  { %3697 = vadd.xlane.f32.xlu1 %v3696_v45 }
0x15c0   :  { %v3500_v42 = vpop.xlane.xlu0 %3499 }
0x15c1   :  { %v3501_v6 = vmul.f32 0.03125, %v3500_v42 }
0x15c2   :  { %v3505_v27 = vpop.xlane.xlu1 %3504 }
0x15c3   :  { %v3507_v12 = vmul.f32 %v3501_v6, %v3501_v6  ;;  %v3506_v31 = vmul.f32 0.03125, %v3505_v27  ;;  %v3509_v7 = vsub.f32 %v3403_v3, %v3501_v6  ;;  %v10281_v6 = vld [vmem:[#allocation28_spill] sm:$0xff] }
0x15c5   :  { %v3508_v39 = vsub.f32 %v3506_v31, %v3507_v12  ;;  %v10282_v12 = vld [vmem:[#allocation29_spill] sm:$0xff] }
0x15c7   :  { %v3510_v43 = vadd.f32 1e-05, %v3508_v39 }
0x15c9   :  { %7449 = vrsqrt.f32 %v3510_v43 }
0x15d3   :  { %v7450_v33 = vpop.eup %7449 }
0x15d4   :  { %v3512_v55 = vmul.f32 %v7450_v33, %v3509_v7  ;;  %v10283_v7 = vld [vmem:[#allocation30_spill] sm:$0xff] }
0x15d6   :  { %v3513_v63 = vmul.f32 %v10276_v18, %v3512_v55 }
0x15d8   :  { %v3514_v4 = vadd.f32 %v10277_v19, %v3513_v63  ;;  %v10278_v19 = vld [vmem:[#allocation26_spill] sm:$0xff] }
0x15da   :  { %v4708_v10 = vmul.f32 -1.442695, %v3514_v4 }
0x15dc   :  { %7451 = vpow2.f32 %v4708_v10  ;;  %v9404_v10 = vld [vmem:[%s9751_s5 + $0x1] ss:$0 sm:$0xff] }
0x15e2   :  { %v3720_v5 = vpop.xlane.xlu0 %3719 }
0x15e3   :  { %v3721_v62 = vmul.f32 0.03125, %v3720_v5  ;;  %v10284_v5 = vld [vmem:[#allocation31_spill] sm:$0xff] }
0x15e4   :  { %v3725_v45 = vpop.xlane.xlu1 %3724 }
0x15e5   :  { %v3727_v17 = vmul.f32 %v3721_v62, %v3721_v62  ;;  %v3726_v42 = vmul.f32 0.03125, %v3725_v45  ;;  %v3729_v3 = vsub.f32 %v3717_v36, %v3721_v62  ;;  %v10280_v36 = vld [vmem:[#allocation27_spill] sm:$0xff]  ;;  %v10285_v62 = vld [vmem:[#allocation32_spill] sm:$0xff]  ;;  %v10286_v45 = vld [vmem:[#allocation33_spill] sm:$0xff] }
0x15e6   :  { %v7452_v32 = vpop.eup %7451 }
0x15e7   :  { %v3728_v9 = vsub.f32 %v3726_v42, %v3727_v17  ;;  %v3518_v27 = vadd.f32 1.0, %v7452_v32  ;;  %v9905_v42 = vrot.slane %v9304_v25, 6 }
0x15e9   :  { %v3730_v31 = vadd.f32 1e-05, %v3728_v9  ;;  %7453 = vrcp.f32 %v3518_v27  ;;  %v9414_v9 = vld [vmem:[%s9752_s6 + $0x1] ss:$0 sm:$0xff] }
0x15ea   :  { %10279 = vst [vmem:[#allocation20_spill] sm:$0xff] %v9414_v9 }
0x15eb   :  { %7455 = vrsqrt.f32 %v3730_v31  ;;  %v10287_v31 = vld [vmem:[#allocation47_spill] sm:$0xff] }
0x15f3   :  { %v7454_v39 = vpop.eup %7453 }
0x15f4   :  { %v3521_v18 = vmul.f32 %v7454_v39, %v9296_v26 }
0x15f5   :  { %v7456_v33 = vpop.eup %7455 }
0x15f6   :  { %v3732_v55 = vmul.f32 %v7456_v33, %v3729_v3  ;;  %5698 = vmatmul.mubr.f32.vlgmr.msra.gmra.mrb[36].mxu1 %v3521_v18  ;;  %v10288_v33 = vld [vmem:[#allocation48_spill] sm:$0xff]  ;;  %v10289_v18 = vld [vmem:[#allocation51_spill] sm:$0xff] }
0x15f7   :  { %6938 = vmatpush3.bf16.msra.mxu1 %v10278_v19  ;;  %5732 = vmatprep.mubr.msk.f32.mxu1 %vm7766_vm2, %v9966_v58 }
0x15f8   :  { %v3733_v4 = vmul.f32 %v9404_v10, %v3732_v55  ;;  %6939 = vmatprep.subr.bf16.mxu1 %v9975_v2  ;;  %v10290_v55 = vld [vmem:[#allocation52_spill] sm:$0xff] }
0x15fa   :  { %v3734_v32 = vadd.f32 %v9414_v9, %v3733_v4  ;;  %v10291_v4 = vld [vmem:[#allocation55_spill] sm:$0xff] }
0x15fb   :  { %6941 = vmatpush3.bf16.msra.mxu1 %v10280_v36 }
0x15fc   :  { %v4710_v17 = vmul.f32 -1.442695, %v3734_v32  ;;  %6942 = vmatprep.subr.bf16.mxu1 %v9975_v2  ;;  %v10292_v32 = vld [vmem:[#allocation56_spill] sm:$0xff] }
0x15fe   :  { %7457 = vpow2.f32 %v4710_v17  ;;  %v10293_v17 = vld [vmem:[#allocation59_spill] sm:$0xff] }
0x15ff   :  { %6944 = vmatpush3.bf16.msra.mxu1 %v10281_v6 }
0x1600   :  { %6945 = vmatprep.subr.bf16.mxu1 %v9975_v2 }
0x1603   :  { %6947 = vmatpush3.bf16.msra.mxu1 %v10282_v12  ;;  %v10306_v12 = vld [vmem:[#allocation81_spill] sm:$0xff] }
0x1604   :  { %6948 = vmatprep.subr.bf16.mxu1 %v9975_v2 }
0x1607   :  { %6950 = vmatpush3.bf16.msra.mxu1 %v10283_v7 }
0x1608   :  { %v7458_v43 = vpop.eup %7457  ;;  %6951 = vmatprep.subr.bf16.mxu1 %v9975_v2 }
0x1609   :  { %v3738_v63 = vadd.f32 1.0, %v7458_v43  ;;  %v10294_v43 = vld [vmem:[#allocation60_spill] sm:$0xff] }
0x160b   :  { %7459 = vrcp.f32 %v3738_v63  ;;  %6953 = vmatpush3.bf16.msra.mxu1 %v10284_v5  ;;  %v10295_v63 = vld [vmem:[#allocation63_spill] sm:$0xff] }
0x160c   :  { %6954 = vmatprep.subr.bf16.mxu1 %v9975_v2 }
0x160f   :  { %6956 = vmatpush3.bf16.msra.mxu1 %v10285_v62  ;;  %v10305_v62 = vld [vmem:[#allocation80_spill] sm:$0xff] }
0x1610   :  { %6957 = vmatprep.subr.bf16.mxu1 %v9975_v2 }
0x1613   :  { %6959 = vmatpush3.bf16.msra.mxu1 %v10286_v45 }
0x1614   :  { %7025 = vmatprep.subr.bf16.mxu1 %v10287_v31  ;;  %v10296_v31 = vld [vmem:[#allocation64_spill] sm:$0xff] }
0x1615   :  { %v7460_v27 = vpop.eup %7459 }
0x1616   :  { %v3743_v39 = vmul.f32 %v7460_v27, %v9905_v42  ;;  %v10297_v27 = vld [vmem:[#allocation67_spill] sm:$0xff]  ;;  %v10300_v42 = vld [vmem:[#allocation72_spill] sm:$0xff] }
0x1618   :  { %v3745_v3 = vrot.slane %v3743_v39, 4  ;;  %v10298_v39 = vld [vmem:[#allocation68_spill] sm:$0xff] }
0x161a   :  { %5733 = vmatmul.mubr.f32.vlgmr.msra.gmra.mrb[38].mxu1 %v3745_v3  ;;  %v10299_v3 = vld [vmem:[#allocation71_spill] sm:$0xff] }
0x161b   :  { %7027 = vmatpush3.bf16.msra.mxu1 %v10288_v33  ;;  %v10304_v33 = vld [vmem:[#allocation36_spill] sm:$0xff] }
0x161c   :  { %7029 = vmatprep.subr.bf16.mxu1 %v10289_v18 }
0x161f   :  { %7031 = vmatpush3.bf16.msra.mxu1 %v10290_v55  ;;  %v10301_v55 = vld [vmem:[#allocation75_spill] sm:$0xff] }
0x1620   :  { %7033 = vmatprep.subr.bf16.mxu1 %v10291_v4  ;;  %v10302_v4 = vld [vmem:[#allocation76_spill] sm:$0xff] }
0x1623   :  { %7035 = vmatpush3.bf16.msra.mxu1 %v10292_v32 }
0x1624   :  { %7037 = vmatprep.subr.bf16.mxu1 %v10293_v17  ;;  %v10303_v17 = vld [vmem:[#allocation34_spill] sm:$0xff] }
0x1627   :  { %7039 = vmatpush3.bf16.msra.mxu1 %v10294_v43  ;;  %v3472_v43 = vadd.f32 %v9375_v24, %v10303_v17 }
0x1628   :  { %7041 = vmatprep.subr.bf16.mxu1 %v10295_v63 }
0x162b   :  { %7043 = vmatpush3.bf16.msra.mxu1 %v10296_v31 }
0x162c   :  { %7045 = vmatprep.subr.bf16.mxu1 %v10297_v27 }
0x162f   :  { %7047 = vmatpush3.bf16.msra.mxu1 %v10298_v39 }
0x1630   :  { %7049 = vmatprep.subr.bf16.mxu1 %v10299_v3 }
0x1633   :  { %7051 = vmatpush3.bf16.msra.mxu1 %v10300_v42 }
0x1634   :  { %7053 = vmatprep.subr.bf16.mxu1 %v10301_v55 }
0x1637   :  { %7055 = vmatpush3.bf16.msra.mxu1 %v10302_v4 }
0x1638   :  { %7056 = vmatprep.subr.bf16.mxu1 %v9975_v2 }
0x16c9   :  { %v3588_v63 = vpop.f32.mrb[36].mxu1 }
0x16ca   :  { %v3592_v32 = vadd.f32 %v3588_v63, %v3472_v43  ;;  %v5699_v31 = vpop.f32.mrb[37].mxu1  ;;  %v3477_v43 = vpop.xlane.xlu0 %3476 }
0x16cb   :  { %v3478_v63 = vmul.f32 0.03125, %v3477_v43 }
0x16cc   :  { %v3593_v27 = vsel %vm500_vm1, %v3592_v32, 0.0  ;;  %v3597_v18 = vmul.f32 %v3592_v32, %v3592_v32 }
0x16cd   :  { %3594 = vadd.xlane.f32.xlu0 %v3593_v27  ;;  %v3484_v27 = vmul.f32 %v3478_v63, %v3478_v63 }
0x16ce   :  { %v3598_v3 = vsel %vm500_vm1, %v3597_v18, 0.0  ;;  %v3482_v18 = vpop.xlane.xlu1 %3481  ;;  %v3693_v7 = vpop.xlane.xlu0 %3692 }
0x16cf   :  { %3599 = vadd.xlane.f32.xlu1 %v3598_v3  ;;  %v3483_v3 = vmul.f32 0.03125, %v3482_v18  ;;  %v3694_v6 = vmul.f32 0.03125, %v3693_v7 }
0x16d1   :  { %v3700_v36 = vmul.f32 %v3694_v6, %v3694_v6 }
0x16ed   :  { %v3813_v42 = vpop.f32.mrb[38].mxu1 }
0x16ee   :  { %v3818_v39 = vrot.slane %v3813_v42, 4  ;;  %v5734_v55 = vpop.f32.mrb[39].mxu1  ;;  %v3485_v42 = vsub.f32 %v3483_v3, %v3484_v27 }
0x16f0   :  { %v9455_v4 = vadd.f32 %v3818_v39, %v10304_v33  ;;  %v3487_v55 = vadd.f32 1e-05, %v3485_v42  ;;  %v3486_v33 = vsub.f32 %v9380_v38, %v3478_v63 }
0x16f2   :  { %v3821_v45 = vsel %vm1645_vm4, %v9455_v4, 0.0  ;;  %v3825_v24 = vmul.f32 %v9455_v4, %v9455_v4  ;;  %7461 = vrsqrt.f32 %v3487_v55 }
0x16f3   :  { %3822 = vadd.xlane.f32.xlu0 %v3821_v45 }
0x16f4   :  { %v3826_v31 = vsel %vm1645_vm4, %v3825_v24, 0.0  ;;  %v3698_v24 = vpop.xlane.xlu1 %3697 }
0x16f5   :  { %3827 = vadd.xlane.f32.xlu1 %v3826_v31  ;;  %v3699_v43 = vmul.f32 0.03125, %v3698_v24  ;;  %v9471_v24 = vld [vmem:[%s9751_s5] ss:$0 sm:$0xff] }
0x16f7   :  { %v3701_v27 = vsub.f32 %v3699_v43, %v3700_v36 }
0x16f9   :  { %v3703_v38 = vadd.f32 1e-05, %v3701_v27 }
0x16fc   :  { %v7462_v39 = vpop.eup %7461 }
0x16fd   :  { %v3489_v17 = vmul.f32 %v7462_v39, %v3486_v33  ;;  %v3702_v39 = vsub.f32 %v9385_v48, %v3694_v6 }
0x16ff   :  { %v3490_v5 = vmul.f32 %v10305_v62, %v3489_v17 }
0x1701   :  { %v3491_v45 = vadd.f32 %v10306_v12, %v3490_v5 }
0x1703   :  { %v4707_v31 = vmul.f32 -1.442695, %v3491_v45 }
0x1705   :  { %7463 = vpow2.f32 %v4707_v31 }
0x170f   :  { %v7464_v62 = vpop.eup %7463 }
0x1710   :  { %v3495_v17 = vadd.f32 1.0, %v7464_v62 }
0x175a   :  { %v3595_v9 = vpop.xlane.xlu0 %3594 }
0x175b   :  { %v3596_v19 = vmul.f32 0.03125, %v3595_v9 }
0x175c   :  { %v3600_v18 = vpop.xlane.xlu1 %3599 }
0x175d   :  { %v3602_v3 = vmul.f32 %v3596_v19, %v3596_v19  ;;  %v3601_v42 = vmul.f32 0.03125, %v3600_v18  ;;  %v3604_v12 = vsub.f32 %v3592_v32, %v3596_v19  ;;  %v9477_v32 = vld [vmem:[%s9752_s6] ss:$0 sm:$0xff] }
0x175f   :  { %v3603_v55 = vsub.f32 %v3601_v42, %v3602_v3 }
0x1761   :  { %v3605_v33 = vadd.f32 1e-05, %v3603_v55 }
0x1763   :  { %7465 = vrsqrt.f32 %v3605_v33 }
0x1764   :  { %7467 = vrsqrt.f32 %v3703_v38 }
0x1765   :  { %7469 = vrcp.f32 %v3495_v17 }
0x176d   :  { %v7466_v7 = vpop.eup %7465 }
0x176e   :  { %v3607_v5 = vmul.f32 %v7466_v7, %v3604_v12  ;;  %v7468_v63 = vpop.eup %7467 }
0x176f   :  { %v3705_v45 = vmul.f32 %v7468_v63, %v3702_v39  ;;  %v7470_v19 = vpop.eup %7469 }
0x1770   :  { %v3608_v9 = vmul.f32 %v9284_v8, %v3607_v5  ;;  %v3611_v8 = vsub.f32 1.0, %v7470_v19 }
0x1771   :  { %v3706_v31 = vmul.f32 %v9471_v24, %v3705_v45 }
0x1772   :  { %v3609_v36 = vadd.f32 %v9290_v30, %v3608_v9  ;;  %v3612_v18 = vmul.f32 %v3611_v8, %v9296_v26 }
0x1773   :  { %v3707_v48 = vadd.f32 %v9477_v32, %v3706_v31 }
0x1774   :  { %7471 = vtanh.f32 %v3609_v36  ;;  %v9488_v36 = vld [vmem:[%s9751_s5 + $0x2] ss:$0 sm:$0xff] }
0x1775   :  { %v4709_v43 = vmul.f32 -1.442695, %v3707_v48 }
0x1777   :  { %7473 = vpow2.f32 %v4709_v43  ;;  %v10307_v43 = vrot.slane %v9304_v25, 6 }
0x177e   :  { %v7472_v6 = vpop.eup %7471 }
0x177f   :  { %v3613_v27 = vmul.f32 %v7472_v6, %v7470_v19  ;;  %v9494_v19 = vld [vmem:[%s9752_s6 + $0x2] ss:$0 sm:$0xff] }
0x1780   :  { %v3823_v30 = vpop.xlane.xlu0 %3822 }
0x1781   :  { %v3824_v3 = vmul.f32 0.03125, %v3823_v30  ;;  %v9481_v55 = vadd.f32 %v3613_v27, %v3612_v18  ;;  %v7474_v5 = vpop.eup %7473 }
0x1782   :  { %v3828_v42 = vpop.xlane.xlu1 %3827  ;;  %v3711_v63 = vadd.f32 1.0, %v7474_v5 }
0x1783   :  { %v3830_v38 = vmul.f32 %v3824_v3, %v3824_v3  ;;  %v3829_v33 = vmul.f32 0.03125, %v3828_v42  ;;  %v3844_v62 = vrot.slane %v9481_v55, 4  ;;  %v3832_v39 = vsub.f32 %v9455_v4, %v3824_v3 }
0x1785   :  { %v3831_v17 = vsub.f32 %v3829_v33, %v3830_v38  ;;  %v3847_v12 = vrot.slane %v3844_v62, 4  ;;  %v10331_v33 = vld [vmem:[#allocation21_spill] sm:$0xff] }
0x1787   :  { %v3833_v7 = vadd.f32 1e-05, %v3831_v17  ;;  %3914 = vmatprep.mubr.f32.mxu0 %v3847_v12  ;;  %3985 = vmatprep.mubr.f32.mxu1 %v3847_v12 }
0x1789   :  { %7475 = vrsqrt.f32 %v3833_v7 }
0x178a   :  { %7477 = vrcp.f32 %v3711_v63 }
0x1793   :  { %v7476_v9 = vpop.eup %7475 }
0x1794   :  { %v3835_v45 = vmul.f32 %v7476_v9, %v3832_v39  ;;  %v7478_v8 = vpop.eup %7477 }
0x1795   :  { %v3839_v4 = vsub.f32 1.0, %v7478_v8 }
0x1796   :  { %v3836_v31 = vmul.f32 %v9488_v36, %v3835_v45  ;;  %v10332_v45 = vld [vmem:[#allocation78_spill] sm:$0xff] }
0x1797   :  { %v3840_v30 = vmul.f32 %v3839_v4, %v10307_v43 }
0x1798   :  { %v3837_v48 = vadd.f32 %v9494_v19, %v3836_v31 }
0x179a   :  { %7479 = vtanh.f32 %v3837_v48 }
0x17a4   :  { %v7480_v6 = vpop.eup %7479 }
0x17a5   :  { %v3841_v18 = vmul.f32 %v7480_v6, %v7478_v8  ;;  %v10333_v8 = vld [vmem:[#allocation23_spill] sm:$0xff] }
0x17a7   :  { %v9499_v27 = vadd.f32 %v3841_v18, %v3840_v30  ;;  %v10334_v30 = vld [vmem:[#allocation22_spill] sm:$0xff] }
0x17a9   :  { %v3846_v3 = vrot.slane %v9499_v27, 4 }
0x17ab   :  { %3915 = vmatmul.mubr.f32.vlgmr.msra.gmra.mrb[30].mxu0 %v3846_v3  ;;  %3986 = vmatmul.mubr.f32.vlgmr.msra.gmra.mrb[40].mxu1 %v3846_v3 }
0x17ac   :  { %7083 = vmatpush1.bf16.msra.mxu0 %v7950_v15  ;;  %4196 = vmatprep.mubr.f32.mxu0 %v9966_v58  ;;  %v10308_v15 = vld [vmem:[#allocation37_spill] sm:$0xff] }
0x17ad   :  { %7085 = vmatprep.subr.bf16.mxu0 %v7953_v16  ;;  %7058 = vmatpush3.bf16.msra.mxu1 %v8370_v50  ;;  %v10309_v16 = vld [vmem:[#allocation38_spill] sm:$0xff] }
0x17ae   :  { %7059 = vmatprep.subr.bf16.mxu1 %v9975_v2  ;;  %5767 = vmatprep.mubr.msk.f32.mxu1 %vm7766_vm2, %v9966_v58 }
0x17b0   :  { %7087 = vmatpush1.bf16.msra.mxu0 %v7957_v21  ;;  %v10310_v21 = vld [vmem:[#allocation39_spill] sm:$0xff] }
0x17b1   :  { %7089 = vmatprep.subr.bf16.mxu0 %v7961_v22  ;;  %7061 = vmatpush3.bf16.msra.mxu1 %v8379_v49  ;;  %v10311_v22 = vld [vmem:[#allocation40_spill] sm:$0xff] }
0x17b2   :  { %7062 = vmatprep.subr.bf16.mxu1 %v9975_v2 }
0x17b4   :  { %7091 = vmatpush1.bf16.msra.mxu0 %v7966_v28  ;;  %v10312_v28 = vld [vmem:[#allocation42_spill] sm:$0xff] }
0x17b5   :  { %7093 = vmatprep.subr.bf16.mxu0 %v7969_v29  ;;  %7064 = vmatpush3.bf16.msra.mxu1 %v8388_v60  ;;  %v10313_v29 = vld [vmem:[#allocation43_spill] sm:$0xff] }
0x17b6   :  { %7065 = vmatprep.subr.bf16.mxu1 %v9975_v2 }
0x17b8   :  { %7095 = vmatpush1.bf16.msra.mxu0 %v7975_v34  ;;  %v10314_v34 = vld [vmem:[#allocation44_spill] sm:$0xff] }
0x17b9   :  { %7097 = vmatprep.subr.bf16.mxu0 %v7978_v35  ;;  %7067 = vmatpush3.bf16.msra.mxu1 %v8396_v54  ;;  %v10315_v35 = vld [vmem:[#allocation45_spill] sm:$0xff] }
0x17ba   :  { %7068 = vmatprep.subr.bf16.mxu1 %v9975_v2 }
0x17bc   :  { %7099 = vmatpush1.bf16.msra.mxu0 %v7981_v40  ;;  %v10316_v40 = vld [vmem:[#allocation46_spill] sm:$0xff] }
0x17bd   :  { %7101 = vmatprep.subr.bf16.mxu0 %v7984_v41  ;;  %7070 = vmatpush3.bf16.msra.mxu1 %v8400_v0  ;;  %v10317_v41 = vld [vmem:[#allocation49_spill] sm:$0xff] }
0x17be   :  { %7071 = vmatprep.subr.bf16.mxu1 %v9975_v2 }
0x17c0   :  { %7103 = vmatpush1.bf16.msra.mxu0 %v7987_v46  ;;  %v10318_v46 = vld [vmem:[#allocation50_spill] sm:$0xff] }
0x17c1   :  { %7105 = vmatprep.subr.bf16.mxu0 %v7990_v47  ;;  %7073 = vmatpush3.bf16.msra.mxu1 %v8404_v51  ;;  %v10319_v47 = vld [vmem:[#allocation53_spill] sm:$0xff] }
0x17c2   :  { %7074 = vmatprep.subr.bf16.mxu1 %v9975_v2 }
0x17c4   :  { %7107 = vmatpush1.bf16.msra.mxu0 %v7993_v52  ;;  %v10320_v52 = vld [vmem:[#allocation54_spill] sm:$0xff] }
0x17c5   :  { %7109 = vmatprep.subr.bf16.mxu0 %v7996_v53  ;;  %7076 = vmatpush3.bf16.msra.mxu1 %v8408_v61  ;;  %v10321_v53 = vld [vmem:[#allocation57_spill] sm:$0xff] }
0x17c6   :  { %7077 = vmatprep.subr.bf16.mxu1 %v9975_v2 }
0x17c8   :  { %7111 = vmatpush1.bf16.msra.mxu0 %v7999_v56  ;;  %v10322_v56 = vld [vmem:[#allocation58_spill] sm:$0xff] }
0x17c9   :  { %7079 = vmatpush3.bf16.msra.mxu1 %v8412_v44  ;;  %7137 = vmatprep.subr.bf16.mxu0 %v8097_v1  ;;  %v10323_v1 = vld [vmem:[#allocation61_spill] sm:$0xff] }
0x17ca   :  { %7112 = vmatprep.subr.bf16.mxu1 %v9975_v2 }
0x17cb   :  { %4197 = vmatmul.mubr.f32.vlgmr.msra.gmra.mrb[32].mxu0 %v3846_v3 }
0x17cc   :  { %7139 = vmatpush1.bf16.msra.mxu0 %v8099_v11  ;;  %v10324_v11 = vld [vmem:[#allocation62_spill] sm:$0xff] }
0x17cd   :  { %7141 = vmatprep.subr.bf16.mxu0 %v8101_v14  ;;  %v10325_v14 = vld [vmem:[#allocation65_spill] sm:$0xff] }
0x17d0   :  { %7143 = vmatpush1.bf16.msra.mxu0 %v8105_v20  ;;  %v10326_v20 = vld [vmem:[#allocation66_spill] sm:$0xff] }
0x17d1   :  { %7145 = vmatprep.subr.bf16.mxu0 %v8108_v23  ;;  %v10327_v23 = vld [vmem:[#allocation69_spill] sm:$0xff] }
0x17d4   :  { %7147 = vmatpush1.bf16.msra.mxu0 %v8111_v37  ;;  %v10328_v37 = vld [vmem:[#allocation70_spill] sm:$0xff] }
0x17d5   :  { %7149 = vmatprep.subr.bf16.mxu0 %v8114_v13  ;;  %v10329_v13 = vld [vmem:[#allocation73_spill] sm:$0xff] }
0x17d8   :  { %7151 = vmatpush1.bf16.msra.mxu0 %v8117_v57  ;;  %v10330_v57 = vld [vmem:[#allocation74_spill] sm:$0xff] }
0x17d9   :  { %7153 = vmatprep.subr.bf16.mxu0 %v8120_v59 }
0x17dc   :  { %7155 = vmatpush1.bf16.msra.mxu0 %v10308_v15 }
0x17dd   :  { %7157 = vmatprep.subr.bf16.mxu0 %v10309_v16 }
0x17e0   :  { %7159 = vmatpush1.bf16.msra.mxu0 %v10310_v21 }
0x17e1   :  { %7161 = vmatprep.subr.bf16.mxu0 %v10311_v22 }
0x17e4   :  { %7163 = vmatpush1.bf16.msra.mxu0 %v10312_v28 }
0x17e5   :  { %7165 = vmatprep.subr.bf16.mxu0 %v10313_v29 }
0x17e8   :  { %7167 = vmatpush1.bf16.msra.mxu0 %v10314_v34 }
0x17e9   :  { %7169 = vmatprep.subr.bf16.mxu0 %v10315_v35 }
0x17ec   :  { %7171 = vmatpush1.bf16.msra.mxu0 %v10316_v40 }
0x17ed   :  { %7173 = vmatprep.subr.bf16.mxu0 %v10317_v41 }
0x17f0   :  { %7175 = vmatpush1.bf16.msra.mxu0 %v10318_v46 }
0x17f1   :  { %7177 = vmatprep.subr.bf16.mxu0 %v10319_v47 }
0x17f4   :  { %7179 = vmatpush1.bf16.msra.mxu0 %v10320_v52 }
0x17f5   :  { %7181 = vmatprep.subr.bf16.mxu0 %v10321_v53 }
0x17f8   :  { %7183 = vmatpush1.bf16.msra.mxu0 %v10322_v56 }
0x17f9   :  { %7185 = vmatprep.subr.bf16.mxu0 %v10323_v1 }
0x17fc   :  { %7187 = vmatpush1.bf16.msra.mxu0 %v10324_v11  ;;  %v9595_v11 = vld [vmem:[%s9756_s10 + $0x1] ss:$0 sm:$0xff] }
0x17fd   :  { %7189 = vmatprep.subr.bf16.mxu0 %v10325_v14 }
0x1800   :  { %7191 = vmatpush1.bf16.msra.mxu0 %v10326_v20  ;;  %v9601_v20 = vld [vmem:[%s9757_s11 + $0x1] ss:$0 sm:$0xff] }
0x1801   :  { %7193 = vmatprep.subr.bf16.mxu0 %v10327_v23 }
0x1804   :  { %7195 = vmatpush1.bf16.msra.mxu0 %v10328_v37 }
0x1805   :  { %7197 = vmatprep.subr.bf16.mxu0 %v10329_v13 }
0x1808   :  { %7199 = vmatpush1.bf16.msra.mxu0 %v10330_v57 }
0x187e   :  { %v3916_v59 = vpop.f32.mrb[30].mxu0  ;;  %v5184_v25 = vpop.f32.mrb[40].mxu1 }
0x187f   :  { %v3918_v42 = vpop.f32.mrb[31].mxu0  ;;  %v5185_v38 = vpop.f32.mrb[41].mxu1  ;;  %v9574_v31 = vadd.f32 %v3916_v59, %v10332_v45 }
0x1880   :  { %v3919_v62 = vadd.f32 %v3918_v42, %v10331_v33  ;;  %v9569_v17 = vadd.f32 %v5185_v38, %v5184_v25 }
0x1881   :  { %v3995_v15 = vmul.f32 %v9574_v31, %v9574_v31  ;;  %v3991_v16 = vsel %vm500_vm1, %v9574_v31, 0.0 }
0x1882   :  { %v4014_v12 = vsel %vm500_vm1, %v3919_v62, 0.0  ;;  %v4018_v7 = vmul.f32 %v3919_v62, %v3919_v62 }
0x1883   :  { %4015 = vadd.xlane.f32.xlu0 %v4014_v12  ;;  %v3996_v21 = vsel %vm500_vm1, %v3995_v15, 0.0  ;;  %v10337_v15 = vld [vmem:[#allocation27_spill] sm:$0xff] }
0x1884   :  { %v4019_v5 = vsel %vm500_vm1, %v4018_v7, 0.0 }
0x1885   :  { %4020 = vadd.xlane.f32.xlu1 %v4019_v5 }
0x189e   :  { %v4198_v63 = vpop.f32.mrb[32].mxu0 }
0x189f   :  { %v4200_v39 = vpop.f32.mrb[33].mxu0  ;;  %v4204_v48 = vrot.slane %v4198_v63, 2 }
0x18a0   :  { %v4231_v9 = vrot.slane %v4200_v39, 2 }
0x18a1   :  { %v9579_v18 = vadd.f32 %v4204_v48, %v10334_v30 }
0x18a2   :  { %v4233_v4 = vadd.f32 %v4231_v9, %v10333_v8 }
0x18a3   :  { %v4211_v22 = vmul.f32 %v9579_v18, %v9579_v18  ;;  %v4207_v28 = vsel %vm2162_vm5, %v9579_v18, 0.0 }
0x18a4   :  { %v4234_v6 = vsel %vm2162_vm5, %v4233_v4, 0.0  ;;  %v4238_v43 = vmul.f32 %v4233_v4, %v4233_v4 }
0x18a5   :  { %4235 = vadd.xlane.f32.xlu0 %v4234_v6  ;;  %v4212_v29 = vsel %vm2162_vm5, %v4211_v22, 0.0  ;;  %v10335_v6 = vld [vmem:[#allocation26_spill] sm:$0xff] }
0x18a6   :  { %v4239_v3 = vsel %vm2162_vm5, %v4238_v43, 0.0  ;;  %v10336_v43 = vld [vmem:[#allocation20_spill] sm:$0xff] }
0x18a7   :  { %4240 = vadd.xlane.f32.xlu1 %v4239_v3 }
0x18a9   :  { %3992 = vadd.xlane.f32.xlu0 %v3991_v16 }
0x18ab   :  { %3997 = vadd.xlane.f32.xlu1 %v3996_v21  ;;  %v10340_v21 = vld [vmem:[#allocation30_spill] sm:$0xff] }
0x18ad   :  { %4208 = vadd.xlane.f32.xlu0 %v4207_v28  ;;  %v10341_v28 = vld [vmem:[#allocation31_spill] sm:$0xff] }
0x18af   :  { %4213 = vadd.xlane.f32.xlu1 %v4212_v29  ;;  %v10342_v29 = vld [vmem:[#allocation32_spill] sm:$0xff] }
0x1910   :  { %v4016_v34 = vpop.xlane.xlu0 %4015 }
0x1911   :  { %v4017_v35 = vmul.f32 0.03125, %v4016_v34  ;;  %v10343_v34 = vld [vmem:[#allocation33_spill] sm:$0xff] }
0x1912   :  { %v4021_v40 = vpop.xlane.xlu1 %4020 }
0x1913   :  { %v4023_v41 = vmul.f32 %v4017_v35, %v4017_v35  ;;  %v4022_v46 = vmul.f32 0.03125, %v4021_v40  ;;  %v4025_v53 = vsub.f32 %v3919_v62, %v4017_v35  ;;  %v4257_v35 = vrot.slane %v9499_v27, 6 }
0x1915   :  { %v4024_v47 = vsub.f32 %v4022_v46, %v4023_v41  ;;  %v10344_v41 = vld [vmem:[#allocation47_spill] sm:$0xff] }
0x1917   :  { %v4026_v52 = vadd.f32 1e-05, %v4024_v47 }
0x1919   :  { %7481 = vrsqrt.f32 %v4026_v52  ;;  %v10345_v52 = vld [vmem:[#allocation48_spill] sm:$0xff] }
0x1923   :  { %v7482_v56 = vpop.eup %7481 }
0x1924   :  { %v4028_v1 = vmul.f32 %v7482_v56, %v4025_v53  ;;  %v10346_v53 = vld [vmem:[#allocation51_spill] sm:$0xff]  ;;  %v10347_v56 = vld [vmem:[#allocation52_spill] sm:$0xff] }
0x1926   :  { %v4029_v14 = vmul.f32 %v9595_v11, %v4028_v1  ;;  %v10348_v1 = vld [vmem:[#allocation55_spill] sm:$0xff] }
0x1928   :  { %v4030_v23 = vadd.f32 %v9601_v20, %v4029_v14  ;;  %v10349_v14 = vld [vmem:[#allocation56_spill] sm:$0xff] }
0x192a   :  { %v4712_v37 = vmul.f32 -1.442695, %v4030_v23  ;;  %v10350_v23 = vld [vmem:[#allocation59_spill] sm:$0xff] }
0x192c   :  { %7483 = vpow2.f32 %v4712_v37  ;;  %v10351_v37 = vld [vmem:[#allocation60_spill] sm:$0xff] }
0x1932   :  { %v4236_v13 = vpop.xlane.xlu0 %4235 }
0x1933   :  { %v4237_v57 = vmul.f32 0.03125, %v4236_v13  ;;  %v10352_v13 = vld [vmem:[#allocation63_spill] sm:$0xff] }
0x1934   :  { %v4241_v59 = vpop.xlane.xlu1 %4240 }
0x1935   :  { %v4243_v25 = vmul.f32 %v4237_v57, %v4237_v57  ;;  %v4242_v42 = vmul.f32 0.03125, %v4241_v59  ;;  %v4245_v63 = vsub.f32 %v4233_v4, %v4237_v57  ;;  %v10338_v4 = vld [vmem:[#allocation28_spill] sm:$0xff]  ;;  %v10354_v59 = vld [vmem:[#allocation67_spill] sm:$0xff] }
0x1936   :  { %v7484_v38 = vpop.eup %7483  ;;  %v10353_v57 = vld [vmem:[#allocation64_spill] sm:$0xff] }
0x1937   :  { %v4244_v62 = vsub.f32 %v4242_v42, %v4243_v25  ;;  %v4034_v12 = vadd.f32 1.0, %v7484_v38  ;;  %v10355_v25 = vld [vmem:[#allocation68_spill] sm:$0xff]  ;;  %v10356_v42 = vld [vmem:[#allocation71_spill] sm:$0xff] }
0x1938   :  { %v10357_v38 = vld [vmem:[#allocation72_spill] sm:$0xff] }
0x1939   :  { %v4246_v7 = vadd.f32 1e-05, %v4244_v62  ;;  %7485 = vrcp.f32 %v4034_v12  ;;  %v10358_v62 = vld [vmem:[#allocation75_spill] sm:$0xff]  ;;  %v10359_v12 = vld [vmem:[#allocation76_spill] sm:$0xff] }
0x193b   :  { %7487 = vrsqrt.f32 %v4246_v7  ;;  %v10360_v7 = vld [vmem:[#allocation34_spill] sm:$0xff] }
0x1943   :  { %v7486_v5 = vpop.eup %7485 }
0x1944   :  { %v4037_v9 = vmul.f32 %v7486_v5, %v9481_v55  ;;  %v3988_v5 = vadd.f32 %v9569_v17, %v10360_v7 }
0x1945   :  { %v7488_v39 = vpop.eup %7487 }
0x1946   :  { %v4248_v48 = vmul.f32 %v7488_v39, %v4245_v63  ;;  %5768 = vmatmul.mubr.f32.vlgmr.msra.gmra.mrb[42].mxu1 %v4037_v9 }
0x1947   :  { %7114 = vmatpush3.bf16.msra.mxu1 %v10335_v6  ;;  %5802 = vmatprep.mubr.msk.f32.mxu1 %vm7766_vm2, %v9966_v58 }
0x1948   :  { %v4249_v8 = vmul.f32 %v9404_v10, %v4248_v48  ;;  %7115 = vmatprep.subr.bf16.mxu1 %v9975_v2  ;;  %v10339_v10 = vld [vmem:[#allocation29_spill] sm:$0xff] }
0x194a   :  { %v4250_v30 = vadd.f32 %v10336_v43, %v4249_v8 }
0x194b   :  { %7117 = vmatpush3.bf16.msra.mxu1 %v10337_v15  ;;  %v10361_v15 = vld [vmem:[#allocation36_spill] sm:$0xff] }
0x194c   :  { %v4714_v3 = vmul.f32 -1.442695, %v4250_v30  ;;  %7118 = vmatprep.subr.bf16.mxu1 %v9975_v2 }
0x194e   :  { %7489 = vpow2.f32 %v4714_v3 }
0x194f   :  { %7120 = vmatpush3.bf16.msra.mxu1 %v10338_v4 }
0x1950   :  { %7121 = vmatprep.subr.bf16.mxu1 %v9975_v2 }
0x1953   :  { %7123 = vmatpush3.bf16.msra.mxu1 %v10339_v10 }
0x1954   :  { %7124 = vmatprep.subr.bf16.mxu1 %v9975_v2 }
0x1957   :  { %7126 = vmatpush3.bf16.msra.mxu1 %v10340_v21  ;;  %v3993_v21 = vpop.xlane.xlu0 %3992 }
0x1958   :  { %v7490_v16 = vpop.eup %7489  ;;  %7127 = vmatprep.subr.bf16.mxu1 %v9975_v2 }
0x1959   :  { %v4254_v22 = vadd.f32 1.0, %v7490_v16 }
0x195b   :  { %7491 = vrcp.f32 %v4254_v22  ;;  %7129 = vmatpush3.bf16.msra.mxu1 %v10341_v28  ;;  %v3994_v22 = vmul.f32 0.03125, %v3993_v21  ;;  %v3998_v28 = vpop.xlane.xlu1 %3997 }
0x195c   :  { %7130 = vmatprep.subr.bf16.mxu1 %v9975_v2 }
0x195f   :  { %7132 = vmatpush3.bf16.msra.mxu1 %v10342_v29  ;;  %v4000_v29 = vmul.f32 %v3994_v22, %v3994_v22 }
0x1960   :  { %7133 = vmatprep.subr.bf16.mxu1 %v9975_v2 }
0x1963   :  { %7135 = vmatpush3.bf16.msra.mxu1 %v10343_v34  ;;  %v3999_v34 = vmul.f32 0.03125, %v3998_v28 }
0x1964   :  { %7201 = vmatprep.subr.bf16.mxu1 %v10344_v41 }
0x1965   :  { %v7492_v40 = vpop.eup %7491 }
0x1966   :  { %v4259_v46 = vmul.f32 %v7492_v40, %v4257_v35  ;;  %v4001_v40 = vsub.f32 %v3999_v34, %v4000_v29 }
0x1968   :  { %v4261_v47 = vrot.slane %v4259_v46, 6  ;;  %v4003_v41 = vadd.f32 1e-05, %v4001_v40 }
0x196a   :  { %5803 = vmatmul.mubr.f32.vlgmr.msra.gmra.mrb[44].mxu1 %v4261_v47  ;;  %7493 = vrsqrt.f32 %v4003_v41  ;;  %v4002_v47 = vsub.f32 %v9574_v31, %v3994_v22  ;;  %v9679_v22 = vld [vmem:[%s9757_s11 + $0x2] ss:$0 sm:$0xff] }
0x196b   :  { %7203 = vmatpush3.bf16.msra.mxu1 %v10345_v52 }
0x196c   :  { %7205 = vmatprep.subr.bf16.mxu1 %v10346_v53  ;;  %v9660_v53 = vld [vmem:[%s9756_s10] ss:$0 sm:$0xff] }
0x196f   :  { %7207 = vmatpush3.bf16.msra.mxu1 %v10347_v56 }
0x1970   :  { %7209 = vmatprep.subr.bf16.mxu1 %v10348_v1  ;;  %v4209_v1 = vpop.xlane.xlu0 %4208 }
0x1973   :  { %7211 = vmatpush3.bf16.msra.mxu1 %v10349_v14  ;;  %v9666_v14 = vld [vmem:[%s9757_s11] ss:$0 sm:$0xff] }
0x1974   :  { %7213 = vmatprep.subr.bf16.mxu1 %v10350_v23  ;;  %v7494_v46 = vpop.eup %7493 }
0x1975   :  { %v4005_v52 = vmul.f32 %v7494_v46, %v4002_v47 }
0x1977   :  { %7215 = vmatpush3.bf16.msra.mxu1 %v10351_v37  ;;  %v4006_v56 = vmul.f32 %v9660_v53, %v4005_v52  ;;  %v4210_v37 = vmul.f32 0.03125, %v4209_v1 }
0x1978   :  { %7217 = vmatprep.subr.bf16.mxu1 %v10352_v13  ;;  %v4214_v13 = vpop.xlane.xlu1 %4213 }
0x1979   :  { %v4007_v23 = vadd.f32 %v9666_v14, %v4006_v56  ;;  %v4216_v31 = vmul.f32 %v4210_v37, %v4210_v37 }
0x197b   :  { %7219 = vmatpush3.bf16.msra.mxu1 %v10353_v57  ;;  %v4711_v57 = vmul.f32 -1.442695, %v4007_v23 }
0x197c   :  { %7221 = vmatprep.subr.bf16.mxu1 %v10354_v59  ;;  %v4215_v59 = vmul.f32 0.03125, %v4214_v13 }
0x197d   :  { %7495 = vpow2.f32 %v4711_v57 }
0x197f   :  { %7223 = vmatpush3.bf16.msra.mxu1 %v10355_v25 }
0x1980   :  { %7225 = vmatprep.subr.bf16.mxu1 %v10356_v42 }
0x1983   :  { %7227 = vmatpush3.bf16.msra.mxu1 %v10357_v38 }
0x1984   :  { %7229 = vmatprep.subr.bf16.mxu1 %v10358_v62  ;;  %v4217_v62 = vsub.f32 %v4215_v59, %v4216_v31 }
0x1987   :  { %7231 = vmatpush3.bf16.msra.mxu1 %v10359_v12 }
0x1988   :  { %7232 = vmatprep.subr.bf16.mxu1 %v9975_v2 }
0x1a19   :  { %v4104_v63 = vpop.f32.mrb[42].mxu1 }
0x1a1a   :  { %v4108_v39 = vadd.f32 %v4104_v63, %v3988_v5  ;;  %v5769_v9 = vpop.f32.mrb[43].mxu1 }
0x1a1b   :  { %v4219_v9 = vadd.f32 1e-05, %v4217_v62 }
0x1a1c   :  { %v4109_v48 = vsel %vm500_vm1, %v4108_v39, 0.0  ;;  %v4113_v8 = vmul.f32 %v4108_v39, %v4108_v39 }
0x1a1d   :  { %4110 = vadd.xlane.f32.xlu0 %v4109_v48 }
0x1a1e   :  { %v4114_v6 = vsel %vm500_vm1, %v4113_v8, 0.0  ;;  %v7496_v8 = vpop.eup %7495 }
0x1a1f   :  { %4115 = vadd.xlane.f32.xlu1 %v4114_v6  ;;  %v4011_v6 = vadd.f32 1.0, %v7496_v8 }
0x1a3d   :  { %v4329_v43 = vpop.f32.mrb[44].mxu1 }
0x1a3e   :  { %v4334_v30 = vrot.slane %v4329_v43, 2  ;;  %v5804_v3 = vpop.f32.mrb[45].mxu1 }
0x1a40   :  { %v9649_v4 = vadd.f32 %v4334_v30, %v10361_v15 }
0x1a42   :  { %v4337_v10 = vsel %vm2162_vm5, %v9649_v4, 0.0  ;;  %v4341_v17 = vmul.f32 %v9649_v4, %v9649_v4 }
0x1a43   :  { %4338 = vadd.xlane.f32.xlu0 %v4337_v10  ;;  %v4218_v10 = vsub.f32 %v9579_v18, %v4210_v37 }
0x1a44   :  { %v4342_v16 = vsel %vm2162_vm5, %v4341_v17, 0.0  ;;  %v9673_v17 = vld [vmem:[%s9756_s10 + $0x2] ss:$0 sm:$0xff]  ;;  %s7767_s10 = smov [#allocation14]  }
0x1a45   :  { %4343 = vadd.xlane.f32.xlu1 %v4342_v16  ;;  %s4657_s11 = sshll.u32 %s7767_s10, 4  ;;  %s4658_s11 = int_to_ptr.vmem [resolvable:$true] %s4657_s11 }
0x1a46   :  { %s7719_s22 = scalar_lea.vmem %s4658_s11, 32  ;;  %p7724_p1 = scmp.lt.s32.totalorder %s4658_s11, %s4658_s11 }
0x1a47   :  { %p7720_p0 = scmp.ne.s32.totalorder %s4658_s11, %s7719_s22  ;;  %p7725_p2 = scmp.lt.s32.totalorder %s7719_s22, %s7719_s22 }
0x1a49   :  { %p7726_p3 = por %p7725_p2, %p7724_p1 }
0x1a4b   :  { %p7727_p4 = pnand %p7726_p3, %p7720_p0 }
0x1aaa   :  { %v4111_v25 = vpop.xlane.xlu0 %4110 }
0x1aab   :  { %v4112_v42 = vmul.f32 0.03125, %v4111_v25 }
0x1aac   :  { %v4116_v38 = vpop.xlane.xlu1 %4115 }
0x1aad   :  { %v4118_v12 = vmul.f32 %v4112_v42, %v4112_v42  ;;  %v4117_v5 = vmul.f32 0.03125, %v4116_v38  ;;  %v4120_v43 = vsub.f32 %v4108_v39, %v4112_v42 }
0x1aaf   :  { %v4119_v63 = vsub.f32 %v4117_v5, %v4118_v12 }
0x1ab1   :  { %v4121_v48 = vadd.f32 1e-05, %v4119_v63 }
0x1ab3   :  { %7497 = vrsqrt.f32 %v4121_v48 }
0x1ab4   :  { %7499 = vrsqrt.f32 %v4219_v9 }
0x1ab5   :  { %7501 = vrcp.f32 %v4011_v6 }
0x1abd   :  { %v7498_v30 = vpop.eup %7497 }
0x1abe   :  { %v4123_v3 = vmul.f32 %v7498_v30, %v4120_v43  ;;  %v7500_v15 = vpop.eup %7499 }
0x1abf   :  { %v4221_v21 = vmul.f32 %v7500_v15, %v4218_v10  ;;  %v7502_v29 = vpop.eup %7501 }
0x1ac0   :  { %v4124_v16 = vmul.f32 %v9673_v17, %v4123_v3  ;;  %v4127_v34 = vsub.f32 1.0, %v7502_v29 }
0x1ac1   :  { %v4222_v28 = vmul.f32 %v9471_v24, %v4221_v21 }
0x1ac2   :  { %v4125_v39 = vadd.f32 %v9679_v22, %v4124_v16  ;;  %v4128_v47 = vmul.f32 %v4127_v34, %v9481_v55 }
0x1ac3   :  { %v4223_v18 = vadd.f32 %v9477_v32, %v4222_v28 }
0x1ac4   :  { %7503 = vtanh.f32 %v4125_v39 }
0x1ac5   :  { %v4713_v41 = vmul.f32 -1.442695, %v4223_v18 }
0x1ac7   :  { %7505 = vpow2.f32 %v4713_v41 }
0x1ace   :  { %v7504_v40 = vpop.eup %7503 }
0x1acf   :  { %v4129_v52 = vmul.f32 %v7504_v40, %v7502_v29 }
0x1ad0   :  { %v4339_v46 = vpop.xlane.xlu0 %4338 }
0x1ad1   :  { %v4340_v56 = vmul.f32 0.03125, %v4339_v46  ;;  %v9685_v23 = vadd.f32 %v4129_v52, %v4128_v47  ;;  %v7506_v32 = vpop.eup %7505 }
0x1ad2   :  { %v4344_v1 = vpop.xlane.xlu1 %4343  ;;  %v4227_v25 = vadd.f32 1.0, %v7506_v32 }
0x1ad3   :  { %v4346_v37 = vmul.f32 %v4340_v56, %v4340_v56  ;;  %v4345_v13 = vmul.f32 0.03125, %v4344_v1  ;;  %v4360_v57 = vrot.slane %v9685_v23, 2  ;;  %v4348_v42 = vsub.f32 %v9649_v4, %v4340_v56 }
0x1ad5   :  { %v4347_v24 = vsub.f32 %v4345_v13, %v4346_v37  ;;  %v4363_v31 = vrot.slane %v4360_v57, 6 }
0x1ad7   :  { %v4349_v59 = vadd.f32 1e-05, %v4347_v24  ;;  %4430 = vmatprep.mubr.f32.mxu0 %v4363_v31  ;;  %4501 = vmatprep.mubr.f32.mxu1 %v4363_v31 }
0x1ad9   :  { %7507 = vrsqrt.f32 %v4349_v59 }
0x1ada   :  { %7509 = vrcp.f32 %v4227_v25 }
0x1ae3   :  { %v7508_v38 = vpop.eup %7507 }
0x1ae4   :  { %v4351_v62 = vmul.f32 %v7508_v38, %v4348_v42  ;;  %v7510_v63 = vpop.eup %7509 }
0x1ae5   :  { %v4355_v9 = vsub.f32 1.0, %v7510_v63 }
0x1ae6   :  { %v4352_v12 = vmul.f32 %v9488_v36, %v4351_v62 }
0x1ae7   :  { %v4356_v8 = vmul.f32 %v4355_v9, %v4257_v35 }
0x1ae8   :  { %v4353_v5 = vadd.f32 %v9494_v19, %v4352_v12 }
0x1aea   :  { %7511 = vtanh.f32 %v4353_v5 }
0x1af4   :  { %v7512_v48 = vpop.eup %7511 }
0x1af5   :  { %v4357_v6 = vmul.f32 %v7512_v48, %v7510_v63 }
0x1af7   :  { %v4358_v43 = vadd.f32 %v4357_v6, %v4356_v8 }
0x1af9   :  { %v4362_v30 = vrot.slane %v4358_v43, 6 }
0x1afb   :  { %4431 = vmatmul.mubr.f32.vlgmr.msra.gmra.mrb[34].mxu0 %v4362_v30  ;;  %4502 = vmatmul.mubr.f32.vlgmr.msra.gmra.mrb[46].mxu1 %v4362_v30 }
0x1afc   :  { %7234 = vmatpush3.bf16.msra.mxu1 %v8370_v50  ;;  %5837 = vmatprep.mubr.msk.f32.mxu1 %vm7766_vm2, %v9966_v58 }
0x1afd   :  { %7235 = vmatprep.subr.bf16.mxu1 %v9975_v2 }
0x1b00   :  { %7237 = vmatpush3.bf16.msra.mxu1 %v8379_v49 }
0x1b01   :  { %7238 = vmatprep.subr.bf16.mxu1 %v9975_v2 }
0x1b04   :  { %7240 = vmatpush3.bf16.msra.mxu1 %v8388_v60 }
0x1b05   :  { %7241 = vmatprep.subr.bf16.mxu1 %v9975_v2 }
0x1b08   :  { %7243 = vmatpush3.bf16.msra.mxu1 %v8396_v54 }
0x1b09   :  { %7244 = vmatprep.subr.bf16.mxu1 %v9975_v2 }
0x1b0c   :  { %7246 = vmatpush3.bf16.msra.mxu1 %v8400_v0 }
0x1b0d   :  { %7247 = vmatprep.subr.bf16.mxu1 %v9975_v2 }
0x1b10   :  { %7249 = vmatpush3.bf16.msra.mxu1 %v8404_v51 }
0x1b11   :  { %7250 = vmatprep.subr.bf16.mxu1 %v9975_v2 }
0x1b14   :  { %7252 = vmatpush3.bf16.msra.mxu1 %v8408_v61 }
0x1b15   :  { %7253 = vmatprep.subr.bf16.mxu1 %v9975_v2 }
0x1b18   :  { %7255 = vmatpush3.bf16.msra.mxu1 %v8412_v44 }
0x1bce   :  { %v4432_v50 = vpop.f32.mrb[34].mxu0  ;;  %v5253_v49 = vpop.f32.mrb[46].mxu1 }
0x1bcf   :  { %v4434_v58 = vpop.f32.mrb[35].mxu0  ;;  %v5254_v60 = vpop.f32.mrb[47].mxu1  ;;  %v4433_v54 = vadd.f32 %v4432_v50, %v10332_v45 }
0x1bd0   :  { %v4435_v0 = vadd.f32 %v4434_v58, %v10331_v33  ;;  %v5255_v36 = vadd.f32 %v5254_v60, %v5253_v49 }
0x1bd1   :  { %v4511_v61 = vmul.f32 %v4433_v54, %v4433_v54  ;;  %v4507_v2 = vsel %vm500_vm1, %v4433_v54, 0.0 }
0x1bd2   :  { %v4530_v19 = vsel %vm500_vm1, %v4435_v0, 0.0  ;;  %v4534_v51 = vmul.f32 %v4435_v0, %v4435_v0  ;;  %v4504_v47 = vadd.f32 %v5255_v36, %v10360_v7  ;;  %v10363_v36 = vld [vmem:[#allocation35_spill] sm:$0xff] }
0x1bd3   :  { %4531 = vadd.xlane.f32.xlu0 %v4530_v19  ;;  %v4512_v44 = vsel %vm500_vm1, %v4511_v61, 0.0 }
0x1bd4   :  { %v4535_v27 = vsel %vm500_vm1, %v4534_v51, 0.0 }
0x1bd5   :  { %4536 = vadd.xlane.f32.xlu1 %v4535_v27  ;;  %v10364_v27 = vld [vmem:[#allocation41_spill] sm:$0xff] }
0x1bd7   :  { %4508 = vadd.xlane.f32.xlu0 %v4507_v2  ;;  %v10365_v2 = vld [vmem:[#allocation25_spill] sm:$0xff] }
0x1bd9   :  { %4513 = vadd.xlane.f32.xlu1 %v4512_v44 }
0x1c60   :  { %v4532_v35 = vpop.xlane.xlu0 %4531 }
0x1c61   :  { %v4533_v4 = vmul.f32 0.03125, %v4532_v35 }
0x1c62   :  { %v4537_v45 = vpop.xlane.xlu1 %4536 }
0x1c63   :  { %v4539_v3 = vmul.f32 %v4533_v4, %v4533_v4  ;;  %v4538_v33 = vmul.f32 0.03125, %v4537_v45  ;;  %v4541_v16 = vsub.f32 %v4435_v0, %v4533_v4  ;;  %v10362_v0 = vld [vmem:[#allocation77_spill] sm:$0xff] }
0x1c64   :  { %v1569_v19 = vadd.f32 %v10363_v36, %v10362_v0 }
0x1c65   :  { %v4540_v15 = vsub.f32 %v4538_v33, %v4539_v3 }
0x1c66   :  { %v4514_v24 = vpop.xlane.xlu1 %4513  ;;  %v2086_v61 = vadd.f32 %v10364_v27, %v1569_v19 }
0x1c67   :  { %v4542_v10 = vadd.f32 1e-05, %v4540_v15  ;;  %v4515_v59 = vmul.f32 0.03125, %v4514_v24 }
0x1c68   :  { %v2603_v44 = vadd.f32 %v10365_v2, %v2086_v61 }
0x1c69   :  { %7513 = vrsqrt.f32 %v4542_v10 }
0x1c6a   :  { %v3098_v4 = vadd.f32 %v9296_v26, %v2603_v44 }
0x1c6c   :  { %v3615_v3 = vadd.f32 %v9481_v55, %v3098_v4 }
0x1c73   :  { %v7514_v21 = vpop.eup %7513 }
0x1c74   :  { %v4544_v39 = vmul.f32 %v7514_v21, %v4541_v16 }
0x1c76   :  { %v4545_v28 = vmul.f32 %v9595_v11, %v4544_v39 }
0x1c78   :  { %v4546_v29 = vadd.f32 %v9601_v20, %v4545_v28  ;;  %v4509_v20 = vpop.xlane.xlu0 %4508 }
0x1c79   :  { %v4510_v57 = vmul.f32 0.03125, %v4509_v20 }
0x1c7a   :  { %v4716_v18 = vmul.f32 -1.442695, %v4546_v29 }
0x1c7b   :  { %v4516_v31 = vmul.f32 %v4510_v57, %v4510_v57  ;;  %v4518_v7 = vsub.f32 %v4433_v54, %v4510_v57 }
0x1c7c   :  { %7515 = vpow2.f32 %v4716_v18 }
0x1c7d   :  { %v4517_v32 = vsub.f32 %v4515_v59, %v4516_v31 }
0x1c7f   :  { %v4519_v25 = vadd.f32 1e-05, %v4517_v32 }
0x1c86   :  { %v7516_v34 = vpop.eup %7515 }
0x1c87   :  { %v4550_v40 = vadd.f32 1.0, %v7516_v34 }
0x1c89   :  { %7517 = vrcp.f32 %v4550_v40 }
0x1c8a   :  { %7519 = vrsqrt.f32 %v4519_v25 }
0x1c93   :  { %v7518_v41 = vpop.eup %7517 }
0x1c94   :  { %v4553_v46 = vmul.f32 %v7518_v41, %v9685_v23  ;;  %v7520_v42 = vpop.eup %7519 }
0x1c95   :  { %v4521_v38 = vmul.f32 %v7520_v42, %v4518_v7 }
0x1c96   :  { %5838 = vmatmul.mubr.f32.vlgmr.msra.gmra.mrb[48].mxu1 %v4553_v46 }
0x1c97   :  { %v4522_v62 = vmul.f32 %v9660_v53, %v4521_v38 }
0x1c99   :  { %v4523_v12 = vadd.f32 %v9666_v14, %v4522_v62 }
0x1c9b   :  { %v4715_v5 = vmul.f32 -1.442695, %v4523_v12 }
0x1c9d   :  { %7521 = vpow2.f32 %v4715_v5 }
0x1ca7   :  { %v7522_v50 = vpop.eup %7521 }
0x1ca8   :  { %v4527_v49 = vadd.f32 1.0, %v7522_v50 }
0x1d69   :  { %v4620_v52 = vpop.f32.mrb[48].mxu1 }
0x1d6a   :  { %v4624_v56 = vadd.f32 %v4620_v52, %v4504_v47  ;;  %v5839_v1 = vpop.f32.mrb[49].mxu1 }
0x1d6c   :  { %v4625_v37 = vsel %vm500_vm1, %v4624_v56, 0.0  ;;  %v4629_v13 = vmul.f32 %v4624_v56, %v4624_v56 }
0x1d6d   :  { %4626 = vadd.xlane.f32.xlu0 %v4625_v37 }
0x1d6e   :  { %v4630_v11 = vsel %vm500_vm1, %v4629_v13, 0.0 }
0x1d6f   :  { %4631 = vadd.xlane.f32.xlu1 %v4630_v11 }
0x1dfa   :  { %v4627_v63 = vpop.xlane.xlu0 %4626 }
0x1dfb   :  { %v4628_v9 = vmul.f32 0.03125, %v4627_v63 }
0x1dfc   :  { %v4632_v48 = vpop.xlane.xlu1 %4631 }
0x1dfd   :  { %v4634_v8 = vmul.f32 %v4628_v9, %v4628_v9  ;;  %v4633_v6 = vmul.f32 0.03125, %v4632_v48  ;;  %v4636_v58 = vsub.f32 %v4624_v56, %v4628_v9 }
0x1dff   :  { %v4635_v43 = vsub.f32 %v4633_v6, %v4634_v8 }
0x1e01   :  { %v4637_v30 = vadd.f32 1e-05, %v4635_v43 }
0x1e03   :  { %7523 = vrsqrt.f32 %v4637_v30 }
0x1e04   :  { %7525 = vrcp.f32 %v4527_v49 }
0x1e0d   :  { %v7524_v60 = vpop.eup %7523 }
0x1e0e   :  { %v4639_v54 = vmul.f32 %v7524_v60, %v4636_v58  ;;  %v7526_v51 = vpop.eup %7525 }
0x1e0f   :  { %v4643_v35 = vsub.f32 1.0, %v7526_v51 }
0x1e10   :  { %v4640_v53 = vmul.f32 %v9673_v17, %v4639_v54 }
0x1e11   :  { %v4644_v33 = vmul.f32 %v4643_v35, %v9685_v23 }
0x1e12   :  { %v4641_v14 = vadd.f32 %v9679_v22, %v4640_v53  ;;  %v4131_v22 = vadd.f32 %v9685_v23, %v3615_v3 }
0x1e14   :  { %7527 = vtanh.f32 %v4641_v14 }
0x1e1e   :  { %v7528_v45 = vpop.eup %7527 }
0x1e1f   :  { %v4645_v17 = vmul.f32 %v7528_v45, %v7526_v51 }
0x1e21   :  { %v4646_v15 = vadd.f32 %v4645_v17, %v4644_v33 }
0x1e23   :  { %v4647_v10 = vadd.f32 %v4646_v15, %v4131_v22 }
0x1e25   :  { %v4648_v16 = vmul.f32 0.125, %v4647_v10 }
0x1e27   :  { %4650 = vst.msk [vmem:[#allocation14] sm:$0x3] %vm4649_vm6, %v4648_v16 }
0x1e28   :  { %7730 = shalt.err (!%p7727_p4)
}
0x1e29   :  { %s7731_s17 = scalar_lea.hbm %s9758_s12, 32 }
0x1e2a   :  { %p7732_p5 = scmp.ne.s32.totalorder %s9758_s12, %s7731_s17  ;;  %p7735_p6 = scmp.lt.u32.totalorder %s7731_s17, %s9758_s12 }
0x1e2c   :  { %p7737_p7 = pnand %p7735_p6, %p7732_p5 }
0x1e2e   :  { %7740 = shalt.err (!%p7737_p7)
}
0x1e2f   :  { %4660 = dma.vmem_to_hbm [thread:$0]  %s4658_s11, 32, %s9758_s12, [#allocation4]  }
0x1e30   :  { %7749 = dma.done.wait [#allocation4], 32  }
0x1e31   :  { %7750 = vsyncadd [#allocation4], 4294967264 }
0x1e32   :  { %4664 = vsyncpa [#allocation3], 1 }
0x1e33   :  { %4665 = vsyncpa [#allocation6], 1 }
0x1e34   :  { %4666 = vsyncpa [#allocation9], 1 }
0x1e35   :  { %4667 = vsyncpa [#allocation12], 1 }
0x1e36   :  { %4668 = vsyncpa [#allocation4], 1 }

</bundles_post_ra>
